<compile_context>
chip_gen: v7x
topology: tpu7x:2x2x1
jax: 0.10.0
libtpu: 0.0.40
codegen_flags: <defaults>
</compile_context>

<pallas_src>
import math
from functools import partial

import jax
import jax.numpy as jnp
from jax import lax
from jax.experimental import pallas as pl
from jax.experimental.pallas import tpu as pltpu

EPS = 1e-5
_K_SINGLE_MAX = 2048          # every contraction in this model has K <= 512
_VMEM_LIMIT = 32 * 1024 * 1024


def _round_up(x, m):
    return (x + m - 1) // m * m


# --------------------------------------------------------------------------
# Pallas kernel: fused  relu( sum_i x_i @ w_i )  — bf16 in/out, f32 accumulate
# --------------------------------------------------------------------------
def _fused_1x1_kernel(*refs, n_in, relu):
    x_refs = refs[:n_in]
    w_refs = refs[n_in:2 * n_in]
    o_ref = refs[2 * n_in]
    y = jnp.dot(x_refs[0][...], w_refs[0][...],
                preferred_element_type=jnp.float32)
    for i in range(1, n_in):
        y += jnp.dot(x_refs[i][...], w_refs[i][...],
                     preferred_element_type=jnp.float32)
    if relu:
        y = jnp.maximum(y, 0.0)            # ReLU on the f32 accumulator (v5e-safe)
    o_ref[...] = y.astype(o_ref.dtype)     # bf16 store: halves output writeback


def fused_1x1_matmul(xs, ws, *, relu):
    """bf16 out = relu_opt( sum_i xs[i] @ ws[i] ).

    xs: list of (M, K) bf16 activations; ws: list of (K, N) bf16 weights with the
    BN scale and any per-skip scalar gate already folded in (so the weighted
    skip-sum + 1x1 conv collapses to a sum of matmuls with a shared f32 acc).
    """
    n_in = len(xs)
    M, K = xs[0].shape
    N = ws[0].shape[1]

    # Tiny / narrow problems: the pallas_call launch + pipeline prologue would
    # dominate and N < 64 outputs hit masked partial stores -> plain dot that
    # XLA fuses with its elementwise neighbours (review item 4).
    min_n = 128 if n_in == 1 else 64
    pallas_ok = (M >= 256 and N >= min_n and K <= _K_SINGLE_MAX
                 and (N <= 256 or N % 128 == 0))
    if not pallas_ok:
        y = jnp.dot(xs[0], ws[0], preferred_element_type=jnp.float32)
        for i in range(1, n_in):
            y += jnp.dot(xs[i], ws[i], preferred_element_type=jnp.float32)
        if relu:
            y = jnp.maximum(y, 0.0)
        return y.astype(jnp.bfloat16)

    # Tiles: multiples of 128 (bf16 sublane packing), and >= 2 steps along M
    # whenever possible so both v7x TensorCores get work (single-core chips are
    # unaffected).  K is taken as a single full-extent block (K <= 512 here),
    # so there is no accumulator scratch and no init/finalize revisits.
    if M >= 2048:
        tm = 512
    elif M >= 512:
        tm = 256
    else:
        tm = 128
    if N <= 256:
        tn = N                              # full-extent, lane-dense output block
    elif N % 256 == 0:
        tn = 256
    else:
        tn = 128

    Mp = _round_up(M, tm)
    if Mp != M:                             # never triggers for this network's shapes
        xs = [jnp.pad(x, ((0, Mp - M), (0, 0))) for x in xs]

    x_spec = pl.BlockSpec((tm, K), lambda i, j: (i, 0))
    w_spec = pl.BlockSpec((K, tn), lambda i, j: (0, j))

    out = pl.pallas_call(
        partial(_fused_1x1_kernel, n_in=n_in, relu=relu),
        out_shape=jax.ShapeDtypeStruct((Mp, N), jnp.bfloat16),
        grid_spec=pltpu.PrefetchScalarGridSpec(
            num_scalar_prefetch=0,
            grid=(Mp // tm, N // tn),
            in_specs=[x_spec] * n_in + [w_spec] * n_in,
            out_specs=pl.BlockSpec((tm, tn), lambda i, j: (i, j)),
        ),
        compiler_params=pltpu.CompilerParams(
            dimension_semantics=("parallel", "parallel"),
            vmem_limit_bytes=_VMEM_LIMIT),
    )(*xs, *ws)

    return out[:M] if Mp != M else out


# --------------------------------------------------------------------------
# Conv wrappers (NHWC, bf16), maxpool, bilinear upsample
# --------------------------------------------------------------------------
def conv1x1(xs, coefs, p, relu):
    """Fused weighted skip-sum + 1x1 conv (+folded BN) (+ReLU) on NHWC bf16 inputs.

    xs: list of NHWC tensors of identical shape; coefs: matching list of scalar
    gates (python 1.0 or a traced f32 scalar).  Each gate is folded into its own
    copy of the (tiny) weight so the kernel is a pure sum of matmuls.
    """
    w = p["w"]
    _, _, cin, cout = w.shape
    s = p["stride"]
    if s > 1:
        xs = [x[:, ::s, ::s, :] for x in xs]
    Nb, H, W, _ = xs[0].shape
    M = Nb * H * W
    w2 = w.reshape(cin, cout)
    ws = []
    for c in coefs:
        wc = w2 if (isinstance(c, float) and c == 1.0) else w2 * c
        ws.append(wc.astype(jnp.bfloat16))
    xflat = [x.reshape(M, cin) for x in xs]
    y = fused_1x1_matmul(xflat, ws, relu=relu)
    return y.reshape(Nb, H, W, cout)


def apply_conv(x, p, relu=True):
    """x: NHWC bf16, p['w']: (kh, kw, cin, cout) with BN scale folded in."""
    w = p["w"]
    kh, kw = w.shape[0], w.shape[1]
    if kh == 1 and kw == 1 and p["pad"] == 0:
        return conv1x1([x], [1.0], p, relu)

    # k>1 convs: XLA native implicit-GEMM conv (bf16 in, f32 accumulate,
    # ReLU + bf16 cast fused into the epilogue).
    s, pad = p["stride"], p["pad"]
    y = lax.conv_general_dilated(
        x.astype(jnp.bfloat16), w.astype(jnp.bfloat16),
        window_strides=(s, s),
        padding=((pad, pad), (pad, pad)),
        dimension_numbers=("NHWC", "HWIO", "NHWC"),
        preferred_element_type=jnp.float32)
    if relu:
        y = jnp.maximum(y, 0.0)
    return y.astype(jnp.bfloat16)


def maxpool_3x3_s2_p1(x):
    return lax.reduce_window(
        x, jnp.array(-jnp.inf, x.dtype), lax.max,
        window_dimensions=(1, 3, 3, 1),
        window_strides=(1, 2, 2, 1),
        padding=((0, 0), (1, 1), (1, 1), (0, 0)))


def _interp_matrix(n_in):
    """Dense (2*n_in, n_in) bilinear interpolation matrix, align_corners=True."""
    n_out = 2 * n_in
    if n_in == 1:
        return jnp.ones((n_out, 1), jnp.float32)
    src = jnp.arange(n_out, dtype=jnp.float32) * (n_in - 1) / (n_out - 1)
    i0 = jnp.floor(src).astype(jnp.int32)
    i1 = jnp.minimum(i0 + 1, n_in - 1)
    f = src - i0.astype(jnp.float32)
    return (jax.nn.one_hot(i0, n_in, dtype=jnp.float32) * (1.0 - f)[:, None]
            + jax.nn.one_hot(i1, n_in, dtype=jnp.float32) * f[:, None])


def upsample_bilinear_x2(x, relu=False):
    """F.interpolate(scale_factor=2, mode='bilinear', align_corners=True), NHWC.

    Both passes are broadcast-batched GEMMs that contract over the dim directly
    above the channel dim, so C stays minor/contiguous (no full-tensor
    transposes).  The ReLU commuted past the upsample is fused here.
    """
    N, H, W, C = x.shape
    dt = x.dtype
    Ih = _interp_matrix(H).astype(dt)[None]          # (1, 2H, H)
    Iw = _interp_matrix(W).astype(dt)[None]          # (1, 2W, W)
    y = jnp.matmul(Ih, x.reshape(N, H, W * C),
                   preferred_element_type=jnp.float32).astype(dt)   # (N, 2H, W*C)
    y = y.reshape(N * 2 * H, W, C)
    z = jnp.matmul(Iw, y, preferred_element_type=jnp.float32)       # (N*2H, 2W, C)
    z = z.reshape(N, 2 * H, 2 * W, C)
    if relu:
        z = jnp.maximum(z, 0.0)
    return z.astype(dt)


# --------------------------------------------------------------------------
# Deterministic parameter construction (BN folded, weights in HWIO, f32 master)
# --------------------------------------------------------------------------
class KeyGen:
    def __init__(self, key):
        self.key = key

    def __call__(self):
        self.key, sub = jax.random.split(self.key)
        return sub


def kaiming_uniform(key, shape):
    # shape = (kh, kw, cin, cout); fan_in = kh*kw*cin (matches kaiming_uniform_).
    fan_in = shape[0] * shape[1] * shape[2]
    bound = math.sqrt(6.0 / fan_in)
    return jax.random.uniform(key, shape, jnp.float32, -bound, bound)


def make_conv_bn(kg, cin, cout, k, stride, pad, gamma_std=0.0):
    """Conv(k,k) followed by eval-mode BN: fold scale into the cout axis."""
    w = kaiming_uniform(kg(), (k, k, cin, cout))
    if gamma_std > 0:
        gamma = 1.0 + gamma_std * jax.random.normal(kg(), (cout,), jnp.float32)
    else:
        gamma = jnp.ones((cout,), jnp.float32)
    scale = gamma / jnp.sqrt(1.0 + EPS)          # eval BN: mean=0, var=1, beta=0
    return dict(w=w * scale[None, None, None, :], stride=stride, pad=pad)


def make_basic_block(kg, cin, cout, stride):
    return dict(
        conv1=make_conv_bn(kg, cin, cout, 3, stride, 1),
        conv2=make_conv_bn(kg, cout, cout, 3, 1, 1),
        down=(make_conv_bn(kg, cin, cout, 1, stride, 0)
              if (stride != 1 or cin != cout) else None),
    )


def make_resnet34(kg):
    def layer(cin, cout, n, stride):
        blocks = [make_basic_block(kg, cin, cout, stride)]
        for _ in range(n - 1):
            blocks.append(make_basic_block(kg, cout, cout, 1))
        return blocks

    return dict(
        conv1=make_conv_bn(kg, 3, 64, 7, 2, 3),
        layer1=layer(64, 64, 3, 1),
        layer2=layer(64, 128, 4, 2),
        layer3=layer(128, 256, 6, 2),
        layer4=layer(256, 512, 3, 2),
    )


def make_vgg_block(kg, cin, cmid, cout):
    # VGGBlock applies BN *before* each conv; fold BN (beta=0) onto the cin axis.
    g1 = 1.0 + 0.02 * jax.random.normal(kg(), (cin,), jnp.float32)
    w1 = kaiming_uniform(kg(), (1, 1, cin, cmid)) \
        * (g1 / jnp.sqrt(1.0 + EPS))[None, None, :, None]
    g2 = 1.0 + 0.02 * jax.random.normal(kg(), (cmid,), jnp.float32)
    w2 = kaiming_uniform(kg(), (3, 3, cmid, cout)) \
        * (g2 / jnp.sqrt(1.0 + EPS))[None, None, :, None]
    return dict(
        c1=dict(w=w1, stride=1, pad=0),
        c2=dict(w=w2, stride=1, pad=1),
    )


def make_decoder_block(kg, cin, cout):
    return dict(
        c3=make_conv_bn(kg, cin, cin, 3, 1, 1, gamma_std=0.02),
        c1=make_conv_bn(kg, cin, cout, 1, 1, 0, gamma_std=0.02),
    )


def make_head(kg, cin, num_classes):
    # conv_1x1_2 has a bias that is zero-initialized in the reference -> omitted.
    return dict(
        c1=make_conv_bn(kg, cin, 32, 1, 1, 0, gamma_std=0.02),
        c2=make_conv_bn(kg, 32, 32, 3, 1, 1, gamma_std=0.02),
        cf=dict(w=kaiming_uniform(kg(), (1, 1, 32, num_classes)), stride=1, pad=0),
    )


def make_params(key, num_classes):
    kg = KeyGen(key)
    nb = [64, 64, 128, 256, 512]
    p = {}
    p["up0_1"] = make_decoder_block(kg, nb[1], nb[0])
    p["up1_1"] = make_decoder_block(kg, nb[2], nb[1])
    p["up0_2"] = make_decoder_block(kg, nb[1], nb[0])
    p["up2_1"] = make_decoder_block(kg, nb[3], nb[2])
    p["up1_2"] = make_decoder_block(kg, nb[2], nb[1])
    p["up0_3"] = make_decoder_block(kg, nb[1], nb[0])
    p["up3_1"] = make_decoder_block(kg, nb[4], nb[3])
    p["up2_2"] = make_decoder_block(kg, nb[3], nb[2])
    p["up1_3"] = make_decoder_block(kg, nb[2], nb[1])
    p["up0_4"] = make_decoder_block(kg, nb[1], nb[0])
    p["Params_0"] = jnp.zeros((6,), jnp.float32)
    p["Params_1"] = jnp.zeros((3,), jnp.float32)
    p["Params_2"] = jnp.zeros((1,), jnp.float32)
    p["backbone"] = make_resnet34(kg)
    p["conv0_1"] = make_vgg_block(kg, nb[0], nb[0], nb[0])
    p["conv1_1"] = make_vgg_block(kg, nb[1], nb[1], nb[1])
    p["conv2_1"] = make_vgg_block(kg, nb[2], nb[2], nb[2])
    p["conv3_1"] = make_vgg_block(kg, nb[3], nb[3], nb[3])
    p["conv0_2"] = make_vgg_block(kg, nb[0], nb[0], nb[0])
    p["conv1_2"] = make_vgg_block(kg, nb[1], nb[1], nb[1])
    p["conv2_2"] = make_vgg_block(kg, nb[2], nb[2], nb[2])
    p["conv0_3"] = make_vgg_block(kg, nb[0], nb[0], nb[0])
    p["conv1_3"] = make_vgg_block(kg, nb[1], nb[1], nb[1])
    p["conv0_4"] = make_vgg_block(kg, nb[0], nb[0], nb[0])
    p["final"] = make_head(kg, nb[0], num_classes)
    return p


# --------------------------------------------------------------------------
# Module forward passes (NHWC bf16 internally)
# --------------------------------------------------------------------------
def basic_block_fwd(x, blk):
    h = apply_conv(x, blk["conv1"], relu=True)
    h = apply_conv(h, blk["conv2"], relu=False)
    idt = x if blk["down"] is None else apply_conv(x, blk["down"], relu=False)
    return jnp.maximum(h + idt, 0.0)


def layer_fwd(x, blocks):
    for blk in blocks:
        x = basic_block_fwd(x, blk)
    return x


def vgg_fwd(xs, coefs, p):
    # Fused: BN(folded) + weighted skip-sum + 1x1 conv + ReLU in one Pallas call.
    x = conv1x1(xs, coefs, p["c1"], relu=True)
    x = apply_conv(x, p["c2"], relu=True)     # BN(folded) + 3x3 + ReLU
    return x


def decoder_fwd(x, p):
    x = apply_conv(x, p["c3"], relu=True)            # 3x3 + BN + ReLU
    x = conv1x1([x], [1.0], p["c1"], relu=False)     # 1x1 + BN at pre-upsample res
    return upsample_bilinear_x2(x, relu=True)        # x2 up, then ReLU (commuted)


def head_fwd(x, p):
    x = conv1x1([x], [1.0], p["c1"], relu=False)     # 1x1 at pre-upsample res
    x = upsample_bilinear_x2(x, relu=True)           # x2 up, then ReLU (commuted)
    x = apply_conv(x, p["c2"], relu=True)
    x = apply_conv(x, p["cf"], relu=False)
    return x


def resunet_pp_forward(params, x_nchw):
    x = jnp.transpose(x_nchw, (0, 2, 3, 1)).astype(jnp.bfloat16)  # NCHW -> NHWC
    P0, P1, P2 = params["Params_0"], params["Params_1"], params["Params_2"]
    bb = params["backbone"]

    x0_0 = apply_conv(x, bb["conv1"], relu=True)
    x1_0 = layer_fwd(maxpool_3x3_s2_p1(x0_0), bb["layer1"])
    x0_1 = vgg_fwd([x0_0, decoder_fwd(x1_0, params["up0_1"])], [1.0, 1.0],
                   params["conv0_1"])
    x2_0 = layer_fwd(x1_0, bb["layer2"])
    x1_1 = vgg_fwd([x1_0, decoder_fwd(x2_0, params["up1_1"])], [1.0, 1.0],
                   params["conv1_1"])
    x0_2 = vgg_fwd([x0_0, x0_1, decoder_fwd(x1_1, params["up0_2"])],
                   [P0[0], 1.0, 1.0], params["conv0_2"])
    x3_0 = layer_fwd(x2_0, bb["layer3"])
    x2_1 = vgg_fwd([x2_0, decoder_fwd(x3_0, params["up2_1"])], [1.0, 1.0],
                   params["conv2_1"])
    x1_2 = vgg_fwd([x1_0, x1_1, decoder_fwd(x2_1, params["up1_2"])],
                   [P1[0], 1.0, 1.0], params["conv1_2"])
    x0_3 = vgg_fwd([x0_0, x0_1, x0_2, decoder_fwd(x1_2, params["up0_3"])],
                   [P0[1], P0[2], 1.0, 1.0], params["conv0_3"])
    x4_0 = layer_fwd(x3_0, bb["layer4"])
    x3_1 = vgg_fwd([x3_0, decoder_fwd(x4_0, params["up3_1"])], [1.0, 1.0],
                   params["conv3_1"])
    x2_2 = vgg_fwd([x2_0, x2_1, decoder_fwd(x3_1, params["up2_2"])],
                   [P2[0], 1.0, 1.0], params["conv2_2"])
    x1_3 = vgg_fwd([x1_0, x1_1, x1_2, decoder_fwd(x2_2, params["up1_3"])],
                   [P1[1], P1[2], 1.0, 1.0], params["conv1_3"])
    x0_4 = vgg_fwd([x0_0, x0_1, x0_2, x0_3, decoder_fwd(x1_3, params["up0_4"])],
                   [P0[3], P0[4], P0[5], 1.0, 1.0], params["conv0_4"])
    out = head_fwd(x0_4, params["final"])
    out = jax.nn.sigmoid(out.astype(jnp.float32))
    return jnp.transpose(out, (0, 3, 1, 2))   # NHWC -> NCHW once, f32 out


# --------------------------------------------------------------------------
if __name__ == "__main__":
    key = jax.random.PRNGKey(0)
    pkey, xkey = jax.random.split(key)

    num_classes = 1
    params = make_params(pkey, num_classes)

    # ResNet34 stem needs 3 input channels; 64x64 keeps the deepest map at 2x2.
    x = jax.random.normal(xkey, (2, 3, 64, 64), jnp.float32)

    # Weights (and static stride/pad ints) are closed over so the whole forward
    # is one jitted graph; only the image is a traced argument.
    forward = jax.jit(lambda inp: resunet_pp_forward(params, inp))

    out = forward(x)
    out = jax.block_until_ready(out)

    assert out.shape == (2, num_classes, 64, 64), out.shape
    assert bool(jnp.all(jnp.isfinite(out)))
    assert bool(jnp.all((out >= 0.0) & (out <= 1.0)))
    print("KERNEL_OK")
</pallas_src>

<mosaic_0001>
module attributes {stable_mosaic.version = 11 : i64} {
  func.func @_fused_1x1_kernel(%arg0: i32, %arg1: i32, %arg2: memref<256x64xbf16, #tpu.memory_space<vmem>>, %arg3: memref<256x64xbf16, #tpu.memory_space<vmem>>, %arg4: memref<64x64xbf16, #tpu.memory_space<vmem>>, %arg5: memref<64x64xbf16, #tpu.memory_space<vmem>>, %arg6: memref<256x64xbf16, #tpu.memory_space<vmem>>) attributes {dimension_semantics = [#tpu.dimension_semantics<parallel>, #tpu.dimension_semantics<parallel>], iteration_bounds = array<i64: 2, 1>, scalar_prefetch = 0 : i64, scratch_operands = 0 : i64, tpu.core_type = #tpu.core_type<tc>, window_params = [{transform_indices = @transform_0, window_bounds = array<i64: 256, 64>}, {transform_indices = @transform_1, window_bounds = array<i64: 256, 64>}, {transform_indices = @transform_2, window_bounds = array<i64: 64, 64>}, {transform_indices = @transform_3, window_bounds = array<i64: 64, 64>}, {transform_indices = @transform_4, window_bounds = array<i64: 256, 64>}]} {
    %c0 = arith.constant 0 : index
    %c0_0 = arith.constant 0 : index
    %0 = vector.load %arg2[%c0, %c0_0] : memref<256x64xbf16, #tpu.memory_space<vmem>>, vector<256x64xbf16>
    %c0_1 = arith.constant 0 : index
    %c0_2 = arith.constant 0 : index
    %1 = vector.load %arg4[%c0_1, %c0_2] : memref<64x64xbf16, #tpu.memory_space<vmem>>, vector<64x64xbf16>
    %cst = arith.constant dense<0.000000e+00> : vector<256x64xf32>
    %2 = tpu.matmul %0, %1, %cst {dimension_numbers = #tpu.dot_dimension_numbers<[1], [0], [0], [1], [0, 0, 1, 1], [], []>} : vector<256x64xbf16>, vector<64x64xbf16>, vector<256x64xf32> -> vector<256x64xf32>
    %c0_3 = arith.constant 0 : index
    %c0_4 = arith.constant 0 : index
    %3 = vector.load %arg3[%c0_3, %c0_4] : memref<256x64xbf16, #tpu.memory_space<vmem>>, vector<256x64xbf16>
    %c0_5 = arith.constant 0 : index
    %c0_6 = arith.constant 0 : index
    %4 = vector.load %arg5[%c0_5, %c0_6] : memref<64x64xbf16, #tpu.memory_space<vmem>>, vector<64x64xbf16>
    %cst_7 = arith.constant dense<0.000000e+00> : vector<256x64xf32>
    %5 = tpu.matmul %3, %4, %cst_7 {dimension_numbers = #tpu.dot_dimension_numbers<[1], [0], [0], [1], [0, 0, 1, 1], [], []>} : vector<256x64xbf16>, vector<64x64xbf16>, vector<256x64xf32> -> vector<256x64xf32>
    %6 = arith.addf %2, %5 : vector<256x64xf32>
    %cst_8 = arith.constant 0.000000e+00 : f32
    %7 = vector.broadcast %cst_8 : f32 to vector<256x64xf32>
    %8 = arith.maximumf %6, %7 : vector<256x64xf32>
    %9 = arith.truncf %8 : vector<256x64xf32> to vector<256x64xbf16>
    %c0_9 = arith.constant 0 : index
    %c0_10 = arith.constant 0 : index
    %10 = vector.load %arg6[%c0_9, %c0_10] : memref<256x64xbf16, #tpu.memory_space<vmem>>, vector<256x64xbf16>
    tpu.vector_store %arg6[%c0_9, %c0_10], %9 {strides = array<i32>} : memref<256x64xbf16, #tpu.memory_space<vmem>>, vector<256x64xbf16>,
    return
  }
  func.func @transform_0(%arg0: i32, %arg1: i32) -> (i32, i32) {
    %c0_i32 = arith.constant 0 : i32
    %c0_i32_0 = arith.constant 0 : i32
    return %arg0, %c0_i32 : i32, i32
  }
  func.func @transform_1(%arg0: i32, %arg1: i32) -> (i32, i32) {
    %c0_i32 = arith.constant 0 : i32
    %c0_i32_0 = arith.constant 0 : i32
    return %arg0, %c0_i32 : i32, i32
  }
  func.func @transform_2(%arg0: i32, %arg1: i32) -> (i32, i32) {
    %c0_i32 = arith.constant 0 : i32
    %c0_i32_0 = arith.constant 0 : i32
    return %c0_i32, %arg1 : i32, i32
  }
  func.func @transform_3(%arg0: i32, %arg1: i32) -> (i32, i32) {
    %c0_i32 = arith.constant 0 : i32
    %c0_i32_0 = arith.constant 0 : i32
    return %c0_i32, %arg1 : i32, i32
  }
  func.func @transform_4(%arg0: i32, %arg1: i32) -> (i32, i32) {
    %c0_i32 = arith.constant 0 : i32
    return %arg0, %arg1 : i32, i32
  }
}

module attributes {stable_mosaic.version = 11 : i64} {
  func.func @_fused_1x1_kernel(%arg0: i32, %arg1: i32, %arg2: memref<256x64xbf16, #tpu.memory_space<vmem>>, %arg3: memref<256x64xbf16, #tpu.memory_space<vmem>>, %arg4: memref<256x64xbf16, #tpu.memory_space<vmem>>, %arg5: memref<64x64xbf16, #tpu.memory_space<vmem>>, %arg6: memref<64x64xbf16, #tpu.memory_space<vmem>>, %arg7: memref<64x64xbf16, #tpu.memory_space<vmem>>, %arg8: memref<256x64xbf16, #tpu.memory_space<vmem>>) attributes {dimension_semantics = [#tpu.dimension_semantics<parallel>, #tpu.dimension_semantics<parallel>], iteration_bounds = array<i64: 2, 1>, scalar_prefetch = 0 : i64, scratch_operands = 0 : i64, tpu.core_type = #tpu.core_type<tc>, window_params = [{transform_indices = @transform_0, window_bounds = array<i64: 256, 64>}, {transform_indices = @transform_1, window_bounds = array<i64: 256, 64>}, {transform_indices = @transform_2, window_bounds = array<i64: 256, 64>}, {transform_indices = @transform_3, window_bounds = array<i64: 64, 64>}, {transform_indices = @transform_4, window_bounds = array<i64: 64, 64>}, {transform_indices = @transform_5, window_bounds = array<i64: 64, 64>}, {transform_indices = @transform_6, window_bounds = array<i64: 256, 64>}]} {
    %c0 = arith.constant 0 : index
    %c0_0 = arith.constant 0 : index
    %0 = vector.load %arg2[%c0, %c0_0] : memref<256x64xbf16, #tpu.memory_space<vmem>>, vector<256x64xbf16>
    %c0_1 = arith.constant 0 : index
    %c0_2 = arith.constant 0 : index
    %1 = vector.load %arg5[%c0_1, %c0_2] : memref<64x64xbf16, #tpu.memory_space<vmem>>, vector<64x64xbf16>
    %cst = arith.constant dense<0.000000e+00> : vector<256x64xf32>
    %2 = tpu.matmul %0, %1, %cst {dimension_numbers = #tpu.dot_dimension_numbers<[1], [0], [0], [1], [0, 0, 1, 1], [], []>} : vector<256x64xbf16>, vector<64x64xbf16>, vector<256x64xf32> -> vector<256x64xf32>
    %c0_3 = arith.constant 0 : index
    %c0_4 = arith.constant 0 : index
    %3 = vector.load %arg3[%c0_3, %c0_4] : memref<256x64xbf16, #tpu.memory_space<vmem>>, vector<256x64xbf16>
    %c0_5 = arith.constant 0 : index
    %c0_6 = arith.constant 0 : index
    %4 = vector.load %arg6[%c0_5, %c0_6] : memref<64x64xbf16, #tpu.memory_space<vmem>>, vector<64x64xbf16>
    %cst_7 = arith.constant dense<0.000000e+00> : vector<256x64xf32>
    %5 = tpu.matmul %3, %4, %cst_7 {dimension_numbers = #tpu.dot_dimension_numbers<[1], [0], [0], [1], [0, 0, 1, 1], [], []>} : vector<256x64xbf16>, vector<64x64xbf16>, vector<256x64xf32> -> vector<256x64xf32>
    %6 = arith.addf %2, %5 : vector<256x64xf32>
    %c0_8 = arith.constant 0 : index
    %c0_9 = arith.constant 0 : index
    %7 = vector.load %arg4[%c0_8, %c0_9] : memref<256x64xbf16, #tpu.memory_space<vmem>>, vector<256x64xbf16>
    %c0_10 = arith.constant 0 : index
    %c0_11 = arith.constant 0 : index
    %8 = vector.load %arg7[%c0_10, %c0_11] : memref<64x64xbf16, #tpu.memory_space<vmem>>, vector<64x64xbf16>
    %cst_12 = arith.constant dense<0.000000e+00> : vector<256x64xf32>
    %9 = tpu.matmul %7, %8, %cst_12 {dimension_numbers = #tpu.dot_dimension_numbers<[1], [0], [0], [1], [0, 0, 1, 1], [], []>} : vector<256x64xbf16>, vector<64x64xbf16>, vector<256x64xf32> -> vector<256x64xf32>
    %10 = arith.addf %6, %9 : vector<256x64xf32>
    %cst_13 = arith.constant 0.000000e+00 : f32
    %11 = vector.broadcast %cst_13 : f32 to vector<256x64xf32>
    %12 = arith.maximumf %10, %11 : vector<256x64xf32>
    %13 = arith.truncf %12 : vector<256x64xf32> to vector<256x64xbf16>
    %c0_14 = arith.constant 0 : index
    %c0_15 = arith.constant 0 : index
    %14 = vector.load %arg8[%c0_14, %c0_15] : memref<256x64xbf16, #tpu.memory_space<vmem>>, vector<256x64xbf16>
    tpu.vector_store %arg8[%c0_14, %c0_15], %13 {strides = array<i32>} : memref<256x64xbf16, #tpu.memory_space<vmem>>, vector<256x64xbf16>,
    return
  }
  func.func @transform_0(%arg0: i32, %arg1: i32) -> (i32, i32) {
    %c0_i32 = arith.constant 0 : i32
    %c0_i32_0 = arith.constant 0 : i32
    return %arg0, %c0_i32 : i32, i32
  }
  func.func @transform_1(%arg0: i32, %arg1: i32) -> (i32, i32) {
    %c0_i32 = arith.constant 0 : i32
    %c0_i32_0 = arith.constant 0 : i32
    return %arg0, %c0_i32 : i32, i32
  }
  func.func @transform_2(%arg0: i32, %arg1: i32) -> (i32, i32) {
    %c0_i32 = arith.constant 0 : i32
    %c0_i32_0 = arith.constant 0 : i32
    return %arg0, %c0_i32 : i32, i32
  }
  func.func @transform_3(%arg0: i32, %arg1: i32) -> (i32, i32) {
    %c0_i32 = arith.constant 0 : i32
    %c0_i32_0 = arith.constant 0 : i32
    return %c0_i32, %arg1 : i32, i32
  }
  func.func @transform_4(%arg0: i32, %arg1: i32) -> (i32, i32) {
    %c0_i32 = arith.constant 0 : i32
    %c0_i32_0 = arith.constant 0 : i32
    return %c0_i32, %arg1 : i32, i32
  }
  func.func @transform_5(%arg0: i32, %arg1: i32) -> (i32, i32) {
    %c0_i32 = arith.constant 0 : i32
    %c0_i32_0 = arith.constant 0 : i32
    return %c0_i32, %arg1 : i32, i32
  }
  func.func @transform_6(%arg0: i32, %arg1: i32) -> (i32, i32) {
    %c0_i32 = arith.constant 0 : i32
    return %arg0, %arg1 : i32, i32
  }
}

module attributes {stable_mosaic.version = 11 : i64} {
  func.func @_fused_1x1_kernel(%arg0: i32, %arg1: i32, %arg2: memref<256x64xbf16, #tpu.memory_space<vmem>>, %arg3: memref<256x64xbf16, #tpu.memory_space<vmem>>, %arg4: memref<256x64xbf16, #tpu.memory_space<vmem>>, %arg5: memref<256x64xbf16, #tpu.memory_space<vmem>>, %arg6: memref<64x64xbf16, #tpu.memory_space<vmem>>, %arg7: memref<64x64xbf16, #tpu.memory_space<vmem>>, %arg8: memref<64x64xbf16, #tpu.memory_space<vmem>>, %arg9: memref<64x64xbf16, #tpu.memory_space<vmem>>, %arg10: memref<256x64xbf16, #tpu.memory_space<vmem>>) attributes {dimension_semantics = [#tpu.dimension_semantics<parallel>, #tpu.dimension_semantics<parallel>], iteration_bounds = array<i64: 2, 1>, scalar_prefetch = 0 : i64, scratch_operands = 0 : i64, tpu.core_type = #tpu.core_type<tc>, window_params = [{transform_indices = @transform_0, window_bounds = array<i64: 256, 64>}, {transform_indices = @transform_1, window_bounds = array<i64: 256, 64>}, {transform_indices = @transform_2, window_bounds = array<i64: 256, 64>}, {transform_indices = @transform_3, window_bounds = array<i64: 256, 64>}, {transform_indices = @transform_4, window_bounds = array<i64: 64, 64>}, {transform_indices = @transform_5, window_bounds = array<i64: 64, 64>}, {transform_indices = @transform_6, window_bounds = array<i64: 64, 64>}, {transform_indices = @transform_7, window_bounds = array<i64: 64, 64>}, {transform_indices = @transform_8, window_bounds = array<i64: 256, 64>}]} {
    %c0 = arith.constant 0 : index
    %c0_0 = arith.constant 0 : index
    %0 = vector.load %arg2[%c0, %c0_0] : memref<256x64xbf16, #tpu.memory_space<vmem>>, vector<256x64xbf16>
    %c0_1 = arith.constant 0 : index
    %c0_2 = arith.constant 0 : index
    %1 = vector.load %arg6[%c0_1, %c0_2] : memref<64x64xbf16, #tpu.memory_space<vmem>>, vector<64x64xbf16>
    %cst = arith.constant dense<0.000000e+00> : vector<256x64xf32>
    %2 = tpu.matmul %0, %1, %cst {dimension_numbers = #tpu.dot_dimension_numbers<[1], [0], [0], [1], [0, 0, 1, 1], [], []>} : vector<256x64xbf16>, vector<64x64xbf16>, vector<256x64xf32> -> vector<256x64xf32>
    %c0_3 = arith.constant 0 : index
    %c0_4 = arith.constant 0 : index
    %3 = vector.load %arg3[%c0_3, %c0_4] : memref<256x64xbf16, #tpu.memory_space<vmem>>, vector<256x64xbf16>
    %c0_5 = arith.constant 0 : index
    %c0_6 = arith.constant 0 : index
    %4 = vector.load %arg7[%c0_5, %c0_6] : memref<64x64xbf16, #tpu.memory_space<vmem>>, vector<64x64xbf16>
    %cst_7 = arith.constant dense<0.000000e+00> : vector<256x64xf32>
    %5 = tpu.matmul %3, %4, %cst_7 {dimension_numbers = #tpu.dot_dimension_numbers<[1], [0], [0], [1], [0, 0, 1, 1], [], []>} : vector<256x64xbf16>, vector<64x64xbf16>, vector<256x64xf32> -> vector<256x64xf32>
    %6 = arith.addf %2, %5 : vector<256x64xf32>
    %c0_8 = arith.constant 0 : index
    %c0_9 = arith.constant 0 : index
    %7 = vector.load %arg4[%c0_8, %c0_9] : memref<256x64xbf16, #tpu.memory_space<vmem>>, vector<256x64xbf16>
    %c0_10 = arith.constant 0 : index
    %c0_11 = arith.constant 0 : index
    %8 = vector.load %arg8[%c0_10, %c0_11] : memref<64x64xbf16, #tpu.memory_space<vmem>>, vector<64x64xbf16>
    %cst_12 = arith.constant dense<0.000000e+00> : vector<256x64xf32>
    %9 = tpu.matmul %7, %8, %cst_12 {dimension_numbers = #tpu.dot_dimension_numbers<[1], [0], [0], [1], [0, 0, 1, 1], [], []>} : vector<256x64xbf16>, vector<64x64xbf16>, vector<256x64xf32> -> vector<256x64xf32>
    %10 = arith.addf %6, %9 : vector<256x64xf32>
    %c0_13 = arith.constant 0 : index
    %c0_14 = arith.constant 0 : index
    %11 = vector.load %arg5[%c0_13, %c0_14] : memref<256x64xbf16, #tpu.memory_space<vmem>>, vector<256x64xbf16>
    %c0_15 = arith.constant 0 : index
    %c0_16 = arith.constant 0 : index
    %12 = vector.load %arg9[%c0_15, %c0_16] : memref<64x64xbf16, #tpu.memory_space<vmem>>, vector<64x64xbf16>
    %cst_17 = arith.constant dense<0.000000e+00> : vector<256x64xf32>
    %13 = tpu.matmul %11, %12, %cst_17 {dimension_numbers = #tpu.dot_dimension_numbers<[1], [0], [0], [1], [0, 0, 1, 1], [], []>} : vector<256x64xbf16>, vector<64x64xbf16>, vector<256x64xf32> -> vector<256x64xf32>
    %14 = arith.addf %10, %13 : vector<256x64xf32>
    %cst_18 = arith.constant 0.000000e+00 : f32
    %15 = vector.broadcast %cst_18 : f32 to vector<256x64xf32>
    %16 = arith.maximumf %14, %15 : vector<256x64xf32>
    %17 = arith.truncf %16 : vector<256x64xf32> to vector<256x64xbf16>
    %c0_19 = arith.constant 0 : index
    %c0_20 = arith.constant 0 : index
    %18 = vector.load %arg10[%c0_19, %c0_20] : memref<256x64xbf16, #tpu.memory_space<vmem>>, vector<256x64xbf16>
    tpu.vector_store %arg10[%c0_19, %c0_20], %17 {strides = array<i32>} : memref<256x64xbf16, #tpu.memory_space<vmem>>, vector<256x64xbf16>,
    return
  }
  func.func @transform_0(%arg0: i32, %arg1: i32) -> (i32, i32) {
    %c0_i32 = arith.constant 0 : i32
    %c0_i32_0 = arith.constant 0 : i32
    return %arg0, %c0_i32 : i32, i32
  }
  func.func @transform_1(%arg0: i32, %arg1: i32) -> (i32, i32) {
    %c0_i32 = arith.constant 0 : i32
    %c0_i32_0 = arith.constant 0 : i32
    return %arg0, %c0_i32 : i32, i32
  }
  func.func @transform_2(%arg0: i32, %arg1: i32) -> (i32, i32) {
    %c0_i32 = arith.constant 0 : i32
    %c0_i32_0 = arith.constant 0 : i32
    return %arg0, %c0_i32 : i32, i32
  }
  func.func @transform_3(%arg0: i32, %arg1: i32) -> (i32, i32) {
    %c0_i32 = arith.constant 0 : i32
    %c0_i32_0 = arith.constant 0 : i32
    return %arg0, %c0_i32 : i32, i32
  }
  func.func @transform_4(%arg0: i32, %arg1: i32) -> (i32, i32) {
    %c0_i32 = arith.constant 0 : i32
    %c0_i32_0 = arith.constant 0 : i32
    return %c0_i32, %arg1 : i32, i32
  }
  func.func @transform_5(%arg0: i32, %arg1: i32) -> (i32, i32) {
    %c0_i32 = arith.constant 0 : i32
    %c0_i32_0 = arith.constant 0 : i32
    return %c0_i32, %arg1 : i32, i32
  }
  func.func @transform_6(%arg0: i32, %arg1: i32) -> (i32, i32) {
    %c0_i32 = arith.constant 0 : i32
    %c0_i32_0 = arith.constant 0 : i32
    return %c0_i32, %arg1 : i32, i32
  }
  func.func @transform_7(%arg0: i32, %arg1: i32) -> (i32, i32) {
    %c0_i32 = arith.constant 0 : i32
    %c0_i32_0 = arith.constant 0 : i32
    return %c0_i32, %arg1 : i32, i32
  }
  func.func @transform_8(%arg0: i32, %arg1: i32) -> (i32, i32) {
    %c0_i32 = arith.constant 0 : i32
    return %arg0, %arg1 : i32, i32
  }
}

module attributes {stable_mosaic.version = 11 : i64} {
  func.func @_fused_1x1_kernel(%arg0: i32, %arg1: i32, %arg2: memref<512x64xbf16, #tpu.memory_space<vmem>>, %arg3: memref<512x64xbf16, #tpu.memory_space<vmem>>, %arg4: memref<64x64xbf16, #tpu.memory_space<vmem>>, %arg5: memref<64x64xbf16, #tpu.memory_space<vmem>>, %arg6: memref<512x64xbf16, #tpu.memory_space<vmem>>) attributes {dimension_semantics = [#tpu.dimension_semantics<parallel>, #tpu.dimension_semantics<parallel>], iteration_bounds = array<i64: 4, 1>, scalar_prefetch = 0 : i64, scratch_operands = 0 : i64, tpu.core_type = #tpu.core_type<tc>, window_params = [{transform_indices = @transform_0, window_bounds = array<i64: 512, 64>}, {transform_indices = @transform_1, window_bounds = array<i64: 512, 64>}, {transform_indices = @transform_2, window_bounds = array<i64: 64, 64>}, {transform_indices = @transform_3, window_bounds = array<i64: 64, 64>}, {transform_indices = @transform_4, window_bounds = array<i64: 512, 64>}]} {
    %c0 = arith.constant 0 : index
    %c0_0 = arith.constant 0 : index
    %0 = vector.load %arg2[%c0, %c0_0] : memref<512x64xbf16, #tpu.memory_space<vmem>>, vector<512x64xbf16>
    %c0_1 = arith.constant 0 : index
    %c0_2 = arith.constant 0 : index
    %1 = vector.load %arg4[%c0_1, %c0_2] : memref<64x64xbf16, #tpu.memory_space<vmem>>, vector<64x64xbf16>
    %cst = arith.constant dense<0.000000e+00> : vector<512x64xf32>
    %2 = tpu.matmul %0, %1, %cst {dimension_numbers = #tpu.dot_dimension_numbers<[1], [0], [0], [1], [0, 0, 1, 1], [], []>} : vector<512x64xbf16>, vector<64x64xbf16>, vector<512x64xf32> -> vector<512x64xf32>
    %c0_3 = arith.constant 0 : index
    %c0_4 = arith.constant 0 : index
    %3 = vector.load %arg3[%c0_3, %c0_4] : memref<512x64xbf16, #tpu.memory_space<vmem>>, vector<512x64xbf16>
    %c0_5 = arith.constant 0 : index
    %c0_6 = arith.constant 0 : index
    %4 = vector.load %arg5[%c0_5, %c0_6] : memref<64x64xbf16, #tpu.memory_space<vmem>>, vector<64x64xbf16>
    %cst_7 = arith.constant dense<0.000000e+00> : vector<512x64xf32>
    %5 = tpu.matmul %3, %4, %cst_7 {dimension_numbers = #tpu.dot_dimension_numbers<[1], [0], [0], [1], [0, 0, 1, 1], [], []>} : vector<512x64xbf16>, vector<64x64xbf16>, vector<512x64xf32> -> vector<512x64xf32>
    %6 = arith.addf %2, %5 : vector<512x64xf32>
    %cst_8 = arith.constant 0.000000e+00 : f32
    %7 = vector.broadcast %cst_8 : f32 to vector<512x64xf32>
    %8 = arith.maximumf %6, %7 : vector<512x64xf32>
    %9 = arith.truncf %8 : vector<512x64xf32> to vector<512x64xbf16>
    %c0_9 = arith.constant 0 : index
    %c0_10 = arith.constant 0 : index
    %10 = vector.load %arg6[%c0_9, %c0_10] : memref<512x64xbf16, #tpu.memory_space<vmem>>, vector<512x64xbf16>
    tpu.vector_store %arg6[%c0_9, %c0_10], %9 {strides = array<i32>} : memref<512x64xbf16, #tpu.memory_space<vmem>>, vector<512x64xbf16>,
    return
  }
  func.func @transform_0(%arg0: i32, %arg1: i32) -> (i32, i32) {
    %c0_i32 = arith.constant 0 : i32
    %c0_i32_0 = arith.constant 0 : i32
    return %arg0, %c0_i32 : i32, i32
  }
  func.func @transform_1(%arg0: i32, %arg1: i32) -> (i32, i32) {
    %c0_i32 = arith.constant 0 : i32
    %c0_i32_0 = arith.constant 0 : i32
    return %arg0, %c0_i32 : i32, i32
  }
  func.func @transform_2(%arg0: i32, %arg1: i32) -> (i32, i32) {
    %c0_i32 = arith.constant 0 : i32
    %c0_i32_0 = arith.constant 0 : i32
    return %c0_i32, %arg1 : i32, i32
  }
  func.func @transform_3(%arg0: i32, %arg1: i32) -> (i32, i32) {
    %c0_i32 = arith.constant 0 : i32
    %c0_i32_0 = arith.constant 0 : i32
    return %c0_i32, %arg1 : i32, i32
  }
  func.func @transform_4(%arg0: i32, %arg1: i32) -> (i32, i32) {
    %c0_i32 = arith.constant 0 : i32
    return %arg0, %arg1 : i32, i32
  }
}

module attributes {stable_mosaic.version = 11 : i64} {
  func.func @_fused_1x1_kernel(%arg0: i32, %arg1: i32, %arg2: memref<512x64xbf16, #tpu.memory_space<vmem>>, %arg3: memref<512x64xbf16, #tpu.memory_space<vmem>>, %arg4: memref<512x64xbf16, #tpu.memory_space<vmem>>, %arg5: memref<64x64xbf16, #tpu.memory_space<vmem>>, %arg6: memref<64x64xbf16, #tpu.memory_space<vmem>>, %arg7: memref<64x64xbf16, #tpu.memory_space<vmem>>, %arg8: memref<512x64xbf16, #tpu.memory_space<vmem>>) attributes {dimension_semantics = [#tpu.dimension_semantics<parallel>, #tpu.dimension_semantics<parallel>], iteration_bounds = array<i64: 4, 1>, scalar_prefetch = 0 : i64, scratch_operands = 0 : i64, tpu.core_type = #tpu.core_type<tc>, window_params = [{transform_indices = @transform_0, window_bounds = array<i64: 512, 64>}, {transform_indices = @transform_1, window_bounds = array<i64: 512, 64>}, {transform_indices = @transform_2, window_bounds = array<i64: 512, 64>}, {transform_indices = @transform_3, window_bounds = array<i64: 64, 64>}, {transform_indices = @transform_4, window_bounds = array<i64: 64, 64>}, {transform_indices = @transform_5, window_bounds = array<i64: 64, 64>}, {transform_indices = @transform_6, window_bounds = array<i64: 512, 64>}]} {
    %c0 = arith.constant 0 : index
    %c0_0 = arith.constant 0 : index
    %0 = vector.load %arg2[%c0, %c0_0] : memref<512x64xbf16, #tpu.memory_space<vmem>>, vector<512x64xbf16>
    %c0_1 = arith.constant 0 : index
    %c0_2 = arith.constant 0 : index
    %1 = vector.load %arg5[%c0_1, %c0_2] : memref<64x64xbf16, #tpu.memory_space<vmem>>, vector<64x64xbf16>
    %cst = arith.constant dense<0.000000e+00> : vector<512x64xf32>
    %2 = tpu.matmul %0, %1, %cst {dimension_numbers = #tpu.dot_dimension_numbers<[1], [0], [0], [1], [0, 0, 1, 1], [], []>} : vector<512x64xbf16>, vector<64x64xbf16>, vector<512x64xf32> -> vector<512x64xf32>
    %c0_3 = arith.constant 0 : index
    %c0_4 = arith.constant 0 : index
    %3 = vector.load %arg3[%c0_3, %c0_4] : memref<512x64xbf16, #tpu.memory_space<vmem>>, vector<512x64xbf16>
    %c0_5 = arith.constant 0 : index
    %c0_6 = arith.constant 0 : index
    %4 = vector.load %arg6[%c0_5, %c0_6] : memref<64x64xbf16, #tpu.memory_space<vmem>>, vector<64x64xbf16>
    %cst_7 = arith.constant dense<0.000000e+00> : vector<512x64xf32>
    %5 = tpu.matmul %3, %4, %cst_7 {dimension_numbers = #tpu.dot_dimension_numbers<[1], [0], [0], [1], [0, 0, 1, 1], [], []>} : vector<512x64xbf16>, vector<64x64xbf16>, vector<512x64xf32> -> vector<512x64xf32>
    %6 = arith.addf %2, %5 : vector<512x64xf32>
    %c0_8 = arith.constant 0 : index
    %c0_9 = arith.constant 0 : index
    %7 = vector.load %arg4[%c0_8, %c0_9] : memref<512x64xbf16, #tpu.memory_space<vmem>>, vector<512x64xbf16>
    %c0_10 = arith.constant 0 : index
    %c0_11 = arith.constant 0 : index
    %8 = vector.load %arg7[%c0_10, %c0_11] : memref<64x64xbf16, #tpu.memory_space<vmem>>, vector<64x64xbf16>
    %cst_12 = arith.constant dense<0.000000e+00> : vector<512x64xf32>
    %9 = tpu.matmul %7, %8, %cst_12 {dimension_numbers = #tpu.dot_dimension_numbers<[1], [0], [0], [1], [0, 0, 1, 1], [], []>} : vector<512x64xbf16>, vector<64x64xbf16>, vector<512x64xf32> -> vector<512x64xf32>
    %10 = arith.addf %6, %9 : vector<512x64xf32>
    %cst_13 = arith.constant 0.000000e+00 : f32
    %11 = vector.broadcast %cst_13 : f32 to vector<512x64xf32>
    %12 = arith.maximumf %10, %11 : vector<512x64xf32>
    %13 = arith.truncf %12 : vector<512x64xf32> to vector<512x64xbf16>
    %c0_14 = arith.constant 0 : index
    %c0_15 = arith.constant 0 : index
    %14 = vector.load %arg8[%c0_14, %c0_15] : memref<512x64xbf16, #tpu.memory_space<vmem>>, vector<512x64xbf16>
    tpu.vector_store %arg8[%c0_14, %c0_15], %13 {strides = array<i32>} : memref<512x64xbf16, #tpu.memory_space<vmem>>, vector<512x64xbf16>,
    return
  }
  func.func @transform_0(%arg0: i32, %arg1: i32) -> (i32, i32) {
    %c0_i32 = arith.constant 0 : i32
    %c0_i32_0 = arith.constant 0 : i32
    return %arg0, %c0_i32 : i32, i32
  }
  func.func @transform_1(%arg0: i32, %arg1: i32) -> (i32, i32) {
    %c0_i32 = arith.constant 0 : i32
    %c0_i32_0 = arith.constant 0 : i32
    return %arg0, %c0_i32 : i32, i32
  }
  func.func @transform_2(%arg0: i32, %arg1: i32) -> (i32, i32) {
    %c0_i32 = arith.constant 0 : i32
    %c0_i32_0 = arith.constant 0 : i32
    return %arg0, %c0_i32 : i32, i32
  }
  func.func @transform_3(%arg0: i32, %arg1: i32) -> (i32, i32) {
    %c0_i32 = arith.constant 0 : i32
    %c0_i32_0 = arith.constant 0 : i32
    return %c0_i32, %arg1 : i32, i32
  }
  func.func @transform_4(%arg0: i32, %arg1: i32) -> (i32, i32) {
    %c0_i32 = arith.constant 0 : i32
    %c0_i32_0 = arith.constant 0 : i32
    return %c0_i32, %arg1 : i32, i32
  }
  func.func @transform_5(%arg0: i32, %arg1: i32) -> (i32, i32) {
    %c0_i32 = arith.constant 0 : i32
    %c0_i32_0 = arith.constant 0 : i32
    return %c0_i32, %arg1 : i32, i32
  }
  func.func @transform_6(%arg0: i32, %arg1: i32) -> (i32, i32) {
    %c0_i32 = arith.constant 0 : i32
    return %arg0, %arg1 : i32, i32
  }
}

module attributes {stable_mosaic.version = 11 : i64} {
  func.func @_fused_1x1_kernel(%arg0: i32, %arg1: i32, %arg2: memref<512x64xbf16, #tpu.memory_space<vmem>>, %arg3: memref<512x64xbf16, #tpu.memory_space<vmem>>, %arg4: memref<512x64xbf16, #tpu.memory_space<vmem>>, %arg5: memref<512x64xbf16, #tpu.memory_space<vmem>>, %arg6: memref<64x64xbf16, #tpu.memory_space<vmem>>, %arg7: memref<64x64xbf16, #tpu.memory_space<vmem>>, %arg8: memref<64x64xbf16, #tpu.memory_space<vmem>>, %arg9: memref<64x64xbf16, #tpu.memory_space<vmem>>, %arg10: memref<512x64xbf16, #tpu.memory_space<vmem>>) attributes {dimension_semantics = [#tpu.dimension_semantics<parallel>, #tpu.dimension_semantics<parallel>], iteration_bounds = array<i64: 4, 1>, scalar_prefetch = 0 : i64, scratch_operands = 0 : i64, tpu.core_type = #tpu.core_type<tc>, window_params = [{transform_indices = @transform_0, window_bounds = array<i64: 512, 64>}, {transform_indices = @transform_1, window_bounds = array<i64: 512, 64>}, {transform_indices = @transform_2, window_bounds = array<i64: 512, 64>}, {transform_indices = @transform_3, window_bounds = array<i64: 512, 64>}, {transform_indices = @transform_4, window_bounds = array<i64: 64, 64>}, {transform_indices = @transform_5, window_bounds = array<i64: 64, 64>}, {transform_indices = @transform_6, window_bounds = array<i64: 64, 64>}, {transform_indices = @transform_7, window_bounds = array<i64: 64, 64>}, {transform_indices = @transform_8, window_bounds = array<i64: 512, 64>}]} {
    %c0 = arith.constant 0 : index
    %c0_0 = arith.constant 0 : index
    %0 = vector.load %arg2[%c0, %c0_0] : memref<512x64xbf16, #tpu.memory_space<vmem>>, vector<512x64xbf16>
    %c0_1 = arith.constant 0 : index
    %c0_2 = arith.constant 0 : index
    %1 = vector.load %arg6[%c0_1, %c0_2] : memref<64x64xbf16, #tpu.memory_space<vmem>>, vector<64x64xbf16>
    %cst = arith.constant dense<0.000000e+00> : vector<512x64xf32>
    %2 = tpu.matmul %0, %1, %cst {dimension_numbers = #tpu.dot_dimension_numbers<[1], [0], [0], [1], [0, 0, 1, 1], [], []>} : vector<512x64xbf16>, vector<64x64xbf16>, vector<512x64xf32> -> vector<512x64xf32>
    %c0_3 = arith.constant 0 : index
    %c0_4 = arith.constant 0 : index
    %3 = vector.load %arg3[%c0_3, %c0_4] : memref<512x64xbf16, #tpu.memory_space<vmem>>, vector<512x64xbf16>
    %c0_5 = arith.constant 0 : index
    %c0_6 = arith.constant 0 : index
    %4 = vector.load %arg7[%c0_5, %c0_6] : memref<64x64xbf16, #tpu.memory_space<vmem>>, vector<64x64xbf16>
    %cst_7 = arith.constant dense<0.000000e+00> : vector<512x64xf32>
    %5 = tpu.matmul %3, %4, %cst_7 {dimension_numbers = #tpu.dot_dimension_numbers<[1], [0], [0], [1], [0, 0, 1, 1], [], []>} : vector<512x64xbf16>, vector<64x64xbf16>, vector<512x64xf32> -> vector<512x64xf32>
    %6 = arith.addf %2, %5 : vector<512x64xf32>
    %c0_8 = arith.constant 0 : index
    %c0_9 = arith.constant 0 : index
    %7 = vector.load %arg4[%c0_8, %c0_9] : memref<512x64xbf16, #tpu.memory_space<vmem>>, vector<512x64xbf16>
    %c0_10 = arith.constant 0 : index
    %c0_11 = arith.constant 0 : index
    %8 = vector.load %arg8[%c0_10, %c0_11] : memref<64x64xbf16, #tpu.memory_space<vmem>>, vector<64x64xbf16>
    %cst_12 = arith.constant dense<0.000000e+00> : vector<512x64xf32>
    %9 = tpu.matmul %7, %8, %cst_12 {dimension_numbers = #tpu.dot_dimension_numbers<[1], [0], [0], [1], [0, 0, 1, 1], [], []>} : vector<512x64xbf16>, vector<64x64xbf16>, vector<512x64xf32> -> vector<512x64xf32>
    %10 = arith.addf %6, %9 : vector<512x64xf32>
    %c0_13 = arith.constant 0 : index
    %c0_14 = arith.constant 0 : index
    %11 = vector.load %arg5[%c0_13, %c0_14] : memref<512x64xbf16, #tpu.memory_space<vmem>>, vector<512x64xbf16>
    %c0_15 = arith.constant 0 : index
    %c0_16 = arith.constant 0 : index
    %12 = vector.load %arg9[%c0_15, %c0_16] : memref<64x64xbf16, #tpu.memory_space<vmem>>, vector<64x64xbf16>
    %cst_17 = arith.constant dense<0.000000e+00> : vector<512x64xf32>
    %13 = tpu.matmul %11, %12, %cst_17 {dimension_numbers = #tpu.dot_dimension_numbers<[1], [0], [0], [1], [0, 0, 1, 1], [], []>} : vector<512x64xbf16>, vector<64x64xbf16>, vector<512x64xf32> -> vector<512x64xf32>
    %14 = arith.addf %10, %13 : vector<512x64xf32>
    %cst_18 = arith.constant 0.000000e+00 : f32
    %15 = vector.broadcast %cst_18 : f32 to vector<512x64xf32>
    %16 = arith.maximumf %14, %15 : vector<512x64xf32>
    %17 = arith.truncf %16 : vector<512x64xf32> to vector<512x64xbf16>
    %c0_19 = arith.constant 0 : index
    %c0_20 = arith.constant 0 : index
    %18 = vector.load %arg10[%c0_19, %c0_20] : memref<512x64xbf16, #tpu.memory_space<vmem>>, vector<512x64xbf16>
    tpu.vector_store %arg10[%c0_19, %c0_20], %17 {strides = array<i32>} : memref<512x64xbf16, #tpu.memory_space<vmem>>, vector<512x64xbf16>,
    return
  }
  func.func @transform_0(%arg0: i32, %arg1: i32) -> (i32, i32) {
    %c0_i32 = arith.constant 0 : i32
    %c0_i32_0 = arith.constant 0 : i32
    return %arg0, %c0_i32 : i32, i32
  }
  func.func @transform_1(%arg0: i32, %arg1: i32) -> (i32, i32) {
    %c0_i32 = arith.constant 0 : i32
    %c0_i32_0 = arith.constant 0 : i32
    return %arg0, %c0_i32 : i32, i32
  }
  func.func @transform_2(%arg0: i32, %arg1: i32) -> (i32, i32) {
    %c0_i32 = arith.constant 0 : i32
    %c0_i32_0 = arith.constant 0 : i32
    return %arg0, %c0_i32 : i32, i32
  }
  func.func @transform_3(%arg0: i32, %arg1: i32) -> (i32, i32) {
    %c0_i32 = arith.constant 0 : i32
    %c0_i32_0 = arith.constant 0 : i32
    return %arg0, %c0_i32 : i32, i32
  }
  func.func @transform_4(%arg0: i32, %arg1: i32) -> (i32, i32) {
    %c0_i32 = arith.constant 0 : i32
    %c0_i32_0 = arith.constant 0 : i32
    return %c0_i32, %arg1 : i32, i32
  }
  func.func @transform_5(%arg0: i32, %arg1: i32) -> (i32, i32) {
    %c0_i32 = arith.constant 0 : i32
    %c0_i32_0 = arith.constant 0 : i32
    return %c0_i32, %arg1 : i32, i32
  }
  func.func @transform_6(%arg0: i32, %arg1: i32) -> (i32, i32) {
    %c0_i32 = arith.constant 0 : i32
    %c0_i32_0 = arith.constant 0 : i32
    return %c0_i32, %arg1 : i32, i32
  }
  func.func @transform_7(%arg0: i32, %arg1: i32) -> (i32, i32) {
    %c0_i32 = arith.constant 0 : i32
    %c0_i32_0 = arith.constant 0 : i32
    return %c0_i32, %arg1 : i32, i32
  }
  func.func @transform_8(%arg0: i32, %arg1: i32) -> (i32, i32) {
    %c0_i32 = arith.constant 0 : i32
    return %arg0, %arg1 : i32, i32
  }
}

module attributes {stable_mosaic.version = 11 : i64} {
  func.func @_fused_1x1_kernel(%arg0: i32, %arg1: i32, %arg2: memref<512x64xbf16, #tpu.memory_space<vmem>>, %arg3: memref<512x64xbf16, #tpu.memory_space<vmem>>, %arg4: memref<512x64xbf16, #tpu.memory_space<vmem>>, %arg5: memref<512x64xbf16, #tpu.memory_space<vmem>>, %arg6: memref<512x64xbf16, #tpu.memory_space<vmem>>, %arg7: memref<64x64xbf16, #tpu.memory_space<vmem>>, %arg8: memref<64x64xbf16, #tpu.memory_space<vmem>>, %arg9: memref<64x64xbf16, #tpu.memory_space<vmem>>, %arg10: memref<64x64xbf16, #tpu.memory_space<vmem>>, %arg11: memref<64x64xbf16, #tpu.memory_space<vmem>>, %arg12: memref<512x64xbf16, #tpu.memory_space<vmem>>) attributes {dimension_semantics = [#tpu.dimension_semantics<parallel>, #tpu.dimension_semantics<parallel>], iteration_bounds = array<i64: 4, 1>, scalar_prefetch = 0 : i64, scratch_operands = 0 : i64, tpu.core_type = #tpu.core_type<tc>, window_params = [{transform_indices = @transform_0, window_bounds = array<i64: 512, 64>}, {transform_indices = @transform_1, window_bounds = array<i64: 512, 64>}, {transform_indices = @transform_2, window_bounds = array<i64: 512, 64>}, {transform_indices = @transform_3, window_bounds = array<i64: 512, 64>}, {transform_indices = @transform_4, window_bounds = array<i64: 512, 64>}, {transform_indices = @transform_5, window_bounds = array<i64: 64, 64>}, {transform_indices = @transform_6, window_bounds = array<i64: 64, 64>}, {transform_indices = @transform_7, window_bounds = array<i64: 64, 64>}, {transform_indices = @transform_8, window_bounds = array<i64: 64, 64>}, {transform_indices = @transform_9, window_bounds = array<i64: 64, 64>}, {transform_indices = @transform_10, window_bounds = array<i64: 512, 64>}]} {
    %c0 = arith.constant 0 : index
    %c0_0 = arith.constant 0 : index
    %0 = vector.load %arg2[%c0, %c0_0] : memref<512x64xbf16, #tpu.memory_space<vmem>>, vector<512x64xbf16>
    %c0_1 = arith.constant 0 : index
    %c0_2 = arith.constant 0 : index
    %1 = vector.load %arg7[%c0_1, %c0_2] : memref<64x64xbf16, #tpu.memory_space<vmem>>, vector<64x64xbf16>
    %cst = arith.constant dense<0.000000e+00> : vector<512x64xf32>
    %2 = tpu.matmul %0, %1, %cst {dimension_numbers = #tpu.dot_dimension_numbers<[1], [0], [0], [1], [0, 0, 1, 1], [], []>} : vector<512x64xbf16>, vector<64x64xbf16>, vector<512x64xf32> -> vector<512x64xf32>
    %c0_3 = arith.constant 0 : index
    %c0_4 = arith.constant 0 : index
    %3 = vector.load %arg3[%c0_3, %c0_4] : memref<512x64xbf16, #tpu.memory_space<vmem>>, vector<512x64xbf16>
    %c0_5 = arith.constant 0 : index
    %c0_6 = arith.constant 0 : index
    %4 = vector.load %arg8[%c0_5, %c0_6] : memref<64x64xbf16, #tpu.memory_space<vmem>>, vector<64x64xbf16>
    %cst_7 = arith.constant dense<0.000000e+00> : vector<512x64xf32>
    %5 = tpu.matmul %3, %4, %cst_7 {dimension_numbers = #tpu.dot_dimension_numbers<[1], [0], [0], [1], [0, 0, 1, 1], [], []>} : vector<512x64xbf16>, vector<64x64xbf16>, vector<512x64xf32> -> vector<512x64xf32>
    %6 = arith.addf %2, %5 : vector<512x64xf32>
    %c0_8 = arith.constant 0 : index
    %c0_9 = arith.constant 0 : index
    %7 = vector.load %arg4[%c0_8, %c0_9] : memref<512x64xbf16, #tpu.memory_space<vmem>>, vector<512x64xbf16>
    %c0_10 = arith.constant 0 : index
    %c0_11 = arith.constant 0 : index
    %8 = vector.load %arg9[%c0_10, %c0_11] : memref<64x64xbf16, #tpu.memory_space<vmem>>, vector<64x64xbf16>
    %cst_12 = arith.constant dense<0.000000e+00> : vector<512x64xf32>
    %9 = tpu.matmul %7, %8, %cst_12 {dimension_numbers = #tpu.dot_dimension_numbers<[1], [0], [0], [1], [0, 0, 1, 1], [], []>} : vector<512x64xbf16>, vector<64x64xbf16>, vector<512x64xf32> -> vector<512x64xf32>
    %10 = arith.addf %6, %9 : vector<512x64xf32>
    %c0_13 = arith.constant 0 : index
    %c0_14 = arith.constant 0 : index
    %11 = vector.load %arg5[%c0_13, %c0_14] : memref<512x64xbf16, #tpu.memory_space<vmem>>, vector<512x64xbf16>
    %c0_15 = arith.constant 0 : index
    %c0_16 = arith.constant 0 : index
    %12 = vector.load %arg10[%c0_15, %c0_16] : memref<64x64xbf16, #tpu.memory_space<vmem>>, vector<64x64xbf16>
    %cst_17 = arith.constant dense<0.000000e+00> : vector<512x64xf32>
    %13 = tpu.matmul %11, %12, %cst_17 {dimension_numbers = #tpu.dot_dimension_numbers<[1], [0], [0], [1], [0, 0, 1, 1], [], []>} : vector<512x64xbf16>, vector<64x64xbf16>, vector<512x64xf32> -> vector<512x64xf32>
    %14 = arith.addf %10, %13 : vector<512x64xf32>
    %c0_18 = arith.constant 0 : index
    %c0_19 = arith.constant 0 : index
    %15 = vector.load %arg6[%c0_18, %c0_19] : memref<512x64xbf16, #tpu.memory_space<vmem>>, vector<512x64xbf16>
    %c0_20 = arith.constant 0 : index
    %c0_21 = arith.constant 0 : index
    %16 = vector.load %arg11[%c0_20, %c0_21] : memref<64x64xbf16, #tpu.memory_space<vmem>>, vector<64x64xbf16>
    %cst_22 = arith.constant dense<0.000000e+00> : vector<512x64xf32>
    %17 = tpu.matmul %15, %16, %cst_22 {dimension_numbers = #tpu.dot_dimension_numbers<[1], [0], [0], [1], [0, 0, 1, 1], [], []>} : vector<512x64xbf16>, vector<64x64xbf16>, vector<512x64xf32> -> vector<512x64xf32>
    %18 = arith.addf %14, %17 : vector<512x64xf32>
    %cst_23 = arith.constant 0.000000e+00 : f32
    %19 = vector.broadcast %cst_23 : f32 to vector<512x64xf32>
    %20 = arith.maximumf %18, %19 : vector<512x64xf32>
    %21 = arith.truncf %20 : vector<512x64xf32> to vector<512x64xbf16>
    %c0_24 = arith.constant 0 : index
    %c0_25 = arith.constant 0 : index
    %22 = vector.load %arg12[%c0_24, %c0_25] : memref<512x64xbf16, #tpu.memory_space<vmem>>, vector<512x64xbf16>
    tpu.vector_store %arg12[%c0_24, %c0_25], %21 {strides = array<i32>} : memref<512x64xbf16, #tpu.memory_space<vmem>>, vector<512x64xbf16>,
    return
  }
  func.func @transform_0(%arg0: i32, %arg1: i32) -> (i32, i32) {
    %c0_i32 = arith.constant 0 : i32
    %c0_i32_0 = arith.constant 0 : i32
    return %arg0, %c0_i32 : i32, i32
  }
  func.func @transform_1(%arg0: i32, %arg1: i32) -> (i32, i32) {
    %c0_i32 = arith.constant 0 : i32
    %c0_i32_0 = arith.constant 0 : i32
    return %arg0, %c0_i32 : i32, i32
  }
  func.func @transform_2(%arg0: i32, %arg1: i32) -> (i32, i32) {
    %c0_i32 = arith.constant 0 : i32
    %c0_i32_0 = arith.constant 0 : i32
    return %arg0, %c0_i32 : i32, i32
  }
  func.func @transform_3(%arg0: i32, %arg1: i32) -> (i32, i32) {
    %c0_i32 = arith.constant 0 : i32
    %c0_i32_0 = arith.constant 0 : i32
    return %arg0, %c0_i32 : i32, i32
  }
  func.func @transform_4(%arg0: i32, %arg1: i32) -> (i32, i32) {
    %c0_i32 = arith.constant 0 : i32
    %c0_i32_0 = arith.constant 0 : i32
    return %arg0, %c0_i32 : i32, i32
  }
  func.func @transform_5(%arg0: i32, %arg1: i32) -> (i32, i32) {
    %c0_i32 = arith.constant 0 : i32
    %c0_i32_0 = arith.constant 0 : i32
    return %c0_i32, %arg1 : i32, i32
  }
  func.func @transform_6(%arg0: i32, %arg1: i32) -> (i32, i32) {
    %c0_i32 = arith.constant 0 : i32
    %c0_i32_0 = arith.constant 0 : i32
    return %c0_i32, %arg1 : i32, i32
  }
  func.func @transform_7(%arg0: i32, %arg1: i32) -> (i32, i32) {
    %c0_i32 = arith.constant 0 : i32
    %c0_i32_0 = arith.constant 0 : i32
    return %c0_i32, %arg1 : i32, i32
  }
  func.func @transform_8(%arg0: i32, %arg1: i32) -> (i32, i32) {
    %c0_i32 = arith.constant 0 : i32
    %c0_i32_0 = arith.constant 0 : i32
    return %c0_i32, %arg1 : i32, i32
  }
  func.func @transform_9(%arg0: i32, %arg1: i32) -> (i32, i32) {
    %c0_i32 = arith.constant 0 : i32
    %c0_i32_0 = arith.constant 0 : i32
    return %c0_i32, %arg1 : i32, i32
  }
  func.func @transform_10(%arg0: i32, %arg1: i32) -> (i32, i32) {
    %c0_i32 = arith.constant 0 : i32
    return %arg0, %arg1 : i32, i32
  }
}

</mosaic_0001>

<bundles_post_ra>
// kernel: _lambda_.8
= control target key start
LH: loop header
LB: loop body
LE: loop exit
PB: predicated region body
PF: predicated region fallthrough
CT: control target
= control target key end

     0   :  { %s1711_s15 = smov 0   ;;  %s1713_s16 = smov 0   ;;  %s1910_s0 = inlined_call_operand.vmem [shape: bf16[512,64], index: 0, kind: input, shape index: {}]   ;;  %s1911_s1 = inlined_call_operand.vmem [shape: bf16[512,64], index: 1, kind: input, shape index: {}]   ;;  %s1912_s2 = inlined_call_operand.vmem [shape: bf16[64,64], index: 2, kind: input, shape index: {}, may-alias: {2,3}]   ;;  %s1913_s3 = inlined_call_operand.vmem [shape: bf16[64,64], index: 3, kind: input, shape index: {}, may-alias: {2,3}]   ;;  %s1914_s4 = inlined_call_operand.vmem [shape: bf16[512,64], index: 4, kind: output, shape index: {}]  }
   0x1   :  { %s1715_s17 = smov 0  }
   0x2 LB: > { %s26_s18 = sadd.s32 1, %s1680_s16  ;;  %p1301_p0 = scmp.ge.s32.totalorder %s1684_s17, 1  ;;  %s1684_s17 = sphi %s1715_s17, %s14_s17   ;;  %s1680_s16 = sphi %s1713_s16, %s1916_s16   ;;  %s1676_s15 = sphi %s1711_s15, %s1915_s15  }
   0x3   : > { %p28_p1 = scmp.ge.s32.totalorder %s26_s18, 2  ;;  %p206_p2 = scmp.lt.s32.totalorder %s1684_s17, 3 }
   0x5   : > { %s1918_s18 = smov (%p28_p1, %s26_s18), 0  ;;  %p207_p3 = pnand %p1301_p0, %p206_p2 }
   0x6   : > { %v1622_v0 = vld [vmem:[%s1913_s3] sm:$0xff] (!%p207_p3)   ;;  %s1302_s21 = sshll.u32 (!%p207_p3), %s1676_s15, 5  ;;  %v1624_v2 = vld [vmem:[%s1913_s3 + $0x8] sm:$0xff] (!%p207_p3)   ;;  %v1626_v4 = vld [vmem:[%s1913_s3 + $0x10] sm:$0xff] (!%p207_p3)   ;;  %vm462_vm0 = vcmask (!%p207_p3), 523264   ;;  %vm1145_vm1 = vcmask (!%p207_p3), 519168  }
   0x7   : > { %210 = sbr.rel (%p207_p3) target bundleno = 302 (0x12e), region = 36  ;;  %v1623_v1 = vld [vmem:[%s1912_s2] sm:$0xff] (!%p207_p3)   ;;  %p249_p4 = scmp.lt.s32.totalorder (!%p207_p3), %s1302_s21, 63  ;;  %1486 = vmatprep.subr.bf16.mxu1 (!%p207_p3), %v1622_v0  ;;  %v1625_v3 = vld [vmem:[%s1912_s2 + $0x8] sm:$0xff] (!%p207_p3)   ;;  %v1627_v5 = vld [vmem:[%s1912_s2 + $0x10] sm:$0xff] (!%p207_p3)  }
   0x8   : > { %1526 = vmatprep.subr.bf16.mxu0 (!%p207_p3), %v1623_v1  ;;  %1487 = vmatpush3.bf16.msra.mxu1 (!%p207_p3), %v1622_v0  ;;  %v1628_v6 = vld [vmem:[%s1913_s3 + $0x18] sm:$0xff] (!%p207_p3)  }
   0x9   : > { %1527 = vmatpush3.bf16.msra.mxu0 (!%p207_p3), %v1623_v1  ;;  %1488 = vmatprep.subr.bf16.mxu1 (!%p207_p3), %v1624_v2  ;;  %v1629_v7 = vld [vmem:[%s1912_s2 + $0x18] sm:$0xff] (!%p207_p3)  }
   0xa   : > { %1528 = vmatprep.subr.bf16.mxu0 (!%p207_p3), %v1625_v3 }
   0xc   : > { %1489 = vmatpush3.bf16.msra.mxu1 (!%p207_p3), %v1624_v2 }
   0xd   : > { %1529 = vmatpush3.bf16.msra.mxu0 (!%p207_p3), %v1625_v3  ;;  %1490 = vmatprep.subr.bf16.mxu1 (!%p207_p3), %v1626_v4 }
   0xe   : > { %s1920_s21 = smov (!%p249_p4, %s1302_s21), 63  ;;  %1530 = vmatprep.subr.bf16.mxu0 %v1627_v5 }
   0xf   : > { %s1747_s6 = sshll.u32 %s1920_s21, 2 }
  0x10   : > { %s1756_s11 = scalar_lea.vmem %s1911_s1, %s1747_s6  ;;  %s1762_s14 = scalar_lea.vmem %s1910_s0, %s1747_s6  ;;  %1491 = vmatpush3.bf16.msra.mxu1 %v1626_v4 }
  0x11   : > { %v1630_v8 = vld [vmem:[%s1756_s11] sm:$0xff]   ;;  %1531 = vmatpush3.bf16.msra.mxu0 %v1627_v5  ;;  %1492 = vmatprep.subr.bf16.mxu1 %v1628_v6  ;;  %v1632_v10 = vld [vmem:[%s1756_s11 + $0x8] sm:$0xff]   ;;  %v1634_v12 = vld [vmem:[%s1756_s11 + $0x10] sm:$0xff]   ;;  %s1835_s22 = scalar_lea.vmem %s1914_s4, %s1747_s6 }
  0x12   : > { %v1631_v9 = vld [vmem:[%s1762_s14] sm:$0xff]   ;;  %1494 = vmatprep.mubr.msk.bf16.mxu1 %vm462_vm0, %v1630_v8  ;;  %1532 = vmatprep.subr.bf16.mxu0 %v1629_v7  ;;  %v1633_v11 = vld [vmem:[%s1762_s14 + $0x8] sm:$0xff]   ;;  %v1635_v13 = vld [vmem:[%s1762_s14 + $0x10] sm:$0xff]  }
  0x13   : > { %1534 = vmatprep.mubr.msk.bf16.mxu0 %vm462_vm0, %v1631_v9  ;;  %v1636_v14 = vld [vmem:[%s1756_s11 + $0x18] sm:$0xff]   ;;  %v1638_v16 = vld [vmem:[%s1756_s11 + $0x20] sm:$0xff]   ;;  %v1640_v18 = vld [vmem:[%s1756_s11 + $0x28] sm:$0xff]  }
  0x14   : > { %1493 = vmatpush3.bf16.msra.mxu1 %v1628_v6  ;;  %v1637_v15 = vld [vmem:[%s1762_s14 + $0x18] sm:$0xff]   ;;  %v1639_v17 = vld [vmem:[%s1762_s14 + $0x20] sm:$0xff]   ;;  %v1641_v19 = vld [vmem:[%s1762_s14 + $0x28] sm:$0xff]  }
  0x15   : > { %1533 = vmatpush3.bf16.msra.mxu0 %v1629_v7  ;;  %v1642_v20 = vld [vmem:[%s1756_s11 + $0x30] sm:$0xff]   ;;  %v1644_v22 = vld [vmem:[%s1756_s11 + $0x38] sm:$0xff]   ;;  %v1646_v24 = vld [vmem:[%s1756_s11 + $0x40] sm:$0xff]  }
  0x16   : > { %v1643_v21 = vld [vmem:[%s1762_s14 + $0x30] sm:$0xff]   ;;  %v1645_v23 = vld [vmem:[%s1762_s14 + $0x38] sm:$0xff]   ;;  %v1647_v25 = vld [vmem:[%s1762_s14 + $0x40] sm:$0xff]  }
  0x17   : > { %1495 = vmatmul.mubr.msk.bf16.vlgmr.msra.gmra.mrb[0].mxu1 %vm462_vm0, %v1632_v10  ;;  %v1648_v26 = vld [vmem:[%s1756_s11 + $0x48] sm:$0xff]   ;;  %v1650_v28 = vld [vmem:[%s1756_s11 + $0x50] sm:$0xff]   ;;  %v1652_v30 = vld [vmem:[%s1756_s11 + $0x58] sm:$0xff]  }
  0x18   : > { %1535 = vmatmul.mubr.msk.bf16.vlgmr.msra.gmra.mrb[0].mxu0 %vm462_vm0, %v1633_v11  ;;  %1498 = vmatprep.mubr.msk.bf16.mxu1 %vm462_vm0, %v1634_v12  ;;  %v1649_v27 = vld [vmem:[%s1762_s14 + $0x48] sm:$0xff]   ;;  %v1651_v29 = vld [vmem:[%s1762_s14 + $0x50] sm:$0xff]   ;;  %v1653_v31 = vld [vmem:[%s1762_s14 + $0x58] sm:$0xff]  }
  0x19   : > { %1538 = vmatprep.mubr.msk.bf16.mxu0 %vm462_vm0, %v1635_v13  ;;  %v1654_v32 = vld [vmem:[%s1756_s11 + $0x60] sm:$0xff]   ;;  %v1656_v34 = vld [vmem:[%s1756_s11 + $0x68] sm:$0xff]   ;;  %v1658_v36 = vld [vmem:[%s1756_s11 + $0x70] sm:$0xff]  }
  0x1a   : > { %v1655_v33 = vld [vmem:[%s1762_s14 + $0x60] sm:$0xff]   ;;  %v1657_v35 = vld [vmem:[%s1762_s14 + $0x68] sm:$0xff]   ;;  %v1659_v37 = vld [vmem:[%s1762_s14 + $0x70] sm:$0xff]  }
  0x1b   : > { %v1660_v38 = vld [vmem:[%s1756_s11 + $0x78] sm:$0xff]  }
  0x1c   : > { %v1661_v39 = vld [vmem:[%s1762_s14 + $0x78] sm:$0xff]  }
  0x1f   : > { %1499 = vmatmul.mubr.msk.bf16.gmra.mrb[4].mxu1 %vm462_vm0, %v1636_v14 }
  0x20   : > { %1539 = vmatmul.mubr.msk.bf16.gmra.mrb[4].mxu0 %vm462_vm0, %v1637_v15  ;;  %1502 = vmatprep.mubr.msk.bf16.mxu1 %vm462_vm0, %v1638_v16 }
  0x21   : > { %1542 = vmatprep.mubr.msk.bf16.mxu0 %vm462_vm0, %v1639_v17 }
  0x27   : > { %1503 = vmatmul.mubr.msk.bf16.gmra.mrb[8].mxu1 %vm462_vm0, %v1640_v18 }
  0x28   : > { %1543 = vmatmul.mubr.msk.bf16.gmra.mrb[8].mxu0 %vm462_vm0, %v1641_v19  ;;  %1506 = vmatprep.mubr.msk.bf16.mxu1 %vm462_vm0, %v1642_v20 }
  0x29   : > { %1546 = vmatprep.mubr.msk.bf16.mxu0 %vm462_vm0, %v1643_v21 }
  0x2f   : > { %1507 = vmatmul.mubr.msk.bf16.gmra.mrb[12].mxu1 %vm462_vm0, %v1644_v22 }
  0x30   : > { %1547 = vmatmul.mubr.msk.bf16.gmra.mrb[12].mxu0 %vm462_vm0, %v1645_v23  ;;  %1510 = vmatprep.mubr.msk.bf16.mxu1 %vm462_vm0, %v1646_v24 }
  0x31   : > { %1550 = vmatprep.mubr.msk.bf16.mxu0 %vm462_vm0, %v1647_v25 }
  0x37   : > { %1511 = vmatmul.mubr.msk.bf16.gmra.mrb[16].mxu1 %vm462_vm0, %v1648_v26 }
  0x38   : > { %1551 = vmatmul.mubr.msk.bf16.gmra.mrb[16].mxu0 %vm462_vm0, %v1649_v27  ;;  %1514 = vmatprep.mubr.msk.bf16.mxu1 %vm462_vm0, %v1650_v28 }
  0x39   : > { %1554 = vmatprep.mubr.msk.bf16.mxu0 %vm462_vm0, %v1651_v29 }
  0x3f   : > { %1515 = vmatmul.mubr.msk.bf16.gmra.mrb[20].mxu1 %vm462_vm0, %v1652_v30 }
  0x40   : > { %1555 = vmatmul.mubr.msk.bf16.gmra.mrb[20].mxu0 %vm462_vm0, %v1653_v31  ;;  %1518 = vmatprep.mubr.msk.bf16.mxu1 %vm462_vm0, %v1654_v32 }
  0x41   : > { %1558 = vmatprep.mubr.msk.bf16.mxu0 %vm462_vm0, %v1655_v33 }
  0x47   : > { %1519 = vmatmul.mubr.msk.bf16.gmra.mrb[24].mxu1 %vm462_vm0, %v1656_v34 }
  0x48   : > { %1559 = vmatmul.mubr.msk.bf16.gmra.mrb[24].mxu0 %vm462_vm0, %v1657_v35  ;;  %1522 = vmatprep.mubr.msk.bf16.mxu1 %vm462_vm0, %v1658_v36 }
  0x49   : > { %1562 = vmatprep.mubr.msk.bf16.mxu0 %vm462_vm0, %v1659_v37 }
  0x4f   : > { %1523 = vmatmul.mubr.msk.bf16.gmra.mrb[28].mxu1 %vm462_vm0, %v1660_v38 }
  0x50   : > { %1563 = vmatmul.mubr.msk.bf16.gmra.mrb[28].mxu0 %vm462_vm0, %v1661_v39 }
  0xea   : > { %v1496_v40 = vpop.f32.mrb[0].mxu1 }
  0xeb   : > { %v1536_v41 = vpop.f32.mrb[0].mxu0  ;;  %v545_v42 = vpop.f32.mrb[1].mxu1 }
  0xec   : > { %v867_v43 = vadd.f32 %v1536_v41, %v1496_v40  ;;  %v858_v44 = vpop.f32.mrb[1].mxu0  ;;  %v1497_v45 = vpop.f32.mrb[2].mxu1 }
  0xed   : > { %v859_v46 = vadd.f32 %v858_v44, %v545_v42  ;;  %v1537_v47 = vpop.f32.mrb[2].mxu0  ;;  %v548_v48 = vpop.f32.mrb[3].mxu1 }
  0xee   : > { %v987_v49 = vmax.f32 %v867_v43, 0.0  ;;  %v870_v50 = vadd.f32 %v1537_v47, %v1497_v45  ;;  %v861_v51 = vpop.f32.mrb[3].mxu0 }
  0xef   : > { %v985_v52 = vmax.f32 %v859_v46, 0.0  ;;  %v862_v53 = vadd.f32 %v861_v51, %v548_v48 }
  0xf0   : > { %v1416_v54 = vpack.c.bf16 %v987_v49, %v987_v49  ;;  %v988_v55 = vmax.f32 %v870_v50, 0.0 }
  0xf1   : > { %v1414_v56 = vpack.c.bf16 %v985_v52, %v985_v52  ;;  %v986_v57 = vmax.f32 %v862_v53, 0.0 }
  0xf2   : > { %1148 = vst.msk [vmem:[%s1835_s22 + $0x8] sm:$0xf] %vm1145_vm1, %v1416_v54  ;;  %v1417_v58 = vpack.c.bf16 %v988_v55, %v988_v55  ;;  %v1500_v59 = vpop.f32.mrb[4].mxu1 }
  0xf3   : > { %1146 = vst.msk [vmem:[%s1835_s22] sm:$0xf] %vm1145_vm1, %v1414_v56  ;;  %v1415_v60 = vpack.c.bf16 %v986_v57, %v986_v57  ;;  %v1540_v61 = vpop.f32.mrb[4].mxu0  ;;  %v561_v62 = vpop.f32.mrb[5].mxu1 }
  0xf4   : > { %1149 = vst.msk [vmem:[%s1835_s22 + $0xc] sm:$0xf] %vm1145_vm1, %v1417_v58  ;;  %v883_v63 = vadd.f32 %v1540_v61, %v1500_v59  ;;  %v874_v0 = vpop.f32.mrb[5].mxu0  ;;  %v1501_v1 = vpop.f32.mrb[6].mxu1 }
  0xf5   : > { %1147 = vst.msk [vmem:[%s1835_s22 + $0x4] sm:$0xf] %vm1145_vm1, %v1415_v60  ;;  %v875_v2 = vadd.f32 %v874_v0, %v561_v62  ;;  %v1541_v3 = vpop.f32.mrb[6].mxu0  ;;  %v564_v4 = vpop.f32.mrb[7].mxu1 }
  0xf6   : > { %v991_v5 = vmax.f32 %v883_v63, 0.0  ;;  %v886_v6 = vadd.f32 %v1541_v3, %v1501_v1  ;;  %v877_v7 = vpop.f32.mrb[7].mxu0 }
  0xf7   : > { %v989_v8 = vmax.f32 %v875_v2, 0.0  ;;  %v878_v9 = vadd.f32 %v877_v7, %v564_v4 }
  0xf8   : > { %v1420_v10 = vpack.c.bf16 %v991_v5, %v991_v5  ;;  %v992_v11 = vmax.f32 %v886_v6, 0.0 }
  0xf9   : > { %v1418_v12 = vpack.c.bf16 %v989_v8, %v989_v8  ;;  %v990_v13 = vmax.f32 %v878_v9, 0.0 }
  0xfa   : > { %1152 = vst.msk [vmem:[%s1835_s22 + $0x18] sm:$0xf] %vm1145_vm1, %v1420_v10  ;;  %v1421_v14 = vpack.c.bf16 %v992_v11, %v992_v11  ;;  %v1504_v15 = vpop.f32.mrb[8].mxu1 }
  0xfb   : > { %1150 = vst.msk [vmem:[%s1835_s22 + $0x10] sm:$0xf] %vm1145_vm1, %v1418_v12  ;;  %v1419_v16 = vpack.c.bf16 %v990_v13, %v990_v13  ;;  %v1544_v17 = vpop.f32.mrb[8].mxu0  ;;  %v577_v18 = vpop.f32.mrb[9].mxu1 }
  0xfc   : > { %1153 = vst.msk [vmem:[%s1835_s22 + $0x1c] sm:$0xf] %vm1145_vm1, %v1421_v14  ;;  %v899_v19 = vadd.f32 %v1544_v17, %v1504_v15  ;;  %v890_v20 = vpop.f32.mrb[9].mxu0  ;;  %v1505_v21 = vpop.f32.mrb[10].mxu1 }
  0xfd   : > { %1151 = vst.msk [vmem:[%s1835_s22 + $0x14] sm:$0xf] %vm1145_vm1, %v1419_v16  ;;  %v891_v22 = vadd.f32 %v890_v20, %v577_v18  ;;  %v1545_v23 = vpop.f32.mrb[10].mxu0  ;;  %v580_v24 = vpop.f32.mrb[11].mxu1 }
  0xfe   : > { %v995_v25 = vmax.f32 %v899_v19, 0.0  ;;  %v902_v26 = vadd.f32 %v1545_v23, %v1505_v21  ;;  %v893_v27 = vpop.f32.mrb[11].mxu0 }
  0xff   : > { %v993_v28 = vmax.f32 %v891_v22, 0.0  ;;  %v894_v29 = vadd.f32 %v893_v27, %v580_v24 }
 0x100   : > { %v1424_v30 = vpack.c.bf16 %v995_v25, %v995_v25  ;;  %v996_v31 = vmax.f32 %v902_v26, 0.0 }
 0x101   : > { %v1422_v32 = vpack.c.bf16 %v993_v28, %v993_v28  ;;  %v994_v33 = vmax.f32 %v894_v29, 0.0 }
 0x102   : > { %1156 = vst.msk [vmem:[%s1835_s22 + $0x28] sm:$0xf] %vm1145_vm1, %v1424_v30  ;;  %v1425_v34 = vpack.c.bf16 %v996_v31, %v996_v31  ;;  %v1508_v35 = vpop.f32.mrb[12].mxu1 }
 0x103   : > { %1154 = vst.msk [vmem:[%s1835_s22 + $0x20] sm:$0xf] %vm1145_vm1, %v1422_v32  ;;  %v1423_v36 = vpack.c.bf16 %v994_v33, %v994_v33  ;;  %v1548_v37 = vpop.f32.mrb[12].mxu0  ;;  %v593_v38 = vpop.f32.mrb[13].mxu1 }
 0x104   : > { %1157 = vst.msk [vmem:[%s1835_s22 + $0x2c] sm:$0xf] %vm1145_vm1, %v1425_v34  ;;  %v915_v39 = vadd.f32 %v1548_v37, %v1508_v35  ;;  %v906_v40 = vpop.f32.mrb[13].mxu0  ;;  %v1509_v41 = vpop.f32.mrb[14].mxu1 }
 0x105   : > { %1155 = vst.msk [vmem:[%s1835_s22 + $0x24] sm:$0xf] %vm1145_vm1, %v1423_v36  ;;  %v907_v42 = vadd.f32 %v906_v40, %v593_v38  ;;  %v1549_v43 = vpop.f32.mrb[14].mxu0  ;;  %v596_v44 = vpop.f32.mrb[15].mxu1 }
 0x106   : > { %v999_v45 = vmax.f32 %v915_v39, 0.0  ;;  %v918_v46 = vadd.f32 %v1549_v43, %v1509_v41  ;;  %v909_v47 = vpop.f32.mrb[15].mxu0 }
 0x107   : > { %v997_v48 = vmax.f32 %v907_v42, 0.0  ;;  %v910_v49 = vadd.f32 %v909_v47, %v596_v44 }
 0x108   : > { %v1428_v50 = vpack.c.bf16 %v999_v45, %v999_v45  ;;  %v1000_v51 = vmax.f32 %v918_v46, 0.0 }
 0x109   : > { %v1426_v52 = vpack.c.bf16 %v997_v48, %v997_v48  ;;  %v998_v53 = vmax.f32 %v910_v49, 0.0 }
 0x10a   : > { %1160 = vst.msk [vmem:[%s1835_s22 + $0x38] sm:$0xf] %vm1145_vm1, %v1428_v50  ;;  %v1429_v54 = vpack.c.bf16 %v1000_v51, %v1000_v51  ;;  %v1512_v55 = vpop.f32.mrb[16].mxu1 }
 0x10b   : > { %1158 = vst.msk [vmem:[%s1835_s22 + $0x30] sm:$0xf] %vm1145_vm1, %v1426_v52  ;;  %v1427_v56 = vpack.c.bf16 %v998_v53, %v998_v53  ;;  %v1552_v57 = vpop.f32.mrb[16].mxu0  ;;  %v609_v58 = vpop.f32.mrb[17].mxu1 }
 0x10c   : > { %1161 = vst.msk [vmem:[%s1835_s22 + $0x3c] sm:$0xf] %vm1145_vm1, %v1429_v54  ;;  %v931_v59 = vadd.f32 %v1552_v57, %v1512_v55  ;;  %v922_v60 = vpop.f32.mrb[17].mxu0  ;;  %v1513_v61 = vpop.f32.mrb[18].mxu1 }
 0x10d   : > { %1159 = vst.msk [vmem:[%s1835_s22 + $0x34] sm:$0xf] %vm1145_vm1, %v1427_v56  ;;  %v923_v62 = vadd.f32 %v922_v60, %v609_v58  ;;  %v1553_v63 = vpop.f32.mrb[18].mxu0  ;;  %v612_v0 = vpop.f32.mrb[19].mxu1 }
 0x10e   : > { %v1003_v1 = vmax.f32 %v931_v59, 0.0  ;;  %v934_v2 = vadd.f32 %v1553_v63, %v1513_v61  ;;  %v925_v3 = vpop.f32.mrb[19].mxu0 }
 0x10f   : > { %v1001_v4 = vmax.f32 %v923_v62, 0.0  ;;  %v926_v5 = vadd.f32 %v925_v3, %v612_v0 }
 0x110   : > { %v1432_v6 = vpack.c.bf16 %v1003_v1, %v1003_v1  ;;  %v1004_v7 = vmax.f32 %v934_v2, 0.0 }
 0x111   : > { %v1430_v8 = vpack.c.bf16 %v1001_v4, %v1001_v4  ;;  %v1002_v9 = vmax.f32 %v926_v5, 0.0 }
 0x112   : > { %1164 = vst.msk [vmem:[%s1835_s22 + $0x48] sm:$0xf] %vm1145_vm1, %v1432_v6  ;;  %v1433_v10 = vpack.c.bf16 %v1004_v7, %v1004_v7  ;;  %v1516_v11 = vpop.f32.mrb[20].mxu1 }
 0x113   : > { %1162 = vst.msk [vmem:[%s1835_s22 + $0x40] sm:$0xf] %vm1145_vm1, %v1430_v8  ;;  %v1431_v12 = vpack.c.bf16 %v1002_v9, %v1002_v9  ;;  %v1556_v13 = vpop.f32.mrb[20].mxu0  ;;  %v625_v14 = vpop.f32.mrb[21].mxu1 }
 0x114   : > { %1165 = vst.msk [vmem:[%s1835_s22 + $0x4c] sm:$0xf] %vm1145_vm1, %v1433_v10  ;;  %v947_v15 = vadd.f32 %v1556_v13, %v1516_v11  ;;  %v938_v16 = vpop.f32.mrb[21].mxu0  ;;  %v1517_v17 = vpop.f32.mrb[22].mxu1 }
 0x115   : > { %1163 = vst.msk [vmem:[%s1835_s22 + $0x44] sm:$0xf] %vm1145_vm1, %v1431_v12  ;;  %v939_v18 = vadd.f32 %v938_v16, %v625_v14  ;;  %v1557_v19 = vpop.f32.mrb[22].mxu0  ;;  %v628_v20 = vpop.f32.mrb[23].mxu1 }
 0x116   : > { %v1007_v21 = vmax.f32 %v947_v15, 0.0  ;;  %v950_v22 = vadd.f32 %v1557_v19, %v1517_v17  ;;  %v941_v23 = vpop.f32.mrb[23].mxu0 }
 0x117   : > { %v1005_v24 = vmax.f32 %v939_v18, 0.0  ;;  %v942_v25 = vadd.f32 %v941_v23, %v628_v20 }
 0x118   : > { %v1436_v26 = vpack.c.bf16 %v1007_v21, %v1007_v21  ;;  %v1008_v27 = vmax.f32 %v950_v22, 0.0 }
 0x119   : > { %v1434_v28 = vpack.c.bf16 %v1005_v24, %v1005_v24  ;;  %v1006_v29 = vmax.f32 %v942_v25, 0.0 }
 0x11a   : > { %1168 = vst.msk [vmem:[%s1835_s22 + $0x58] sm:$0xf] %vm1145_vm1, %v1436_v26  ;;  %v1437_v30 = vpack.c.bf16 %v1008_v27, %v1008_v27  ;;  %v1520_v31 = vpop.f32.mrb[24].mxu1 }
 0x11b   : > { %1166 = vst.msk [vmem:[%s1835_s22 + $0x50] sm:$0xf] %vm1145_vm1, %v1434_v28  ;;  %v1435_v32 = vpack.c.bf16 %v1006_v29, %v1006_v29  ;;  %v1560_v33 = vpop.f32.mrb[24].mxu0  ;;  %v641_v34 = vpop.f32.mrb[25].mxu1 }
 0x11c   : > { %1169 = vst.msk [vmem:[%s1835_s22 + $0x5c] sm:$0xf] %vm1145_vm1, %v1437_v30  ;;  %v963_v35 = vadd.f32 %v1560_v33, %v1520_v31  ;;  %v954_v36 = vpop.f32.mrb[25].mxu0  ;;  %v1521_v37 = vpop.f32.mrb[26].mxu1 }
 0x11d   : > { %1167 = vst.msk [vmem:[%s1835_s22 + $0x54] sm:$0xf] %vm1145_vm1, %v1435_v32  ;;  %v955_v38 = vadd.f32 %v954_v36, %v641_v34  ;;  %v1561_v39 = vpop.f32.mrb[26].mxu0  ;;  %v644_v40 = vpop.f32.mrb[27].mxu1 }
 0x11e   : > { %v1011_v41 = vmax.f32 %v963_v35, 0.0  ;;  %v966_v42 = vadd.f32 %v1561_v39, %v1521_v37  ;;  %v957_v43 = vpop.f32.mrb[27].mxu0 }
 0x11f   : > { %v1009_v44 = vmax.f32 %v955_v38, 0.0  ;;  %v958_v45 = vadd.f32 %v957_v43, %v644_v40 }
 0x120   : > { %v1440_v46 = vpack.c.bf16 %v1011_v41, %v1011_v41  ;;  %v1012_v47 = vmax.f32 %v966_v42, 0.0 }
 0x121   : > { %v1438_v48 = vpack.c.bf16 %v1009_v44, %v1009_v44  ;;  %v1010_v49 = vmax.f32 %v958_v45, 0.0 }
 0x122   : > { %1172 = vst.msk [vmem:[%s1835_s22 + $0x68] sm:$0xf] %vm1145_vm1, %v1440_v46  ;;  %v1441_v50 = vpack.c.bf16 %v1012_v47, %v1012_v47  ;;  %v1524_v51 = vpop.f32.mrb[28].mxu1 }
 0x123   : > { %1170 = vst.msk [vmem:[%s1835_s22 + $0x60] sm:$0xf] %vm1145_vm1, %v1438_v48  ;;  %v1439_v52 = vpack.c.bf16 %v1010_v49, %v1010_v49  ;;  %v1564_v53 = vpop.f32.mrb[28].mxu0  ;;  %v657_v54 = vpop.f32.mrb[29].mxu1 }
 0x124   : > { %1173 = vst.msk [vmem:[%s1835_s22 + $0x6c] sm:$0xf] %vm1145_vm1, %v1441_v50  ;;  %v979_v55 = vadd.f32 %v1564_v53, %v1524_v51  ;;  %v970_v56 = vpop.f32.mrb[29].mxu0  ;;  %v1525_v57 = vpop.f32.mrb[30].mxu1 }
 0x125   : > { %1171 = vst.msk [vmem:[%s1835_s22 + $0x64] sm:$0xf] %vm1145_vm1, %v1439_v52  ;;  %v971_v58 = vadd.f32 %v970_v56, %v657_v54  ;;  %v1565_v59 = vpop.f32.mrb[30].mxu0  ;;  %v660_v60 = vpop.f32.mrb[31].mxu1 }
 0x126   : > { %v1015_v61 = vmax.f32 %v979_v55, 0.0  ;;  %v982_v62 = vadd.f32 %v1565_v59, %v1525_v57  ;;  %v973_v63 = vpop.f32.mrb[31].mxu0 }
 0x127   : > { %v1013_v0 = vmax.f32 %v971_v58, 0.0  ;;  %v974_v1 = vadd.f32 %v973_v63, %v660_v60 }
 0x128   : > { %v1444_v2 = vpack.c.bf16 %v1015_v61, %v1015_v61  ;;  %v1016_v3 = vmax.f32 %v982_v62, 0.0 }
 0x129   : > { %v1442_v4 = vpack.c.bf16 %v1013_v0, %v1013_v0  ;;  %v1014_v5 = vmax.f32 %v974_v1, 0.0 }
 0x12a   : > { %1176 = vst.msk [vmem:[%s1835_s22 + $0x78] sm:$0xf] %vm1145_vm1, %v1444_v2  ;;  %v1445_v6 = vpack.c.bf16 %v1016_v3, %v1016_v3 }
 0x12b   : > { %1174 = vst.msk [vmem:[%s1835_s22 + $0x70] sm:$0xf] %vm1145_vm1, %v1442_v4  ;;  %v1443_v7 = vpack.c.bf16 %v1014_v5, %v1014_v5 }
 0x12c   : > { %1177 = vst.msk [vmem:[%s1835_s22 + $0x7c] sm:$0xf] %vm1145_vm1, %v1445_v6 }
 0x12d   : > { %1175 = vst.msk [vmem:[%s1835_s22 + $0x74] sm:$0xf] %vm1145_vm1, %v1443_v7 }
 0x12e PF: > { %s14_s17 = sadd.s32 1, %s1684_s17   ;;  %s1915_s15 = smov %s1680_s16 }
 0x12f   : > { %p11_p5 = scmp.ge.s32.totalorder %s14_s17, 4   ;;  %s1916_s16 = smov %s1918_s18 }
 0x131   :  { %13 = sbr.rel (!%p11_p5) target bundleno = 2 (0x2), region = 75 }

// kernel: _lambda_.10
= control target key start
LH: loop header
LB: loop body
LE: loop exit
PB: predicated region body
PF: predicated region fallthrough
CT: control target
= control target key end

     0   :  { %s2385_s21 = smov 0   ;;  %s2387_s22 = smov 0   ;;  %s2646_s0 = inlined_call_operand.vmem [shape: bf16[512,64], index: 0, kind: input, shape index: {}]   ;;  %s2647_s1 = inlined_call_operand.vmem [shape: bf16[512,64], index: 1, kind: input, shape index: {}]   ;;  %s2648_s2 = inlined_call_operand.vmem [shape: bf16[512,64], index: 2, kind: input, shape index: {}]   ;;  %s2649_s3 = inlined_call_operand.vmem [shape: bf16[64,64], index: 3, kind: input, shape index: {}]   ;;  %s2650_s4 = inlined_call_operand.vmem [shape: bf16[64,64], index: 4, kind: input, shape index: {}, may-alias: {4,5}]   ;;  %s2651_s5 = inlined_call_operand.vmem [shape: bf16[64,64], index: 5, kind: input, shape index: {}, may-alias: {4,5}]   ;;  %s2652_s6 = inlined_call_operand.vmem [shape: bf16[512,64], index: 6, kind: output, shape index: {}]  }
   0x1   :  { %s2389_s23 = smov 0  }
   0x2 LB: > { %s28_s24 = sadd.s32 1, %s2344_s22  ;;  %p1807_p0 = scmp.ge.s32.totalorder %s2348_s23, 1  ;;  %s2348_s23 = sphi %s2389_s23, %s16_s23   ;;  %s2344_s22 = sphi %s2387_s22, %s2654_s22   ;;  %s2340_s21 = sphi %s2385_s21, %s2653_s21  }
   0x3   : > { %p30_p1 = scmp.ge.s32.totalorder %s28_s24, 2  ;;  %p276_p2 = scmp.lt.s32.totalorder %s2348_s23, 3 }
   0x5   : > { %s2656_s24 = smov (%p30_p1, %s28_s24), 0  ;;  %p277_p3 = pnand %p1807_p0, %p276_p2 }
   0x6   : > { %v2266_v0 = vld [vmem:[%s2650_s4] sm:$0xff] (!%p277_p3)   ;;  %s1808_s27 = sshll.u32 (!%p277_p3), %s2340_s21, 5  ;;  %v2268_v2 = vld [vmem:[%s2650_s4 + $0x8] sm:$0xff] (!%p277_p3)   ;;  %v2270_v4 = vld [vmem:[%s2650_s4 + $0x10] sm:$0xff] (!%p277_p3)   ;;  %vm555_vm0 = vcmask (!%p277_p3), 523264   ;;  %vm1623_vm1 = vcmask (!%p277_p3), 519168  }
   0x7   : > { %280 = sbr.rel (%p277_p3) target bundleno = 334 (0x14e), region = 44  ;;  %v2267_v1 = vld [vmem:[%s2649_s3] sm:$0xff] (!%p277_p3)   ;;  %p332_p4 = scmp.lt.s32.totalorder (!%p277_p3), %s1808_s27, 63  ;;  %2050 = vmatprep.subr.bf16.mxu1 (!%p277_p3), %v2266_v0  ;;  %v2269_v3 = vld [vmem:[%s2649_s3 + $0x8] sm:$0xff] (!%p277_p3)   ;;  %v2271_v5 = vld [vmem:[%s2649_s3 + $0x10] sm:$0xff] (!%p277_p3)  }
   0x8   : > { %2090 = vmatprep.subr.bf16.mxu0 (!%p277_p3), %v2267_v1  ;;  %2051 = vmatpush3.bf16.msra.mxu1 (!%p277_p3), %v2266_v0  ;;  %v2272_v6 = vld [vmem:[%s2650_s4 + $0x18] sm:$0xff] (!%p277_p3)   ;;  %v2278_v11 = vld [vmem:[%s2651_s5] sm:$0xff] (!%p277_p3)   ;;  %v2283_v15 = vld [vmem:[%s2651_s5 + $0x8] sm:$0xff] (!%p277_p3)  }
   0x9   : > { %2091 = vmatpush3.bf16.msra.mxu0 (!%p277_p3), %v2267_v1  ;;  %2052 = vmatprep.subr.bf16.mxu1 (!%p277_p3), %v2268_v2  ;;  %v2273_v7 = vld [vmem:[%s2649_s3 + $0x18] sm:$0xff] (!%p277_p3)   ;;  %v2288_v18 = vld [vmem:[%s2651_s5 + $0x10] sm:$0xff] (!%p277_p3)  }
   0xa   : > { %2092 = vmatprep.subr.bf16.mxu0 (!%p277_p3), %v2269_v3  ;;  %v2293_v21 = vld [vmem:[%s2651_s5 + $0x18] sm:$0xff] (!%p277_p3)  }
   0xc   : > { %2053 = vmatpush3.bf16.msra.mxu1 (!%p277_p3), %v2268_v2 }
   0xd   : > { %2093 = vmatpush3.bf16.msra.mxu0 (!%p277_p3), %v2269_v3  ;;  %2054 = vmatprep.subr.bf16.mxu1 (!%p277_p3), %v2270_v4 }
   0xe   : > { %s2658_s27 = smov (!%p332_p4, %s1808_s27), 63  ;;  %2094 = vmatprep.subr.bf16.mxu0 %v2271_v5 }
   0xf   : > { %s2421_s14 = sshll.u32 %s2658_s27, 2 }
  0x10   : > { %s2430_s19 = scalar_lea.vmem %s2647_s1, %s2421_s14  ;;  %s2436_s25 = scalar_lea.vmem %s2646_s0, %s2421_s14  ;;  %2055 = vmatpush3.bf16.msra.mxu1 %v2270_v4 }
  0x11   : > { %v2274_v8 = vld [vmem:[%s2430_s19] sm:$0xff]   ;;  %2095 = vmatpush3.bf16.msra.mxu0 %v2271_v5  ;;  %2056 = vmatprep.subr.bf16.mxu1 %v2272_v6  ;;  %v2276_v10 = vld [vmem:[%s2430_s19 + $0x8] sm:$0xff]   ;;  %v2279_v13 = vld [vmem:[%s2430_s19 + $0x10] sm:$0xff]   ;;  %s2477_s15 = scalar_lea.vmem %s2648_s2, %s2421_s14  ;;  %s2567_s18 = scalar_lea.vmem %s2652_s6, %s2421_s14 }
  0x12   : > { %v2275_v9 = vld [vmem:[%s2436_s25] sm:$0xff]   ;;  %2058 = vmatprep.mubr.msk.bf16.mxu1 %vm555_vm0, %v2274_v8  ;;  %2096 = vmatprep.subr.bf16.mxu0 %v2273_v7  ;;  %v2277_v12 = vld [vmem:[%s2436_s25 + $0x8] sm:$0xff]   ;;  %v2280_v14 = vld [vmem:[%s2436_s25 + $0x10] sm:$0xff]  }
  0x13   : > { %2098 = vmatprep.mubr.msk.bf16.mxu0 %vm555_vm0, %v2275_v9  ;;  %v2281_v16 = vld [vmem:[%s2430_s19 + $0x18] sm:$0xff]   ;;  %v2284_v19 = vld [vmem:[%s2430_s19 + $0x20] sm:$0xff]   ;;  %v2286_v22 = vld [vmem:[%s2430_s19 + $0x28] sm:$0xff]  }
  0x14   : > { %2057 = vmatpush3.bf16.msra.mxu1 %v2272_v6  ;;  %v2282_v17 = vld [vmem:[%s2436_s25 + $0x18] sm:$0xff]   ;;  %v2285_v20 = vld [vmem:[%s2436_s25 + $0x20] sm:$0xff]   ;;  %v2287_v23 = vld [vmem:[%s2436_s25 + $0x28] sm:$0xff]  }
  0x15   : > { %2097 = vmatpush3.bf16.msra.mxu0 %v2273_v7  ;;  %2170 = vmatprep.subr.bf16.mxu1 %v2267_v1  ;;  %v2289_v24 = vld [vmem:[%s2430_s19 + $0x30] sm:$0xff]   ;;  %v2291_v26 = vld [vmem:[%s2430_s19 + $0x38] sm:$0xff]   ;;  %v2294_v28 = vld [vmem:[%s2430_s19 + $0x40] sm:$0xff]  }
  0x16   : > { %2130 = vmatprep.subr.bf16.mxu0 %v2278_v11  ;;  %v2290_v25 = vld [vmem:[%s2436_s25 + $0x30] sm:$0xff]   ;;  %v2292_v27 = vld [vmem:[%s2436_s25 + $0x38] sm:$0xff]   ;;  %v2295_v29 = vld [vmem:[%s2477_s15] sm:$0xff]  }
  0x17   : > { %2059 = vmatmul.mubr.msk.bf16.vlgmr.msra.gmra.mrb[0].mxu1 %vm555_vm0, %v2276_v10  ;;  %v2296_v30 = vld [vmem:[%s2430_s19 + $0x48] sm:$0xff]   ;;  %v2298_v32 = vld [vmem:[%s2430_s19 + $0x50] sm:$0xff]   ;;  %v2300_v34 = vld [vmem:[%s2430_s19 + $0x58] sm:$0xff]  }
  0x18   : > { %2099 = vmatmul.mubr.msk.bf16.vlgmr.msra.gmra.mrb[0].mxu0 %vm555_vm0, %v2277_v12  ;;  %2174 = vmatpush3.bf16.msra.mxu1 %v2267_v1  ;;  %v2297_v31 = vld [vmem:[%s2477_s15 + $0x8] sm:$0xff]   ;;  %v2299_v33 = vld [vmem:[%s2477_s15 + $0x10] sm:$0xff]   ;;  %v2301_v35 = vld [vmem:[%s2477_s15 + $0x18] sm:$0xff]  }
  0x19   : > { %2131 = vmatpush3.bf16.msra.mxu0 %v2278_v11  ;;  %2062 = vmatprep.mubr.msk.bf16.mxu1 %vm555_vm0, %v2279_v13  ;;  %v2302_v36 = vld [vmem:[%s2430_s19 + $0x60] sm:$0xff]   ;;  %v2304_v38 = vld [vmem:[%s2430_s19 + $0x68] sm:$0xff]   ;;  %v2306_v40 = vld [vmem:[%s2430_s19 + $0x70] sm:$0xff]  }
  0x1a   : > { %2102 = vmatprep.mubr.msk.bf16.mxu0 %vm555_vm0, %v2280_v14  ;;  %2132 = vmatprep.subr.bf16.mxu0 %v2283_v15  ;;  %v2303_v37 = vld [vmem:[%s2477_s15 + $0x20] sm:$0xff]   ;;  %v2305_v39 = vld [vmem:[%s2477_s15 + $0x28] sm:$0xff]   ;;  %v2307_v41 = vld [vmem:[%s2477_s15 + $0x30] sm:$0xff]  }
  0x1b   : > { %2171 = vmatprep.subr.bf16.mxu1 %v2269_v3  ;;  %v2308_v42 = vld [vmem:[%s2430_s19 + $0x78] sm:$0xff]   ;;  %v2310_v44 = vld [vmem:[%s2436_s25 + $0x40] sm:$0xff]   ;;  %v2312_v46 = vld [vmem:[%s2436_s25 + $0x48] sm:$0xff]  }
  0x1c   : > { %2175 = vmatpush3.bf16.msra.mxu1 %v2269_v3  ;;  %v2309_v43 = vld [vmem:[%s2477_s15 + $0x38] sm:$0xff]   ;;  %v2311_v45 = vld [vmem:[%s2477_s15 + $0x40] sm:$0xff]   ;;  %v2313_v47 = vld [vmem:[%s2477_s15 + $0x48] sm:$0xff]  }
  0x1d   : > { %2133 = vmatpush3.bf16.msra.mxu0 %v2283_v15  ;;  %2172 = vmatprep.subr.bf16.mxu1 %v2271_v5  ;;  %v2314_v48 = vld [vmem:[%s2436_s25 + $0x50] sm:$0xff]   ;;  %v2316_v50 = vld [vmem:[%s2436_s25 + $0x58] sm:$0xff]   ;;  %v2318_v52 = vld [vmem:[%s2436_s25 + $0x60] sm:$0xff]  }
  0x1e   : > { %2134 = vmatprep.subr.bf16.mxu0 %v2288_v18  ;;  %v2315_v49 = vld [vmem:[%s2477_s15 + $0x50] sm:$0xff]   ;;  %v2317_v51 = vld [vmem:[%s2477_s15 + $0x58] sm:$0xff]   ;;  %v2319_v53 = vld [vmem:[%s2477_s15 + $0x60] sm:$0xff]  }
  0x1f   : > { %2063 = vmatmul.mubr.msk.bf16.gmra.mrb[4].mxu1 %vm555_vm0, %v2281_v16  ;;  %v2320_v54 = vld [vmem:[%s2436_s25 + $0x68] sm:$0xff]   ;;  %v2322_v56 = vld [vmem:[%s2436_s25 + $0x70] sm:$0xff]   ;;  %v2324_v58 = vld [vmem:[%s2436_s25 + $0x78] sm:$0xff]  }
  0x20   : > { %2103 = vmatmul.mubr.msk.bf16.gmra.mrb[4].mxu0 %vm555_vm0, %v2282_v17  ;;  %2066 = vmatprep.mubr.msk.bf16.mxu1 %vm555_vm0, %v2284_v19  ;;  %v2321_v55 = vld [vmem:[%s2477_s15 + $0x68] sm:$0xff]   ;;  %v2323_v57 = vld [vmem:[%s2477_s15 + $0x70] sm:$0xff]   ;;  %v2325_v59 = vld [vmem:[%s2477_s15 + $0x78] sm:$0xff]  }
  0x21   : > { %2106 = vmatprep.mubr.msk.bf16.mxu0 %vm555_vm0, %v2285_v20  ;;  %2135 = vmatpush3.bf16.msra.mxu0 %v2288_v18 }
  0x22   : > { %2136 = vmatprep.subr.bf16.mxu0 %v2293_v21  ;;  %2176 = vmatpush3.bf16.msra.mxu1 %v2271_v5 }
  0x23   : > { %2173 = vmatprep.subr.bf16.mxu1 %v2273_v7 }
  0x25   : > { %2137 = vmatpush3.bf16.msra.mxu0 %v2293_v21 }
  0x26   : > { %2177 = vmatpush3.bf16.msra.mxu1 %v2273_v7 }
  0x27   : > { %2067 = vmatmul.mubr.msk.bf16.gmra.mrb[8].mxu1 %vm555_vm0, %v2286_v22 }
  0x28   : > { %2107 = vmatmul.mubr.msk.bf16.gmra.mrb[8].mxu0 %vm555_vm0, %v2287_v23  ;;  %2070 = vmatprep.mubr.msk.bf16.mxu1 %vm555_vm0, %v2289_v24 }
  0x29   : > { %2110 = vmatprep.mubr.msk.bf16.mxu0 %vm555_vm0, %v2290_v25 }
  0x2f   : > { %2071 = vmatmul.mubr.msk.bf16.gmra.mrb[12].mxu1 %vm555_vm0, %v2291_v26 }
  0x30   : > { %2111 = vmatmul.mubr.msk.bf16.gmra.mrb[12].mxu0 %vm555_vm0, %v2292_v27  ;;  %2074 = vmatprep.mubr.msk.bf16.mxu1 %vm555_vm0, %v2294_v28 }
  0x31   : > { %2138 = vmatprep.mubr.msk.bf16.mxu0 %vm555_vm0, %v2295_v29 }
  0x37   : > { %2075 = vmatmul.mubr.msk.bf16.gmra.mrb[16].mxu1 %vm555_vm0, %v2296_v30 }
  0x38   : > { %2139 = vmatmul.mubr.msk.bf16.vlgmr.msra.gmra.mrb[0].mxu0 %vm555_vm0, %v2297_v31  ;;  %2078 = vmatprep.mubr.msk.bf16.mxu1 %vm555_vm0, %v2298_v32 }
  0x39   : > { %2142 = vmatprep.mubr.msk.bf16.mxu0 %vm555_vm0, %v2299_v33 }
  0x3f   : > { %2079 = vmatmul.mubr.msk.bf16.gmra.mrb[20].mxu1 %vm555_vm0, %v2300_v34 }
  0x40   : > { %2143 = vmatmul.mubr.msk.bf16.gmra.mrb[4].mxu0 %vm555_vm0, %v2301_v35  ;;  %2082 = vmatprep.mubr.msk.bf16.mxu1 %vm555_vm0, %v2302_v36 }
  0x41   : > { %2146 = vmatprep.mubr.msk.bf16.mxu0 %vm555_vm0, %v2303_v37 }
  0x47   : > { %2083 = vmatmul.mubr.msk.bf16.gmra.mrb[24].mxu1 %vm555_vm0, %v2304_v38 }
  0x48   : > { %2147 = vmatmul.mubr.msk.bf16.gmra.mrb[8].mxu0 %vm555_vm0, %v2305_v39  ;;  %2086 = vmatprep.mubr.msk.bf16.mxu1 %vm555_vm0, %v2306_v40 }
  0x49   : > { %2150 = vmatprep.mubr.msk.bf16.mxu0 %vm555_vm0, %v2307_v41 }
  0x4f   : > { %2087 = vmatmul.mubr.msk.bf16.gmra.mrb[28].mxu1 %vm555_vm0, %v2308_v42 }
  0x50   : > { %2151 = vmatmul.mubr.msk.bf16.gmra.mrb[12].mxu0 %vm555_vm0, %v2309_v43  ;;  %2114 = vmatprep.mubr.msk.bf16.mxu1 %vm555_vm0, %v2310_v44 }
  0x51   : > { %2154 = vmatprep.mubr.msk.bf16.mxu0 %vm555_vm0, %v2311_v45 }
  0x57   : > { %2115 = vmatmul.mubr.msk.bf16.vlgmr.msra.gmra.mrb[16].mxu1 %vm555_vm0, %v2312_v46 }
  0x58   : > { %2155 = vmatmul.mubr.msk.bf16.gmra.mrb[16].mxu0 %vm555_vm0, %v2313_v47  ;;  %2118 = vmatprep.mubr.msk.bf16.mxu1 %vm555_vm0, %v2314_v48 }
  0x59   : > { %2158 = vmatprep.mubr.msk.bf16.mxu0 %vm555_vm0, %v2315_v49 }
  0x5f   : > { %2119 = vmatmul.mubr.msk.bf16.gmra.mrb[20].mxu1 %vm555_vm0, %v2316_v50 }
  0x60   : > { %2159 = vmatmul.mubr.msk.bf16.gmra.mrb[20].mxu0 %vm555_vm0, %v2317_v51  ;;  %2122 = vmatprep.mubr.msk.bf16.mxu1 %vm555_vm0, %v2318_v52 }
  0x61   : > { %2162 = vmatprep.mubr.msk.bf16.mxu0 %vm555_vm0, %v2319_v53 }
  0x67   : > { %2123 = vmatmul.mubr.msk.bf16.gmra.mrb[24].mxu1 %vm555_vm0, %v2320_v54 }
  0x68   : > { %2163 = vmatmul.mubr.msk.bf16.gmra.mrb[24].mxu0 %vm555_vm0, %v2321_v55  ;;  %2126 = vmatprep.mubr.msk.bf16.mxu1 %vm555_vm0, %v2322_v56 }
  0x69   : > { %2166 = vmatprep.mubr.msk.bf16.mxu0 %vm555_vm0, %v2323_v57 }
  0x6f   : > { %2127 = vmatmul.mubr.msk.bf16.gmra.mrb[28].mxu1 %vm555_vm0, %v2324_v58 }
  0x70   : > { %2167 = vmatmul.mubr.msk.bf16.gmra.mrb[28].mxu0 %vm555_vm0, %v2325_v59 }
  0xea   : > { %v2060_v60 = vpop.f32.mrb[0].mxu1 }
  0xeb   : > { %v638_v61 = vpop.f32.mrb[1].mxu1 }
  0xec   : > { %v2061_v62 = vpop.f32.mrb[2].mxu1 }
  0xed   : > { %v641_v63 = vpop.f32.mrb[3].mxu1 }
  0xf2   : > { %v2064_v0 = vpop.f32.mrb[4].mxu1 }
  0xf3   : > { %v654_v1 = vpop.f32.mrb[5].mxu1 }
  0xf4   : > { %v2065_v2 = vpop.f32.mrb[6].mxu1 }
  0xf5   : > { %v657_v3 = vpop.f32.mrb[7].mxu1 }
  0xfa   : > { %v2068_v4 = vpop.f32.mrb[8].mxu1 }
  0xfb   : > { %v670_v5 = vpop.f32.mrb[9].mxu1 }
  0xfc   : > { %v2069_v6 = vpop.f32.mrb[10].mxu1 }
  0xfd   : > { %v673_v7 = vpop.f32.mrb[11].mxu1 }
 0x102   : > { %v2555_v8 = vpop.f32.mrb[12].mxu1 }
 0x103   : > { %v2557_v9 = vpop.f32.mrb[13].mxu1 }
 0x104   : > { %v2559_v10 = vpop.f32.mrb[14].mxu1 }
 0x105   : > { %v2561_v11 = vpop.f32.mrb[15].mxu1 }
 0x10b   : > { %v2140_v12 = vpop.f32.mrb[0].mxu0 }
 0x10c   : > { %v2178_v13 = vadd.f32 %v2140_v12, %v2060_v60  ;;  %v1304_v14 = vpop.f32.mrb[1].mxu0 }
 0x10d   : > { %v2179_v15 = vadd.f32 %v1304_v14, %v638_v61  ;;  %v2141_v16 = vpop.f32.mrb[2].mxu0 }
 0x10e   : > { %v1465_v17 = vmax.f32 %v2178_v13, 0.0  ;;  %v2180_v18 = vadd.f32 %v2141_v16, %v2061_v62  ;;  %v1307_v19 = vpop.f32.mrb[3].mxu0 }
 0x10f   : > { %v1463_v20 = vmax.f32 %v2179_v15, 0.0  ;;  %v2181_v21 = vadd.f32 %v1307_v19, %v641_v63 }
 0x110   : > { %v1960_v22 = vpack.c.bf16 %v1465_v17, %v1465_v17  ;;  %v1466_v23 = vmax.f32 %v2180_v18, 0.0 }
 0x111   : > { %v1958_v24 = vpack.c.bf16 %v1463_v20, %v1463_v20  ;;  %v1464_v25 = vmax.f32 %v2181_v21, 0.0 }
 0x112   : > { %1626 = vst.msk [vmem:[%s2567_s18 + $0x8] sm:$0xf] %vm1623_vm1, %v1960_v22  ;;  %v1961_v26 = vpack.c.bf16 %v1466_v23, %v1466_v23 }
 0x113   : > { %1624 = vst.msk [vmem:[%s2567_s18] sm:$0xf] %vm1623_vm1, %v1958_v24  ;;  %v1959_v27 = vpack.c.bf16 %v1464_v25, %v1464_v25  ;;  %v2144_v28 = vpop.f32.mrb[4].mxu0 }
 0x114   : > { %1627 = vst.msk [vmem:[%s2567_s18 + $0xc] sm:$0xf] %vm1623_vm1, %v1961_v26  ;;  %v2182_v29 = vadd.f32 %v2144_v28, %v2064_v0  ;;  %v1320_v30 = vpop.f32.mrb[5].mxu0 }
 0x115   : > { %1625 = vst.msk [vmem:[%s2567_s18 + $0x4] sm:$0xf] %vm1623_vm1, %v1959_v27  ;;  %v2183_v31 = vadd.f32 %v1320_v30, %v654_v1  ;;  %v2145_v32 = vpop.f32.mrb[6].mxu0 }
 0x116   : > { %v1469_v33 = vmax.f32 %v2182_v29, 0.0  ;;  %v2184_v34 = vadd.f32 %v2145_v32, %v2065_v2  ;;  %v1323_v35 = vpop.f32.mrb[7].mxu0 }
 0x117   : > { %v1467_v36 = vmax.f32 %v2183_v31, 0.0  ;;  %v2185_v37 = vadd.f32 %v1323_v35, %v657_v3 }
 0x118   : > { %v1964_v38 = vpack.c.bf16 %v1469_v33, %v1469_v33  ;;  %v1470_v39 = vmax.f32 %v2184_v34, 0.0 }
 0x119   : > { %v1962_v40 = vpack.c.bf16 %v1467_v36, %v1467_v36  ;;  %v1468_v41 = vmax.f32 %v2185_v37, 0.0 }
 0x11a   : > { %1630 = vst.msk [vmem:[%s2567_s18 + $0x18] sm:$0xf] %vm1623_vm1, %v1964_v38  ;;  %v1965_v42 = vpack.c.bf16 %v1470_v39, %v1470_v39 }
 0x11b   : > { %1628 = vst.msk [vmem:[%s2567_s18 + $0x10] sm:$0xf] %vm1623_vm1, %v1962_v40  ;;  %v1963_v43 = vpack.c.bf16 %v1468_v41, %v1468_v41  ;;  %v2148_v44 = vpop.f32.mrb[8].mxu0 }
 0x11c   : > { %1631 = vst.msk [vmem:[%s2567_s18 + $0x1c] sm:$0xf] %vm1623_vm1, %v1965_v42  ;;  %v2186_v45 = vadd.f32 %v2148_v44, %v2068_v4  ;;  %v1336_v46 = vpop.f32.mrb[9].mxu0 }
 0x11d   : > { %1629 = vst.msk [vmem:[%s2567_s18 + $0x14] sm:$0xf] %vm1623_vm1, %v1963_v43  ;;  %v2187_v47 = vadd.f32 %v1336_v46, %v670_v5  ;;  %v2149_v48 = vpop.f32.mrb[10].mxu0 }
 0x11e   : > { %v1473_v49 = vmax.f32 %v2186_v45, 0.0  ;;  %v2188_v50 = vadd.f32 %v2149_v48, %v2069_v6  ;;  %v1339_v51 = vpop.f32.mrb[11].mxu0 }
 0x11f   : > { %v1471_v52 = vmax.f32 %v2187_v47, 0.0  ;;  %v2189_v53 = vadd.f32 %v1339_v51, %v673_v7 }
 0x120   : > { %v1968_v54 = vpack.c.bf16 %v1473_v49, %v1473_v49  ;;  %v1474_v55 = vmax.f32 %v2188_v50, 0.0 }
 0x121   : > { %v1966_v56 = vpack.c.bf16 %v1471_v52, %v1471_v52  ;;  %v1472_v57 = vmax.f32 %v2189_v53, 0.0 }
 0x122   : > { %1634 = vst.msk [vmem:[%s2567_s18 + $0x28] sm:$0xf] %vm1623_vm1, %v1968_v54  ;;  %v1969_v58 = vpack.c.bf16 %v1474_v55, %v1474_v55 }
 0x123   : > { %1632 = vst.msk [vmem:[%s2567_s18 + $0x20] sm:$0xf] %vm1623_vm1, %v1966_v56  ;;  %v1967_v59 = vpack.c.bf16 %v1472_v57, %v1472_v57  ;;  %v2152_v60 = vpop.f32.mrb[12].mxu0 }
 0x124   : > { %1635 = vst.msk [vmem:[%s2567_s18 + $0x2c] sm:$0xf] %vm1623_vm1, %v1969_v58  ;;  %v2190_v61 = vadd.f32 %v2152_v60, %v2555_v8  ;;  %v1352_v62 = vpop.f32.mrb[13].mxu0 }
 0x125   : > { %1633 = vst.msk [vmem:[%s2567_s18 + $0x24] sm:$0xf] %vm1623_vm1, %v1967_v59  ;;  %v2191_v63 = vadd.f32 %v1352_v62, %v2557_v9  ;;  %v2153_v0 = vpop.f32.mrb[14].mxu0 }
 0x126   : > { %v1477_v1 = vmax.f32 %v2190_v61, 0.0  ;;  %v2192_v2 = vadd.f32 %v2153_v0, %v2559_v10  ;;  %v1355_v3 = vpop.f32.mrb[15].mxu0 }
 0x127   : > { %v1475_v4 = vmax.f32 %v2191_v63, 0.0  ;;  %v2193_v5 = vadd.f32 %v1355_v3, %v2561_v11 }
 0x128   : > { %v1972_v6 = vpack.c.bf16 %v1477_v1, %v1477_v1  ;;  %v1478_v7 = vmax.f32 %v2192_v2, 0.0 }
 0x129   : > { %v1970_v12 = vpack.c.bf16 %v1475_v4, %v1475_v4  ;;  %v1476_v8 = vmax.f32 %v2193_v5, 0.0 }
 0x12a   : > { %1638 = vst.msk [vmem:[%s2567_s18 + $0x38] sm:$0xf] %vm1623_vm1, %v1972_v6  ;;  %v1973_v13 = vpack.c.bf16 %v1478_v7, %v1478_v7  ;;  %v2116_v14 = vpop.f32.mrb[16].mxu1 }
 0x12b   : > { %1636 = vst.msk [vmem:[%s2567_s18 + $0x30] sm:$0xf] %vm1623_vm1, %v1970_v12  ;;  %v1971_v9 = vpack.c.bf16 %v1476_v8, %v1476_v8  ;;  %v2156_v15 = vpop.f32.mrb[16].mxu0  ;;  %v1015_v16 = vpop.f32.mrb[17].mxu1 }
 0x12c   : > { %1639 = vst.msk [vmem:[%s2567_s18 + $0x3c] sm:$0xf] %vm1623_vm1, %v1973_v13  ;;  %v2194_v10 = vadd.f32 %v2156_v15, %v2116_v14  ;;  %v1368_v17 = vpop.f32.mrb[17].mxu0  ;;  %v2117_v11 = vpop.f32.mrb[18].mxu1 }
 0x12d   : > { %1637 = vst.msk [vmem:[%s2567_s18 + $0x34] sm:$0xf] %vm1623_vm1, %v1971_v9  ;;  %v2195_v18 = vadd.f32 %v1368_v17, %v1015_v16  ;;  %v2157_v19 = vpop.f32.mrb[18].mxu0  ;;  %v1018_v20 = vpop.f32.mrb[19].mxu1 }
 0x12e   : > { %v1481_v21 = vmax.f32 %v2194_v10, 0.0  ;;  %v2196_v22 = vadd.f32 %v2157_v19, %v2117_v11  ;;  %v1371_v23 = vpop.f32.mrb[19].mxu0 }
 0x12f   : > { %v1479_v24 = vmax.f32 %v2195_v18, 0.0  ;;  %v2197_v25 = vadd.f32 %v1371_v23, %v1018_v20 }
 0x130   : > { %v1976_v26 = vpack.c.bf16 %v1481_v21, %v1481_v21  ;;  %v1482_v27 = vmax.f32 %v2196_v22, 0.0 }
 0x131   : > { %v1974_v28 = vpack.c.bf16 %v1479_v24, %v1479_v24  ;;  %v1480_v29 = vmax.f32 %v2197_v25, 0.0 }
 0x132   : > { %1642 = vst.msk [vmem:[%s2567_s18 + $0x48] sm:$0xf] %vm1623_vm1, %v1976_v26  ;;  %v1977_v30 = vpack.c.bf16 %v1482_v27, %v1482_v27  ;;  %v2120_v31 = vpop.f32.mrb[20].mxu1 }
 0x133   : > { %1640 = vst.msk [vmem:[%s2567_s18 + $0x40] sm:$0xf] %vm1623_vm1, %v1974_v28  ;;  %v1975_v32 = vpack.c.bf16 %v1480_v29, %v1480_v29  ;;  %v2160_v33 = vpop.f32.mrb[20].mxu0  ;;  %v1031_v34 = vpop.f32.mrb[21].mxu1 }
 0x134   : > { %1643 = vst.msk [vmem:[%s2567_s18 + $0x4c] sm:$0xf] %vm1623_vm1, %v1977_v30  ;;  %v2198_v35 = vadd.f32 %v2160_v33, %v2120_v31  ;;  %v1384_v36 = vpop.f32.mrb[21].mxu0  ;;  %v2121_v37 = vpop.f32.mrb[22].mxu1 }
 0x135   : > { %1641 = vst.msk [vmem:[%s2567_s18 + $0x44] sm:$0xf] %vm1623_vm1, %v1975_v32  ;;  %v2199_v38 = vadd.f32 %v1384_v36, %v1031_v34  ;;  %v2161_v39 = vpop.f32.mrb[22].mxu0  ;;  %v1034_v40 = vpop.f32.mrb[23].mxu1 }
 0x136   : > { %v1485_v41 = vmax.f32 %v2198_v35, 0.0  ;;  %v2200_v42 = vadd.f32 %v2161_v39, %v2121_v37  ;;  %v1387_v43 = vpop.f32.mrb[23].mxu0 }
 0x137   : > { %v1483_v44 = vmax.f32 %v2199_v38, 0.0  ;;  %v2201_v45 = vadd.f32 %v1387_v43, %v1034_v40 }
 0x138   : > { %v1980_v46 = vpack.c.bf16 %v1485_v41, %v1485_v41  ;;  %v1486_v47 = vmax.f32 %v2200_v42, 0.0 }
 0x139   : > { %v1978_v48 = vpack.c.bf16 %v1483_v44, %v1483_v44  ;;  %v1484_v49 = vmax.f32 %v2201_v45, 0.0 }
 0x13a   : > { %1646 = vst.msk [vmem:[%s2567_s18 + $0x58] sm:$0xf] %vm1623_vm1, %v1980_v46  ;;  %v1981_v50 = vpack.c.bf16 %v1486_v47, %v1486_v47  ;;  %v2124_v51 = vpop.f32.mrb[24].mxu1 }
 0x13b   : > { %1644 = vst.msk [vmem:[%s2567_s18 + $0x50] sm:$0xf] %vm1623_vm1, %v1978_v48  ;;  %v1979_v52 = vpack.c.bf16 %v1484_v49, %v1484_v49  ;;  %v2164_v53 = vpop.f32.mrb[24].mxu0  ;;  %v1047_v54 = vpop.f32.mrb[25].mxu1 }
 0x13c   : > { %1647 = vst.msk [vmem:[%s2567_s18 + $0x5c] sm:$0xf] %vm1623_vm1, %v1981_v50  ;;  %v2202_v55 = vadd.f32 %v2164_v53, %v2124_v51  ;;  %v1400_v56 = vpop.f32.mrb[25].mxu0  ;;  %v2125_v57 = vpop.f32.mrb[26].mxu1 }
 0x13d   : > { %1645 = vst.msk [vmem:[%s2567_s18 + $0x54] sm:$0xf] %vm1623_vm1, %v1979_v52  ;;  %v2203_v58 = vadd.f32 %v1400_v56, %v1047_v54  ;;  %v2165_v59 = vpop.f32.mrb[26].mxu0  ;;  %v1050_v60 = vpop.f32.mrb[27].mxu1 }
 0x13e   : > { %v1489_v61 = vmax.f32 %v2202_v55, 0.0  ;;  %v2204_v62 = vadd.f32 %v2165_v59, %v2125_v57  ;;  %v1403_v63 = vpop.f32.mrb[27].mxu0 }
 0x13f   : > { %v1487_v0 = vmax.f32 %v2203_v58, 0.0  ;;  %v2205_v1 = vadd.f32 %v1403_v63, %v1050_v60 }
 0x140   : > { %v1984_v2 = vpack.c.bf16 %v1489_v61, %v1489_v61  ;;  %v1490_v3 = vmax.f32 %v2204_v62, 0.0 }
 0x141   : > { %v1982_v4 = vpack.c.bf16 %v1487_v0, %v1487_v0  ;;  %v1488_v5 = vmax.f32 %v2205_v1, 0.0 }
 0x142   : > { %1650 = vst.msk [vmem:[%s2567_s18 + $0x68] sm:$0xf] %vm1623_vm1, %v1984_v2  ;;  %v1985_v6 = vpack.c.bf16 %v1490_v3, %v1490_v3  ;;  %v2128_v7 = vpop.f32.mrb[28].mxu1 }
 0x143   : > { %1648 = vst.msk [vmem:[%s2567_s18 + $0x60] sm:$0xf] %vm1623_vm1, %v1982_v4  ;;  %v1983_v12 = vpack.c.bf16 %v1488_v5, %v1488_v5  ;;  %v2168_v8 = vpop.f32.mrb[28].mxu0  ;;  %v1063_v13 = vpop.f32.mrb[29].mxu1 }
 0x144   : > { %1651 = vst.msk [vmem:[%s2567_s18 + $0x6c] sm:$0xf] %vm1623_vm1, %v1985_v6  ;;  %v2206_v14 = vadd.f32 %v2168_v8, %v2128_v7  ;;  %v1416_v9 = vpop.f32.mrb[29].mxu0  ;;  %v2129_v15 = vpop.f32.mrb[30].mxu1 }
 0x145   : > { %1649 = vst.msk [vmem:[%s2567_s18 + $0x64] sm:$0xf] %vm1623_vm1, %v1983_v12  ;;  %v2207_v16 = vadd.f32 %v1416_v9, %v1063_v13  ;;  %v2169_v10 = vpop.f32.mrb[30].mxu0  ;;  %v1066_v17 = vpop.f32.mrb[31].mxu1 }
 0x146   : > { %v1493_v11 = vmax.f32 %v2206_v14, 0.0  ;;  %v2208_v18 = vadd.f32 %v2169_v10, %v2129_v15  ;;  %v1419_v19 = vpop.f32.mrb[31].mxu0 }
 0x147   : > { %v1491_v20 = vmax.f32 %v2207_v16, 0.0  ;;  %v2209_v21 = vadd.f32 %v1419_v19, %v1066_v17 }
 0x148   : > { %v1988_v22 = vpack.c.bf16 %v1493_v11, %v1493_v11  ;;  %v1494_v23 = vmax.f32 %v2208_v18, 0.0 }
 0x149   : > { %v1986_v24 = vpack.c.bf16 %v1491_v20, %v1491_v20  ;;  %v1492_v25 = vmax.f32 %v2209_v21, 0.0 }
 0x14a   : > { %1654 = vst.msk [vmem:[%s2567_s18 + $0x78] sm:$0xf] %vm1623_vm1, %v1988_v22  ;;  %v1989_v26 = vpack.c.bf16 %v1494_v23, %v1494_v23 }
 0x14b   : > { %1652 = vst.msk [vmem:[%s2567_s18 + $0x70] sm:$0xf] %vm1623_vm1, %v1986_v24  ;;  %v1987_v27 = vpack.c.bf16 %v1492_v25, %v1492_v25 }
 0x14c   : > { %1655 = vst.msk [vmem:[%s2567_s18 + $0x7c] sm:$0xf] %vm1623_vm1, %v1989_v26 }
 0x14d   : > { %1653 = vst.msk [vmem:[%s2567_s18 + $0x74] sm:$0xf] %vm1623_vm1, %v1987_v27 }
 0x14e PF: > { %s16_s23 = sadd.s32 1, %s2348_s23   ;;  %s2653_s21 = smov %s2344_s22 }
 0x14f   : > { %p13_p5 = scmp.ge.s32.totalorder %s16_s23, 4   ;;  %s2654_s22 = smov %s2656_s24 }
 0x151   :  { %15 = sbr.rel (!%p13_p5) target bundleno = 2 (0x2), region = 89 }

// kernel: _lambda_.12
= control target key start
LH: loop header
LB: loop body
LE: loop exit
PB: predicated region body
PF: predicated region fallthrough
CT: control target
= control target key end

     0   :  { %s3043_s27 = smov 0   ;;  %s3045_s28 = smov 0   ;;  %s3342_s0 = inlined_call_operand.vmem [shape: bf16[512,64], index: 0, kind: input, shape index: {}]   ;;  %s3343_s1 = inlined_call_operand.vmem [shape: bf16[512,64], index: 1, kind: input, shape index: {}]   ;;  %s3344_s2 = inlined_call_operand.vmem [shape: bf16[512,64], index: 2, kind: input, shape index: {}]   ;;  %s3345_s3 = inlined_call_operand.vmem [shape: bf16[512,64], index: 3, kind: input, shape index: {}]   ;;  %s3346_s4 = inlined_call_operand.vmem [shape: bf16[64,64], index: 4, kind: input, shape index: {}, may-alias: {4,5}]   ;;  %s3347_s5 = inlined_call_operand.vmem [shape: bf16[64,64], index: 5, kind: input, shape index: {}, may-alias: {4,5}]   ;;  %s3348_s6 = inlined_call_operand.vmem [shape: bf16[64,64], index: 6, kind: input, shape index: {}, may-alias: {6,7}]   ;;  %s3349_s7 = inlined_call_operand.vmem [shape: bf16[64,64], index: 7, kind: input, shape index: {}, may-alias: {6,7}]   ;;  %s3350_s8 = inlined_call_operand.vmem [shape: bf16[512,64], index: 8, kind: output, shape index: {}]  }
   0x1   :  { %s3047_s29 = smov 0  }
   0x2 LB: > { %s30_s30 = sadd.s32 1, %s2992_s28  ;;  %p2313_p0 = scmp.ge.s32.totalorder %s2996_s29, 1  ;;  %s2996_s29 = sphi %s3047_s29, %s18_s29   ;;  %s2992_s28 = sphi %s3045_s28, %s3352_s28   ;;  %s2988_s27 = sphi %s3043_s27, %s3351_s27  }
   0x3   : > { %p32_p1 = scmp.ge.s32.totalorder %s30_s30, 2  ;;  %p346_p2 = scmp.lt.s32.totalorder %s2996_s29, 3 }
   0x5   : > { %s3354_s30 = smov (%p32_p1, %s30_s30), 0  ;;  %p347_p3 = pnand %p2313_p0, %p346_p2 }
   0x6   : > { %v2894_v0 = vld [vmem:[%s3347_s5] sm:$0xff] (!%p347_p3)   ;;  %s2314_s11 = sshll.u32 (!%p347_p3), %s2988_s27, 5  ;;  %v2896_v2 = vld [vmem:[%s3347_s5 + $0x8] sm:$0xff] (!%p347_p3)   ;;  %v2898_v4 = vld [vmem:[%s3347_s5 + $0x10] sm:$0xff] (!%p347_p3)   ;;  %vm648_vm0 = vcmask (!%p347_p3), 523264   ;;  %vm2101_vm1 = vcmask (!%p347_p3), 519168  }
   0x7   : > { %350 = sbr.rel (%p347_p3) target bundleno = 366 (0x16e), region = 52  ;;  %v2895_v1 = vld [vmem:[%s3348_s6] sm:$0xff] (!%p347_p3)   ;;  %p415_p4 = scmp.lt.s32.totalorder (!%p347_p3), %s2314_s11, 63  ;;  %2614 = vmatprep.subr.bf16.mxu1 (!%p347_p3), %v2894_v0  ;;  %v2897_v3 = vld [vmem:[%s3348_s6 + $0x8] sm:$0xff] (!%p347_p3)   ;;  %v2899_v5 = vld [vmem:[%s3348_s6 + $0x10] sm:$0xff] (!%p347_p3)  }
   0x8   : > { %2694 = vmatprep.subr.bf16.mxu0 (!%p347_p3), %v2895_v1  ;;  %2615 = vmatpush3.bf16.msra.mxu1 (!%p347_p3), %v2894_v0  ;;  %v2900_v6 = vld [vmem:[%s3347_s5 + $0x18] sm:$0xff] (!%p347_p3)   ;;  %v2905_v10 = vld [vmem:[%s3346_s4] sm:$0xff] (!%p347_p3)   ;;  %v2915_v18 = vld [vmem:[%s3346_s4 + $0x8] sm:$0xff] (!%p347_p3)  }
   0x9   : > { %2695 = vmatpush3.bf16.msra.mxu0 (!%p347_p3), %v2895_v1  ;;  %2616 = vmatprep.subr.bf16.mxu1 (!%p347_p3), %v2896_v2  ;;  %v2901_v7 = vld [vmem:[%s3348_s6 + $0x18] sm:$0xff] (!%p347_p3)   ;;  %v2907_v11 = vld [vmem:[%s3349_s7] sm:$0xff] (!%p347_p3)   ;;  %v2917_v20 = vld [vmem:[%s3349_s7 + $0x8] sm:$0xff] (!%p347_p3)  }
   0xa   : > { %2696 = vmatprep.subr.bf16.mxu0 (!%p347_p3), %v2897_v3  ;;  %v2925_v25 = vld [vmem:[%s3346_s4 + $0x10] sm:$0xff] (!%p347_p3)   ;;  %v2935_v32 = vld [vmem:[%s3346_s4 + $0x18] sm:$0xff] (!%p347_p3)  }
   0xb   : > { %v2927_v27 = vld [vmem:[%s3349_s7 + $0x10] sm:$0xff] (!%p347_p3)   ;;  %v2937_v33 = vld [vmem:[%s3349_s7 + $0x18] sm:$0xff] (!%p347_p3)  }
   0xc   : > { %2617 = vmatpush3.bf16.msra.mxu1 (!%p347_p3), %v2896_v2 }
   0xd   : > { %2697 = vmatpush3.bf16.msra.mxu0 (!%p347_p3), %v2897_v3  ;;  %2618 = vmatprep.subr.bf16.mxu1 (!%p347_p3), %v2898_v4 }
   0xe   : > { %s3356_s11 = smov (!%p415_p4, %s2314_s11), 63  ;;  %2698 = vmatprep.subr.bf16.mxu0 %v2899_v5 }
   0xf   : > { %s3079_s22 = sshll.u32 %s3356_s11, 2 }
  0x10   : > { %s3088_s27 = scalar_lea.vmem %s3343_s1, %s3079_s22  ;;  %s3094_s12 = scalar_lea.vmem %s3344_s2, %s3079_s22  ;;  %2619 = vmatpush3.bf16.msra.mxu1 %v2898_v4 }
  0x11   : > { %v2902_v8 = vld [vmem:[%s3088_s27] sm:$0xff]   ;;  %2699 = vmatpush3.bf16.msra.mxu0 %v2899_v5  ;;  %2620 = vmatprep.subr.bf16.mxu1 %v2900_v6  ;;  %v2904_v12 = vld [vmem:[%s3088_s27 + $0x8] sm:$0xff]   ;;  %v2908_v14 = vld [vmem:[%s3088_s27 + $0x10] sm:$0xff]   ;;  %s3166_s16 = scalar_lea.vmem %s3342_s0, %s3079_s22  ;;  %s3173_s19 = scalar_lea.vmem %s3345_s3, %s3079_s22 }
  0x12   : > { %v2903_v9 = vld [vmem:[%s3094_s12] sm:$0xff]   ;;  %2622 = vmatprep.mubr.msk.bf16.mxu1 %vm648_vm0, %v2902_v8  ;;  %2700 = vmatprep.subr.bf16.mxu0 %v2901_v7  ;;  %v2906_v13 = vld [vmem:[%s3094_s12 + $0x8] sm:$0xff]   ;;  %v2909_v15 = vld [vmem:[%s3094_s12 + $0x10] sm:$0xff]   ;;  %s3267_s20 = scalar_lea.vmem %s3350_s8, %s3079_s22 }
  0x13   : > { %2702 = vmatprep.mubr.msk.bf16.mxu0 %vm648_vm0, %v2903_v9  ;;  %v2910_v16 = vld [vmem:[%s3088_s27 + $0x18] sm:$0xff]   ;;  %v2912_v19 = vld [vmem:[%s3088_s27 + $0x20] sm:$0xff]   ;;  %v2914_v22 = vld [vmem:[%s3088_s27 + $0x28] sm:$0xff]  }
  0x14   : > { %2621 = vmatpush3.bf16.msra.mxu1 %v2900_v6  ;;  %v2911_v17 = vld [vmem:[%s3094_s12 + $0x18] sm:$0xff]   ;;  %v2913_v21 = vld [vmem:[%s3094_s12 + $0x20] sm:$0xff]   ;;  %v2916_v23 = vld [vmem:[%s3094_s12 + $0x28] sm:$0xff]  }
  0x15   : > { %2701 = vmatpush3.bf16.msra.mxu0 %v2901_v7  ;;  %2654 = vmatprep.subr.bf16.mxu1 %v2905_v10  ;;  %v2918_v24 = vld [vmem:[%s3088_s27 + $0x30] sm:$0xff]   ;;  %v2920_v28 = vld [vmem:[%s3088_s27 + $0x38] sm:$0xff]   ;;  %v2922_v30 = vld [vmem:[%s3088_s27 + $0x40] sm:$0xff]  }
  0x16   : > { %2734 = vmatprep.subr.bf16.mxu0 %v2907_v11  ;;  %v2919_v26 = vld [vmem:[%s3094_s12 + $0x30] sm:$0xff]   ;;  %v2921_v29 = vld [vmem:[%s3094_s12 + $0x38] sm:$0xff]   ;;  %v2923_v31 = vld [vmem:[%s3094_s12 + $0x40] sm:$0xff]  }
  0x17   : > { %2623 = vmatmul.mubr.msk.bf16.vlgmr.msra.gmra.mrb[0].mxu1 %vm648_vm0, %v2904_v12  ;;  %v2924_v34 = vld [vmem:[%s3088_s27 + $0x48] sm:$0xff]   ;;  %v2928_v36 = vld [vmem:[%s3088_s27 + $0x50] sm:$0xff]   ;;  %v2930_v38 = vld [vmem:[%s3088_s27 + $0x58] sm:$0xff]  }
  0x18   : > { %2703 = vmatmul.mubr.msk.bf16.vlgmr.msra.gmra.mrb[0].mxu0 %vm648_vm0, %v2906_v13  ;;  %2655 = vmatpush3.bf16.msra.mxu1 %v2905_v10  ;;  %v2926_v35 = vld [vmem:[%s3094_s12 + $0x48] sm:$0xff]   ;;  %v2929_v37 = vld [vmem:[%s3094_s12 + $0x50] sm:$0xff]   ;;  %v2931_v39 = vld [vmem:[%s3094_s12 + $0x58] sm:$0xff]  }
  0x19   : > { %2735 = vmatpush3.bf16.msra.mxu0 %v2907_v11  ;;  %2626 = vmatprep.mubr.msk.bf16.mxu1 %vm648_vm0, %v2908_v14  ;;  %v2932_v40 = vld [vmem:[%s3088_s27 + $0x60] sm:$0xff]   ;;  %v2934_v42 = vld [vmem:[%s3088_s27 + $0x68] sm:$0xff]   ;;  %v2938_v44 = vld [vmem:[%s3088_s27 + $0x70] sm:$0xff]  }
  0x1a   : > { %2706 = vmatprep.mubr.msk.bf16.mxu0 %vm648_vm0, %v2909_v15  ;;  %2656 = vmatprep.subr.bf16.mxu1 %v2915_v18  ;;  %v2933_v41 = vld [vmem:[%s3094_s12 + $0x60] sm:$0xff]   ;;  %v2936_v43 = vld [vmem:[%s3094_s12 + $0x68] sm:$0xff]   ;;  %v2939_v45 = vld [vmem:[%s3094_s12 + $0x70] sm:$0xff]  }
  0x1b   : > { %2736 = vmatprep.subr.bf16.mxu0 %v2917_v20  ;;  %v2940_v46 = vld [vmem:[%s3088_s27 + $0x78] sm:$0xff]   ;;  %v2942_v48 = vld [vmem:[%s3166_s16] sm:$0xff]   ;;  %v2944_v50 = vld [vmem:[%s3166_s16 + $0x8] sm:$0xff]  }
  0x1c   : > { %2657 = vmatpush3.bf16.msra.mxu1 %v2915_v18  ;;  %v2941_v47 = vld [vmem:[%s3094_s12 + $0x78] sm:$0xff]   ;;  %v2943_v49 = vld [vmem:[%s3173_s19] sm:$0xff]   ;;  %v2945_v51 = vld [vmem:[%s3173_s19 + $0x8] sm:$0xff]  }
  0x1d   : > { %2737 = vmatpush3.bf16.msra.mxu0 %v2917_v20  ;;  %2658 = vmatprep.subr.bf16.mxu1 %v2925_v25  ;;  %v2946_v52 = vld [vmem:[%s3166_s16 + $0x10] sm:$0xff]   ;;  %v2948_v54 = vld [vmem:[%s3166_s16 + $0x18] sm:$0xff]   ;;  %v2950_v56 = vld [vmem:[%s3166_s16 + $0x20] sm:$0xff]  }
  0x1e   : > { %2738 = vmatprep.subr.bf16.mxu0 %v2927_v27  ;;  %v2947_v53 = vld [vmem:[%s3173_s19 + $0x10] sm:$0xff]   ;;  %v2949_v55 = vld [vmem:[%s3173_s19 + $0x18] sm:$0xff]   ;;  %v2951_v57 = vld [vmem:[%s3173_s19 + $0x20] sm:$0xff]  }
  0x1f   : > { %2627 = vmatmul.mubr.msk.bf16.gmra.mrb[4].mxu1 %vm648_vm0, %v2910_v16  ;;  %v2952_v58 = vld [vmem:[%s3166_s16 + $0x28] sm:$0xff]   ;;  %v2954_v60 = vld [vmem:[%s3166_s16 + $0x30] sm:$0xff]   ;;  %v2956_v62 = vld [vmem:[%s3166_s16 + $0x38] sm:$0xff]  }
  0x20   : > { %2707 = vmatmul.mubr.msk.bf16.gmra.mrb[4].mxu0 %vm648_vm0, %v2911_v17  ;;  %2630 = vmatprep.mubr.msk.bf16.mxu1 %vm648_vm0, %v2912_v19  ;;  %v2953_v59 = vld [vmem:[%s3173_s19 + $0x28] sm:$0xff]   ;;  %v2955_v61 = vld [vmem:[%s3173_s19 + $0x30] sm:$0xff]   ;;  %v2957_v63 = vld [vmem:[%s3173_s19 + $0x38] sm:$0xff]  }
  0x21   : > { %2710 = vmatprep.mubr.msk.bf16.mxu0 %vm648_vm0, %v2913_v21  ;;  %2659 = vmatpush3.bf16.msra.mxu1 %v2925_v25  ;;  %v2958_v0 = vld [vmem:[%s3166_s16 + $0x40] sm:$0xff]   ;;  %v2960_v2 = vld [vmem:[%s3166_s16 + $0x48] sm:$0xff]   ;;  %v2962_v4 = vld [vmem:[%s3166_s16 + $0x50] sm:$0xff]  }
  0x22   : > { %2739 = vmatpush3.bf16.msra.mxu0 %v2927_v27  ;;  %2660 = vmatprep.subr.bf16.mxu1 %v2935_v32  ;;  %v2959_v1 = vld [vmem:[%s3173_s19 + $0x40] sm:$0xff]   ;;  %v2961_v3 = vld [vmem:[%s3173_s19 + $0x48] sm:$0xff]   ;;  %v2963_v5 = vld [vmem:[%s3173_s19 + $0x50] sm:$0xff]  }
  0x23   : > { %2740 = vmatprep.subr.bf16.mxu0 %v2937_v33  ;;  %v2964_v6 = vld [vmem:[%s3166_s16 + $0x58] sm:$0xff]   ;;  %v2966_v8 = vld [vmem:[%s3166_s16 + $0x60] sm:$0xff]   ;;  %v2968_v10 = vld [vmem:[%s3166_s16 + $0x68] sm:$0xff]  }
  0x24   : > { %v2965_v7 = vld [vmem:[%s3173_s19 + $0x58] sm:$0xff]   ;;  %v2967_v9 = vld [vmem:[%s3173_s19 + $0x60] sm:$0xff]   ;;  %v2969_v11 = vld [vmem:[%s3173_s19 + $0x68] sm:$0xff]  }
  0x25   : > { %2661 = vmatpush3.bf16.msra.mxu1 %v2935_v32  ;;  %v2970_v12 = vld [vmem:[%s3166_s16 + $0x70] sm:$0xff]   ;;  %v2972_v14 = vld [vmem:[%s3166_s16 + $0x78] sm:$0xff]  }
  0x26   : > { %2741 = vmatpush3.bf16.msra.mxu0 %v2937_v33  ;;  %v2971_v13 = vld [vmem:[%s3173_s19 + $0x70] sm:$0xff]   ;;  %v2973_v15 = vld [vmem:[%s3173_s19 + $0x78] sm:$0xff]  }
  0x27   : > { %2631 = vmatmul.mubr.msk.bf16.gmra.mrb[8].mxu1 %vm648_vm0, %v2914_v22 }
  0x28   : > { %2711 = vmatmul.mubr.msk.bf16.gmra.mrb[8].mxu0 %vm648_vm0, %v2916_v23  ;;  %2634 = vmatprep.mubr.msk.bf16.mxu1 %vm648_vm0, %v2918_v24 }
  0x29   : > { %2714 = vmatprep.mubr.msk.bf16.mxu0 %vm648_vm0, %v2919_v26 }
  0x2f   : > { %2635 = vmatmul.mubr.msk.bf16.gmra.mrb[12].mxu1 %vm648_vm0, %v2920_v28 }
  0x30   : > { %2715 = vmatmul.mubr.msk.bf16.gmra.mrb[12].mxu0 %vm648_vm0, %v2921_v29  ;;  %2638 = vmatprep.mubr.msk.bf16.mxu1 %vm648_vm0, %v2922_v30 }
  0x31   : > { %2718 = vmatprep.mubr.msk.bf16.mxu0 %vm648_vm0, %v2923_v31 }
  0x37   : > { %2639 = vmatmul.mubr.msk.bf16.gmra.mrb[16].mxu1 %vm648_vm0, %v2924_v34 }
  0x38   : > { %2719 = vmatmul.mubr.msk.bf16.gmra.mrb[16].mxu0 %vm648_vm0, %v2926_v35  ;;  %2642 = vmatprep.mubr.msk.bf16.mxu1 %vm648_vm0, %v2928_v36 }
  0x39   : > { %2722 = vmatprep.mubr.msk.bf16.mxu0 %vm648_vm0, %v2929_v37 }
  0x3f   : > { %2643 = vmatmul.mubr.msk.bf16.gmra.mrb[20].mxu1 %vm648_vm0, %v2930_v38 }
  0x40   : > { %2723 = vmatmul.mubr.msk.bf16.gmra.mrb[20].mxu0 %vm648_vm0, %v2931_v39  ;;  %2646 = vmatprep.mubr.msk.bf16.mxu1 %vm648_vm0, %v2932_v40 }
  0x41   : > { %2726 = vmatprep.mubr.msk.bf16.mxu0 %vm648_vm0, %v2933_v41 }
  0x47   : > { %2647 = vmatmul.mubr.msk.bf16.gmra.mrb[24].mxu1 %vm648_vm0, %v2934_v42 }
  0x48   : > { %2727 = vmatmul.mubr.msk.bf16.gmra.mrb[24].mxu0 %vm648_vm0, %v2936_v43  ;;  %2650 = vmatprep.mubr.msk.bf16.mxu1 %vm648_vm0, %v2938_v44 }
  0x49   : > { %2730 = vmatprep.mubr.msk.bf16.mxu0 %vm648_vm0, %v2939_v45 }
  0x4f   : > { %2651 = vmatmul.mubr.msk.bf16.gmra.mrb[28].mxu1 %vm648_vm0, %v2940_v46 }
  0x50   : > { %2731 = vmatmul.mubr.msk.bf16.gmra.mrb[28].mxu0 %vm648_vm0, %v2941_v47  ;;  %2662 = vmatprep.mubr.msk.bf16.mxu1 %vm648_vm0, %v2942_v48 }
  0x51   : > { %2742 = vmatprep.mubr.msk.bf16.mxu0 %vm648_vm0, %v2943_v49 }
  0x57   : > { %2663 = vmatmul.mubr.msk.bf16.vlgmr.msra.gmra.mrb[0].mxu1 %vm648_vm0, %v2944_v50 }
  0x58   : > { %2743 = vmatmul.mubr.msk.bf16.vlgmr.msra.gmra.mrb[0].mxu0 %vm648_vm0, %v2945_v51  ;;  %2666 = vmatprep.mubr.msk.bf16.mxu1 %vm648_vm0, %v2946_v52 }
  0x59   : > { %2746 = vmatprep.mubr.msk.bf16.mxu0 %vm648_vm0, %v2947_v53 }
  0x5f   : > { %2667 = vmatmul.mubr.msk.bf16.gmra.mrb[4].mxu1 %vm648_vm0, %v2948_v54 }
  0x60   : > { %2747 = vmatmul.mubr.msk.bf16.gmra.mrb[4].mxu0 %vm648_vm0, %v2949_v55  ;;  %2670 = vmatprep.mubr.msk.bf16.mxu1 %vm648_vm0, %v2950_v56 }
  0x61   : > { %2750 = vmatprep.mubr.msk.bf16.mxu0 %vm648_vm0, %v2951_v57 }
  0x67   : > { %2671 = vmatmul.mubr.msk.bf16.gmra.mrb[8].mxu1 %vm648_vm0, %v2952_v58 }
  0x68   : > { %2751 = vmatmul.mubr.msk.bf16.gmra.mrb[8].mxu0 %vm648_vm0, %v2953_v59  ;;  %2674 = vmatprep.mubr.msk.bf16.mxu1 %vm648_vm0, %v2954_v60 }
  0x69   : > { %2754 = vmatprep.mubr.msk.bf16.mxu0 %vm648_vm0, %v2955_v61 }
  0x6f   : > { %2675 = vmatmul.mubr.msk.bf16.gmra.mrb[12].mxu1 %vm648_vm0, %v2956_v62 }
  0x70   : > { %2755 = vmatmul.mubr.msk.bf16.gmra.mrb[12].mxu0 %vm648_vm0, %v2957_v63  ;;  %2678 = vmatprep.mubr.msk.bf16.mxu1 %vm648_vm0, %v2958_v0 }
  0x71   : > { %2758 = vmatprep.mubr.msk.bf16.mxu0 %vm648_vm0, %v2959_v1 }
  0x77   : > { %2679 = vmatmul.mubr.msk.bf16.gmra.mrb[16].mxu1 %vm648_vm0, %v2960_v2 }
  0x78   : > { %2759 = vmatmul.mubr.msk.bf16.gmra.mrb[16].mxu0 %vm648_vm0, %v2961_v3  ;;  %2682 = vmatprep.mubr.msk.bf16.mxu1 %vm648_vm0, %v2962_v4 }
  0x79   : > { %2762 = vmatprep.mubr.msk.bf16.mxu0 %vm648_vm0, %v2963_v5 }
  0x7f   : > { %2683 = vmatmul.mubr.msk.bf16.gmra.mrb[20].mxu1 %vm648_vm0, %v2964_v6 }
  0x80   : > { %2763 = vmatmul.mubr.msk.bf16.gmra.mrb[20].mxu0 %vm648_vm0, %v2965_v7  ;;  %2686 = vmatprep.mubr.msk.bf16.mxu1 %vm648_vm0, %v2966_v8 }
  0x81   : > { %2766 = vmatprep.mubr.msk.bf16.mxu0 %vm648_vm0, %v2967_v9 }
  0x87   : > { %2687 = vmatmul.mubr.msk.bf16.gmra.mrb[24].mxu1 %vm648_vm0, %v2968_v10 }
  0x88   : > { %2767 = vmatmul.mubr.msk.bf16.gmra.mrb[24].mxu0 %vm648_vm0, %v2969_v11  ;;  %2690 = vmatprep.mubr.msk.bf16.mxu1 %vm648_vm0, %v2970_v12 }
  0x89   : > { %2770 = vmatprep.mubr.msk.bf16.mxu0 %vm648_vm0, %v2971_v13 }
  0x8f   : > { %2691 = vmatmul.mubr.msk.bf16.gmra.mrb[28].mxu1 %vm648_vm0, %v2972_v14 }
  0x90   : > { %2771 = vmatmul.mubr.msk.bf16.gmra.mrb[28].mxu0 %vm648_vm0, %v2973_v15 }
 0x12a   : > { %v2664_v16 = vpop.f32.mrb[0].mxu1 }
 0x12b   : > { %v2744_v17 = vpop.f32.mrb[0].mxu0  ;;  %v1044_v18 = vpop.f32.mrb[1].mxu1 }
 0x12c   : > { %v2774_v19 = vadd.f32 %v2744_v17, %v2664_v16  ;;  %v1782_v20 = vpop.f32.mrb[1].mxu0  ;;  %v2665_v21 = vpop.f32.mrb[2].mxu1 }
 0x12d   : > { %v2775_v22 = vadd.f32 %v1782_v20, %v1044_v18  ;;  %v2745_v23 = vpop.f32.mrb[2].mxu0  ;;  %v1047_v24 = vpop.f32.mrb[3].mxu1 }
 0x12e   : > { %v1943_v25 = vmax.f32 %v2774_v19, 0.0  ;;  %v2776_v26 = vadd.f32 %v2745_v23, %v2665_v21  ;;  %v1785_v27 = vpop.f32.mrb[3].mxu0 }
 0x12f   : > { %v1941_v28 = vmax.f32 %v2775_v22, 0.0  ;;  %v2777_v29 = vadd.f32 %v1785_v27, %v1047_v24 }
 0x130   : > { %v2504_v30 = vpack.c.bf16 %v1943_v25, %v1943_v25  ;;  %v1944_v31 = vmax.f32 %v2776_v26, 0.0 }
 0x131   : > { %v2502_v32 = vpack.c.bf16 %v1941_v28, %v1941_v28  ;;  %v1942_v33 = vmax.f32 %v2777_v29, 0.0 }
 0x132   : > { %2104 = vst.msk [vmem:[%s3267_s20 + $0x8] sm:$0xf] %vm2101_vm1, %v2504_v30  ;;  %v2505_v34 = vpack.c.bf16 %v1944_v31, %v1944_v31  ;;  %v2668_v35 = vpop.f32.mrb[4].mxu1 }
 0x133   : > { %2102 = vst.msk [vmem:[%s3267_s20] sm:$0xf] %vm2101_vm1, %v2502_v32  ;;  %v2503_v36 = vpack.c.bf16 %v1942_v33, %v1942_v33  ;;  %v2748_v37 = vpop.f32.mrb[4].mxu0  ;;  %v1060_v38 = vpop.f32.mrb[5].mxu1 }
 0x134   : > { %2105 = vst.msk [vmem:[%s3267_s20 + $0xc] sm:$0xf] %vm2101_vm1, %v2505_v34  ;;  %v2778_v39 = vadd.f32 %v2748_v37, %v2668_v35  ;;  %v1798_v40 = vpop.f32.mrb[5].mxu0  ;;  %v2669_v41 = vpop.f32.mrb[6].mxu1 }
 0x135   : > { %2103 = vst.msk [vmem:[%s3267_s20 + $0x4] sm:$0xf] %vm2101_vm1, %v2503_v36  ;;  %v2779_v42 = vadd.f32 %v1798_v40, %v1060_v38  ;;  %v2749_v43 = vpop.f32.mrb[6].mxu0  ;;  %v1063_v44 = vpop.f32.mrb[7].mxu1 }
 0x136   : > { %v1947_v45 = vmax.f32 %v2778_v39, 0.0  ;;  %v2780_v46 = vadd.f32 %v2749_v43, %v2669_v41  ;;  %v1801_v47 = vpop.f32.mrb[7].mxu0 }
 0x137   : > { %v1945_v48 = vmax.f32 %v2779_v42, 0.0  ;;  %v2781_v49 = vadd.f32 %v1801_v47, %v1063_v44 }
 0x138   : > { %v2508_v50 = vpack.c.bf16 %v1947_v45, %v1947_v45  ;;  %v1948_v51 = vmax.f32 %v2780_v46, 0.0 }
 0x139   : > { %v2506_v52 = vpack.c.bf16 %v1945_v48, %v1945_v48  ;;  %v1946_v53 = vmax.f32 %v2781_v49, 0.0 }
 0x13a   : > { %2108 = vst.msk [vmem:[%s3267_s20 + $0x18] sm:$0xf] %vm2101_vm1, %v2508_v50  ;;  %v2509_v54 = vpack.c.bf16 %v1948_v51, %v1948_v51  ;;  %v2672_v55 = vpop.f32.mrb[8].mxu1 }
 0x13b   : > { %2106 = vst.msk [vmem:[%s3267_s20 + $0x10] sm:$0xf] %vm2101_vm1, %v2506_v52  ;;  %v2507_v56 = vpack.c.bf16 %v1946_v53, %v1946_v53  ;;  %v2752_v57 = vpop.f32.mrb[8].mxu0  ;;  %v1076_v58 = vpop.f32.mrb[9].mxu1 }
 0x13c   : > { %2109 = vst.msk [vmem:[%s3267_s20 + $0x1c] sm:$0xf] %vm2101_vm1, %v2509_v54  ;;  %v2782_v59 = vadd.f32 %v2752_v57, %v2672_v55  ;;  %v1814_v60 = vpop.f32.mrb[9].mxu0  ;;  %v2673_v61 = vpop.f32.mrb[10].mxu1 }
 0x13d   : > { %2107 = vst.msk [vmem:[%s3267_s20 + $0x14] sm:$0xf] %vm2101_vm1, %v2507_v56  ;;  %v2783_v62 = vadd.f32 %v1814_v60, %v1076_v58  ;;  %v2753_v63 = vpop.f32.mrb[10].mxu0  ;;  %v1079_v0 = vpop.f32.mrb[11].mxu1 }
 0x13e   : > { %v1951_v1 = vmax.f32 %v2782_v59, 0.0  ;;  %v2784_v2 = vadd.f32 %v2753_v63, %v2673_v61  ;;  %v1817_v3 = vpop.f32.mrb[11].mxu0 }
 0x13f   : > { %v1949_v4 = vmax.f32 %v2783_v62, 0.0  ;;  %v2785_v5 = vadd.f32 %v1817_v3, %v1079_v0 }
 0x140   : > { %v2512_v6 = vpack.c.bf16 %v1951_v1, %v1951_v1  ;;  %v1952_v7 = vmax.f32 %v2784_v2, 0.0 }
 0x141   : > { %v2510_v8 = vpack.c.bf16 %v1949_v4, %v1949_v4  ;;  %v1950_v9 = vmax.f32 %v2785_v5, 0.0 }
 0x142   : > { %2112 = vst.msk [vmem:[%s3267_s20 + $0x28] sm:$0xf] %vm2101_vm1, %v2512_v6  ;;  %v2513_v10 = vpack.c.bf16 %v1952_v7, %v1952_v7  ;;  %v2676_v11 = vpop.f32.mrb[12].mxu1 }
 0x143   : > { %2110 = vst.msk [vmem:[%s3267_s20 + $0x20] sm:$0xf] %vm2101_vm1, %v2510_v8  ;;  %v2511_v12 = vpack.c.bf16 %v1950_v9, %v1950_v9  ;;  %v2756_v13 = vpop.f32.mrb[12].mxu0  ;;  %v1092_v14 = vpop.f32.mrb[13].mxu1 }
 0x144   : > { %2113 = vst.msk [vmem:[%s3267_s20 + $0x2c] sm:$0xf] %vm2101_vm1, %v2513_v10  ;;  %v2786_v15 = vadd.f32 %v2756_v13, %v2676_v11  ;;  %v1830_v16 = vpop.f32.mrb[13].mxu0  ;;  %v2677_v17 = vpop.f32.mrb[14].mxu1 }
 0x145   : > { %2111 = vst.msk [vmem:[%s3267_s20 + $0x24] sm:$0xf] %vm2101_vm1, %v2511_v12  ;;  %v2787_v18 = vadd.f32 %v1830_v16, %v1092_v14  ;;  %v2757_v19 = vpop.f32.mrb[14].mxu0  ;;  %v1095_v20 = vpop.f32.mrb[15].mxu1 }
 0x146   : > { %v1955_v21 = vmax.f32 %v2786_v15, 0.0  ;;  %v2788_v22 = vadd.f32 %v2757_v19, %v2677_v17  ;;  %v1833_v23 = vpop.f32.mrb[15].mxu0 }
 0x147   : > { %v1953_v24 = vmax.f32 %v2787_v18, 0.0  ;;  %v2789_v25 = vadd.f32 %v1833_v23, %v1095_v20 }
 0x148   : > { %v2516_v26 = vpack.c.bf16 %v1955_v21, %v1955_v21  ;;  %v1956_v27 = vmax.f32 %v2788_v22, 0.0 }
 0x149   : > { %v2514_v28 = vpack.c.bf16 %v1953_v24, %v1953_v24  ;;  %v1954_v29 = vmax.f32 %v2789_v25, 0.0 }
 0x14a   : > { %2116 = vst.msk [vmem:[%s3267_s20 + $0x38] sm:$0xf] %vm2101_vm1, %v2516_v26  ;;  %v2517_v30 = vpack.c.bf16 %v1956_v27, %v1956_v27  ;;  %v2680_v31 = vpop.f32.mrb[16].mxu1 }
 0x14b   : > { %2114 = vst.msk [vmem:[%s3267_s20 + $0x30] sm:$0xf] %vm2101_vm1, %v2514_v28  ;;  %v2515_v32 = vpack.c.bf16 %v1954_v29, %v1954_v29  ;;  %v2760_v33 = vpop.f32.mrb[16].mxu0  ;;  %v1108_v34 = vpop.f32.mrb[17].mxu1 }
 0x14c   : > { %2117 = vst.msk [vmem:[%s3267_s20 + $0x3c] sm:$0xf] %vm2101_vm1, %v2517_v30  ;;  %v2790_v35 = vadd.f32 %v2760_v33, %v2680_v31  ;;  %v1846_v36 = vpop.f32.mrb[17].mxu0  ;;  %v2681_v37 = vpop.f32.mrb[18].mxu1 }
 0x14d   : > { %2115 = vst.msk [vmem:[%s3267_s20 + $0x34] sm:$0xf] %vm2101_vm1, %v2515_v32  ;;  %v2791_v38 = vadd.f32 %v1846_v36, %v1108_v34  ;;  %v2761_v39 = vpop.f32.mrb[18].mxu0  ;;  %v1111_v40 = vpop.f32.mrb[19].mxu1 }
 0x14e   : > { %v1959_v41 = vmax.f32 %v2790_v35, 0.0  ;;  %v2792_v42 = vadd.f32 %v2761_v39, %v2681_v37  ;;  %v1849_v43 = vpop.f32.mrb[19].mxu0 }
 0x14f   : > { %v1957_v44 = vmax.f32 %v2791_v38, 0.0  ;;  %v2793_v45 = vadd.f32 %v1849_v43, %v1111_v40 }
 0x150   : > { %v2520_v46 = vpack.c.bf16 %v1959_v41, %v1959_v41  ;;  %v1960_v47 = vmax.f32 %v2792_v42, 0.0 }
 0x151   : > { %v2518_v48 = vpack.c.bf16 %v1957_v44, %v1957_v44  ;;  %v1958_v49 = vmax.f32 %v2793_v45, 0.0 }
 0x152   : > { %2120 = vst.msk [vmem:[%s3267_s20 + $0x48] sm:$0xf] %vm2101_vm1, %v2520_v46  ;;  %v2521_v50 = vpack.c.bf16 %v1960_v47, %v1960_v47  ;;  %v2684_v51 = vpop.f32.mrb[20].mxu1 }
 0x153   : > { %2118 = vst.msk [vmem:[%s3267_s20 + $0x40] sm:$0xf] %vm2101_vm1, %v2518_v48  ;;  %v2519_v52 = vpack.c.bf16 %v1958_v49, %v1958_v49  ;;  %v2764_v53 = vpop.f32.mrb[20].mxu0  ;;  %v1124_v54 = vpop.f32.mrb[21].mxu1 }
 0x154   : > { %2121 = vst.msk [vmem:[%s3267_s20 + $0x4c] sm:$0xf] %vm2101_vm1, %v2521_v50  ;;  %v2794_v55 = vadd.f32 %v2764_v53, %v2684_v51  ;;  %v1862_v56 = vpop.f32.mrb[21].mxu0  ;;  %v2685_v57 = vpop.f32.mrb[22].mxu1 }
 0x155   : > { %2119 = vst.msk [vmem:[%s3267_s20 + $0x44] sm:$0xf] %vm2101_vm1, %v2519_v52  ;;  %v2795_v58 = vadd.f32 %v1862_v56, %v1124_v54  ;;  %v2765_v59 = vpop.f32.mrb[22].mxu0  ;;  %v1127_v60 = vpop.f32.mrb[23].mxu1 }
 0x156   : > { %v1963_v61 = vmax.f32 %v2794_v55, 0.0  ;;  %v2796_v62 = vadd.f32 %v2765_v59, %v2685_v57  ;;  %v1865_v63 = vpop.f32.mrb[23].mxu0 }
 0x157   : > { %v1961_v0 = vmax.f32 %v2795_v58, 0.0  ;;  %v2797_v1 = vadd.f32 %v1865_v63, %v1127_v60 }
 0x158   : > { %v2524_v2 = vpack.c.bf16 %v1963_v61, %v1963_v61  ;;  %v1964_v3 = vmax.f32 %v2796_v62, 0.0 }
 0x159   : > { %v2522_v4 = vpack.c.bf16 %v1961_v0, %v1961_v0  ;;  %v1962_v5 = vmax.f32 %v2797_v1, 0.0 }
 0x15a   : > { %2124 = vst.msk [vmem:[%s3267_s20 + $0x58] sm:$0xf] %vm2101_vm1, %v2524_v2  ;;  %v2525_v6 = vpack.c.bf16 %v1964_v3, %v1964_v3  ;;  %v2688_v7 = vpop.f32.mrb[24].mxu1 }
 0x15b   : > { %2122 = vst.msk [vmem:[%s3267_s20 + $0x50] sm:$0xf] %vm2101_vm1, %v2522_v4  ;;  %v2523_v8 = vpack.c.bf16 %v1962_v5, %v1962_v5  ;;  %v2768_v9 = vpop.f32.mrb[24].mxu0  ;;  %v1140_v10 = vpop.f32.mrb[25].mxu1 }
 0x15c   : > { %2125 = vst.msk [vmem:[%s3267_s20 + $0x5c] sm:$0xf] %vm2101_vm1, %v2525_v6  ;;  %v2798_v11 = vadd.f32 %v2768_v9, %v2688_v7  ;;  %v1878_v12 = vpop.f32.mrb[25].mxu0  ;;  %v2689_v13 = vpop.f32.mrb[26].mxu1 }
 0x15d   : > { %2123 = vst.msk [vmem:[%s3267_s20 + $0x54] sm:$0xf] %vm2101_vm1, %v2523_v8  ;;  %v2799_v14 = vadd.f32 %v1878_v12, %v1140_v10  ;;  %v2769_v15 = vpop.f32.mrb[26].mxu0  ;;  %v1143_v16 = vpop.f32.mrb[27].mxu1 }
 0x15e   : > { %v1967_v17 = vmax.f32 %v2798_v11, 0.0  ;;  %v2800_v18 = vadd.f32 %v2769_v15, %v2689_v13  ;;  %v1881_v19 = vpop.f32.mrb[27].mxu0 }
 0x15f   : > { %v1965_v20 = vmax.f32 %v2799_v14, 0.0  ;;  %v2801_v21 = vadd.f32 %v1881_v19, %v1143_v16 }
 0x160   : > { %v2528_v22 = vpack.c.bf16 %v1967_v17, %v1967_v17  ;;  %v1968_v23 = vmax.f32 %v2800_v18, 0.0 }
 0x161   : > { %v2526_v24 = vpack.c.bf16 %v1965_v20, %v1965_v20  ;;  %v1966_v25 = vmax.f32 %v2801_v21, 0.0 }
 0x162   : > { %2128 = vst.msk [vmem:[%s3267_s20 + $0x68] sm:$0xf] %vm2101_vm1, %v2528_v22  ;;  %v2529_v26 = vpack.c.bf16 %v1968_v23, %v1968_v23  ;;  %v2692_v27 = vpop.f32.mrb[28].mxu1 }
 0x163   : > { %2126 = vst.msk [vmem:[%s3267_s20 + $0x60] sm:$0xf] %vm2101_vm1, %v2526_v24  ;;  %v2527_v28 = vpack.c.bf16 %v1966_v25, %v1966_v25  ;;  %v2772_v29 = vpop.f32.mrb[28].mxu0  ;;  %v1156_v30 = vpop.f32.mrb[29].mxu1 }
 0x164   : > { %2129 = vst.msk [vmem:[%s3267_s20 + $0x6c] sm:$0xf] %vm2101_vm1, %v2529_v26  ;;  %v2802_v31 = vadd.f32 %v2772_v29, %v2692_v27  ;;  %v1894_v32 = vpop.f32.mrb[29].mxu0  ;;  %v2693_v33 = vpop.f32.mrb[30].mxu1 }
 0x165   : > { %2127 = vst.msk [vmem:[%s3267_s20 + $0x64] sm:$0xf] %vm2101_vm1, %v2527_v28  ;;  %v2803_v34 = vadd.f32 %v1894_v32, %v1156_v30  ;;  %v2773_v35 = vpop.f32.mrb[30].mxu0  ;;  %v1159_v36 = vpop.f32.mrb[31].mxu1 }
 0x166   : > { %v1971_v37 = vmax.f32 %v2802_v31, 0.0  ;;  %v2804_v38 = vadd.f32 %v2773_v35, %v2693_v33  ;;  %v1897_v39 = vpop.f32.mrb[31].mxu0 }
 0x167   : > { %v1969_v40 = vmax.f32 %v2803_v34, 0.0  ;;  %v2805_v41 = vadd.f32 %v1897_v39, %v1159_v36 }
 0x168   : > { %v2532_v42 = vpack.c.bf16 %v1971_v37, %v1971_v37  ;;  %v1972_v43 = vmax.f32 %v2804_v38, 0.0 }
 0x169   : > { %v2530_v44 = vpack.c.bf16 %v1969_v40, %v1969_v40  ;;  %v1970_v45 = vmax.f32 %v2805_v41, 0.0 }
 0x16a   : > { %2132 = vst.msk [vmem:[%s3267_s20 + $0x78] sm:$0xf] %vm2101_vm1, %v2532_v42  ;;  %v2533_v46 = vpack.c.bf16 %v1972_v43, %v1972_v43 }
 0x16b   : > { %2130 = vst.msk [vmem:[%s3267_s20 + $0x70] sm:$0xf] %vm2101_vm1, %v2530_v44  ;;  %v2531_v47 = vpack.c.bf16 %v1970_v45, %v1970_v45 }
 0x16c   : > { %2133 = vst.msk [vmem:[%s3267_s20 + $0x7c] sm:$0xf] %vm2101_vm1, %v2533_v46 }
 0x16d   : > { %2131 = vst.msk [vmem:[%s3267_s20 + $0x74] sm:$0xf] %vm2101_vm1, %v2531_v47 }
 0x16e PF: > { %s18_s29 = sadd.s32 1, %s2996_s29   ;;  %s3351_s27 = smov %s2992_s28 }
 0x16f   : > { %p15_p5 = scmp.ge.s32.totalorder %s18_s29, 4   ;;  %s3352_s28 = smov %s3354_s30 }
 0x171   :  { %17 = sbr.rel (!%p15_p5) target bundleno = 2 (0x2), region = 103 }

// kernel: _lambda_.7
= control target key start
LH: loop header
LB: loop body
LE: loop exit
PB: predicated region body
PF: predicated region fallthrough
CT: control target
= control target key end

     0   :  { %s2767_s15 = smov 0   ;;  %s2769_s16 = smov 0   ;;  %s3094_s0 = inlined_call_operand.vmem [shape: bf16[2048,64], index: 0, kind: input, shape index: {}]   ;;  %s3095_s1 = inlined_call_operand.vmem [shape: bf16[2048,64], index: 1, kind: input, shape index: {}]   ;;  %s3096_s2 = inlined_call_operand.vmem [shape: bf16[64,64], index: 2, kind: input, shape index: {}, may-alias: {2,3}]   ;;  %s3097_s3 = inlined_call_operand.vmem [shape: bf16[64,64], index: 3, kind: input, shape index: {}, may-alias: {2,3}]   ;;  %s3098_s4 = inlined_call_operand.vmem [shape: bf16[2048,64], index: 4, kind: output, shape index: {}]  }
   0x1   :  { %s2771_s17 = smov 0  }
   0x2 LB: > { %s26_s18 = sadd.s32 1, %s2736_s16  ;;  %p2069_p0 = scmp.ge.s32.totalorder %s2740_s17, 1  ;;  %s2740_s17 = sphi %s2771_s17, %s14_s17   ;;  %s2736_s16 = sphi %s2769_s16, %s3100_s16   ;;  %s2732_s15 = sphi %s2767_s15, %s3099_s15  }
   0x3   : > { %p28_p1 = scmp.ge.s32.totalorder %s26_s18, 4  ;;  %p206_p2 = scmp.lt.s32.totalorder %s2740_s17, 5 }
   0x5   : > { %s3102_s18 = smov (%p28_p1, %s26_s18), 0  ;;  %p207_p3 = pnand %p2069_p0, %p206_p2 }
   0x6   : > { %v2646_v0 = vld [vmem:[%s3097_s3] sm:$0xff] (!%p207_p3)   ;;  %s2070_s21 = sshll.u32 (!%p207_p3), %s2732_s15, 6  ;;  %v2648_v2 = vld [vmem:[%s3097_s3 + $0x8] sm:$0xff] (!%p207_p3)   ;;  %v2650_v4 = vld [vmem:[%s3097_s3 + $0x10] sm:$0xff] (!%p207_p3)   ;;  %vm606_vm0 = vcmask (!%p207_p3), 523264   ;;  %vm1881_vm1 = vcmask (!%p207_p3), 519168  }
   0x7   : > { %210 = sbr.rel (%p207_p3) target bundleno = 366 (0x16e), region = 36  ;;  %v2647_v1 = vld [vmem:[%s3096_s2] sm:$0xff] (!%p207_p3)   ;;  %p249_p4 = scmp.lt.s32.totalorder (!%p207_p3), %s2070_s21, 255  ;;  %2414 = vmatprep.subr.bf16.mxu1 (!%p207_p3), %v2646_v0  ;;  %v2649_v3 = vld [vmem:[%s3096_s2 + $0x8] sm:$0xff] (!%p207_p3)   ;;  %v2651_v5 = vld [vmem:[%s3096_s2 + $0x10] sm:$0xff] (!%p207_p3)  }
   0x8   : > { %2486 = vmatprep.subr.bf16.mxu0 (!%p207_p3), %v2647_v1  ;;  %2415 = vmatpush3.bf16.msra.mxu1 (!%p207_p3), %v2646_v0  ;;  %v2652_v6 = vld [vmem:[%s3097_s3 + $0x18] sm:$0xff] (!%p207_p3)  }
   0x9   : > { %2487 = vmatpush3.bf16.msra.mxu0 (!%p207_p3), %v2647_v1  ;;  %2416 = vmatprep.subr.bf16.mxu1 (!%p207_p3), %v2648_v2  ;;  %v2653_v7 = vld [vmem:[%s3096_s2 + $0x18] sm:$0xff] (!%p207_p3)  }
   0xa   : > { %2488 = vmatprep.subr.bf16.mxu0 (!%p207_p3), %v2649_v3 }
   0xc   : > { %2417 = vmatpush3.bf16.msra.mxu1 (!%p207_p3), %v2648_v2 }
   0xd   : > { %2489 = vmatpush3.bf16.msra.mxu0 (!%p207_p3), %v2649_v3  ;;  %2418 = vmatprep.subr.bf16.mxu1 (!%p207_p3), %v2650_v4 }
   0xe   : > { %s3104_s21 = smov (!%p249_p4, %s2070_s21), 255  ;;  %2490 = vmatprep.subr.bf16.mxu0 %v2651_v5 }
   0xf   : > { %s2803_s6 = sshll.u32 %s3104_s21, 2 }
  0x10   : > { %s2812_s11 = scalar_lea.vmem %s3095_s1, %s2803_s6  ;;  %s2818_s14 = scalar_lea.vmem %s3094_s0, %s2803_s6  ;;  %2419 = vmatpush3.bf16.msra.mxu1 %v2650_v4 }
  0x11   : > { %v2654_v8 = vld [vmem:[%s2812_s11] sm:$0xff]   ;;  %2491 = vmatpush3.bf16.msra.mxu0 %v2651_v5  ;;  %2420 = vmatprep.subr.bf16.mxu1 %v2652_v6  ;;  %v2656_v10 = vld [vmem:[%s2812_s11 + $0x8] sm:$0xff]   ;;  %v2658_v12 = vld [vmem:[%s2812_s11 + $0x10] sm:$0xff]   ;;  %s2955_s22 = scalar_lea.vmem %s3098_s4, %s2803_s6 }
  0x12   : > { %v2655_v9 = vld [vmem:[%s2818_s14] sm:$0xff]   ;;  %2422 = vmatprep.mubr.msk.bf16.mxu1 %vm606_vm0, %v2654_v8  ;;  %2492 = vmatprep.subr.bf16.mxu0 %v2653_v7  ;;  %v2657_v11 = vld [vmem:[%s2818_s14 + $0x8] sm:$0xff]   ;;  %v2659_v13 = vld [vmem:[%s2818_s14 + $0x10] sm:$0xff]  }
  0x13   : > { %2494 = vmatprep.mubr.msk.bf16.mxu0 %vm606_vm0, %v2655_v9  ;;  %v2660_v14 = vld [vmem:[%s2812_s11 + $0x18] sm:$0xff]   ;;  %v2662_v16 = vld [vmem:[%s2812_s11 + $0x20] sm:$0xff]   ;;  %v2664_v18 = vld [vmem:[%s2812_s11 + $0x28] sm:$0xff]  }
  0x14   : > { %2421 = vmatpush3.bf16.msra.mxu1 %v2652_v6  ;;  %v2661_v15 = vld [vmem:[%s2818_s14 + $0x18] sm:$0xff]   ;;  %v2663_v17 = vld [vmem:[%s2818_s14 + $0x20] sm:$0xff]   ;;  %v2665_v19 = vld [vmem:[%s2818_s14 + $0x28] sm:$0xff]  }
  0x15   : > { %2493 = vmatpush3.bf16.msra.mxu0 %v2653_v7  ;;  %v2666_v20 = vld [vmem:[%s2812_s11 + $0x30] sm:$0xff]   ;;  %v2668_v22 = vld [vmem:[%s2812_s11 + $0x38] sm:$0xff]   ;;  %v2670_v24 = vld [vmem:[%s2812_s11 + $0x40] sm:$0xff]  }
  0x16   : > { %v2667_v21 = vld [vmem:[%s2818_s14 + $0x30] sm:$0xff]   ;;  %v2669_v23 = vld [vmem:[%s2818_s14 + $0x38] sm:$0xff]   ;;  %v2671_v25 = vld [vmem:[%s2818_s14 + $0x40] sm:$0xff]  }
  0x17   : > { %2423 = vmatmul.mubr.msk.bf16.vlgmr.msra.gmra.mrb[0].mxu1 %vm606_vm0, %v2656_v10  ;;  %v2672_v26 = vld [vmem:[%s2812_s11 + $0x48] sm:$0xff]   ;;  %v2674_v28 = vld [vmem:[%s2812_s11 + $0x50] sm:$0xff]   ;;  %v2676_v30 = vld [vmem:[%s2812_s11 + $0x58] sm:$0xff]  }
  0x18   : > { %2495 = vmatmul.mubr.msk.bf16.vlgmr.msra.gmra.mrb[0].mxu0 %vm606_vm0, %v2657_v11  ;;  %2426 = vmatprep.mubr.msk.bf16.mxu1 %vm606_vm0, %v2658_v12  ;;  %v2673_v27 = vld [vmem:[%s2818_s14 + $0x48] sm:$0xff]   ;;  %v2675_v29 = vld [vmem:[%s2818_s14 + $0x50] sm:$0xff]   ;;  %v2677_v31 = vld [vmem:[%s2818_s14 + $0x58] sm:$0xff]  }
  0x19   : > { %2498 = vmatprep.mubr.msk.bf16.mxu0 %vm606_vm0, %v2659_v13  ;;  %v2678_v32 = vld [vmem:[%s2812_s11 + $0x60] sm:$0xff]   ;;  %v2680_v34 = vld [vmem:[%s2812_s11 + $0x68] sm:$0xff]   ;;  %v2682_v36 = vld [vmem:[%s2812_s11 + $0x70] sm:$0xff]  }
  0x1a   : > { %v2679_v33 = vld [vmem:[%s2818_s14 + $0x60] sm:$0xff]   ;;  %v2681_v35 = vld [vmem:[%s2818_s14 + $0x68] sm:$0xff]   ;;  %v2683_v37 = vld [vmem:[%s2818_s14 + $0x70] sm:$0xff]  }
  0x1b   : > { %v2684_v38 = vld [vmem:[%s2812_s11 + $0x78] sm:$0xff]   ;;  %v2686_v40 = vld [vmem:[%s2812_s11 + $0x80] sm:$0xff]   ;;  %v2688_v42 = vld [vmem:[%s2812_s11 + $0x88] sm:$0xff]  }
  0x1c   : > { %v2685_v39 = vld [vmem:[%s2818_s14 + $0x78] sm:$0xff]   ;;  %v2687_v41 = vld [vmem:[%s2818_s14 + $0x80] sm:$0xff]   ;;  %v2689_v43 = vld [vmem:[%s2818_s14 + $0x88] sm:$0xff]  }
  0x1d   : > { %v2690_v44 = vld [vmem:[%s2812_s11 + $0x90] sm:$0xff]   ;;  %v2692_v46 = vld [vmem:[%s2812_s11 + $0x98] sm:$0xff]   ;;  %v2694_v48 = vld [vmem:[%s2812_s11 + $0xa0] sm:$0xff]  }
  0x1e   : > { %v2691_v45 = vld [vmem:[%s2818_s14 + $0x90] sm:$0xff]   ;;  %v2693_v47 = vld [vmem:[%s2818_s14 + $0x98] sm:$0xff]   ;;  %v2695_v49 = vld [vmem:[%s2818_s14 + $0xa0] sm:$0xff]  }
  0x1f   : > { %2427 = vmatmul.mubr.msk.bf16.gmra.mrb[4].mxu1 %vm606_vm0, %v2660_v14  ;;  %v2696_v50 = vld [vmem:[%s2812_s11 + $0xa8] sm:$0xff]   ;;  %v2698_v52 = vld [vmem:[%s2812_s11 + $0xb0] sm:$0xff]   ;;  %v2700_v54 = vld [vmem:[%s2812_s11 + $0xb8] sm:$0xff]  }
  0x20   : > { %2499 = vmatmul.mubr.msk.bf16.gmra.mrb[4].mxu0 %vm606_vm0, %v2661_v15  ;;  %2430 = vmatprep.mubr.msk.bf16.mxu1 %vm606_vm0, %v2662_v16  ;;  %v2697_v51 = vld [vmem:[%s2818_s14 + $0xa8] sm:$0xff]   ;;  %v2699_v53 = vld [vmem:[%s2818_s14 + $0xb0] sm:$0xff]   ;;  %v2701_v55 = vld [vmem:[%s2818_s14 + $0xb8] sm:$0xff]  }
  0x21   : > { %2502 = vmatprep.mubr.msk.bf16.mxu0 %vm606_vm0, %v2663_v17  ;;  %v2702_v56 = vld [vmem:[%s2812_s11 + $0xc0] sm:$0xff]   ;;  %v2704_v58 = vld [vmem:[%s2812_s11 + $0xc8] sm:$0xff]   ;;  %v2706_v60 = vld [vmem:[%s2812_s11 + $0xd0] sm:$0xff]  }
  0x22   : > { %v2703_v57 = vld [vmem:[%s2818_s14 + $0xc0] sm:$0xff]   ;;  %v2705_v59 = vld [vmem:[%s2818_s14 + $0xc8] sm:$0xff]   ;;  %v2707_v61 = vld [vmem:[%s2818_s14 + $0xd0] sm:$0xff]  }
  0x23   : > { %v2708_v62 = vld [vmem:[%s2812_s11 + $0xd8] sm:$0xff]   ;;  %v2710_v0 = vld [vmem:[%s2812_s11 + $0xe0] sm:$0xff]   ;;  %v2712_v2 = vld [vmem:[%s2812_s11 + $0xe8] sm:$0xff]  }
  0x24   : > { %v2709_v63 = vld [vmem:[%s2818_s14 + $0xd8] sm:$0xff]   ;;  %v2711_v1 = vld [vmem:[%s2818_s14 + $0xe0] sm:$0xff]   ;;  %v2713_v3 = vld [vmem:[%s2818_s14 + $0xe8] sm:$0xff]  }
  0x25   : > { %v2714_v4 = vld [vmem:[%s2812_s11 + $0xf0] sm:$0xff]   ;;  %v2716_v6 = vld [vmem:[%s2812_s11 + $0xf8] sm:$0xff]  }
  0x26   : > { %v2715_v5 = vld [vmem:[%s2818_s14 + $0xf0] sm:$0xff]   ;;  %v2717_v7 = vld [vmem:[%s2818_s14 + $0xf8] sm:$0xff]  }
  0x27   : > { %2431 = vmatmul.mubr.msk.bf16.gmra.mrb[8].mxu1 %vm606_vm0, %v2664_v18 }
  0x28   : > { %2503 = vmatmul.mubr.msk.bf16.gmra.mrb[8].mxu0 %vm606_vm0, %v2665_v19  ;;  %2434 = vmatprep.mubr.msk.bf16.mxu1 %vm606_vm0, %v2666_v20 }
  0x29   : > { %2506 = vmatprep.mubr.msk.bf16.mxu0 %vm606_vm0, %v2667_v21 }
  0x2f   : > { %2435 = vmatmul.mubr.msk.bf16.gmra.mrb[12].mxu1 %vm606_vm0, %v2668_v22 }
  0x30   : > { %2507 = vmatmul.mubr.msk.bf16.gmra.mrb[12].mxu0 %vm606_vm0, %v2669_v23  ;;  %2438 = vmatprep.mubr.msk.bf16.mxu1 %vm606_vm0, %v2670_v24 }
  0x31   : > { %2510 = vmatprep.mubr.msk.bf16.mxu0 %vm606_vm0, %v2671_v25 }
  0x37   : > { %2439 = vmatmul.mubr.msk.bf16.gmra.mrb[16].mxu1 %vm606_vm0, %v2672_v26 }
  0x38   : > { %2511 = vmatmul.mubr.msk.bf16.gmra.mrb[16].mxu0 %vm606_vm0, %v2673_v27  ;;  %2442 = vmatprep.mubr.msk.bf16.mxu1 %vm606_vm0, %v2674_v28 }
  0x39   : > { %2514 = vmatprep.mubr.msk.bf16.mxu0 %vm606_vm0, %v2675_v29 }
  0x3f   : > { %2443 = vmatmul.mubr.msk.bf16.gmra.mrb[20].mxu1 %vm606_vm0, %v2676_v30 }
  0x40   : > { %2515 = vmatmul.mubr.msk.bf16.gmra.mrb[20].mxu0 %vm606_vm0, %v2677_v31  ;;  %2446 = vmatprep.mubr.msk.bf16.mxu1 %vm606_vm0, %v2678_v32 }
  0x41   : > { %2518 = vmatprep.mubr.msk.bf16.mxu0 %vm606_vm0, %v2679_v33 }
  0x47   : > { %2447 = vmatmul.mubr.msk.bf16.gmra.mrb[24].mxu1 %vm606_vm0, %v2680_v34 }
  0x48   : > { %2519 = vmatmul.mubr.msk.bf16.gmra.mrb[24].mxu0 %vm606_vm0, %v2681_v35  ;;  %2450 = vmatprep.mubr.msk.bf16.mxu1 %vm606_vm0, %v2682_v36 }
  0x49   : > { %2522 = vmatprep.mubr.msk.bf16.mxu0 %vm606_vm0, %v2683_v37 }
  0x4f   : > { %2451 = vmatmul.mubr.msk.bf16.gmra.mrb[28].mxu1 %vm606_vm0, %v2684_v38 }
  0x50   : > { %2523 = vmatmul.mubr.msk.bf16.gmra.mrb[28].mxu0 %vm606_vm0, %v2685_v39  ;;  %2454 = vmatprep.mubr.msk.bf16.mxu1 %vm606_vm0, %v2686_v40 }
  0x51   : > { %2526 = vmatprep.mubr.msk.bf16.mxu0 %vm606_vm0, %v2687_v41 }
  0x57   : > { %2455 = vmatmul.mubr.msk.bf16.gmra.mrb[32].mxu1 %vm606_vm0, %v2688_v42 }
  0x58   : > { %2527 = vmatmul.mubr.msk.bf16.gmra.mrb[32].mxu0 %vm606_vm0, %v2689_v43  ;;  %2458 = vmatprep.mubr.msk.bf16.mxu1 %vm606_vm0, %v2690_v44 }
  0x59   : > { %2530 = vmatprep.mubr.msk.bf16.mxu0 %vm606_vm0, %v2691_v45 }
  0x5f   : > { %2459 = vmatmul.mubr.msk.bf16.gmra.mrb[36].mxu1 %vm606_vm0, %v2692_v46 }
  0x60   : > { %2531 = vmatmul.mubr.msk.bf16.gmra.mrb[36].mxu0 %vm606_vm0, %v2693_v47  ;;  %2462 = vmatprep.mubr.msk.bf16.mxu1 %vm606_vm0, %v2694_v48 }
  0x61   : > { %2534 = vmatprep.mubr.msk.bf16.mxu0 %vm606_vm0, %v2695_v49 }
  0x67   : > { %2463 = vmatmul.mubr.msk.bf16.gmra.mrb[40].mxu1 %vm606_vm0, %v2696_v50 }
  0x68   : > { %2535 = vmatmul.mubr.msk.bf16.gmra.mrb[40].mxu0 %vm606_vm0, %v2697_v51  ;;  %2466 = vmatprep.mubr.msk.bf16.mxu1 %vm606_vm0, %v2698_v52 }
  0x69   : > { %2538 = vmatprep.mubr.msk.bf16.mxu0 %vm606_vm0, %v2699_v53 }
  0x6f   : > { %2467 = vmatmul.mubr.msk.bf16.gmra.mrb[44].mxu1 %vm606_vm0, %v2700_v54 }
  0x70   : > { %2539 = vmatmul.mubr.msk.bf16.gmra.mrb[44].mxu0 %vm606_vm0, %v2701_v55  ;;  %2470 = vmatprep.mubr.msk.bf16.mxu1 %vm606_vm0, %v2702_v56 }
  0x71   : > { %2542 = vmatprep.mubr.msk.bf16.mxu0 %vm606_vm0, %v2703_v57 }
  0x77   : > { %2471 = vmatmul.mubr.msk.bf16.gmra.mrb[48].mxu1 %vm606_vm0, %v2704_v58 }
  0x78   : > { %2543 = vmatmul.mubr.msk.bf16.gmra.mrb[48].mxu0 %vm606_vm0, %v2705_v59  ;;  %2474 = vmatprep.mubr.msk.bf16.mxu1 %vm606_vm0, %v2706_v60 }
  0x79   : > { %2546 = vmatprep.mubr.msk.bf16.mxu0 %vm606_vm0, %v2707_v61 }
  0x7f   : > { %2475 = vmatmul.mubr.msk.bf16.gmra.mrb[52].mxu1 %vm606_vm0, %v2708_v62 }
  0x80   : > { %2547 = vmatmul.mubr.msk.bf16.gmra.mrb[52].mxu0 %vm606_vm0, %v2709_v63  ;;  %2478 = vmatprep.mubr.msk.bf16.mxu1 %vm606_vm0, %v2710_v0 }
  0x81   : > { %2550 = vmatprep.mubr.msk.bf16.mxu0 %vm606_vm0, %v2711_v1 }
  0x87   : > { %2479 = vmatmul.mubr.msk.bf16.gmra.mrb[56].mxu1 %vm606_vm0, %v2712_v2 }
  0x88   : > { %2551 = vmatmul.mubr.msk.bf16.gmra.mrb[56].mxu0 %vm606_vm0, %v2713_v3  ;;  %2482 = vmatprep.mubr.msk.bf16.mxu1 %vm606_vm0, %v2714_v4 }
  0x89   : > { %2554 = vmatprep.mubr.msk.bf16.mxu0 %vm606_vm0, %v2715_v5 }
  0x8f   : > { %2483 = vmatmul.mubr.msk.bf16.gmra.mrb[60].mxu1 %vm606_vm0, %v2716_v6 }
  0x90   : > { %2555 = vmatmul.mubr.msk.bf16.gmra.mrb[60].mxu0 %vm606_vm0, %v2717_v7 }
  0xea   : > { %v2424_v8 = vpop.f32.mrb[0].mxu1 }
  0xeb   : > { %v2496_v9 = vpop.f32.mrb[0].mxu0  ;;  %v737_v10 = vpop.f32.mrb[1].mxu1 }
  0xec   : > { %v1315_v11 = vadd.f32 %v2496_v9, %v2424_v8  ;;  %v1306_v12 = vpop.f32.mrb[1].mxu0  ;;  %v2425_v13 = vpop.f32.mrb[2].mxu1 }
  0xed   : > { %v1307_v14 = vadd.f32 %v1306_v12, %v737_v10  ;;  %v2497_v15 = vpop.f32.mrb[2].mxu0  ;;  %v740_v16 = vpop.f32.mrb[3].mxu1 }
  0xee   : > { %v1563_v17 = vmax.f32 %v1315_v11, 0.0  ;;  %v1318_v18 = vadd.f32 %v2497_v15, %v2425_v13  ;;  %v1309_v19 = vpop.f32.mrb[3].mxu0 }
  0xef   : > { %v1561_v20 = vmax.f32 %v1307_v14, 0.0  ;;  %v1310_v21 = vadd.f32 %v1309_v19, %v740_v16 }
  0xf0   : > { %v2280_v22 = vpack.c.bf16 %v1563_v17, %v1563_v17  ;;  %v1564_v23 = vmax.f32 %v1318_v18, 0.0 }
  0xf1   : > { %v2278_v24 = vpack.c.bf16 %v1561_v20, %v1561_v20  ;;  %v1562_v25 = vmax.f32 %v1310_v21, 0.0 }
  0xf2   : > { %1884 = vst.msk [vmem:[%s2955_s22 + $0x8] sm:$0xf] %vm1881_vm1, %v2280_v22  ;;  %v2281_v26 = vpack.c.bf16 %v1564_v23, %v1564_v23  ;;  %v2428_v27 = vpop.f32.mrb[4].mxu1 }
  0xf3   : > { %1882 = vst.msk [vmem:[%s2955_s22] sm:$0xf] %vm1881_vm1, %v2278_v24  ;;  %v2279_v28 = vpack.c.bf16 %v1562_v25, %v1562_v25  ;;  %v2500_v29 = vpop.f32.mrb[4].mxu0  ;;  %v753_v30 = vpop.f32.mrb[5].mxu1 }
  0xf4   : > { %1885 = vst.msk [vmem:[%s2955_s22 + $0xc] sm:$0xf] %vm1881_vm1, %v2281_v26  ;;  %v1331_v31 = vadd.f32 %v2500_v29, %v2428_v27  ;;  %v1322_v32 = vpop.f32.mrb[5].mxu0  ;;  %v2429_v33 = vpop.f32.mrb[6].mxu1 }
  0xf5   : > { %1883 = vst.msk [vmem:[%s2955_s22 + $0x4] sm:$0xf] %vm1881_vm1, %v2279_v28  ;;  %v1323_v34 = vadd.f32 %v1322_v32, %v753_v30  ;;  %v2501_v35 = vpop.f32.mrb[6].mxu0  ;;  %v756_v36 = vpop.f32.mrb[7].mxu1 }
  0xf6   : > { %v1567_v37 = vmax.f32 %v1331_v31, 0.0  ;;  %v1334_v38 = vadd.f32 %v2501_v35, %v2429_v33  ;;  %v1325_v39 = vpop.f32.mrb[7].mxu0 }
  0xf7   : > { %v1565_v40 = vmax.f32 %v1323_v34, 0.0  ;;  %v1326_v41 = vadd.f32 %v1325_v39, %v756_v36 }
  0xf8   : > { %v2284_v42 = vpack.c.bf16 %v1567_v37, %v1567_v37  ;;  %v1568_v43 = vmax.f32 %v1334_v38, 0.0 }
  0xf9   : > { %v2282_v44 = vpack.c.bf16 %v1565_v40, %v1565_v40  ;;  %v1566_v45 = vmax.f32 %v1326_v41, 0.0 }
  0xfa   : > { %1888 = vst.msk [vmem:[%s2955_s22 + $0x18] sm:$0xf] %vm1881_vm1, %v2284_v42  ;;  %v2285_v46 = vpack.c.bf16 %v1568_v43, %v1568_v43  ;;  %v2432_v47 = vpop.f32.mrb[8].mxu1 }
  0xfb   : > { %1886 = vst.msk [vmem:[%s2955_s22 + $0x10] sm:$0xf] %vm1881_vm1, %v2282_v44  ;;  %v2283_v48 = vpack.c.bf16 %v1566_v45, %v1566_v45  ;;  %v2504_v49 = vpop.f32.mrb[8].mxu0  ;;  %v769_v50 = vpop.f32.mrb[9].mxu1 }
  0xfc   : > { %1889 = vst.msk [vmem:[%s2955_s22 + $0x1c] sm:$0xf] %vm1881_vm1, %v2285_v46  ;;  %v1347_v51 = vadd.f32 %v2504_v49, %v2432_v47  ;;  %v1338_v52 = vpop.f32.mrb[9].mxu0  ;;  %v2433_v53 = vpop.f32.mrb[10].mxu1 }
  0xfd   : > { %1887 = vst.msk [vmem:[%s2955_s22 + $0x14] sm:$0xf] %vm1881_vm1, %v2283_v48  ;;  %v1339_v54 = vadd.f32 %v1338_v52, %v769_v50  ;;  %v2505_v55 = vpop.f32.mrb[10].mxu0  ;;  %v772_v56 = vpop.f32.mrb[11].mxu1 }
  0xfe   : > { %v1571_v57 = vmax.f32 %v1347_v51, 0.0  ;;  %v1350_v58 = vadd.f32 %v2505_v55, %v2433_v53  ;;  %v1341_v59 = vpop.f32.mrb[11].mxu0 }
  0xff   : > { %v1569_v60 = vmax.f32 %v1339_v54, 0.0  ;;  %v1342_v61 = vadd.f32 %v1341_v59, %v772_v56 }
 0x100   : > { %v2288_v62 = vpack.c.bf16 %v1571_v57, %v1571_v57  ;;  %v1572_v63 = vmax.f32 %v1350_v58, 0.0 }
 0x101   : > { %v2286_v0 = vpack.c.bf16 %v1569_v60, %v1569_v60  ;;  %v1570_v1 = vmax.f32 %v1342_v61, 0.0 }
 0x102   : > { %1892 = vst.msk [vmem:[%s2955_s22 + $0x28] sm:$0xf] %vm1881_vm1, %v2288_v62  ;;  %v2289_v2 = vpack.c.bf16 %v1572_v63, %v1572_v63  ;;  %v2436_v3 = vpop.f32.mrb[12].mxu1 }
 0x103   : > { %1890 = vst.msk [vmem:[%s2955_s22 + $0x20] sm:$0xf] %vm1881_vm1, %v2286_v0  ;;  %v2287_v4 = vpack.c.bf16 %v1570_v1, %v1570_v1  ;;  %v2508_v5 = vpop.f32.mrb[12].mxu0  ;;  %v785_v6 = vpop.f32.mrb[13].mxu1 }
 0x104   : > { %1893 = vst.msk [vmem:[%s2955_s22 + $0x2c] sm:$0xf] %vm1881_vm1, %v2289_v2  ;;  %v1363_v7 = vadd.f32 %v2508_v5, %v2436_v3  ;;  %v1354_v8 = vpop.f32.mrb[13].mxu0  ;;  %v2437_v9 = vpop.f32.mrb[14].mxu1 }
 0x105   : > { %1891 = vst.msk [vmem:[%s2955_s22 + $0x24] sm:$0xf] %vm1881_vm1, %v2287_v4  ;;  %v1355_v10 = vadd.f32 %v1354_v8, %v785_v6  ;;  %v2509_v11 = vpop.f32.mrb[14].mxu0  ;;  %v788_v12 = vpop.f32.mrb[15].mxu1 }
 0x106   : > { %v1575_v13 = vmax.f32 %v1363_v7, 0.0  ;;  %v1366_v14 = vadd.f32 %v2509_v11, %v2437_v9  ;;  %v1357_v15 = vpop.f32.mrb[15].mxu0 }
 0x107   : > { %v1573_v16 = vmax.f32 %v1355_v10, 0.0  ;;  %v1358_v17 = vadd.f32 %v1357_v15, %v788_v12 }
 0x108   : > { %v2292_v18 = vpack.c.bf16 %v1575_v13, %v1575_v13  ;;  %v1576_v19 = vmax.f32 %v1366_v14, 0.0 }
 0x109   : > { %v2290_v20 = vpack.c.bf16 %v1573_v16, %v1573_v16  ;;  %v1574_v21 = vmax.f32 %v1358_v17, 0.0 }
 0x10a   : > { %1896 = vst.msk [vmem:[%s2955_s22 + $0x38] sm:$0xf] %vm1881_vm1, %v2292_v18  ;;  %v2293_v22 = vpack.c.bf16 %v1576_v19, %v1576_v19  ;;  %v2440_v23 = vpop.f32.mrb[16].mxu1 }
 0x10b   : > { %1894 = vst.msk [vmem:[%s2955_s22 + $0x30] sm:$0xf] %vm1881_vm1, %v2290_v20  ;;  %v2291_v24 = vpack.c.bf16 %v1574_v21, %v1574_v21  ;;  %v2512_v25 = vpop.f32.mrb[16].mxu0  ;;  %v801_v26 = vpop.f32.mrb[17].mxu1 }
 0x10c   : > { %1897 = vst.msk [vmem:[%s2955_s22 + $0x3c] sm:$0xf] %vm1881_vm1, %v2293_v22  ;;  %v1379_v27 = vadd.f32 %v2512_v25, %v2440_v23  ;;  %v1370_v28 = vpop.f32.mrb[17].mxu0  ;;  %v2441_v29 = vpop.f32.mrb[18].mxu1 }
 0x10d   : > { %1895 = vst.msk [vmem:[%s2955_s22 + $0x34] sm:$0xf] %vm1881_vm1, %v2291_v24  ;;  %v1371_v30 = vadd.f32 %v1370_v28, %v801_v26  ;;  %v2513_v31 = vpop.f32.mrb[18].mxu0  ;;  %v804_v32 = vpop.f32.mrb[19].mxu1 }
 0x10e   : > { %v1579_v33 = vmax.f32 %v1379_v27, 0.0  ;;  %v1382_v34 = vadd.f32 %v2513_v31, %v2441_v29  ;;  %v1373_v35 = vpop.f32.mrb[19].mxu0 }
 0x10f   : > { %v1577_v36 = vmax.f32 %v1371_v30, 0.0  ;;  %v1374_v37 = vadd.f32 %v1373_v35, %v804_v32 }
 0x110   : > { %v2296_v38 = vpack.c.bf16 %v1579_v33, %v1579_v33  ;;  %v1580_v39 = vmax.f32 %v1382_v34, 0.0 }
 0x111   : > { %v2294_v40 = vpack.c.bf16 %v1577_v36, %v1577_v36  ;;  %v1578_v41 = vmax.f32 %v1374_v37, 0.0 }
 0x112   : > { %1900 = vst.msk [vmem:[%s2955_s22 + $0x48] sm:$0xf] %vm1881_vm1, %v2296_v38  ;;  %v2297_v42 = vpack.c.bf16 %v1580_v39, %v1580_v39  ;;  %v2444_v43 = vpop.f32.mrb[20].mxu1 }
 0x113   : > { %1898 = vst.msk [vmem:[%s2955_s22 + $0x40] sm:$0xf] %vm1881_vm1, %v2294_v40  ;;  %v2295_v44 = vpack.c.bf16 %v1578_v41, %v1578_v41  ;;  %v2516_v45 = vpop.f32.mrb[20].mxu0  ;;  %v817_v46 = vpop.f32.mrb[21].mxu1 }
 0x114   : > { %1901 = vst.msk [vmem:[%s2955_s22 + $0x4c] sm:$0xf] %vm1881_vm1, %v2297_v42  ;;  %v1395_v47 = vadd.f32 %v2516_v45, %v2444_v43  ;;  %v1386_v48 = vpop.f32.mrb[21].mxu0  ;;  %v2445_v49 = vpop.f32.mrb[22].mxu1 }
 0x115   : > { %1899 = vst.msk [vmem:[%s2955_s22 + $0x44] sm:$0xf] %vm1881_vm1, %v2295_v44  ;;  %v1387_v50 = vadd.f32 %v1386_v48, %v817_v46  ;;  %v2517_v51 = vpop.f32.mrb[22].mxu0  ;;  %v820_v52 = vpop.f32.mrb[23].mxu1 }
 0x116   : > { %v1583_v53 = vmax.f32 %v1395_v47, 0.0  ;;  %v1398_v54 = vadd.f32 %v2517_v51, %v2445_v49  ;;  %v1389_v55 = vpop.f32.mrb[23].mxu0 }
 0x117   : > { %v1581_v56 = vmax.f32 %v1387_v50, 0.0  ;;  %v1390_v57 = vadd.f32 %v1389_v55, %v820_v52 }
 0x118   : > { %v2300_v58 = vpack.c.bf16 %v1583_v53, %v1583_v53  ;;  %v1584_v59 = vmax.f32 %v1398_v54, 0.0 }
 0x119   : > { %v2298_v60 = vpack.c.bf16 %v1581_v56, %v1581_v56  ;;  %v1582_v61 = vmax.f32 %v1390_v57, 0.0 }
 0x11a   : > { %1904 = vst.msk [vmem:[%s2955_s22 + $0x58] sm:$0xf] %vm1881_vm1, %v2300_v58  ;;  %v2301_v62 = vpack.c.bf16 %v1584_v59, %v1584_v59  ;;  %v2448_v63 = vpop.f32.mrb[24].mxu1 }
 0x11b   : > { %1902 = vst.msk [vmem:[%s2955_s22 + $0x50] sm:$0xf] %vm1881_vm1, %v2298_v60  ;;  %v2299_v0 = vpack.c.bf16 %v1582_v61, %v1582_v61  ;;  %v2520_v1 = vpop.f32.mrb[24].mxu0  ;;  %v833_v2 = vpop.f32.mrb[25].mxu1 }
 0x11c   : > { %1905 = vst.msk [vmem:[%s2955_s22 + $0x5c] sm:$0xf] %vm1881_vm1, %v2301_v62  ;;  %v1411_v3 = vadd.f32 %v2520_v1, %v2448_v63  ;;  %v1402_v4 = vpop.f32.mrb[25].mxu0  ;;  %v2449_v5 = vpop.f32.mrb[26].mxu1 }
 0x11d   : > { %1903 = vst.msk [vmem:[%s2955_s22 + $0x54] sm:$0xf] %vm1881_vm1, %v2299_v0  ;;  %v1403_v6 = vadd.f32 %v1402_v4, %v833_v2  ;;  %v2521_v7 = vpop.f32.mrb[26].mxu0  ;;  %v836_v8 = vpop.f32.mrb[27].mxu1 }
 0x11e   : > { %v1587_v9 = vmax.f32 %v1411_v3, 0.0  ;;  %v1414_v10 = vadd.f32 %v2521_v7, %v2449_v5  ;;  %v1405_v11 = vpop.f32.mrb[27].mxu0 }
 0x11f   : > { %v1585_v12 = vmax.f32 %v1403_v6, 0.0  ;;  %v1406_v13 = vadd.f32 %v1405_v11, %v836_v8 }
 0x120   : > { %v2304_v14 = vpack.c.bf16 %v1587_v9, %v1587_v9  ;;  %v1588_v15 = vmax.f32 %v1414_v10, 0.0 }
 0x121   : > { %v2302_v16 = vpack.c.bf16 %v1585_v12, %v1585_v12  ;;  %v1586_v17 = vmax.f32 %v1406_v13, 0.0 }
 0x122   : > { %1908 = vst.msk [vmem:[%s2955_s22 + $0x68] sm:$0xf] %vm1881_vm1, %v2304_v14  ;;  %v2305_v18 = vpack.c.bf16 %v1588_v15, %v1588_v15  ;;  %v2452_v19 = vpop.f32.mrb[28].mxu1 }
 0x123   : > { %1906 = vst.msk [vmem:[%s2955_s22 + $0x60] sm:$0xf] %vm1881_vm1, %v2302_v16  ;;  %v2303_v20 = vpack.c.bf16 %v1586_v17, %v1586_v17  ;;  %v2524_v21 = vpop.f32.mrb[28].mxu0  ;;  %v849_v22 = vpop.f32.mrb[29].mxu1 }
 0x124   : > { %1909 = vst.msk [vmem:[%s2955_s22 + $0x6c] sm:$0xf] %vm1881_vm1, %v2305_v18  ;;  %v1427_v23 = vadd.f32 %v2524_v21, %v2452_v19  ;;  %v1418_v24 = vpop.f32.mrb[29].mxu0  ;;  %v2453_v25 = vpop.f32.mrb[30].mxu1 }
 0x125   : > { %1907 = vst.msk [vmem:[%s2955_s22 + $0x64] sm:$0xf] %vm1881_vm1, %v2303_v20  ;;  %v1419_v26 = vadd.f32 %v1418_v24, %v849_v22  ;;  %v2525_v27 = vpop.f32.mrb[30].mxu0  ;;  %v852_v28 = vpop.f32.mrb[31].mxu1 }
 0x126   : > { %v1591_v29 = vmax.f32 %v1427_v23, 0.0  ;;  %v1430_v30 = vadd.f32 %v2525_v27, %v2453_v25  ;;  %v1421_v31 = vpop.f32.mrb[31].mxu0 }
 0x127   : > { %v1589_v32 = vmax.f32 %v1419_v26, 0.0  ;;  %v1422_v33 = vadd.f32 %v1421_v31, %v852_v28 }
 0x128   : > { %v2308_v34 = vpack.c.bf16 %v1591_v29, %v1591_v29  ;;  %v1592_v35 = vmax.f32 %v1430_v30, 0.0 }
 0x129   : > { %v2306_v36 = vpack.c.bf16 %v1589_v32, %v1589_v32  ;;  %v1590_v37 = vmax.f32 %v1422_v33, 0.0 }
 0x12a   : > { %1912 = vst.msk [vmem:[%s2955_s22 + $0x78] sm:$0xf] %vm1881_vm1, %v2308_v34  ;;  %v2309_v38 = vpack.c.bf16 %v1592_v35, %v1592_v35  ;;  %v2456_v39 = vpop.f32.mrb[32].mxu1 }
 0x12b   : > { %1910 = vst.msk [vmem:[%s2955_s22 + $0x70] sm:$0xf] %vm1881_vm1, %v2306_v36  ;;  %v2307_v40 = vpack.c.bf16 %v1590_v37, %v1590_v37  ;;  %v2528_v41 = vpop.f32.mrb[32].mxu0  ;;  %v865_v42 = vpop.f32.mrb[33].mxu1 }
 0x12c   : > { %1913 = vst.msk [vmem:[%s2955_s22 + $0x7c] sm:$0xf] %vm1881_vm1, %v2309_v38  ;;  %v1443_v43 = vadd.f32 %v2528_v41, %v2456_v39  ;;  %v1434_v44 = vpop.f32.mrb[33].mxu0  ;;  %v2457_v45 = vpop.f32.mrb[34].mxu1 }
 0x12d   : > { %1911 = vst.msk [vmem:[%s2955_s22 + $0x74] sm:$0xf] %vm1881_vm1, %v2307_v40  ;;  %v1435_v46 = vadd.f32 %v1434_v44, %v865_v42  ;;  %v2529_v47 = vpop.f32.mrb[34].mxu0  ;;  %v868_v48 = vpop.f32.mrb[35].mxu1 }
 0x12e   : > { %v1595_v49 = vmax.f32 %v1443_v43, 0.0  ;;  %v1446_v50 = vadd.f32 %v2529_v47, %v2457_v45  ;;  %v1437_v51 = vpop.f32.mrb[35].mxu0 }
 0x12f   : > { %v1593_v52 = vmax.f32 %v1435_v46, 0.0  ;;  %v1438_v53 = vadd.f32 %v1437_v51, %v868_v48 }
 0x130   : > { %v2312_v54 = vpack.c.bf16 %v1595_v49, %v1595_v49  ;;  %v1596_v55 = vmax.f32 %v1446_v50, 0.0 }
 0x131   : > { %v2310_v56 = vpack.c.bf16 %v1593_v52, %v1593_v52  ;;  %v1594_v57 = vmax.f32 %v1438_v53, 0.0 }
 0x132   : > { %1916 = vst.msk [vmem:[%s2955_s22 + $0x88] sm:$0xf] %vm1881_vm1, %v2312_v54  ;;  %v2313_v58 = vpack.c.bf16 %v1596_v55, %v1596_v55  ;;  %v2460_v59 = vpop.f32.mrb[36].mxu1 }
 0x133   : > { %1914 = vst.msk [vmem:[%s2955_s22 + $0x80] sm:$0xf] %vm1881_vm1, %v2310_v56  ;;  %v2311_v60 = vpack.c.bf16 %v1594_v57, %v1594_v57  ;;  %v2532_v61 = vpop.f32.mrb[36].mxu0  ;;  %v881_v62 = vpop.f32.mrb[37].mxu1 }
 0x134   : > { %1917 = vst.msk [vmem:[%s2955_s22 + $0x8c] sm:$0xf] %vm1881_vm1, %v2313_v58  ;;  %v1459_v63 = vadd.f32 %v2532_v61, %v2460_v59  ;;  %v1450_v0 = vpop.f32.mrb[37].mxu0  ;;  %v2461_v1 = vpop.f32.mrb[38].mxu1 }
 0x135   : > { %1915 = vst.msk [vmem:[%s2955_s22 + $0x84] sm:$0xf] %vm1881_vm1, %v2311_v60  ;;  %v1451_v2 = vadd.f32 %v1450_v0, %v881_v62  ;;  %v2533_v3 = vpop.f32.mrb[38].mxu0  ;;  %v884_v4 = vpop.f32.mrb[39].mxu1 }
 0x136   : > { %v1599_v5 = vmax.f32 %v1459_v63, 0.0  ;;  %v1462_v6 = vadd.f32 %v2533_v3, %v2461_v1  ;;  %v1453_v7 = vpop.f32.mrb[39].mxu0 }
 0x137   : > { %v1597_v8 = vmax.f32 %v1451_v2, 0.0  ;;  %v1454_v9 = vadd.f32 %v1453_v7, %v884_v4 }
 0x138   : > { %v2316_v10 = vpack.c.bf16 %v1599_v5, %v1599_v5  ;;  %v1600_v11 = vmax.f32 %v1462_v6, 0.0 }
 0x139   : > { %v2314_v12 = vpack.c.bf16 %v1597_v8, %v1597_v8  ;;  %v1598_v13 = vmax.f32 %v1454_v9, 0.0 }
 0x13a   : > { %1920 = vst.msk [vmem:[%s2955_s22 + $0x98] sm:$0xf] %vm1881_vm1, %v2316_v10  ;;  %v2317_v14 = vpack.c.bf16 %v1600_v11, %v1600_v11  ;;  %v2464_v15 = vpop.f32.mrb[40].mxu1 }
 0x13b   : > { %1918 = vst.msk [vmem:[%s2955_s22 + $0x90] sm:$0xf] %vm1881_vm1, %v2314_v12  ;;  %v2315_v16 = vpack.c.bf16 %v1598_v13, %v1598_v13  ;;  %v2536_v17 = vpop.f32.mrb[40].mxu0  ;;  %v897_v18 = vpop.f32.mrb[41].mxu1 }
 0x13c   : > { %1921 = vst.msk [vmem:[%s2955_s22 + $0x9c] sm:$0xf] %vm1881_vm1, %v2317_v14  ;;  %v1475_v19 = vadd.f32 %v2536_v17, %v2464_v15  ;;  %v1466_v20 = vpop.f32.mrb[41].mxu0  ;;  %v2465_v21 = vpop.f32.mrb[42].mxu1 }
 0x13d   : > { %1919 = vst.msk [vmem:[%s2955_s22 + $0x94] sm:$0xf] %vm1881_vm1, %v2315_v16  ;;  %v1467_v22 = vadd.f32 %v1466_v20, %v897_v18  ;;  %v2537_v23 = vpop.f32.mrb[42].mxu0  ;;  %v900_v24 = vpop.f32.mrb[43].mxu1 }
 0x13e   : > { %v1603_v25 = vmax.f32 %v1475_v19, 0.0  ;;  %v1478_v26 = vadd.f32 %v2537_v23, %v2465_v21  ;;  %v1469_v27 = vpop.f32.mrb[43].mxu0 }
 0x13f   : > { %v1601_v28 = vmax.f32 %v1467_v22, 0.0  ;;  %v1470_v29 = vadd.f32 %v1469_v27, %v900_v24 }
 0x140   : > { %v2320_v30 = vpack.c.bf16 %v1603_v25, %v1603_v25  ;;  %v1604_v31 = vmax.f32 %v1478_v26, 0.0 }
 0x141   : > { %v2318_v32 = vpack.c.bf16 %v1601_v28, %v1601_v28  ;;  %v1602_v33 = vmax.f32 %v1470_v29, 0.0 }
 0x142   : > { %1924 = vst.msk [vmem:[%s2955_s22 + $0xa8] sm:$0xf] %vm1881_vm1, %v2320_v30  ;;  %v2321_v34 = vpack.c.bf16 %v1604_v31, %v1604_v31  ;;  %v2468_v35 = vpop.f32.mrb[44].mxu1 }
 0x143   : > { %1922 = vst.msk [vmem:[%s2955_s22 + $0xa0] sm:$0xf] %vm1881_vm1, %v2318_v32  ;;  %v2319_v36 = vpack.c.bf16 %v1602_v33, %v1602_v33  ;;  %v2540_v37 = vpop.f32.mrb[44].mxu0  ;;  %v913_v38 = vpop.f32.mrb[45].mxu1 }
 0x144   : > { %1925 = vst.msk [vmem:[%s2955_s22 + $0xac] sm:$0xf] %vm1881_vm1, %v2321_v34  ;;  %v1491_v39 = vadd.f32 %v2540_v37, %v2468_v35  ;;  %v1482_v40 = vpop.f32.mrb[45].mxu0  ;;  %v2469_v41 = vpop.f32.mrb[46].mxu1 }
 0x145   : > { %1923 = vst.msk [vmem:[%s2955_s22 + $0xa4] sm:$0xf] %vm1881_vm1, %v2319_v36  ;;  %v1483_v42 = vadd.f32 %v1482_v40, %v913_v38  ;;  %v2541_v43 = vpop.f32.mrb[46].mxu0  ;;  %v916_v44 = vpop.f32.mrb[47].mxu1 }
 0x146   : > { %v1607_v45 = vmax.f32 %v1491_v39, 0.0  ;;  %v1494_v46 = vadd.f32 %v2541_v43, %v2469_v41  ;;  %v1485_v47 = vpop.f32.mrb[47].mxu0 }
 0x147   : > { %v1605_v48 = vmax.f32 %v1483_v42, 0.0  ;;  %v1486_v49 = vadd.f32 %v1485_v47, %v916_v44 }
 0x148   : > { %v2324_v50 = vpack.c.bf16 %v1607_v45, %v1607_v45  ;;  %v1608_v51 = vmax.f32 %v1494_v46, 0.0 }
 0x149   : > { %v2322_v52 = vpack.c.bf16 %v1605_v48, %v1605_v48  ;;  %v1606_v53 = vmax.f32 %v1486_v49, 0.0 }
 0x14a   : > { %1928 = vst.msk [vmem:[%s2955_s22 + $0xb8] sm:$0xf] %vm1881_vm1, %v2324_v50  ;;  %v2325_v54 = vpack.c.bf16 %v1608_v51, %v1608_v51  ;;  %v2472_v55 = vpop.f32.mrb[48].mxu1 }
 0x14b   : > { %1926 = vst.msk [vmem:[%s2955_s22 + $0xb0] sm:$0xf] %vm1881_vm1, %v2322_v52  ;;  %v2323_v56 = vpack.c.bf16 %v1606_v53, %v1606_v53  ;;  %v2544_v57 = vpop.f32.mrb[48].mxu0  ;;  %v929_v58 = vpop.f32.mrb[49].mxu1 }
 0x14c   : > { %1929 = vst.msk [vmem:[%s2955_s22 + $0xbc] sm:$0xf] %vm1881_vm1, %v2325_v54  ;;  %v1507_v59 = vadd.f32 %v2544_v57, %v2472_v55  ;;  %v1498_v60 = vpop.f32.mrb[49].mxu0  ;;  %v2473_v61 = vpop.f32.mrb[50].mxu1 }
 0x14d   : > { %1927 = vst.msk [vmem:[%s2955_s22 + $0xb4] sm:$0xf] %vm1881_vm1, %v2323_v56  ;;  %v1499_v62 = vadd.f32 %v1498_v60, %v929_v58  ;;  %v2545_v63 = vpop.f32.mrb[50].mxu0  ;;  %v932_v0 = vpop.f32.mrb[51].mxu1 }
 0x14e   : > { %v1611_v1 = vmax.f32 %v1507_v59, 0.0  ;;  %v1510_v2 = vadd.f32 %v2545_v63, %v2473_v61  ;;  %v1501_v3 = vpop.f32.mrb[51].mxu0 }
 0x14f   : > { %v1609_v4 = vmax.f32 %v1499_v62, 0.0  ;;  %v1502_v5 = vadd.f32 %v1501_v3, %v932_v0 }
 0x150   : > { %v2328_v6 = vpack.c.bf16 %v1611_v1, %v1611_v1  ;;  %v1612_v7 = vmax.f32 %v1510_v2, 0.0 }
 0x151   : > { %v2326_v8 = vpack.c.bf16 %v1609_v4, %v1609_v4  ;;  %v1610_v9 = vmax.f32 %v1502_v5, 0.0 }
 0x152   : > { %1932 = vst.msk [vmem:[%s2955_s22 + $0xc8] sm:$0xf] %vm1881_vm1, %v2328_v6  ;;  %v2329_v10 = vpack.c.bf16 %v1612_v7, %v1612_v7  ;;  %v2476_v11 = vpop.f32.mrb[52].mxu1 }
 0x153   : > { %1930 = vst.msk [vmem:[%s2955_s22 + $0xc0] sm:$0xf] %vm1881_vm1, %v2326_v8  ;;  %v2327_v12 = vpack.c.bf16 %v1610_v9, %v1610_v9  ;;  %v2548_v13 = vpop.f32.mrb[52].mxu0  ;;  %v945_v14 = vpop.f32.mrb[53].mxu1 }
 0x154   : > { %1933 = vst.msk [vmem:[%s2955_s22 + $0xcc] sm:$0xf] %vm1881_vm1, %v2329_v10  ;;  %v1523_v15 = vadd.f32 %v2548_v13, %v2476_v11  ;;  %v1514_v16 = vpop.f32.mrb[53].mxu0  ;;  %v2477_v17 = vpop.f32.mrb[54].mxu1 }
 0x155   : > { %1931 = vst.msk [vmem:[%s2955_s22 + $0xc4] sm:$0xf] %vm1881_vm1, %v2327_v12  ;;  %v1515_v18 = vadd.f32 %v1514_v16, %v945_v14  ;;  %v2549_v19 = vpop.f32.mrb[54].mxu0  ;;  %v948_v20 = vpop.f32.mrb[55].mxu1 }
 0x156   : > { %v1615_v21 = vmax.f32 %v1523_v15, 0.0  ;;  %v1526_v22 = vadd.f32 %v2549_v19, %v2477_v17  ;;  %v1517_v23 = vpop.f32.mrb[55].mxu0 }
 0x157   : > { %v1613_v24 = vmax.f32 %v1515_v18, 0.0  ;;  %v1518_v25 = vadd.f32 %v1517_v23, %v948_v20 }
 0x158   : > { %v2332_v26 = vpack.c.bf16 %v1615_v21, %v1615_v21  ;;  %v1616_v27 = vmax.f32 %v1526_v22, 0.0 }
 0x159   : > { %v2330_v28 = vpack.c.bf16 %v1613_v24, %v1613_v24  ;;  %v1614_v29 = vmax.f32 %v1518_v25, 0.0 }
 0x15a   : > { %1936 = vst.msk [vmem:[%s2955_s22 + $0xd8] sm:$0xf] %vm1881_vm1, %v2332_v26  ;;  %v2333_v30 = vpack.c.bf16 %v1616_v27, %v1616_v27  ;;  %v2480_v31 = vpop.f32.mrb[56].mxu1 }
 0x15b   : > { %1934 = vst.msk [vmem:[%s2955_s22 + $0xd0] sm:$0xf] %vm1881_vm1, %v2330_v28  ;;  %v2331_v32 = vpack.c.bf16 %v1614_v29, %v1614_v29  ;;  %v2552_v33 = vpop.f32.mrb[56].mxu0  ;;  %v961_v34 = vpop.f32.mrb[57].mxu1 }
 0x15c   : > { %1937 = vst.msk [vmem:[%s2955_s22 + $0xdc] sm:$0xf] %vm1881_vm1, %v2333_v30  ;;  %v1539_v35 = vadd.f32 %v2552_v33, %v2480_v31  ;;  %v1530_v36 = vpop.f32.mrb[57].mxu0  ;;  %v2481_v37 = vpop.f32.mrb[58].mxu1 }
 0x15d   : > { %1935 = vst.msk [vmem:[%s2955_s22 + $0xd4] sm:$0xf] %vm1881_vm1, %v2331_v32  ;;  %v1531_v38 = vadd.f32 %v1530_v36, %v961_v34  ;;  %v2553_v39 = vpop.f32.mrb[58].mxu0  ;;  %v964_v40 = vpop.f32.mrb[59].mxu1 }
 0x15e   : > { %v1619_v41 = vmax.f32 %v1539_v35, 0.0  ;;  %v1542_v42 = vadd.f32 %v2553_v39, %v2481_v37  ;;  %v1533_v43 = vpop.f32.mrb[59].mxu0 }
 0x15f   : > { %v1617_v44 = vmax.f32 %v1531_v38, 0.0  ;;  %v1534_v45 = vadd.f32 %v1533_v43, %v964_v40 }
 0x160   : > { %v2336_v46 = vpack.c.bf16 %v1619_v41, %v1619_v41  ;;  %v1620_v47 = vmax.f32 %v1542_v42, 0.0 }
 0x161   : > { %v2334_v48 = vpack.c.bf16 %v1617_v44, %v1617_v44  ;;  %v1618_v49 = vmax.f32 %v1534_v45, 0.0 }
 0x162   : > { %1940 = vst.msk [vmem:[%s2955_s22 + $0xe8] sm:$0xf] %vm1881_vm1, %v2336_v46  ;;  %v2337_v50 = vpack.c.bf16 %v1620_v47, %v1620_v47  ;;  %v2484_v51 = vpop.f32.mrb[60].mxu1 }
 0x163   : > { %1938 = vst.msk [vmem:[%s2955_s22 + $0xe0] sm:$0xf] %vm1881_vm1, %v2334_v48  ;;  %v2335_v52 = vpack.c.bf16 %v1618_v49, %v1618_v49  ;;  %v2556_v53 = vpop.f32.mrb[60].mxu0  ;;  %v977_v54 = vpop.f32.mrb[61].mxu1 }
 0x164   : > { %1941 = vst.msk [vmem:[%s2955_s22 + $0xec] sm:$0xf] %vm1881_vm1, %v2337_v50  ;;  %v1555_v55 = vadd.f32 %v2556_v53, %v2484_v51  ;;  %v1546_v56 = vpop.f32.mrb[61].mxu0  ;;  %v2485_v57 = vpop.f32.mrb[62].mxu1 }
 0x165   : > { %1939 = vst.msk [vmem:[%s2955_s22 + $0xe4] sm:$0xf] %vm1881_vm1, %v2335_v52  ;;  %v1547_v58 = vadd.f32 %v1546_v56, %v977_v54  ;;  %v2557_v59 = vpop.f32.mrb[62].mxu0  ;;  %v980_v60 = vpop.f32.mrb[63].mxu1 }
 0x166   : > { %v1623_v61 = vmax.f32 %v1555_v55, 0.0  ;;  %v1558_v62 = vadd.f32 %v2557_v59, %v2485_v57  ;;  %v1549_v63 = vpop.f32.mrb[63].mxu0 }
 0x167   : > { %v1621_v0 = vmax.f32 %v1547_v58, 0.0  ;;  %v1550_v1 = vadd.f32 %v1549_v63, %v980_v60 }
 0x168   : > { %v2340_v2 = vpack.c.bf16 %v1623_v61, %v1623_v61  ;;  %v1624_v3 = vmax.f32 %v1558_v62, 0.0 }
 0x169   : > { %v2338_v4 = vpack.c.bf16 %v1621_v0, %v1621_v0  ;;  %v1622_v5 = vmax.f32 %v1550_v1, 0.0 }
 0x16a   : > { %1944 = vst.msk [vmem:[%s2955_s22 + $0xf8] sm:$0xf] %vm1881_vm1, %v2340_v2  ;;  %v2341_v6 = vpack.c.bf16 %v1624_v3, %v1624_v3 }
 0x16b   : > { %1942 = vst.msk [vmem:[%s2955_s22 + $0xf0] sm:$0xf] %vm1881_vm1, %v2338_v4  ;;  %v2339_v7 = vpack.c.bf16 %v1622_v5, %v1622_v5 }
 0x16c   : > { %1945 = vst.msk [vmem:[%s2955_s22 + $0xfc] sm:$0xf] %vm1881_vm1, %v2341_v6 }
 0x16d   : > { %1943 = vst.msk [vmem:[%s2955_s22 + $0xf4] sm:$0xf] %vm1881_vm1, %v2339_v7 }
 0x16e PF: > { %s14_s17 = sadd.s32 1, %s2740_s17   ;;  %s3099_s15 = smov %s2736_s16 }
 0x16f   : > { %p11_p5 = scmp.ge.s32.totalorder %s14_s17, 6   ;;  %s3100_s16 = smov %s3102_s18 }
 0x171   :  { %13 = sbr.rel (!%p11_p5) target bundleno = 2 (0x2), region = 75 }

// kernel: _lambda_.9
= control target key start
LH: loop header
LB: loop body
LE: loop exit
PB: predicated region body
PF: predicated region fallthrough
CT: control target
= control target key end

     0   :  { %s3889_s21 = smov 0   ;;  %s3891_s22 = smov 0   ;;  %s4370_s0 = inlined_call_operand.vmem [shape: bf16[2048,64], index: 0, kind: input, shape index: {}]   ;;  %s4371_s1 = inlined_call_operand.vmem [shape: bf16[2048,64], index: 1, kind: input, shape index: {}]   ;;  %s4372_s2 = inlined_call_operand.vmem [shape: bf16[2048,64], index: 2, kind: input, shape index: {}]   ;;  %s4373_s3 = inlined_call_operand.vmem [shape: bf16[64,64], index: 3, kind: input, shape index: {}]   ;;  %s4374_s4 = inlined_call_operand.vmem [shape: bf16[64,64], index: 4, kind: input, shape index: {}, may-alias: {4,5}]   ;;  %s4375_s5 = inlined_call_operand.vmem [shape: bf16[64,64], index: 5, kind: input, shape index: {}, may-alias: {4,5}]   ;;  %s4376_s6 = inlined_call_operand.vmem [shape: bf16[2048,64], index: 6, kind: output, shape index: {}]  }
   0x1   :  { %s3893_s23 = smov 0  }
   0x2 LB: > { %s28_s24 = sadd.s32 1, %s3848_s22  ;;  %p2895_p0 = scmp.ge.s32.totalorder %s3852_s23, 1  ;;  %s3852_s23 = sphi %s3893_s23, %s16_s23   ;;  %s3848_s22 = sphi %s3891_s22, %s4378_s22   ;;  %s3844_s21 = sphi %s3889_s21, %s4377_s21  }
   0x3   : > { %p30_p1 = scmp.ge.s32.totalorder %s28_s24, 4  ;;  %p276_p2 = scmp.lt.s32.totalorder %s3852_s23, 5 }
   0x5   : > { %s4380_s24 = smov (%p30_p1, %s28_s24), 0  ;;  %p277_p3 = pnand %p2895_p0, %p276_p2 }
   0x6   : > { %v3722_v0 = vld [vmem:[%s4374_s4] sm:$0xff] (!%p277_p3)   ;;  %s2896_s27 = sshll.u32 (!%p277_p3), %s3844_s21, 6  ;;  %v3724_v2 = vld [vmem:[%s4374_s4 + $0x8] sm:$0xff] (!%p277_p3)   ;;  %v3726_v4 = vld [vmem:[%s4374_s4 + $0x10] sm:$0xff] (!%p277_p3)   ;;  %vm699_vm0 = vcmask (!%p277_p3), 523264   ;;  %vm2679_vm1 = vcmask (!%p277_p3), 519168  }
   0x7   : > { %280 = sbr.rel (%p277_p3) target bundleno = 430 (0x1ae), region = 44  ;;  %v3723_v1 = vld [vmem:[%s4373_s3] sm:$0xff] (!%p277_p3)   ;;  %p332_p4 = scmp.lt.s32.totalorder (!%p277_p3), %s2896_s27, 255  ;;  %3346 = vmatprep.subr.bf16.mxu1 (!%p277_p3), %v3722_v0  ;;  %v3725_v3 = vld [vmem:[%s4373_s3 + $0x8] sm:$0xff] (!%p277_p3)   ;;  %v3727_v5 = vld [vmem:[%s4373_s3 + $0x10] sm:$0xff] (!%p277_p3)  }
   0x8   : > { %3418 = vmatprep.subr.bf16.mxu0 (!%p277_p3), %v3723_v1  ;;  %3347 = vmatpush3.bf16.msra.mxu1 (!%p277_p3), %v3722_v0  ;;  %v3728_v6 = vld [vmem:[%s4374_s4 + $0x18] sm:$0xff] (!%p277_p3)   ;;  %v3734_v10 = vld [vmem:[%s4375_s5] sm:$0xff] (!%p277_p3)   ;;  %v3743_v16 = vld [vmem:[%s4375_s5 + $0x8] sm:$0xff] (!%p277_p3)  }
   0x9   : > { %3419 = vmatpush3.bf16.msra.mxu0 (!%p277_p3), %v3723_v1  ;;  %3348 = vmatprep.subr.bf16.mxu1 (!%p277_p3), %v3724_v2  ;;  %v3729_v7 = vld [vmem:[%s4373_s3 + $0x18] sm:$0xff] (!%p277_p3)   ;;  %v3752_v22 = vld [vmem:[%s4375_s5 + $0x10] sm:$0xff] (!%p277_p3)  }
   0xa   : > { %3420 = vmatprep.subr.bf16.mxu0 (!%p277_p3), %v3725_v3  ;;  %v3761_v28 = vld [vmem:[%s4375_s5 + $0x18] sm:$0xff] (!%p277_p3)  }
   0xc   : > { %3349 = vmatpush3.bf16.msra.mxu1 (!%p277_p3), %v3724_v2 }
   0xd   : > { %3421 = vmatpush3.bf16.msra.mxu0 (!%p277_p3), %v3725_v3  ;;  %3350 = vmatprep.subr.bf16.mxu1 (!%p277_p3), %v3726_v4 }
   0xe   : > { %s4382_s27 = smov (!%p332_p4, %s2896_s27), 255  ;;  %3422 = vmatprep.subr.bf16.mxu0 %v3727_v5 }
   0xf   : > { %s3925_s14 = sshll.u32 %s4382_s27, 2 }
  0x10   : > { %s3934_s19 = scalar_lea.vmem %s4371_s1, %s3925_s14  ;;  %s3940_s25 = scalar_lea.vmem %s4370_s0, %s3925_s14  ;;  %3351 = vmatpush3.bf16.msra.mxu1 %v3726_v4 }
  0x11   : > { %v3730_v8 = vld [vmem:[%s3934_s19] sm:$0xff]   ;;  %3423 = vmatpush3.bf16.msra.mxu0 %v3727_v5  ;;  %3352 = vmatprep.subr.bf16.mxu1 %v3728_v6  ;;  %v3732_v11 = vld [vmem:[%s3934_s19 + $0x8] sm:$0xff]   ;;  %v3735_v13 = vld [vmem:[%s3934_s19 + $0x10] sm:$0xff]   ;;  %s3997_s15 = scalar_lea.vmem %s4372_s2, %s3925_s14  ;;  %s4207_s18 = scalar_lea.vmem %s4376_s6, %s3925_s14 }
  0x12   : > { %v3731_v9 = vld [vmem:[%s3940_s25] sm:$0xff]   ;;  %3354 = vmatprep.mubr.msk.bf16.mxu1 %vm699_vm0, %v3730_v8  ;;  %3424 = vmatprep.subr.bf16.mxu0 %v3729_v7  ;;  %v3733_v12 = vld [vmem:[%s3940_s25 + $0x8] sm:$0xff]   ;;  %v3736_v14 = vld [vmem:[%s3940_s25 + $0x10] sm:$0xff]  }
  0x13   : > { %3426 = vmatprep.mubr.msk.bf16.mxu0 %vm699_vm0, %v3731_v9  ;;  %v3737_v15 = vld [vmem:[%s3934_s19 + $0x18] sm:$0xff]   ;;  %v3739_v18 = vld [vmem:[%s3934_s19 + $0x20] sm:$0xff]   ;;  %v3741_v20 = vld [vmem:[%s3934_s19 + $0x28] sm:$0xff]  }
  0x14   : > { %3353 = vmatpush3.bf16.msra.mxu1 %v3728_v6  ;;  %v3738_v17 = vld [vmem:[%s3940_s25 + $0x18] sm:$0xff]   ;;  %v3740_v19 = vld [vmem:[%s3940_s25 + $0x20] sm:$0xff]   ;;  %v3742_v21 = vld [vmem:[%s3940_s25 + $0x28] sm:$0xff]  }
  0x15   : > { %3425 = vmatpush3.bf16.msra.mxu0 %v3729_v7  ;;  %3562 = vmatprep.subr.bf16.mxu1 %v3723_v1  ;;  %v3744_v23 = vld [vmem:[%s3934_s19 + $0x30] sm:$0xff]   ;;  %v3746_v25 = vld [vmem:[%s3934_s19 + $0x38] sm:$0xff]   ;;  %v3748_v27 = vld [vmem:[%s3934_s19 + $0x40] sm:$0xff]  }
  0x16   : > { %3490 = vmatprep.subr.bf16.mxu0 %v3734_v10  ;;  %v3745_v24 = vld [vmem:[%s3940_s25 + $0x30] sm:$0xff]   ;;  %v3747_v26 = vld [vmem:[%s3940_s25 + $0x38] sm:$0xff]   ;;  %v3749_v29 = vld [vmem:[%s3940_s25 + $0x40] sm:$0xff]  }
  0x17   : > { %3355 = vmatmul.mubr.msk.bf16.vlgmr.msra.gmra.mrb[0].mxu1 %vm699_vm0, %v3732_v11  ;;  %v3750_v30 = vld [vmem:[%s3934_s19 + $0x48] sm:$0xff]   ;;  %v3753_v32 = vld [vmem:[%s3934_s19 + $0x50] sm:$0xff]   ;;  %v3755_v34 = vld [vmem:[%s3934_s19 + $0x58] sm:$0xff]  }
  0x18   : > { %3427 = vmatmul.mubr.msk.bf16.vlgmr.msra.gmra.mrb[0].mxu0 %vm699_vm0, %v3733_v12  ;;  %3566 = vmatpush3.bf16.msra.mxu1 %v3723_v1  ;;  %v3751_v31 = vld [vmem:[%s3940_s25 + $0x48] sm:$0xff]   ;;  %v3754_v33 = vld [vmem:[%s3940_s25 + $0x50] sm:$0xff]   ;;  %v3756_v35 = vld [vmem:[%s3940_s25 + $0x58] sm:$0xff]  }
  0x19   : > { %3491 = vmatpush3.bf16.msra.mxu0 %v3734_v10  ;;  %3358 = vmatprep.mubr.msk.bf16.mxu1 %vm699_vm0, %v3735_v13  ;;  %v3757_v36 = vld [vmem:[%s3934_s19 + $0x60] sm:$0xff]   ;;  %v3759_v38 = vld [vmem:[%s3934_s19 + $0x68] sm:$0xff]   ;;  %v3762_v40 = vld [vmem:[%s3934_s19 + $0x70] sm:$0xff]  }
  0x1a   : > { %3430 = vmatprep.mubr.msk.bf16.mxu0 %vm699_vm0, %v3736_v14  ;;  %3563 = vmatprep.subr.bf16.mxu1 %v3725_v3  ;;  %v3758_v37 = vld [vmem:[%s3940_s25 + $0x60] sm:$0xff]   ;;  %v3760_v39 = vld [vmem:[%s3940_s25 + $0x68] sm:$0xff]   ;;  %v3763_v41 = vld [vmem:[%s3940_s25 + $0x70] sm:$0xff]  }
  0x1b   : > { %3492 = vmatprep.subr.bf16.mxu0 %v3743_v16  ;;  %v3764_v42 = vld [vmem:[%s3934_s19 + $0x78] sm:$0xff]   ;;  %v3766_v44 = vld [vmem:[%s3934_s19 + $0x80] sm:$0xff]   ;;  %v3768_v46 = vld [vmem:[%s3934_s19 + $0x88] sm:$0xff]  }
  0x1c   : > { %3567 = vmatpush3.bf16.msra.mxu1 %v3725_v3  ;;  %v3765_v43 = vld [vmem:[%s3940_s25 + $0x78] sm:$0xff]   ;;  %v3767_v45 = vld [vmem:[%s3997_s15] sm:$0xff]   ;;  %v3769_v47 = vld [vmem:[%s3997_s15 + $0x8] sm:$0xff]  }
  0x1d   : > { %3493 = vmatpush3.bf16.msra.mxu0 %v3743_v16  ;;  %3564 = vmatprep.subr.bf16.mxu1 %v3727_v5  ;;  %v3770_v48 = vld [vmem:[%s3934_s19 + $0x90] sm:$0xff]   ;;  %v3772_v50 = vld [vmem:[%s3934_s19 + $0x98] sm:$0xff]   ;;  %v3774_v52 = vld [vmem:[%s3934_s19 + $0xa0] sm:$0xff]  }
  0x1e   : > { %3494 = vmatprep.subr.bf16.mxu0 %v3752_v22  ;;  %v3771_v49 = vld [vmem:[%s3997_s15 + $0x10] sm:$0xff]   ;;  %v3773_v51 = vld [vmem:[%s3997_s15 + $0x18] sm:$0xff]   ;;  %v3775_v53 = vld [vmem:[%s3997_s15 + $0x20] sm:$0xff]  }
  0x1f   : > { %3359 = vmatmul.mubr.msk.bf16.gmra.mrb[4].mxu1 %vm699_vm0, %v3737_v15  ;;  %v3776_v54 = vld [vmem:[%s3934_s19 + $0xa8] sm:$0xff]   ;;  %v3778_v56 = vld [vmem:[%s3934_s19 + $0xb0] sm:$0xff]   ;;  %v3780_v58 = vld [vmem:[%s3934_s19 + $0xb8] sm:$0xff]  }
  0x20   : > { %3431 = vmatmul.mubr.msk.bf16.gmra.mrb[4].mxu0 %vm699_vm0, %v3738_v17  ;;  %3362 = vmatprep.mubr.msk.bf16.mxu1 %vm699_vm0, %v3739_v18  ;;  %v3777_v55 = vld [vmem:[%s3997_s15 + $0x28] sm:$0xff]   ;;  %v3779_v57 = vld [vmem:[%s3997_s15 + $0x30] sm:$0xff]   ;;  %v3781_v59 = vld [vmem:[%s3997_s15 + $0x38] sm:$0xff]  }
  0x21   : > { %3434 = vmatprep.mubr.msk.bf16.mxu0 %vm699_vm0, %v3740_v19  ;;  %3568 = vmatpush3.bf16.msra.mxu1 %v3727_v5  ;;  %v3782_v60 = vld [vmem:[%s3934_s19 + $0xc0] sm:$0xff]   ;;  %v3784_v62 = vld [vmem:[%s3934_s19 + $0xc8] sm:$0xff]   ;;  %v3786_v0 = vld [vmem:[%s3934_s19 + $0xd0] sm:$0xff]  }
  0x22   : > { %3565 = vmatprep.subr.bf16.mxu1 %v3729_v7  ;;  %3495 = vmatpush3.bf16.msra.mxu0 %v3752_v22  ;;  %v3783_v61 = vld [vmem:[%s3997_s15 + $0x40] sm:$0xff]   ;;  %v3785_v63 = vld [vmem:[%s3997_s15 + $0x48] sm:$0xff]   ;;  %v3787_v1 = vld [vmem:[%s3997_s15 + $0x50] sm:$0xff]  }
  0x23   : > { %3496 = vmatprep.subr.bf16.mxu0 %v3761_v28  ;;  %v3788_v2 = vld [vmem:[%s3934_s19 + $0xd8] sm:$0xff]   ;;  %v3790_v4 = vld [vmem:[%s3934_s19 + $0xe0] sm:$0xff]   ;;  %v3792_v6 = vld [vmem:[%s3934_s19 + $0xe8] sm:$0xff]  }
  0x24   : > { %v3789_v3 = vld [vmem:[%s3997_s15 + $0x58] sm:$0xff]   ;;  %v3791_v5 = vld [vmem:[%s3997_s15 + $0x60] sm:$0xff]   ;;  %v3794_v8 = vld [vmem:[%s3934_s19 + $0xf0] sm:$0xff]  }
  0x25   : > { %3569 = vmatpush3.bf16.msra.mxu1 %v3729_v7  ;;  %v3793_v7 = vld [vmem:[%s3997_s15 + $0x68] sm:$0xff]   ;;  %v3795_v9 = vld [vmem:[%s3997_s15 + $0x70] sm:$0xff]   ;;  %v3796_v10 = vld [vmem:[%s3934_s19 + $0xf8] sm:$0xff]  }
  0x26   : > { %3497 = vmatpush3.bf16.msra.mxu0 %v3761_v28  ;;  %v3797_v11 = vld [vmem:[%s3997_s15 + $0x78] sm:$0xff]   ;;  %v3798_v12 = vld [vmem:[%s3940_s25 + $0x80] sm:$0xff]   ;;  %v3800_v14 = vld [vmem:[%s3940_s25 + $0x88] sm:$0xff]  }
  0x27   : > { %3363 = vmatmul.mubr.msk.bf16.gmra.mrb[8].mxu1 %vm699_vm0, %v3741_v20  ;;  %v3799_v13 = vld [vmem:[%s3997_s15 + $0x80] sm:$0xff]   ;;  %v3801_v15 = vld [vmem:[%s3997_s15 + $0x88] sm:$0xff]   ;;  %v3802_v16 = vld [vmem:[%s3940_s25 + $0x90] sm:$0xff]  }
  0x28   : > { %3435 = vmatmul.mubr.msk.bf16.gmra.mrb[8].mxu0 %vm699_vm0, %v3742_v21  ;;  %3366 = vmatprep.mubr.msk.bf16.mxu1 %vm699_vm0, %v3744_v23  ;;  %v3803_v17 = vld [vmem:[%s3997_s15 + $0x90] sm:$0xff]   ;;  %v3804_v18 = vld [vmem:[%s3940_s25 + $0x98] sm:$0xff]   ;;  %v3806_v20 = vld [vmem:[%s3940_s25 + $0xa0] sm:$0xff]  }
  0x29   : > { %3438 = vmatprep.mubr.msk.bf16.mxu0 %vm699_vm0, %v3745_v24  ;;  %v3805_v19 = vld [vmem:[%s3997_s15 + $0x98] sm:$0xff]   ;;  %v3807_v21 = vld [vmem:[%s3997_s15 + $0xa0] sm:$0xff]   ;;  %v3808_v22 = vld [vmem:[%s3940_s25 + $0xa8] sm:$0xff]  }
  0x2a   : > { %v3809_v23 = vld [vmem:[%s3997_s15 + $0xa8] sm:$0xff]   ;;  %v3810_v24 = vld [vmem:[%s3940_s25 + $0xb0] sm:$0xff]   ;;  %v3814_v28 = vld [vmem:[%s3940_s25 + $0xc0] sm:$0xff]  }
  0x2f   : > { %3367 = vmatmul.mubr.msk.bf16.gmra.mrb[12].mxu1 %vm699_vm0, %v3746_v25  ;;  %v3811_v25 = vld [vmem:[%s3997_s15 + $0xb0] sm:$0xff]  }
  0x30   : > { %3439 = vmatmul.mubr.msk.bf16.gmra.mrb[12].mxu0 %vm699_vm0, %v3747_v26  ;;  %3370 = vmatprep.mubr.msk.bf16.mxu1 %vm699_vm0, %v3748_v27  ;;  %v3812_v26 = vld [vmem:[%s3940_s25 + $0xb8] sm:$0xff]  }
  0x31   : > { %3442 = vmatprep.mubr.msk.bf16.mxu0 %vm699_vm0, %v3749_v29  ;;  %v3813_v27 = vld [vmem:[%s3997_s15 + $0xb8] sm:$0xff]   ;;  %v3815_v29 = vld [vmem:[%s3997_s15 + $0xc0] sm:$0xff]  }
  0x37   : > { %3371 = vmatmul.mubr.msk.bf16.gmra.mrb[16].mxu1 %vm699_vm0, %v3750_v30  ;;  %v3816_v30 = vld [vmem:[%s3940_s25 + $0xc8] sm:$0xff]  }
  0x38   : > { %3443 = vmatmul.mubr.msk.bf16.gmra.mrb[16].mxu0 %vm699_vm0, %v3751_v31  ;;  %3374 = vmatprep.mubr.msk.bf16.mxu1 %vm699_vm0, %v3753_v32  ;;  %v3817_v31 = vld [vmem:[%s3997_s15 + $0xc8] sm:$0xff]   ;;  %v3818_v32 = vld [vmem:[%s3940_s25 + $0xd0] sm:$0xff]  }
  0x39   : > { %3446 = vmatprep.mubr.msk.bf16.mxu0 %vm699_vm0, %v3754_v33  ;;  %v3819_v33 = vld [vmem:[%s3997_s15 + $0xd0] sm:$0xff]  }
  0x3f   : > { %3375 = vmatmul.mubr.msk.bf16.gmra.mrb[20].mxu1 %vm699_vm0, %v3755_v34  ;;  %v3820_v34 = vld [vmem:[%s3940_s25 + $0xd8] sm:$0xff]  }
  0x40   : > { %3447 = vmatmul.mubr.msk.bf16.gmra.mrb[20].mxu0 %vm699_vm0, %v3756_v35  ;;  %3378 = vmatprep.mubr.msk.bf16.mxu1 %vm699_vm0, %v3757_v36  ;;  %v3821_v35 = vld [vmem:[%s3997_s15 + $0xd8] sm:$0xff]   ;;  %v3822_v36 = vld [vmem:[%s3940_s25 + $0xe0] sm:$0xff]  }
  0x41   : > { %3450 = vmatprep.mubr.msk.bf16.mxu0 %vm699_vm0, %v3758_v37  ;;  %v3823_v37 = vld [vmem:[%s3997_s15 + $0xe0] sm:$0xff]  }
  0x47   : > { %3379 = vmatmul.mubr.msk.bf16.gmra.mrb[24].mxu1 %vm699_vm0, %v3759_v38  ;;  %v3824_v38 = vld [vmem:[%s3940_s25 + $0xe8] sm:$0xff]  }
  0x48   : > { %3451 = vmatmul.mubr.msk.bf16.gmra.mrb[24].mxu0 %vm699_vm0, %v3760_v39  ;;  %3382 = vmatprep.mubr.msk.bf16.mxu1 %vm699_vm0, %v3762_v40  ;;  %v3825_v39 = vld [vmem:[%s3997_s15 + $0xe8] sm:$0xff]   ;;  %v3826_v40 = vld [vmem:[%s3940_s25 + $0xf0] sm:$0xff]  }
  0x49   : > { %3454 = vmatprep.mubr.msk.bf16.mxu0 %vm699_vm0, %v3763_v41  ;;  %v3827_v41 = vld [vmem:[%s3997_s15 + $0xf0] sm:$0xff]  }
  0x4f   : > { %3383 = vmatmul.mubr.msk.bf16.gmra.mrb[28].mxu1 %vm699_vm0, %v3764_v42  ;;  %v3828_v42 = vld [vmem:[%s3940_s25 + $0xf8] sm:$0xff]  }
  0x50   : > { %3455 = vmatmul.mubr.msk.bf16.gmra.mrb[28].mxu0 %vm699_vm0, %v3765_v43  ;;  %3386 = vmatprep.mubr.msk.bf16.mxu1 %vm699_vm0, %v3766_v44  ;;  %v3829_v43 = vld [vmem:[%s3997_s15 + $0xf8] sm:$0xff]  }
  0x51   : > { %3498 = vmatprep.mubr.msk.bf16.mxu0 %vm699_vm0, %v3767_v45 }
  0x57   : > { %3387 = vmatmul.mubr.msk.bf16.gmra.mrb[32].mxu1 %vm699_vm0, %v3768_v46 }
  0x58   : > { %3499 = vmatmul.mubr.msk.bf16.vlgmr.msra.gmra.mrb[0].mxu0 %vm699_vm0, %v3769_v47  ;;  %3390 = vmatprep.mubr.msk.bf16.mxu1 %vm699_vm0, %v3770_v48 }
  0x59   : > { %3502 = vmatprep.mubr.msk.bf16.mxu0 %vm699_vm0, %v3771_v49 }
  0x5f   : > { %3391 = vmatmul.mubr.msk.bf16.gmra.mrb[36].mxu1 %vm699_vm0, %v3772_v50 }
  0x60   : > { %3503 = vmatmul.mubr.msk.bf16.gmra.mrb[4].mxu0 %vm699_vm0, %v3773_v51  ;;  %3394 = vmatprep.mubr.msk.bf16.mxu1 %vm699_vm0, %v3774_v52 }
  0x61   : > { %3506 = vmatprep.mubr.msk.bf16.mxu0 %vm699_vm0, %v3775_v53 }
  0x67   : > { %3395 = vmatmul.mubr.msk.bf16.gmra.mrb[40].mxu1 %vm699_vm0, %v3776_v54 }
  0x68   : > { %3507 = vmatmul.mubr.msk.bf16.gmra.mrb[8].mxu0 %vm699_vm0, %v3777_v55  ;;  %3398 = vmatprep.mubr.msk.bf16.mxu1 %vm699_vm0, %v3778_v56 }
  0x69   : > { %3510 = vmatprep.mubr.msk.bf16.mxu0 %vm699_vm0, %v3779_v57 }
  0x6f   : > { %3399 = vmatmul.mubr.msk.bf16.gmra.mrb[44].mxu1 %vm699_vm0, %v3780_v58 }
  0x70   : > { %3511 = vmatmul.mubr.msk.bf16.gmra.mrb[12].mxu0 %vm699_vm0, %v3781_v59  ;;  %3402 = vmatprep.mubr.msk.bf16.mxu1 %vm699_vm0, %v3782_v60 }
  0x71   : > { %3514 = vmatprep.mubr.msk.bf16.mxu0 %vm699_vm0, %v3783_v61 }
  0x77   : > { %3403 = vmatmul.mubr.msk.bf16.gmra.mrb[48].mxu1 %vm699_vm0, %v3784_v62 }
  0x78   : > { %3515 = vmatmul.mubr.msk.bf16.gmra.mrb[16].mxu0 %vm699_vm0, %v3785_v63  ;;  %3406 = vmatprep.mubr.msk.bf16.mxu1 %vm699_vm0, %v3786_v0 }
  0x79   : > { %3518 = vmatprep.mubr.msk.bf16.mxu0 %vm699_vm0, %v3787_v1 }
  0x7f   : > { %3407 = vmatmul.mubr.msk.bf16.gmra.mrb[52].mxu1 %vm699_vm0, %v3788_v2 }
  0x80   : > { %3519 = vmatmul.mubr.msk.bf16.gmra.mrb[20].mxu0 %vm699_vm0, %v3789_v3  ;;  %3410 = vmatprep.mubr.msk.bf16.mxu1 %vm699_vm0, %v3790_v4 }
  0x81   : > { %3522 = vmatprep.mubr.msk.bf16.mxu0 %vm699_vm0, %v3791_v5 }
  0x87   : > { %3411 = vmatmul.mubr.msk.bf16.gmra.mrb[56].mxu1 %vm699_vm0, %v3792_v6 }
  0x88   : > { %3523 = vmatmul.mubr.msk.bf16.gmra.mrb[24].mxu0 %vm699_vm0, %v3793_v7  ;;  %3414 = vmatprep.mubr.msk.bf16.mxu1 %vm699_vm0, %v3794_v8 }
  0x89   : > { %3526 = vmatprep.mubr.msk.bf16.mxu0 %vm699_vm0, %v3795_v9 }
  0x8f   : > { %3415 = vmatmul.mubr.msk.bf16.gmra.mrb[60].mxu1 %vm699_vm0, %v3796_v10 }
  0x90   : > { %3527 = vmatmul.mubr.msk.bf16.gmra.mrb[28].mxu0 %vm699_vm0, %v3797_v11  ;;  %3458 = vmatprep.mubr.msk.bf16.mxu1 %vm699_vm0, %v3798_v12 }
  0x91   : > { %3530 = vmatprep.mubr.msk.bf16.mxu0 %vm699_vm0, %v3799_v13 }
  0x97   : > { %3459 = vmatmul.mubr.msk.bf16.vlgmr.msra.gmra.mrb[32].mxu1 %vm699_vm0, %v3800_v14 }
  0x98   : > { %3531 = vmatmul.mubr.msk.bf16.gmra.mrb[32].mxu0 %vm699_vm0, %v3801_v15  ;;  %3462 = vmatprep.mubr.msk.bf16.mxu1 %vm699_vm0, %v3802_v16 }
  0x99   : > { %3534 = vmatprep.mubr.msk.bf16.mxu0 %vm699_vm0, %v3803_v17 }
  0x9f   : > { %3463 = vmatmul.mubr.msk.bf16.gmra.mrb[36].mxu1 %vm699_vm0, %v3804_v18 }
  0xa0   : > { %3535 = vmatmul.mubr.msk.bf16.gmra.mrb[36].mxu0 %vm699_vm0, %v3805_v19  ;;  %3466 = vmatprep.mubr.msk.bf16.mxu1 %vm699_vm0, %v3806_v20 }
  0xa1   : > { %3538 = vmatprep.mubr.msk.bf16.mxu0 %vm699_vm0, %v3807_v21 }
  0xa7   : > { %3467 = vmatmul.mubr.msk.bf16.gmra.mrb[40].mxu1 %vm699_vm0, %v3808_v22 }
  0xa8   : > { %3539 = vmatmul.mubr.msk.bf16.gmra.mrb[40].mxu0 %vm699_vm0, %v3809_v23  ;;  %3470 = vmatprep.mubr.msk.bf16.mxu1 %vm699_vm0, %v3810_v24 }
  0xa9   : > { %3542 = vmatprep.mubr.msk.bf16.mxu0 %vm699_vm0, %v3811_v25 }
  0xaf   : > { %3471 = vmatmul.mubr.msk.bf16.gmra.mrb[44].mxu1 %vm699_vm0, %v3812_v26 }
  0xb0   : > { %3543 = vmatmul.mubr.msk.bf16.gmra.mrb[44].mxu0 %vm699_vm0, %v3813_v27  ;;  %3474 = vmatprep.mubr.msk.bf16.mxu1 %vm699_vm0, %v3814_v28 }
  0xb1   : > { %3546 = vmatprep.mubr.msk.bf16.mxu0 %vm699_vm0, %v3815_v29 }
  0xb7   : > { %3475 = vmatmul.mubr.msk.bf16.gmra.mrb[48].mxu1 %vm699_vm0, %v3816_v30 }
  0xb8   : > { %3547 = vmatmul.mubr.msk.bf16.gmra.mrb[48].mxu0 %vm699_vm0, %v3817_v31  ;;  %3478 = vmatprep.mubr.msk.bf16.mxu1 %vm699_vm0, %v3818_v32 }
  0xb9   : > { %3550 = vmatprep.mubr.msk.bf16.mxu0 %vm699_vm0, %v3819_v33 }
  0xbf   : > { %3479 = vmatmul.mubr.msk.bf16.gmra.mrb[52].mxu1 %vm699_vm0, %v3820_v34 }
  0xc0   : > { %3551 = vmatmul.mubr.msk.bf16.gmra.mrb[52].mxu0 %vm699_vm0, %v3821_v35  ;;  %3482 = vmatprep.mubr.msk.bf16.mxu1 %vm699_vm0, %v3822_v36 }
  0xc1   : > { %3554 = vmatprep.mubr.msk.bf16.mxu0 %vm699_vm0, %v3823_v37 }
  0xc7   : > { %3483 = vmatmul.mubr.msk.bf16.gmra.mrb[56].mxu1 %vm699_vm0, %v3824_v38 }
  0xc8   : > { %3555 = vmatmul.mubr.msk.bf16.gmra.mrb[56].mxu0 %vm699_vm0, %v3825_v39  ;;  %3486 = vmatprep.mubr.msk.bf16.mxu1 %vm699_vm0, %v3826_v40 }
  0xc9   : > { %3558 = vmatprep.mubr.msk.bf16.mxu0 %vm699_vm0, %v3827_v41 }
  0xcf   : > { %3487 = vmatmul.mubr.msk.bf16.gmra.mrb[60].mxu1 %vm699_vm0, %v3828_v42 }
  0xd0   : > { %3559 = vmatmul.mubr.msk.bf16.gmra.mrb[60].mxu0 %vm699_vm0, %v3829_v43 }
  0xea   : > { %v3356_v44 = vpop.f32.mrb[0].mxu1 }
  0xeb   : > { %v830_v45 = vpop.f32.mrb[1].mxu1 }
  0xec   : > { %v3357_v46 = vpop.f32.mrb[2].mxu1 }
  0xed   : > { %v833_v47 = vpop.f32.mrb[3].mxu1 }
  0xf2   : > { %v3360_v48 = vpop.f32.mrb[4].mxu1 }
  0xf3   : > { %v846_v49 = vpop.f32.mrb[5].mxu1 }
  0xf4   : > { %v3361_v50 = vpop.f32.mrb[6].mxu1 }
  0xf5   : > { %v849_v51 = vpop.f32.mrb[7].mxu1 }
  0xfa   : > { %v4155_v52 = vpop.f32.mrb[8].mxu1 }
  0xfb   : > { %v4157_v53 = vpop.f32.mrb[9].mxu1 }
  0xfc   : > { %v4159_v54 = vpop.f32.mrb[10].mxu1 }
  0xfd   : > { %v4161_v55 = vpop.f32.mrb[11].mxu1 }
 0x102   : > { %v4163_v56 = vpop.f32.mrb[12].mxu1 }
 0x103   : > { %v4165_v57 = vpop.f32.mrb[13].mxu1 }
 0x104   : > { %v4167_v58 = vpop.f32.mrb[14].mxu1 }
 0x105   : > { %v4169_v59 = vpop.f32.mrb[15].mxu1 }
 0x10a   : > { %v4171_v60 = vpop.f32.mrb[16].mxu1 }
 0x10b   : > { %v4173_v61 = vpop.f32.mrb[17].mxu1 }
 0x10c   : > { %v4175_v62 = vpop.f32.mrb[18].mxu1 }
 0x10d   : > { %v4177_v63 = vpop.f32.mrb[19].mxu1 }
 0x112   : > { %v4179_v0 = vpop.f32.mrb[20].mxu1 }
 0x113   : > { %v4181_v1 = vpop.f32.mrb[21].mxu1 }
 0x114   : > { %v4183_v2 = vpop.f32.mrb[22].mxu1 }
 0x115   : > { %v4185_v3 = vpop.f32.mrb[23].mxu1 }
 0x11a   : > { %v4187_v4 = vpop.f32.mrb[24].mxu1 }
 0x11b   : > { %v4189_v5 = vpop.f32.mrb[25].mxu1 }
 0x11c   : > { %v4191_v6 = vpop.f32.mrb[26].mxu1 }
 0x11d   : > { %v4193_v7 = vpop.f32.mrb[27].mxu1 }
 0x122   : > { %v4195_v8 = vpop.f32.mrb[28].mxu1 }
 0x123   : > { %v4197_v9 = vpop.f32.mrb[29].mxu1 }
 0x124   : > { %v4199_v10 = vpop.f32.mrb[30].mxu1 }
 0x125   : > { %v4201_v11 = vpop.f32.mrb[31].mxu1 }
 0x12b   : > { %v3500_v12 = vpop.f32.mrb[0].mxu0 }
 0x12c   : > { %v3570_v13 = vadd.f32 %v3500_v12, %v3356_v44  ;;  %v2040_v14 = vpop.f32.mrb[1].mxu0 }
 0x12d   : > { %v3571_v15 = vadd.f32 %v2040_v14, %v830_v45  ;;  %v3501_v16 = vpop.f32.mrb[2].mxu0 }
 0x12e   : > { %v2361_v17 = vmax.f32 %v3570_v13, 0.0  ;;  %v3572_v18 = vadd.f32 %v3501_v16, %v3357_v46  ;;  %v2043_v19 = vpop.f32.mrb[3].mxu0 }
 0x12f   : > { %v2359_v20 = vmax.f32 %v3571_v15, 0.0  ;;  %v3573_v21 = vadd.f32 %v2043_v19, %v833_v47 }
 0x130   : > { %v3176_v22 = vpack.c.bf16 %v2361_v17, %v2361_v17  ;;  %v2362_v23 = vmax.f32 %v3572_v18, 0.0 }
 0x131   : > { %v3174_v24 = vpack.c.bf16 %v2359_v20, %v2359_v20  ;;  %v2360_v25 = vmax.f32 %v3573_v21, 0.0 }
 0x132   : > { %2682 = vst.msk [vmem:[%s4207_s18 + $0x8] sm:$0xf] %vm2679_vm1, %v3176_v22  ;;  %v3177_v26 = vpack.c.bf16 %v2362_v23, %v2362_v23 }
 0x133   : > { %2680 = vst.msk [vmem:[%s4207_s18] sm:$0xf] %vm2679_vm1, %v3174_v24  ;;  %v3175_v27 = vpack.c.bf16 %v2360_v25, %v2360_v25  ;;  %v3504_v28 = vpop.f32.mrb[4].mxu0 }
 0x134   : > { %2683 = vst.msk [vmem:[%s4207_s18 + $0xc] sm:$0xf] %vm2679_vm1, %v3177_v26  ;;  %v3574_v29 = vadd.f32 %v3504_v28, %v3360_v48  ;;  %v2056_v30 = vpop.f32.mrb[5].mxu0 }
 0x135   : > { %2681 = vst.msk [vmem:[%s4207_s18 + $0x4] sm:$0xf] %vm2679_vm1, %v3175_v27  ;;  %v3575_v31 = vadd.f32 %v2056_v30, %v846_v49  ;;  %v3505_v32 = vpop.f32.mrb[6].mxu0 }
 0x136   : > { %v2365_v33 = vmax.f32 %v3574_v29, 0.0  ;;  %v3576_v34 = vadd.f32 %v3505_v32, %v3361_v50  ;;  %v2059_v35 = vpop.f32.mrb[7].mxu0 }
 0x137   : > { %v2363_v36 = vmax.f32 %v3575_v31, 0.0  ;;  %v3577_v37 = vadd.f32 %v2059_v35, %v849_v51 }
 0x138   : > { %v3180_v38 = vpack.c.bf16 %v2365_v33, %v2365_v33  ;;  %v2366_v39 = vmax.f32 %v3576_v34, 0.0 }
 0x139   : > { %v3178_v40 = vpack.c.bf16 %v2363_v36, %v2363_v36  ;;  %v2364_v41 = vmax.f32 %v3577_v37, 0.0 }
 0x13a   : > { %2686 = vst.msk [vmem:[%s4207_s18 + $0x18] sm:$0xf] %vm2679_vm1, %v3180_v38  ;;  %v3181_v42 = vpack.c.bf16 %v2366_v39, %v2366_v39 }
 0x13b   : > { %2684 = vst.msk [vmem:[%s4207_s18 + $0x10] sm:$0xf] %vm2679_vm1, %v3178_v40  ;;  %v3179_v43 = vpack.c.bf16 %v2364_v41, %v2364_v41  ;;  %v3508_v44 = vpop.f32.mrb[8].mxu0 }
 0x13c   : > { %2687 = vst.msk [vmem:[%s4207_s18 + $0x1c] sm:$0xf] %vm2679_vm1, %v3181_v42  ;;  %v3578_v45 = vadd.f32 %v3508_v44, %v4155_v52  ;;  %v2072_v46 = vpop.f32.mrb[9].mxu0 }
 0x13d   : > { %2685 = vst.msk [vmem:[%s4207_s18 + $0x14] sm:$0xf] %vm2679_vm1, %v3179_v43  ;;  %v3579_v47 = vadd.f32 %v2072_v46, %v4157_v53  ;;  %v3509_v48 = vpop.f32.mrb[10].mxu0 }
 0x13e   : > { %v2369_v49 = vmax.f32 %v3578_v45, 0.0  ;;  %v3580_v50 = vadd.f32 %v3509_v48, %v4159_v54  ;;  %v2075_v51 = vpop.f32.mrb[11].mxu0 }
 0x13f   : > { %v2367_v12 = vmax.f32 %v3579_v47, 0.0  ;;  %v3581_v13 = vadd.f32 %v2075_v51, %v4161_v55 }
 0x140   : > { %v3184_v14 = vpack.c.bf16 %v2369_v49, %v2369_v49  ;;  %v2370_v15 = vmax.f32 %v3580_v50, 0.0 }
 0x141   : > { %v3182_v16 = vpack.c.bf16 %v2367_v12, %v2367_v12  ;;  %v2368_v52 = vmax.f32 %v3581_v13, 0.0 }
 0x142   : > { %2690 = vst.msk [vmem:[%s4207_s18 + $0x28] sm:$0xf] %vm2679_vm1, %v3184_v14  ;;  %v3185_v17 = vpack.c.bf16 %v2370_v15, %v2370_v15 }
 0x143   : > { %2688 = vst.msk [vmem:[%s4207_s18 + $0x20] sm:$0xf] %vm2679_vm1, %v3182_v16  ;;  %v3183_v53 = vpack.c.bf16 %v2368_v52, %v2368_v52  ;;  %v3512_v18 = vpop.f32.mrb[12].mxu0 }
 0x144   : > { %2691 = vst.msk [vmem:[%s4207_s18 + $0x2c] sm:$0xf] %vm2679_vm1, %v3185_v17  ;;  %v3582_v54 = vadd.f32 %v3512_v18, %v4163_v56  ;;  %v2088_v19 = vpop.f32.mrb[13].mxu0 }
 0x145   : > { %2689 = vst.msk [vmem:[%s4207_s18 + $0x24] sm:$0xf] %vm2679_vm1, %v3183_v53  ;;  %v3583_v55 = vadd.f32 %v2088_v19, %v4165_v57  ;;  %v3513_v20 = vpop.f32.mrb[14].mxu0 }
 0x146   : > { %v2373_v21 = vmax.f32 %v3582_v54, 0.0  ;;  %v3584_v22 = vadd.f32 %v3513_v20, %v4167_v58  ;;  %v2091_v23 = vpop.f32.mrb[15].mxu0 }
 0x147   : > { %v2371_v24 = vmax.f32 %v3583_v55, 0.0  ;;  %v3585_v25 = vadd.f32 %v2091_v23, %v4169_v59 }
 0x148   : > { %v3188_v26 = vpack.c.bf16 %v2373_v21, %v2373_v21  ;;  %v2374_v27 = vmax.f32 %v3584_v22, 0.0 }
 0x149   : > { %v3186_v28 = vpack.c.bf16 %v2371_v24, %v2371_v24  ;;  %v2372_v56 = vmax.f32 %v3585_v25, 0.0 }
 0x14a   : > { %2694 = vst.msk [vmem:[%s4207_s18 + $0x38] sm:$0xf] %vm2679_vm1, %v3188_v26  ;;  %v3189_v29 = vpack.c.bf16 %v2374_v27, %v2374_v27 }
 0x14b   : > { %2692 = vst.msk [vmem:[%s4207_s18 + $0x30] sm:$0xf] %vm2679_vm1, %v3186_v28  ;;  %v3187_v57 = vpack.c.bf16 %v2372_v56, %v2372_v56  ;;  %v3516_v30 = vpop.f32.mrb[16].mxu0 }
 0x14c   : > { %2695 = vst.msk [vmem:[%s4207_s18 + $0x3c] sm:$0xf] %vm2679_vm1, %v3189_v29  ;;  %v3586_v58 = vadd.f32 %v3516_v30, %v4171_v60  ;;  %v2104_v31 = vpop.f32.mrb[17].mxu0 }
 0x14d   : > { %2693 = vst.msk [vmem:[%s4207_s18 + $0x34] sm:$0xf] %vm2679_vm1, %v3187_v57  ;;  %v3587_v59 = vadd.f32 %v2104_v31, %v4173_v61  ;;  %v3517_v32 = vpop.f32.mrb[18].mxu0 }
 0x14e   : > { %v2377_v33 = vmax.f32 %v3586_v58, 0.0  ;;  %v3588_v34 = vadd.f32 %v3517_v32, %v4175_v62  ;;  %v2107_v35 = vpop.f32.mrb[19].mxu0 }
 0x14f   : > { %v2375_v36 = vmax.f32 %v3587_v59, 0.0  ;;  %v3589_v37 = vadd.f32 %v2107_v35, %v4177_v63 }
 0x150   : > { %v3192_v38 = vpack.c.bf16 %v2377_v33, %v2377_v33  ;;  %v2378_v39 = vmax.f32 %v3588_v34, 0.0 }
 0x151   : > { %v3190_v40 = vpack.c.bf16 %v2375_v36, %v2375_v36  ;;  %v2376_v60 = vmax.f32 %v3589_v37, 0.0 }
 0x152   : > { %2698 = vst.msk [vmem:[%s4207_s18 + $0x48] sm:$0xf] %vm2679_vm1, %v3192_v38  ;;  %v3193_v41 = vpack.c.bf16 %v2378_v39, %v2378_v39 }
 0x153   : > { %2696 = vst.msk [vmem:[%s4207_s18 + $0x40] sm:$0xf] %vm2679_vm1, %v3190_v40  ;;  %v3191_v61 = vpack.c.bf16 %v2376_v60, %v2376_v60  ;;  %v3520_v42 = vpop.f32.mrb[20].mxu0 }
 0x154   : > { %2699 = vst.msk [vmem:[%s4207_s18 + $0x4c] sm:$0xf] %vm2679_vm1, %v3193_v41  ;;  %v3590_v62 = vadd.f32 %v3520_v42, %v4179_v0  ;;  %v2120_v43 = vpop.f32.mrb[21].mxu0 }
 0x155   : > { %2697 = vst.msk [vmem:[%s4207_s18 + $0x44] sm:$0xf] %vm2679_vm1, %v3191_v61  ;;  %v3591_v63 = vadd.f32 %v2120_v43, %v4181_v1  ;;  %v3521_v44 = vpop.f32.mrb[22].mxu0 }
 0x156   : > { %v2381_v45 = vmax.f32 %v3590_v62, 0.0  ;;  %v3592_v46 = vadd.f32 %v3521_v44, %v4183_v2  ;;  %v2123_v47 = vpop.f32.mrb[23].mxu0 }
 0x157   : > { %v2379_v48 = vmax.f32 %v3591_v63, 0.0  ;;  %v3593_v49 = vadd.f32 %v2123_v47, %v4185_v3 }
 0x158   : > { %v3196_v50 = vpack.c.bf16 %v2381_v45, %v2381_v45  ;;  %v2382_v51 = vmax.f32 %v3592_v46, 0.0 }
 0x159   : > { %v3194_v12 = vpack.c.bf16 %v2379_v48, %v2379_v48  ;;  %v2380_v0 = vmax.f32 %v3593_v49, 0.0 }
 0x15a   : > { %2702 = vst.msk [vmem:[%s4207_s18 + $0x58] sm:$0xf] %vm2679_vm1, %v3196_v50  ;;  %v3197_v13 = vpack.c.bf16 %v2382_v51, %v2382_v51 }
 0x15b   : > { %2700 = vst.msk [vmem:[%s4207_s18 + $0x50] sm:$0xf] %vm2679_vm1, %v3194_v12  ;;  %v3195_v1 = vpack.c.bf16 %v2380_v0, %v2380_v0  ;;  %v3524_v14 = vpop.f32.mrb[24].mxu0 }
 0x15c   : > { %2703 = vst.msk [vmem:[%s4207_s18 + $0x5c] sm:$0xf] %vm2679_vm1, %v3197_v13  ;;  %v3594_v2 = vadd.f32 %v3524_v14, %v4187_v4  ;;  %v2136_v15 = vpop.f32.mrb[25].mxu0 }
 0x15d   : > { %2701 = vst.msk [vmem:[%s4207_s18 + $0x54] sm:$0xf] %vm2679_vm1, %v3195_v1  ;;  %v3595_v3 = vadd.f32 %v2136_v15, %v4189_v5  ;;  %v3525_v16 = vpop.f32.mrb[26].mxu0 }
 0x15e   : > { %v2385_v52 = vmax.f32 %v3594_v2, 0.0  ;;  %v3596_v17 = vadd.f32 %v3525_v16, %v4191_v6  ;;  %v2139_v53 = vpop.f32.mrb[27].mxu0 }
 0x15f   : > { %v2383_v18 = vmax.f32 %v3595_v3, 0.0  ;;  %v3597_v54 = vadd.f32 %v2139_v53, %v4193_v7 }
 0x160   : > { %v3200_v19 = vpack.c.bf16 %v2385_v52, %v2385_v52  ;;  %v2386_v55 = vmax.f32 %v3596_v17, 0.0 }
 0x161   : > { %v3198_v20 = vpack.c.bf16 %v2383_v18, %v2383_v18  ;;  %v2384_v4 = vmax.f32 %v3597_v54, 0.0 }
 0x162   : > { %2706 = vst.msk [vmem:[%s4207_s18 + $0x68] sm:$0xf] %vm2679_vm1, %v3200_v19  ;;  %v3201_v21 = vpack.c.bf16 %v2386_v55, %v2386_v55 }
 0x163   : > { %2704 = vst.msk [vmem:[%s4207_s18 + $0x60] sm:$0xf] %vm2679_vm1, %v3198_v20  ;;  %v3199_v5 = vpack.c.bf16 %v2384_v4, %v2384_v4  ;;  %v3528_v22 = vpop.f32.mrb[28].mxu0 }
 0x164   : > { %2707 = vst.msk [vmem:[%s4207_s18 + $0x6c] sm:$0xf] %vm2679_vm1, %v3201_v21  ;;  %v3598_v6 = vadd.f32 %v3528_v22, %v4195_v8  ;;  %v2152_v23 = vpop.f32.mrb[29].mxu0 }
 0x165   : > { %2705 = vst.msk [vmem:[%s4207_s18 + $0x64] sm:$0xf] %vm2679_vm1, %v3199_v5  ;;  %v3599_v7 = vadd.f32 %v2152_v23, %v4197_v9  ;;  %v3529_v24 = vpop.f32.mrb[30].mxu0 }
 0x166   : > { %v2389_v25 = vmax.f32 %v3598_v6, 0.0  ;;  %v3600_v26 = vadd.f32 %v3529_v24, %v4199_v10  ;;  %v2155_v27 = vpop.f32.mrb[31].mxu0 }
 0x167   : > { %v2387_v28 = vmax.f32 %v3599_v7, 0.0  ;;  %v3601_v56 = vadd.f32 %v2155_v27, %v4201_v11 }
 0x168   : > { %v3204_v29 = vpack.c.bf16 %v2389_v25, %v2389_v25  ;;  %v2390_v57 = vmax.f32 %v3600_v26, 0.0 }
 0x169   : > { %v3202_v30 = vpack.c.bf16 %v2387_v28, %v2387_v28  ;;  %v2388_v8 = vmax.f32 %v3601_v56, 0.0 }
 0x16a   : > { %2710 = vst.msk [vmem:[%s4207_s18 + $0x78] sm:$0xf] %vm2679_vm1, %v3204_v29  ;;  %v3205_v58 = vpack.c.bf16 %v2390_v57, %v2390_v57  ;;  %v3460_v31 = vpop.f32.mrb[32].mxu1 }
 0x16b   : > { %2708 = vst.msk [vmem:[%s4207_s18 + $0x70] sm:$0xf] %vm2679_vm1, %v3202_v30  ;;  %v3203_v9 = vpack.c.bf16 %v2388_v8, %v2388_v8  ;;  %v3532_v59 = vpop.f32.mrb[32].mxu0  ;;  %v1527_v32 = vpop.f32.mrb[33].mxu1 }
 0x16c   : > { %2711 = vst.msk [vmem:[%s4207_s18 + $0x7c] sm:$0xf] %vm2679_vm1, %v3205_v58  ;;  %v3602_v10 = vadd.f32 %v3532_v59, %v3460_v31  ;;  %v2168_v33 = vpop.f32.mrb[33].mxu0  ;;  %v3461_v11 = vpop.f32.mrb[34].mxu1 }
 0x16d   : > { %2709 = vst.msk [vmem:[%s4207_s18 + $0x74] sm:$0xf] %vm2679_vm1, %v3203_v9  ;;  %v3603_v34 = vadd.f32 %v2168_v33, %v1527_v32  ;;  %v3533_v35 = vpop.f32.mrb[34].mxu0  ;;  %v1530_v36 = vpop.f32.mrb[35].mxu1 }
 0x16e   : > { %v2393_v37 = vmax.f32 %v3602_v10, 0.0  ;;  %v3604_v38 = vadd.f32 %v3533_v35, %v3461_v11  ;;  %v2171_v39 = vpop.f32.mrb[35].mxu0 }
 0x16f   : > { %v2391_v40 = vmax.f32 %v3603_v34, 0.0  ;;  %v3605_v60 = vadd.f32 %v2171_v39, %v1530_v36 }
 0x170   : > { %v3208_v41 = vpack.c.bf16 %v2393_v37, %v2393_v37  ;;  %v2394_v61 = vmax.f32 %v3604_v38, 0.0 }
 0x171   : > { %v3206_v42 = vpack.c.bf16 %v2391_v40, %v2391_v40  ;;  %v2392_v62 = vmax.f32 %v3605_v60, 0.0 }
 0x172   : > { %2714 = vst.msk [vmem:[%s4207_s18 + $0x88] sm:$0xf] %vm2679_vm1, %v3208_v41  ;;  %v3209_v43 = vpack.c.bf16 %v2394_v61, %v2394_v61  ;;  %v3464_v63 = vpop.f32.mrb[36].mxu1 }
 0x173   : > { %2712 = vst.msk [vmem:[%s4207_s18 + $0x80] sm:$0xf] %vm2679_vm1, %v3206_v42  ;;  %v3207_v44 = vpack.c.bf16 %v2392_v62, %v2392_v62  ;;  %v3536_v45 = vpop.f32.mrb[36].mxu0  ;;  %v1543_v46 = vpop.f32.mrb[37].mxu1 }
 0x174   : > { %2715 = vst.msk [vmem:[%s4207_s18 + $0x8c] sm:$0xf] %vm2679_vm1, %v3209_v43  ;;  %v3606_v47 = vadd.f32 %v3536_v45, %v3464_v63  ;;  %v2184_v48 = vpop.f32.mrb[37].mxu0  ;;  %v3465_v49 = vpop.f32.mrb[38].mxu1 }
 0x175   : > { %2713 = vst.msk [vmem:[%s4207_s18 + $0x84] sm:$0xf] %vm2679_vm1, %v3207_v44  ;;  %v3607_v50 = vadd.f32 %v2184_v48, %v1543_v46  ;;  %v3537_v51 = vpop.f32.mrb[38].mxu0  ;;  %v1546_v12 = vpop.f32.mrb[39].mxu1 }
 0x176   : > { %v2397_v0 = vmax.f32 %v3606_v47, 0.0  ;;  %v3608_v13 = vadd.f32 %v3537_v51, %v3465_v49  ;;  %v2187_v1 = vpop.f32.mrb[39].mxu0 }
 0x177   : > { %v2395_v14 = vmax.f32 %v3607_v50, 0.0  ;;  %v3609_v2 = vadd.f32 %v2187_v1, %v1546_v12 }
 0x178   : > { %v3212_v15 = vpack.c.bf16 %v2397_v0, %v2397_v0  ;;  %v2398_v3 = vmax.f32 %v3608_v13, 0.0 }
 0x179   : > { %v3210_v16 = vpack.c.bf16 %v2395_v14, %v2395_v14  ;;  %v2396_v52 = vmax.f32 %v3609_v2, 0.0 }
 0x17a   : > { %2718 = vst.msk [vmem:[%s4207_s18 + $0x98] sm:$0xf] %vm2679_vm1, %v3212_v15  ;;  %v3213_v17 = vpack.c.bf16 %v2398_v3, %v2398_v3  ;;  %v3468_v53 = vpop.f32.mrb[40].mxu1 }
 0x17b   : > { %2716 = vst.msk [vmem:[%s4207_s18 + $0x90] sm:$0xf] %vm2679_vm1, %v3210_v16  ;;  %v3211_v18 = vpack.c.bf16 %v2396_v52, %v2396_v52  ;;  %v3540_v54 = vpop.f32.mrb[40].mxu0  ;;  %v1559_v19 = vpop.f32.mrb[41].mxu1 }
 0x17c   : > { %2719 = vst.msk [vmem:[%s4207_s18 + $0x9c] sm:$0xf] %vm2679_vm1, %v3213_v17  ;;  %v3610_v55 = vadd.f32 %v3540_v54, %v3468_v53  ;;  %v2200_v20 = vpop.f32.mrb[41].mxu0  ;;  %v3469_v4 = vpop.f32.mrb[42].mxu1 }
 0x17d   : > { %2717 = vst.msk [vmem:[%s4207_s18 + $0x94] sm:$0xf] %vm2679_vm1, %v3211_v18  ;;  %v3611_v21 = vadd.f32 %v2200_v20, %v1559_v19  ;;  %v3541_v5 = vpop.f32.mrb[42].mxu0  ;;  %v1562_v22 = vpop.f32.mrb[43].mxu1 }
 0x17e   : > { %v2401_v6 = vmax.f32 %v3610_v55, 0.0  ;;  %v3612_v23 = vadd.f32 %v3541_v5, %v3469_v4  ;;  %v2203_v7 = vpop.f32.mrb[43].mxu0 }
 0x17f   : > { %v2399_v24 = vmax.f32 %v3611_v21, 0.0  ;;  %v3613_v25 = vadd.f32 %v2203_v7, %v1562_v22 }
 0x180   : > { %v3216_v26 = vpack.c.bf16 %v2401_v6, %v2401_v6  ;;  %v2402_v27 = vmax.f32 %v3612_v23, 0.0 }
 0x181   : > { %v3214_v28 = vpack.c.bf16 %v2399_v24, %v2399_v24  ;;  %v2400_v56 = vmax.f32 %v3613_v25, 0.0 }
 0x182   : > { %2722 = vst.msk [vmem:[%s4207_s18 + $0xa8] sm:$0xf] %vm2679_vm1, %v3216_v26  ;;  %v3217_v29 = vpack.c.bf16 %v2402_v27, %v2402_v27  ;;  %v3472_v57 = vpop.f32.mrb[44].mxu1 }
 0x183   : > { %2720 = vst.msk [vmem:[%s4207_s18 + $0xa0] sm:$0xf] %vm2679_vm1, %v3214_v28  ;;  %v3215_v30 = vpack.c.bf16 %v2400_v56, %v2400_v56  ;;  %v3544_v8 = vpop.f32.mrb[44].mxu0  ;;  %v1575_v58 = vpop.f32.mrb[45].mxu1 }
 0x184   : > { %2723 = vst.msk [vmem:[%s4207_s18 + $0xac] sm:$0xf] %vm2679_vm1, %v3217_v29  ;;  %v3614_v31 = vadd.f32 %v3544_v8, %v3472_v57  ;;  %v2216_v9 = vpop.f32.mrb[45].mxu0  ;;  %v3473_v59 = vpop.f32.mrb[46].mxu1 }
 0x185   : > { %2721 = vst.msk [vmem:[%s4207_s18 + $0xa4] sm:$0xf] %vm2679_vm1, %v3215_v30  ;;  %v3615_v32 = vadd.f32 %v2216_v9, %v1575_v58  ;;  %v3545_v10 = vpop.f32.mrb[46].mxu0  ;;  %v1578_v33 = vpop.f32.mrb[47].mxu1 }
 0x186   : > { %v2405_v11 = vmax.f32 %v3614_v31, 0.0  ;;  %v3616_v34 = vadd.f32 %v3545_v10, %v3473_v59  ;;  %v2219_v35 = vpop.f32.mrb[47].mxu0 }
 0x187   : > { %v2403_v36 = vmax.f32 %v3615_v32, 0.0  ;;  %v3617_v37 = vadd.f32 %v2219_v35, %v1578_v33 }
 0x188   : > { %v3220_v38 = vpack.c.bf16 %v2405_v11, %v2405_v11  ;;  %v2406_v39 = vmax.f32 %v3616_v34, 0.0 }
 0x189   : > { %v3218_v40 = vpack.c.bf16 %v2403_v36, %v2403_v36  ;;  %v2404_v60 = vmax.f32 %v3617_v37, 0.0 }
 0x18a   : > { %2726 = vst.msk [vmem:[%s4207_s18 + $0xb8] sm:$0xf] %vm2679_vm1, %v3220_v38  ;;  %v3221_v41 = vpack.c.bf16 %v2406_v39, %v2406_v39  ;;  %v3476_v61 = vpop.f32.mrb[48].mxu1 }
 0x18b   : > { %2724 = vst.msk [vmem:[%s4207_s18 + $0xb0] sm:$0xf] %vm2679_vm1, %v3218_v40  ;;  %v3219_v42 = vpack.c.bf16 %v2404_v60, %v2404_v60  ;;  %v3548_v62 = vpop.f32.mrb[48].mxu0  ;;  %v1591_v43 = vpop.f32.mrb[49].mxu1 }
 0x18c   : > { %2727 = vst.msk [vmem:[%s4207_s18 + $0xbc] sm:$0xf] %vm2679_vm1, %v3221_v41  ;;  %v3618_v63 = vadd.f32 %v3548_v62, %v3476_v61  ;;  %v2232_v44 = vpop.f32.mrb[49].mxu0  ;;  %v3477_v45 = vpop.f32.mrb[50].mxu1 }
 0x18d   : > { %2725 = vst.msk [vmem:[%s4207_s18 + $0xb4] sm:$0xf] %vm2679_vm1, %v3219_v42  ;;  %v3619_v46 = vadd.f32 %v2232_v44, %v1591_v43  ;;  %v3549_v47 = vpop.f32.mrb[50].mxu0  ;;  %v1594_v48 = vpop.f32.mrb[51].mxu1 }
 0x18e   : > { %v2409_v49 = vmax.f32 %v3618_v63, 0.0  ;;  %v3620_v50 = vadd.f32 %v3549_v47, %v3477_v45  ;;  %v2235_v51 = vpop.f32.mrb[51].mxu0 }
 0x18f   : > { %v2407_v12 = vmax.f32 %v3619_v46, 0.0  ;;  %v3621_v0 = vadd.f32 %v2235_v51, %v1594_v48 }
 0x190   : > { %v3224_v13 = vpack.c.bf16 %v2409_v49, %v2409_v49  ;;  %v2410_v1 = vmax.f32 %v3620_v50, 0.0 }
 0x191   : > { %v3222_v14 = vpack.c.bf16 %v2407_v12, %v2407_v12  ;;  %v2408_v2 = vmax.f32 %v3621_v0, 0.0 }
 0x192   : > { %2730 = vst.msk [vmem:[%s4207_s18 + $0xc8] sm:$0xf] %vm2679_vm1, %v3224_v13  ;;  %v3225_v15 = vpack.c.bf16 %v2410_v1, %v2410_v1  ;;  %v3480_v3 = vpop.f32.mrb[52].mxu1 }
 0x193   : > { %2728 = vst.msk [vmem:[%s4207_s18 + $0xc0] sm:$0xf] %vm2679_vm1, %v3222_v14  ;;  %v3223_v16 = vpack.c.bf16 %v2408_v2, %v2408_v2  ;;  %v3552_v52 = vpop.f32.mrb[52].mxu0  ;;  %v1607_v17 = vpop.f32.mrb[53].mxu1 }
 0x194   : > { %2731 = vst.msk [vmem:[%s4207_s18 + $0xcc] sm:$0xf] %vm2679_vm1, %v3225_v15  ;;  %v3622_v53 = vadd.f32 %v3552_v52, %v3480_v3  ;;  %v2248_v18 = vpop.f32.mrb[53].mxu0  ;;  %v3481_v54 = vpop.f32.mrb[54].mxu1 }
 0x195   : > { %2729 = vst.msk [vmem:[%s4207_s18 + $0xc4] sm:$0xf] %vm2679_vm1, %v3223_v16  ;;  %v3623_v19 = vadd.f32 %v2248_v18, %v1607_v17  ;;  %v3553_v55 = vpop.f32.mrb[54].mxu0  ;;  %v1610_v20 = vpop.f32.mrb[55].mxu1 }
 0x196   : > { %v2413_v4 = vmax.f32 %v3622_v53, 0.0  ;;  %v3624_v21 = vadd.f32 %v3553_v55, %v3481_v54  ;;  %v2251_v5 = vpop.f32.mrb[55].mxu0 }
 0x197   : > { %v2411_v22 = vmax.f32 %v3623_v19, 0.0  ;;  %v3625_v6 = vadd.f32 %v2251_v5, %v1610_v20 }
 0x198   : > { %v3228_v23 = vpack.c.bf16 %v2413_v4, %v2413_v4  ;;  %v2414_v7 = vmax.f32 %v3624_v21, 0.0 }
 0x199   : > { %v3226_v24 = vpack.c.bf16 %v2411_v22, %v2411_v22  ;;  %v2412_v25 = vmax.f32 %v3625_v6, 0.0 }
 0x19a   : > { %2734 = vst.msk [vmem:[%s4207_s18 + $0xd8] sm:$0xf] %vm2679_vm1, %v3228_v23  ;;  %v3229_v26 = vpack.c.bf16 %v2414_v7, %v2414_v7  ;;  %v3484_v27 = vpop.f32.mrb[56].mxu1 }
 0x19b   : > { %2732 = vst.msk [vmem:[%s4207_s18 + $0xd0] sm:$0xf] %vm2679_vm1, %v3226_v24  ;;  %v3227_v28 = vpack.c.bf16 %v2412_v25, %v2412_v25  ;;  %v3556_v56 = vpop.f32.mrb[56].mxu0  ;;  %v1623_v29 = vpop.f32.mrb[57].mxu1 }
 0x19c   : > { %2735 = vst.msk [vmem:[%s4207_s18 + $0xdc] sm:$0xf] %vm2679_vm1, %v3229_v26  ;;  %v3626_v57 = vadd.f32 %v3556_v56, %v3484_v27  ;;  %v2264_v30 = vpop.f32.mrb[57].mxu0  ;;  %v3485_v8 = vpop.f32.mrb[58].mxu1 }
 0x19d   : > { %2733 = vst.msk [vmem:[%s4207_s18 + $0xd4] sm:$0xf] %vm2679_vm1, %v3227_v28  ;;  %v3627_v58 = vadd.f32 %v2264_v30, %v1623_v29  ;;  %v3557_v31 = vpop.f32.mrb[58].mxu0  ;;  %v1626_v9 = vpop.f32.mrb[59].mxu1 }
 0x19e   : > { %v2417_v59 = vmax.f32 %v3626_v57, 0.0  ;;  %v3628_v32 = vadd.f32 %v3557_v31, %v3485_v8  ;;  %v2267_v10 = vpop.f32.mrb[59].mxu0 }
 0x19f   : > { %v2415_v33 = vmax.f32 %v3627_v58, 0.0  ;;  %v3629_v11 = vadd.f32 %v2267_v10, %v1626_v9 }
 0x1a0   : > { %v3232_v34 = vpack.c.bf16 %v2417_v59, %v2417_v59  ;;  %v2418_v35 = vmax.f32 %v3628_v32, 0.0 }
 0x1a1   : > { %v3230_v36 = vpack.c.bf16 %v2415_v33, %v2415_v33  ;;  %v2416_v37 = vmax.f32 %v3629_v11, 0.0 }
 0x1a2   : > { %2738 = vst.msk [vmem:[%s4207_s18 + $0xe8] sm:$0xf] %vm2679_vm1, %v3232_v34  ;;  %v3233_v38 = vpack.c.bf16 %v2418_v35, %v2418_v35  ;;  %v3488_v39 = vpop.f32.mrb[60].mxu1 }
 0x1a3   : > { %2736 = vst.msk [vmem:[%s4207_s18 + $0xe0] sm:$0xf] %vm2679_vm1, %v3230_v36  ;;  %v3231_v40 = vpack.c.bf16 %v2416_v37, %v2416_v37  ;;  %v3560_v60 = vpop.f32.mrb[60].mxu0  ;;  %v1639_v41 = vpop.f32.mrb[61].mxu1 }
 0x1a4   : > { %2739 = vst.msk [vmem:[%s4207_s18 + $0xec] sm:$0xf] %vm2679_vm1, %v3233_v38  ;;  %v3630_v61 = vadd.f32 %v3560_v60, %v3488_v39  ;;  %v2280_v42 = vpop.f32.mrb[61].mxu0  ;;  %v3489_v62 = vpop.f32.mrb[62].mxu1 }
 0x1a5   : > { %2737 = vst.msk [vmem:[%s4207_s18 + $0xe4] sm:$0xf] %vm2679_vm1, %v3231_v40  ;;  %v3631_v43 = vadd.f32 %v2280_v42, %v1639_v41  ;;  %v3561_v63 = vpop.f32.mrb[62].mxu0  ;;  %v1642_v44 = vpop.f32.mrb[63].mxu1 }
 0x1a6   : > { %v2421_v45 = vmax.f32 %v3630_v61, 0.0  ;;  %v3632_v46 = vadd.f32 %v3561_v63, %v3489_v62  ;;  %v2283_v47 = vpop.f32.mrb[63].mxu0 }
 0x1a7   : > { %v2419_v48 = vmax.f32 %v3631_v43, 0.0  ;;  %v3633_v49 = vadd.f32 %v2283_v47, %v1642_v44 }
 0x1a8   : > { %v3236_v50 = vpack.c.bf16 %v2421_v45, %v2421_v45  ;;  %v2422_v51 = vmax.f32 %v3632_v46, 0.0 }
 0x1a9   : > { %v3234_v12 = vpack.c.bf16 %v2419_v48, %v2419_v48  ;;  %v2420_v0 = vmax.f32 %v3633_v49, 0.0 }
 0x1aa   : > { %2742 = vst.msk [vmem:[%s4207_s18 + $0xf8] sm:$0xf] %vm2679_vm1, %v3236_v50  ;;  %v3237_v13 = vpack.c.bf16 %v2422_v51, %v2422_v51 }
 0x1ab   : > { %2740 = vst.msk [vmem:[%s4207_s18 + $0xf0] sm:$0xf] %vm2679_vm1, %v3234_v12  ;;  %v3235_v1 = vpack.c.bf16 %v2420_v0, %v2420_v0 }
 0x1ac   : > { %2743 = vst.msk [vmem:[%s4207_s18 + $0xfc] sm:$0xf] %vm2679_vm1, %v3237_v13 }
 0x1ad   : > { %2741 = vst.msk [vmem:[%s4207_s18 + $0xf4] sm:$0xf] %vm2679_vm1, %v3235_v1 }
 0x1ae PF: > { %s16_s23 = sadd.s32 1, %s3852_s23   ;;  %s4377_s21 = smov %s3848_s22 }
 0x1af   : > { %p13_p5 = scmp.ge.s32.totalorder %s16_s23, 6   ;;  %s4378_s22 = smov %s4380_s24 }
 0x1b1   :  { %15 = sbr.rel (!%p13_p5) target bundleno = 2 (0x2), region = 89 }

// kernel: _lambda_.11
= control target key start
LH: loop header
LB: loop body
LE: loop exit
PB: predicated region body
PF: predicated region fallthrough
CT: control target
= control target key end

     0   :  { %s4995_s27 = smov 0   ;;  %s4997_s28 = smov 0   ;;  %s5486_s0 = inlined_call_operand.vmem [shape: bf16[2048,64], index: 0, kind: input, shape index: {}]   ;;  %s5487_s1 = inlined_call_operand.vmem [shape: bf16[2048,64], index: 1, kind: input, shape index: {}]   ;;  %s5488_s2 = inlined_call_operand.vmem [shape: bf16[2048,64], index: 2, kind: input, shape index: {}]   ;;  %s5489_s3 = inlined_call_operand.vmem [shape: bf16[2048,64], index: 3, kind: input, shape index: {}]   ;;  %s5490_s4 = inlined_call_operand.vmem [shape: bf16[64,64], index: 4, kind: input, shape index: {}, may-alias: {4,5}]   ;;  %s5491_s5 = inlined_call_operand.vmem [shape: bf16[64,64], index: 5, kind: input, shape index: {}, may-alias: {4,5}]   ;;  %s5492_s6 = inlined_call_operand.vmem [shape: bf16[64,64], index: 6, kind: input, shape index: {}, may-alias: {6,7}]   ;;  %s5493_s7 = inlined_call_operand.vmem [shape: bf16[64,64], index: 7, kind: input, shape index: {}, may-alias: {6,7}]   ;;  %s5494_s8 = inlined_call_operand.vmem [shape: bf16[2048,64], index: 8, kind: output, shape index: {}]  }
   0x1   :  { %s4999_s29 = smov 0  }
   0x2 LB: > { %s30_s30 = sadd.s32 1, %s4944_s28  ;;  %p3721_p0 = scmp.ge.s32.totalorder %s4948_s29, 1  ;;  %s4948_s29 = sphi %s4999_s29, %s18_s29   ;;  %s4944_s28 = sphi %s4997_s28, %s5496_s28   ;;  %s4940_s27 = sphi %s4995_s27, %s5495_s27  }
   0x3   : > { %p32_p1 = scmp.ge.s32.totalorder %s30_s30, 4  ;;  %p346_p2 = scmp.lt.s32.totalorder %s4948_s29, 5 }
   0x5   : > { %s5498_s30 = smov (%p32_p1, %s30_s30), 0  ;;  %p347_p3 = pnand %p3721_p0, %p346_p2 }
   0x6   : > { %v4782_v0 = vld [vmem:[%s5491_s5] sm:$0xff] (!%p347_p3)   ;;  %s3722_s11 = sshll.u32 (!%p347_p3), %s4940_s27, 6  ;;  %v4784_v2 = vld [vmem:[%s5491_s5 + $0x8] sm:$0xff] (!%p347_p3)   ;;  %v4786_v4 = vld [vmem:[%s5491_s5 + $0x10] sm:$0xff] (!%p347_p3)   ;;  %vm792_vm0 = vcmask (!%p347_p3), 523264   ;;  %vm3477_vm1 = vcmask (!%p347_p3), 519168  }
   0x7   : > { %350 = sbr.rel (%p347_p3) target bundleno = 494 (0x1ee), region = 52  ;;  %v4783_v1 = vld [vmem:[%s5492_s6] sm:$0xff] (!%p347_p3)   ;;  %p415_p4 = scmp.lt.s32.totalorder (!%p347_p3), %s3722_s11, 255  ;;  %4278 = vmatprep.subr.bf16.mxu1 (!%p347_p3), %v4782_v0  ;;  %v4785_v3 = vld [vmem:[%s5492_s6 + $0x8] sm:$0xff] (!%p347_p3)   ;;  %v4787_v5 = vld [vmem:[%s5492_s6 + $0x10] sm:$0xff] (!%p347_p3)  }
   0x8   : > { %4422 = vmatprep.subr.bf16.mxu0 (!%p347_p3), %v4783_v1  ;;  %4279 = vmatpush3.bf16.msra.mxu1 (!%p347_p3), %v4782_v0  ;;  %v4788_v6 = vld [vmem:[%s5491_s5 + $0x18] sm:$0xff] (!%p347_p3)   ;;  %v4793_v10 = vld [vmem:[%s5490_s4] sm:$0xff] (!%p347_p3)   ;;  %v4811_v22 = vld [vmem:[%s5490_s4 + $0x8] sm:$0xff] (!%p347_p3)  }
   0x9   : > { %4423 = vmatpush3.bf16.msra.mxu0 (!%p347_p3), %v4783_v1  ;;  %4280 = vmatprep.subr.bf16.mxu1 (!%p347_p3), %v4784_v2  ;;  %v4789_v7 = vld [vmem:[%s5492_s6 + $0x18] sm:$0xff] (!%p347_p3)   ;;  %v4795_v11 = vld [vmem:[%s5493_s7] sm:$0xff] (!%p347_p3)   ;;  %v4813_v24 = vld [vmem:[%s5493_s7 + $0x8] sm:$0xff] (!%p347_p3)  }
   0xa   : > { %4424 = vmatprep.subr.bf16.mxu0 (!%p347_p3), %v4785_v3  ;;  %v4829_v33 = vld [vmem:[%s5490_s4 + $0x10] sm:$0xff] (!%p347_p3)   ;;  %v4847_v44 = vld [vmem:[%s5490_s4 + $0x18] sm:$0xff] (!%p347_p3)  }
   0xb   : > { %v4831_v35 = vld [vmem:[%s5493_s7 + $0x10] sm:$0xff] (!%p347_p3)   ;;  %v4849_v45 = vld [vmem:[%s5493_s7 + $0x18] sm:$0xff] (!%p347_p3)  }
   0xc   : > { %4281 = vmatpush3.bf16.msra.mxu1 (!%p347_p3), %v4784_v2 }
   0xd   : > { %4425 = vmatpush3.bf16.msra.mxu0 (!%p347_p3), %v4785_v3  ;;  %4282 = vmatprep.subr.bf16.mxu1 (!%p347_p3), %v4786_v4 }
   0xe   : > { %s5500_s11 = smov (!%p415_p4, %s3722_s11), 255  ;;  %4426 = vmatprep.subr.bf16.mxu0 %v4787_v5 }
   0xf   : > { %s5031_s22 = sshll.u32 %s5500_s11, 2 }
  0x10   : > { %s5040_s27 = scalar_lea.vmem %s5487_s1, %s5031_s22  ;;  %s5046_s12 = scalar_lea.vmem %s5488_s2, %s5031_s22  ;;  %4283 = vmatpush3.bf16.msra.mxu1 %v4786_v4 }
  0x11   : > { %v4790_v8 = vld [vmem:[%s5040_s27] sm:$0xff]   ;;  %4427 = vmatpush3.bf16.msra.mxu0 %v4787_v5  ;;  %4284 = vmatprep.subr.bf16.mxu1 %v4788_v6  ;;  %v4792_v12 = vld [vmem:[%s5040_s27 + $0x8] sm:$0xff]   ;;  %v4796_v14 = vld [vmem:[%s5040_s27 + $0x10] sm:$0xff]   ;;  %s5150_s16 = scalar_lea.vmem %s5486_s0, %s5031_s22  ;;  %s5157_s19 = scalar_lea.vmem %s5489_s3, %s5031_s22 }
  0x12   : > { %v4791_v9 = vld [vmem:[%s5046_s12] sm:$0xff]   ;;  %4286 = vmatprep.mubr.msk.bf16.mxu1 %vm792_vm0, %v4790_v8  ;;  %4428 = vmatprep.subr.bf16.mxu0 %v4789_v7  ;;  %v4794_v13 = vld [vmem:[%s5046_s12 + $0x8] sm:$0xff]   ;;  %v4797_v15 = vld [vmem:[%s5046_s12 + $0x10] sm:$0xff]   ;;  %s5347_s20 = scalar_lea.vmem %s5494_s8, %s5031_s22 }
  0x13   : > { %4430 = vmatprep.mubr.msk.bf16.mxu0 %vm792_vm0, %v4791_v9  ;;  %v4798_v16 = vld [vmem:[%s5040_s27 + $0x18] sm:$0xff]   ;;  %v4800_v18 = vld [vmem:[%s5040_s27 + $0x20] sm:$0xff]   ;;  %v4802_v20 = vld [vmem:[%s5040_s27 + $0x28] sm:$0xff]  }
  0x14   : > { %4285 = vmatpush3.bf16.msra.mxu1 %v4788_v6  ;;  %v4799_v17 = vld [vmem:[%s5046_s12 + $0x18] sm:$0xff]   ;;  %v4801_v19 = vld [vmem:[%s5046_s12 + $0x20] sm:$0xff]   ;;  %v4803_v21 = vld [vmem:[%s5046_s12 + $0x28] sm:$0xff]  }
  0x15   : > { %4429 = vmatpush3.bf16.msra.mxu0 %v4789_v7  ;;  %4350 = vmatprep.subr.bf16.mxu1 %v4793_v10  ;;  %v4804_v23 = vld [vmem:[%s5040_s27 + $0x30] sm:$0xff]   ;;  %v4806_v26 = vld [vmem:[%s5040_s27 + $0x38] sm:$0xff]   ;;  %v4808_v28 = vld [vmem:[%s5040_s27 + $0x40] sm:$0xff]  }
  0x16   : > { %4494 = vmatprep.subr.bf16.mxu0 %v4795_v11  ;;  %v4805_v25 = vld [vmem:[%s5046_s12 + $0x30] sm:$0xff]   ;;  %v4807_v27 = vld [vmem:[%s5046_s12 + $0x38] sm:$0xff]   ;;  %v4809_v29 = vld [vmem:[%s5046_s12 + $0x40] sm:$0xff]  }
  0x17   : > { %4287 = vmatmul.mubr.msk.bf16.vlgmr.msra.gmra.mrb[0].mxu1 %vm792_vm0, %v4792_v12  ;;  %v4810_v30 = vld [vmem:[%s5040_s27 + $0x48] sm:$0xff]   ;;  %v4814_v32 = vld [vmem:[%s5040_s27 + $0x50] sm:$0xff]   ;;  %v4816_v36 = vld [vmem:[%s5040_s27 + $0x58] sm:$0xff]  }
  0x18   : > { %4431 = vmatmul.mubr.msk.bf16.vlgmr.msra.gmra.mrb[0].mxu0 %vm792_vm0, %v4794_v13  ;;  %4351 = vmatpush3.bf16.msra.mxu1 %v4793_v10  ;;  %v4812_v31 = vld [vmem:[%s5046_s12 + $0x48] sm:$0xff]   ;;  %v4815_v34 = vld [vmem:[%s5046_s12 + $0x50] sm:$0xff]   ;;  %v4817_v37 = vld [vmem:[%s5046_s12 + $0x58] sm:$0xff]  }
  0x19   : > { %4495 = vmatpush3.bf16.msra.mxu0 %v4795_v11  ;;  %4290 = vmatprep.mubr.msk.bf16.mxu1 %vm792_vm0, %v4796_v14  ;;  %v4818_v38 = vld [vmem:[%s5040_s27 + $0x60] sm:$0xff]   ;;  %v4820_v40 = vld [vmem:[%s5040_s27 + $0x68] sm:$0xff]   ;;  %v4822_v42 = vld [vmem:[%s5040_s27 + $0x70] sm:$0xff]  }
  0x1a   : > { %4434 = vmatprep.mubr.msk.bf16.mxu0 %vm792_vm0, %v4797_v15  ;;  %4352 = vmatprep.subr.bf16.mxu1 %v4811_v22  ;;  %v4819_v39 = vld [vmem:[%s5046_s12 + $0x60] sm:$0xff]   ;;  %v4821_v41 = vld [vmem:[%s5046_s12 + $0x68] sm:$0xff]   ;;  %v4823_v43 = vld [vmem:[%s5046_s12 + $0x70] sm:$0xff]  }
  0x1b   : > { %4496 = vmatprep.subr.bf16.mxu0 %v4813_v24  ;;  %v4824_v46 = vld [vmem:[%s5040_s27 + $0x78] sm:$0xff]   ;;  %v4826_v48 = vld [vmem:[%s5040_s27 + $0x80] sm:$0xff]   ;;  %v4828_v50 = vld [vmem:[%s5040_s27 + $0x88] sm:$0xff]  }
  0x1c   : > { %4353 = vmatpush3.bf16.msra.mxu1 %v4811_v22  ;;  %v4825_v47 = vld [vmem:[%s5046_s12 + $0x78] sm:$0xff]   ;;  %v4827_v49 = vld [vmem:[%s5046_s12 + $0x80] sm:$0xff]   ;;  %v4830_v51 = vld [vmem:[%s5046_s12 + $0x88] sm:$0xff]  }
  0x1d   : > { %4497 = vmatpush3.bf16.msra.mxu0 %v4813_v24  ;;  %4354 = vmatprep.subr.bf16.mxu1 %v4829_v33  ;;  %v4832_v52 = vld [vmem:[%s5040_s27 + $0x90] sm:$0xff]   ;;  %v4834_v54 = vld [vmem:[%s5040_s27 + $0x98] sm:$0xff]   ;;  %v4836_v56 = vld [vmem:[%s5040_s27 + $0xa0] sm:$0xff]  }
  0x1e   : > { %4498 = vmatprep.subr.bf16.mxu0 %v4831_v35  ;;  %v4833_v53 = vld [vmem:[%s5046_s12 + $0x90] sm:$0xff]   ;;  %v4835_v55 = vld [vmem:[%s5046_s12 + $0x98] sm:$0xff]   ;;  %v4837_v57 = vld [vmem:[%s5046_s12 + $0xa0] sm:$0xff]  }
  0x1f   : > { %4291 = vmatmul.mubr.msk.bf16.gmra.mrb[4].mxu1 %vm792_vm0, %v4798_v16  ;;  %v4838_v58 = vld [vmem:[%s5040_s27 + $0xa8] sm:$0xff]   ;;  %v4840_v60 = vld [vmem:[%s5040_s27 + $0xb0] sm:$0xff]   ;;  %v4842_v62 = vld [vmem:[%s5040_s27 + $0xb8] sm:$0xff]  }
  0x20   : > { %4435 = vmatmul.mubr.msk.bf16.gmra.mrb[4].mxu0 %vm792_vm0, %v4799_v17  ;;  %4294 = vmatprep.mubr.msk.bf16.mxu1 %vm792_vm0, %v4800_v18  ;;  %v4839_v59 = vld [vmem:[%s5046_s12 + $0xa8] sm:$0xff]   ;;  %v4841_v61 = vld [vmem:[%s5046_s12 + $0xb0] sm:$0xff]   ;;  %v4843_v63 = vld [vmem:[%s5046_s12 + $0xb8] sm:$0xff]  }
  0x21   : > { %4438 = vmatprep.mubr.msk.bf16.mxu0 %vm792_vm0, %v4801_v19  ;;  %4355 = vmatpush3.bf16.msra.mxu1 %v4829_v33  ;;  %v4844_v0 = vld [vmem:[%s5040_s27 + $0xc0] sm:$0xff]   ;;  %v4846_v2 = vld [vmem:[%s5040_s27 + $0xc8] sm:$0xff]   ;;  %v4850_v4 = vld [vmem:[%s5040_s27 + $0xd0] sm:$0xff]  }
  0x22   : > { %4499 = vmatpush3.bf16.msra.mxu0 %v4831_v35  ;;  %4356 = vmatprep.subr.bf16.mxu1 %v4847_v44  ;;  %v4845_v1 = vld [vmem:[%s5046_s12 + $0xc0] sm:$0xff]   ;;  %v4848_v3 = vld [vmem:[%s5046_s12 + $0xc8] sm:$0xff]   ;;  %v4851_v5 = vld [vmem:[%s5046_s12 + $0xd0] sm:$0xff]  }
  0x23   : > { %4500 = vmatprep.subr.bf16.mxu0 %v4849_v45  ;;  %v4852_v6 = vld [vmem:[%s5040_s27 + $0xd8] sm:$0xff]   ;;  %v4854_v8 = vld [vmem:[%s5040_s27 + $0xe0] sm:$0xff]   ;;  %v4856_v10 = vld [vmem:[%s5040_s27 + $0xe8] sm:$0xff]  }
  0x24   : > { %v4853_v7 = vld [vmem:[%s5046_s12 + $0xd8] sm:$0xff]   ;;  %v4855_v9 = vld [vmem:[%s5046_s12 + $0xe0] sm:$0xff]   ;;  %v4857_v11 = vld [vmem:[%s5046_s12 + $0xe8] sm:$0xff]  }
  0x25   : > { %4357 = vmatpush3.bf16.msra.mxu1 %v4847_v44  ;;  %v4858_v12 = vld [vmem:[%s5040_s27 + $0xf0] sm:$0xff]   ;;  %v4860_v14 = vld [vmem:[%s5040_s27 + $0xf8] sm:$0xff]   ;;  %v4862_v16 = vld [vmem:[%s5150_s16] sm:$0xff]  }
  0x26   : > { %4501 = vmatpush3.bf16.msra.mxu0 %v4849_v45  ;;  %v4859_v13 = vld [vmem:[%s5046_s12 + $0xf0] sm:$0xff]   ;;  %v4861_v15 = vld [vmem:[%s5046_s12 + $0xf8] sm:$0xff]   ;;  %v4863_v17 = vld [vmem:[%s5157_s19] sm:$0xff]  }
  0x27   : > { %4295 = vmatmul.mubr.msk.bf16.gmra.mrb[8].mxu1 %vm792_vm0, %v4802_v20  ;;  %v4864_v18 = vld [vmem:[%s5150_s16 + $0x8] sm:$0xff]   ;;  %v4866_v20 = vld [vmem:[%s5150_s16 + $0x10] sm:$0xff]   ;;  %v4868_v22 = vld [vmem:[%s5150_s16 + $0x18] sm:$0xff]  }
  0x28   : > { %4439 = vmatmul.mubr.msk.bf16.gmra.mrb[8].mxu0 %vm792_vm0, %v4803_v21  ;;  %4298 = vmatprep.mubr.msk.bf16.mxu1 %vm792_vm0, %v4804_v23  ;;  %v4865_v19 = vld [vmem:[%s5157_s19 + $0x8] sm:$0xff]   ;;  %v4867_v21 = vld [vmem:[%s5157_s19 + $0x10] sm:$0xff]   ;;  %v4869_v23 = vld [vmem:[%s5157_s19 + $0x18] sm:$0xff]  }
  0x29   : > { %4442 = vmatprep.mubr.msk.bf16.mxu0 %vm792_vm0, %v4805_v25  ;;  %v4870_v24 = vld [vmem:[%s5150_s16 + $0x20] sm:$0xff]   ;;  %v4881_v35 = vld [vmem:[%s5157_s19 + $0x48] sm:$0xff]   ;;  %v4890_v44 = vld [vmem:[%s5150_s16 + $0x70] sm:$0xff]  }
  0x2a   : > { %v4871_v25 = vld [vmem:[%s5157_s19 + $0x20] sm:$0xff]   ;;  %v4891_v45 = vld [vmem:[%s5157_s19 + $0x70] sm:$0xff]  }
  0x2b   : > { %v4879_v33 = vld [vmem:[%s5157_s19 + $0x40] sm:$0xff]  }
  0x2f   : > { %4299 = vmatmul.mubr.msk.bf16.gmra.mrb[12].mxu1 %vm792_vm0, %v4806_v26  ;;  %v4872_v26 = vld [vmem:[%s5150_s16 + $0x28] sm:$0xff]  }
  0x30   : > { %4443 = vmatmul.mubr.msk.bf16.gmra.mrb[12].mxu0 %vm792_vm0, %v4807_v27  ;;  %4302 = vmatprep.mubr.msk.bf16.mxu1 %vm792_vm0, %v4808_v28  ;;  %v4873_v27 = vld [vmem:[%s5157_s19 + $0x28] sm:$0xff]   ;;  %v4874_v28 = vld [vmem:[%s5150_s16 + $0x30] sm:$0xff]  }
  0x31   : > { %4446 = vmatprep.mubr.msk.bf16.mxu0 %vm792_vm0, %v4809_v29  ;;  %v4875_v29 = vld [vmem:[%s5157_s19 + $0x30] sm:$0xff]  }
  0x37   : > { %4303 = vmatmul.mubr.msk.bf16.gmra.mrb[16].mxu1 %vm792_vm0, %v4810_v30  ;;  %v4876_v30 = vld [vmem:[%s5150_s16 + $0x38] sm:$0xff]  }
  0x38   : > { %4447 = vmatmul.mubr.msk.bf16.gmra.mrb[16].mxu0 %vm792_vm0, %v4812_v31  ;;  %4306 = vmatprep.mubr.msk.bf16.mxu1 %vm792_vm0, %v4814_v32  ;;  %v4877_v31 = vld [vmem:[%s5157_s19 + $0x38] sm:$0xff]   ;;  %v4878_v32 = vld [vmem:[%s5150_s16 + $0x40] sm:$0xff]  }
  0x39   : > { %4450 = vmatprep.mubr.msk.bf16.mxu0 %vm792_vm0, %v4815_v34  ;;  %v4880_v34 = vld [vmem:[%s5150_s16 + $0x48] sm:$0xff]  }
  0x3f   : > { %4307 = vmatmul.mubr.msk.bf16.gmra.mrb[20].mxu1 %vm792_vm0, %v4816_v36  ;;  %v4882_v36 = vld [vmem:[%s5150_s16 + $0x50] sm:$0xff]  }
  0x40   : > { %4451 = vmatmul.mubr.msk.bf16.gmra.mrb[20].mxu0 %vm792_vm0, %v4817_v37  ;;  %4310 = vmatprep.mubr.msk.bf16.mxu1 %vm792_vm0, %v4818_v38  ;;  %v4883_v37 = vld [vmem:[%s5157_s19 + $0x50] sm:$0xff]   ;;  %v4884_v38 = vld [vmem:[%s5150_s16 + $0x58] sm:$0xff]  }
  0x41   : > { %4454 = vmatprep.mubr.msk.bf16.mxu0 %vm792_vm0, %v4819_v39  ;;  %v4885_v39 = vld [vmem:[%s5157_s19 + $0x58] sm:$0xff]  }
  0x47   : > { %4311 = vmatmul.mubr.msk.bf16.gmra.mrb[24].mxu1 %vm792_vm0, %v4820_v40  ;;  %v4886_v40 = vld [vmem:[%s5150_s16 + $0x60] sm:$0xff]  }
  0x48   : > { %4455 = vmatmul.mubr.msk.bf16.gmra.mrb[24].mxu0 %vm792_vm0, %v4821_v41  ;;  %4314 = vmatprep.mubr.msk.bf16.mxu1 %vm792_vm0, %v4822_v42  ;;  %v4887_v41 = vld [vmem:[%s5157_s19 + $0x60] sm:$0xff]   ;;  %v4888_v42 = vld [vmem:[%s5150_s16 + $0x68] sm:$0xff]  }
  0x49   : > { %4458 = vmatprep.mubr.msk.bf16.mxu0 %vm792_vm0, %v4823_v43  ;;  %v4889_v43 = vld [vmem:[%s5157_s19 + $0x68] sm:$0xff]  }
  0x4f   : > { %4315 = vmatmul.mubr.msk.bf16.gmra.mrb[28].mxu1 %vm792_vm0, %v4824_v46  ;;  %v4892_v46 = vld [vmem:[%s5150_s16 + $0x78] sm:$0xff]  }
  0x50   : > { %4459 = vmatmul.mubr.msk.bf16.gmra.mrb[28].mxu0 %vm792_vm0, %v4825_v47  ;;  %4318 = vmatprep.mubr.msk.bf16.mxu1 %vm792_vm0, %v4826_v48  ;;  %v4893_v47 = vld [vmem:[%s5157_s19 + $0x78] sm:$0xff]   ;;  %v4894_v48 = vld [vmem:[%s5150_s16 + $0x80] sm:$0xff]  }
  0x51   : > { %4462 = vmatprep.mubr.msk.bf16.mxu0 %vm792_vm0, %v4827_v49  ;;  %v4895_v49 = vld [vmem:[%s5157_s19 + $0x80] sm:$0xff]  }
  0x57   : > { %4319 = vmatmul.mubr.msk.bf16.gmra.mrb[32].mxu1 %vm792_vm0, %v4828_v50  ;;  %v4896_v50 = vld [vmem:[%s5150_s16 + $0x88] sm:$0xff]  }
  0x58   : > { %4463 = vmatmul.mubr.msk.bf16.gmra.mrb[32].mxu0 %vm792_vm0, %v4830_v51  ;;  %4322 = vmatprep.mubr.msk.bf16.mxu1 %vm792_vm0, %v4832_v52  ;;  %v4897_v51 = vld [vmem:[%s5157_s19 + $0x88] sm:$0xff]   ;;  %v4898_v52 = vld [vmem:[%s5150_s16 + $0x90] sm:$0xff]  }
  0x59   : > { %4466 = vmatprep.mubr.msk.bf16.mxu0 %vm792_vm0, %v4833_v53  ;;  %v4899_v53 = vld [vmem:[%s5157_s19 + $0x90] sm:$0xff]  }
  0x5f   : > { %4323 = vmatmul.mubr.msk.bf16.gmra.mrb[36].mxu1 %vm792_vm0, %v4834_v54  ;;  %v4900_v54 = vld [vmem:[%s5150_s16 + $0x98] sm:$0xff]  }
  0x60   : > { %4467 = vmatmul.mubr.msk.bf16.gmra.mrb[36].mxu0 %vm792_vm0, %v4835_v55  ;;  %4326 = vmatprep.mubr.msk.bf16.mxu1 %vm792_vm0, %v4836_v56  ;;  %v4901_v55 = vld [vmem:[%s5157_s19 + $0x98] sm:$0xff]   ;;  %v4902_v56 = vld [vmem:[%s5150_s16 + $0xa0] sm:$0xff]  }
  0x61   : > { %4470 = vmatprep.mubr.msk.bf16.mxu0 %vm792_vm0, %v4837_v57  ;;  %v4903_v57 = vld [vmem:[%s5157_s19 + $0xa0] sm:$0xff]  }
  0x67   : > { %4327 = vmatmul.mubr.msk.bf16.gmra.mrb[40].mxu1 %vm792_vm0, %v4838_v58  ;;  %v4904_v58 = vld [vmem:[%s5150_s16 + $0xa8] sm:$0xff]  }
  0x68   : > { %4471 = vmatmul.mubr.msk.bf16.gmra.mrb[40].mxu0 %vm792_vm0, %v4839_v59  ;;  %4330 = vmatprep.mubr.msk.bf16.mxu1 %vm792_vm0, %v4840_v60  ;;  %v4905_v59 = vld [vmem:[%s5157_s19 + $0xa8] sm:$0xff]   ;;  %v4906_v60 = vld [vmem:[%s5150_s16 + $0xb0] sm:$0xff]  }
  0x69   : > { %4474 = vmatprep.mubr.msk.bf16.mxu0 %vm792_vm0, %v4841_v61  ;;  %v4907_v61 = vld [vmem:[%s5157_s19 + $0xb0] sm:$0xff]  }
  0x6f   : > { %4331 = vmatmul.mubr.msk.bf16.gmra.mrb[44].mxu1 %vm792_vm0, %v4842_v62  ;;  %v4908_v62 = vld [vmem:[%s5150_s16 + $0xb8] sm:$0xff]  }
  0x70   : > { %4475 = vmatmul.mubr.msk.bf16.gmra.mrb[44].mxu0 %vm792_vm0, %v4843_v63  ;;  %4334 = vmatprep.mubr.msk.bf16.mxu1 %vm792_vm0, %v4844_v0  ;;  %v4909_v63 = vld [vmem:[%s5157_s19 + $0xb8] sm:$0xff]   ;;  %v4910_v0 = vld [vmem:[%s5150_s16 + $0xc0] sm:$0xff]  }
  0x71   : > { %4478 = vmatprep.mubr.msk.bf16.mxu0 %vm792_vm0, %v4845_v1  ;;  %v4911_v1 = vld [vmem:[%s5157_s19 + $0xc0] sm:$0xff]  }
  0x77   : > { %4335 = vmatmul.mubr.msk.bf16.gmra.mrb[48].mxu1 %vm792_vm0, %v4846_v2  ;;  %v4912_v2 = vld [vmem:[%s5150_s16 + $0xc8] sm:$0xff]  }
  0x78   : > { %4479 = vmatmul.mubr.msk.bf16.gmra.mrb[48].mxu0 %vm792_vm0, %v4848_v3  ;;  %4338 = vmatprep.mubr.msk.bf16.mxu1 %vm792_vm0, %v4850_v4  ;;  %v4913_v3 = vld [vmem:[%s5157_s19 + $0xc8] sm:$0xff]   ;;  %v4914_v4 = vld [vmem:[%s5150_s16 + $0xd0] sm:$0xff]  }
  0x79   : > { %4482 = vmatprep.mubr.msk.bf16.mxu0 %vm792_vm0, %v4851_v5  ;;  %v4915_v5 = vld [vmem:[%s5157_s19 + $0xd0] sm:$0xff]  }
  0x7f   : > { %4339 = vmatmul.mubr.msk.bf16.gmra.mrb[52].mxu1 %vm792_vm0, %v4852_v6  ;;  %v4916_v6 = vld [vmem:[%s5150_s16 + $0xd8] sm:$0xff]  }
  0x80   : > { %4483 = vmatmul.mubr.msk.bf16.gmra.mrb[52].mxu0 %vm792_vm0, %v4853_v7  ;;  %4342 = vmatprep.mubr.msk.bf16.mxu1 %vm792_vm0, %v4854_v8  ;;  %v4917_v7 = vld [vmem:[%s5157_s19 + $0xd8] sm:$0xff]   ;;  %v4918_v8 = vld [vmem:[%s5150_s16 + $0xe0] sm:$0xff]  }
  0x81   : > { %4486 = vmatprep.mubr.msk.bf16.mxu0 %vm792_vm0, %v4855_v9  ;;  %v4919_v9 = vld [vmem:[%s5157_s19 + $0xe0] sm:$0xff]  }
  0x87   : > { %4343 = vmatmul.mubr.msk.bf16.gmra.mrb[56].mxu1 %vm792_vm0, %v4856_v10  ;;  %v4920_v10 = vld [vmem:[%s5150_s16 + $0xe8] sm:$0xff]  }
  0x88   : > { %4487 = vmatmul.mubr.msk.bf16.gmra.mrb[56].mxu0 %vm792_vm0, %v4857_v11  ;;  %4346 = vmatprep.mubr.msk.bf16.mxu1 %vm792_vm0, %v4858_v12  ;;  %v4921_v11 = vld [vmem:[%s5157_s19 + $0xe8] sm:$0xff]   ;;  %v4922_v12 = vld [vmem:[%s5150_s16 + $0xf0] sm:$0xff]  }
  0x89   : > { %4490 = vmatprep.mubr.msk.bf16.mxu0 %vm792_vm0, %v4859_v13  ;;  %v4923_v13 = vld [vmem:[%s5157_s19 + $0xf0] sm:$0xff]  }
  0x8f   : > { %4347 = vmatmul.mubr.msk.bf16.gmra.mrb[60].mxu1 %vm792_vm0, %v4860_v14  ;;  %v4924_v14 = vld [vmem:[%s5150_s16 + $0xf8] sm:$0xff]  }
  0x90   : > { %4491 = vmatmul.mubr.msk.bf16.gmra.mrb[60].mxu0 %vm792_vm0, %v4861_v15  ;;  %4358 = vmatprep.mubr.msk.bf16.mxu1 %vm792_vm0, %v4862_v16  ;;  %v4925_v15 = vld [vmem:[%s5157_s19 + $0xf8] sm:$0xff]  }
  0x91   : > { %4502 = vmatprep.mubr.msk.bf16.mxu0 %vm792_vm0, %v4863_v17 }
  0x97   : > { %4359 = vmatmul.mubr.msk.bf16.vlgmr.msra.gmra.mrb[0].mxu1 %vm792_vm0, %v4864_v18 }
  0x98   : > { %4503 = vmatmul.mubr.msk.bf16.vlgmr.msra.gmra.mrb[0].mxu0 %vm792_vm0, %v4865_v19  ;;  %4362 = vmatprep.mubr.msk.bf16.mxu1 %vm792_vm0, %v4866_v20 }
  0x99   : > { %4506 = vmatprep.mubr.msk.bf16.mxu0 %vm792_vm0, %v4867_v21 }
  0x9f   : > { %4363 = vmatmul.mubr.msk.bf16.gmra.mrb[4].mxu1 %vm792_vm0, %v4868_v22 }
  0xa0   : > { %4507 = vmatmul.mubr.msk.bf16.gmra.mrb[4].mxu0 %vm792_vm0, %v4869_v23  ;;  %4366 = vmatprep.mubr.msk.bf16.mxu1 %vm792_vm0, %v4870_v24 }
  0xa1   : > { %4510 = vmatprep.mubr.msk.bf16.mxu0 %vm792_vm0, %v4871_v25 }
  0xa7   : > { %4367 = vmatmul.mubr.msk.bf16.gmra.mrb[8].mxu1 %vm792_vm0, %v4872_v26 }
  0xa8   : > { %4511 = vmatmul.mubr.msk.bf16.gmra.mrb[8].mxu0 %vm792_vm0, %v4873_v27  ;;  %4370 = vmatprep.mubr.msk.bf16.mxu1 %vm792_vm0, %v4874_v28 }
  0xa9   : > { %4514 = vmatprep.mubr.msk.bf16.mxu0 %vm792_vm0, %v4875_v29 }
  0xaf   : > { %4371 = vmatmul.mubr.msk.bf16.gmra.mrb[12].mxu1 %vm792_vm0, %v4876_v30 }
  0xb0   : > { %4515 = vmatmul.mubr.msk.bf16.gmra.mrb[12].mxu0 %vm792_vm0, %v4877_v31  ;;  %4374 = vmatprep.mubr.msk.bf16.mxu1 %vm792_vm0, %v4878_v32 }
  0xb1   : > { %4518 = vmatprep.mubr.msk.bf16.mxu0 %vm792_vm0, %v4879_v33 }
  0xb7   : > { %4375 = vmatmul.mubr.msk.bf16.gmra.mrb[16].mxu1 %vm792_vm0, %v4880_v34 }
  0xb8   : > { %4519 = vmatmul.mubr.msk.bf16.gmra.mrb[16].mxu0 %vm792_vm0, %v4881_v35  ;;  %4378 = vmatprep.mubr.msk.bf16.mxu1 %vm792_vm0, %v4882_v36 }
  0xb9   : > { %4522 = vmatprep.mubr.msk.bf16.mxu0 %vm792_vm0, %v4883_v37 }
  0xbf   : > { %4379 = vmatmul.mubr.msk.bf16.gmra.mrb[20].mxu1 %vm792_vm0, %v4884_v38 }
  0xc0   : > { %4523 = vmatmul.mubr.msk.bf16.gmra.mrb[20].mxu0 %vm792_vm0, %v4885_v39  ;;  %4382 = vmatprep.mubr.msk.bf16.mxu1 %vm792_vm0, %v4886_v40 }
  0xc1   : > { %4526 = vmatprep.mubr.msk.bf16.mxu0 %vm792_vm0, %v4887_v41 }
  0xc7   : > { %4383 = vmatmul.mubr.msk.bf16.gmra.mrb[24].mxu1 %vm792_vm0, %v4888_v42 }
  0xc8   : > { %4527 = vmatmul.mubr.msk.bf16.gmra.mrb[24].mxu0 %vm792_vm0, %v4889_v43  ;;  %4386 = vmatprep.mubr.msk.bf16.mxu1 %vm792_vm0, %v4890_v44 }
  0xc9   : > { %4530 = vmatprep.mubr.msk.bf16.mxu0 %vm792_vm0, %v4891_v45 }
  0xcf   : > { %4387 = vmatmul.mubr.msk.bf16.gmra.mrb[28].mxu1 %vm792_vm0, %v4892_v46 }
  0xd0   : > { %4531 = vmatmul.mubr.msk.bf16.gmra.mrb[28].mxu0 %vm792_vm0, %v4893_v47  ;;  %4390 = vmatprep.mubr.msk.bf16.mxu1 %vm792_vm0, %v4894_v48 }
  0xd1   : > { %4534 = vmatprep.mubr.msk.bf16.mxu0 %vm792_vm0, %v4895_v49 }
  0xd7   : > { %4391 = vmatmul.mubr.msk.bf16.gmra.mrb[32].mxu1 %vm792_vm0, %v4896_v50 }
  0xd8   : > { %4535 = vmatmul.mubr.msk.bf16.gmra.mrb[32].mxu0 %vm792_vm0, %v4897_v51  ;;  %4394 = vmatprep.mubr.msk.bf16.mxu1 %vm792_vm0, %v4898_v52 }
  0xd9   : > { %4538 = vmatprep.mubr.msk.bf16.mxu0 %vm792_vm0, %v4899_v53 }
  0xdf   : > { %4395 = vmatmul.mubr.msk.bf16.gmra.mrb[36].mxu1 %vm792_vm0, %v4900_v54 }
  0xe0   : > { %4539 = vmatmul.mubr.msk.bf16.gmra.mrb[36].mxu0 %vm792_vm0, %v4901_v55  ;;  %4398 = vmatprep.mubr.msk.bf16.mxu1 %vm792_vm0, %v4902_v56 }
  0xe1   : > { %4542 = vmatprep.mubr.msk.bf16.mxu0 %vm792_vm0, %v4903_v57 }
  0xe7   : > { %4399 = vmatmul.mubr.msk.bf16.gmra.mrb[40].mxu1 %vm792_vm0, %v4904_v58 }
  0xe8   : > { %4543 = vmatmul.mubr.msk.bf16.gmra.mrb[40].mxu0 %vm792_vm0, %v4905_v59  ;;  %4402 = vmatprep.mubr.msk.bf16.mxu1 %vm792_vm0, %v4906_v60 }
  0xe9   : > { %4546 = vmatprep.mubr.msk.bf16.mxu0 %vm792_vm0, %v4907_v61 }
  0xef   : > { %4403 = vmatmul.mubr.msk.bf16.gmra.mrb[44].mxu1 %vm792_vm0, %v4908_v62 }
  0xf0   : > { %4547 = vmatmul.mubr.msk.bf16.gmra.mrb[44].mxu0 %vm792_vm0, %v4909_v63  ;;  %4406 = vmatprep.mubr.msk.bf16.mxu1 %vm792_vm0, %v4910_v0 }
  0xf1   : > { %4550 = vmatprep.mubr.msk.bf16.mxu0 %vm792_vm0, %v4911_v1 }
  0xf7   : > { %4407 = vmatmul.mubr.msk.bf16.gmra.mrb[48].mxu1 %vm792_vm0, %v4912_v2 }
  0xf8   : > { %4551 = vmatmul.mubr.msk.bf16.gmra.mrb[48].mxu0 %vm792_vm0, %v4913_v3  ;;  %4410 = vmatprep.mubr.msk.bf16.mxu1 %vm792_vm0, %v4914_v4 }
  0xf9   : > { %4554 = vmatprep.mubr.msk.bf16.mxu0 %vm792_vm0, %v4915_v5 }
  0xff   : > { %4411 = vmatmul.mubr.msk.bf16.gmra.mrb[52].mxu1 %vm792_vm0, %v4916_v6 }
 0x100   : > { %4555 = vmatmul.mubr.msk.bf16.gmra.mrb[52].mxu0 %vm792_vm0, %v4917_v7  ;;  %4414 = vmatprep.mubr.msk.bf16.mxu1 %vm792_vm0, %v4918_v8 }
 0x101   : > { %4558 = vmatprep.mubr.msk.bf16.mxu0 %vm792_vm0, %v4919_v9 }
 0x107   : > { %4415 = vmatmul.mubr.msk.bf16.gmra.mrb[56].mxu1 %vm792_vm0, %v4920_v10 }
 0x108   : > { %4559 = vmatmul.mubr.msk.bf16.gmra.mrb[56].mxu0 %vm792_vm0, %v4921_v11  ;;  %4418 = vmatprep.mubr.msk.bf16.mxu1 %vm792_vm0, %v4922_v12 }
 0x109   : > { %4562 = vmatprep.mubr.msk.bf16.mxu0 %vm792_vm0, %v4923_v13 }
 0x10f   : > { %4419 = vmatmul.mubr.msk.bf16.gmra.mrb[60].mxu1 %vm792_vm0, %v4924_v14 }
 0x110   : > { %4563 = vmatmul.mubr.msk.bf16.gmra.mrb[60].mxu0 %vm792_vm0, %v4925_v15 }
 0x16a   : > { %v4360_v16 = vpop.f32.mrb[0].mxu1 }
 0x16b   : > { %v4504_v17 = vpop.f32.mrb[0].mxu0  ;;  %v1492_v18 = vpop.f32.mrb[1].mxu1 }
 0x16c   : > { %v4566_v19 = vadd.f32 %v4504_v17, %v4360_v16  ;;  %v2838_v20 = vpop.f32.mrb[1].mxu0  ;;  %v4361_v21 = vpop.f32.mrb[2].mxu1 }
 0x16d   : > { %v4567_v22 = vadd.f32 %v2838_v20, %v1492_v18  ;;  %v4505_v23 = vpop.f32.mrb[2].mxu0  ;;  %v1495_v24 = vpop.f32.mrb[3].mxu1 }
 0x16e   : > { %v3159_v25 = vmax.f32 %v4566_v19, 0.0  ;;  %v4568_v26 = vadd.f32 %v4505_v23, %v4361_v21  ;;  %v2841_v27 = vpop.f32.mrb[3].mxu0 }
 0x16f   : > { %v3157_v28 = vmax.f32 %v4567_v22, 0.0  ;;  %v4569_v29 = vadd.f32 %v2841_v27, %v1495_v24 }
 0x170   : > { %v4072_v30 = vpack.c.bf16 %v3159_v25, %v3159_v25  ;;  %v3160_v31 = vmax.f32 %v4568_v26, 0.0 }
 0x171   : > { %v4070_v32 = vpack.c.bf16 %v3157_v28, %v3157_v28  ;;  %v3158_v33 = vmax.f32 %v4569_v29, 0.0 }
 0x172   : > { %3480 = vst.msk [vmem:[%s5347_s20 + $0x8] sm:$0xf] %vm3477_vm1, %v4072_v30  ;;  %v4073_v34 = vpack.c.bf16 %v3160_v31, %v3160_v31  ;;  %v4364_v35 = vpop.f32.mrb[4].mxu1 }
 0x173   : > { %3478 = vst.msk [vmem:[%s5347_s20] sm:$0xf] %vm3477_vm1, %v4070_v32  ;;  %v4071_v36 = vpack.c.bf16 %v3158_v33, %v3158_v33  ;;  %v4508_v37 = vpop.f32.mrb[4].mxu0  ;;  %v1508_v38 = vpop.f32.mrb[5].mxu1 }
 0x174   : > { %3481 = vst.msk [vmem:[%s5347_s20 + $0xc] sm:$0xf] %vm3477_vm1, %v4073_v34  ;;  %v4570_v39 = vadd.f32 %v4508_v37, %v4364_v35  ;;  %v2854_v40 = vpop.f32.mrb[5].mxu0  ;;  %v4365_v41 = vpop.f32.mrb[6].mxu1 }
 0x175   : > { %3479 = vst.msk [vmem:[%s5347_s20 + $0x4] sm:$0xf] %vm3477_vm1, %v4071_v36  ;;  %v4571_v42 = vadd.f32 %v2854_v40, %v1508_v38  ;;  %v4509_v43 = vpop.f32.mrb[6].mxu0  ;;  %v1511_v44 = vpop.f32.mrb[7].mxu1 }
 0x176   : > { %v3163_v45 = vmax.f32 %v4570_v39, 0.0  ;;  %v4572_v46 = vadd.f32 %v4509_v43, %v4365_v41  ;;  %v2857_v47 = vpop.f32.mrb[7].mxu0 }
 0x177   : > { %v3161_v48 = vmax.f32 %v4571_v42, 0.0  ;;  %v4573_v49 = vadd.f32 %v2857_v47, %v1511_v44 }
 0x178   : > { %v4076_v50 = vpack.c.bf16 %v3163_v45, %v3163_v45  ;;  %v3164_v51 = vmax.f32 %v4572_v46, 0.0 }
 0x179   : > { %v4074_v52 = vpack.c.bf16 %v3161_v48, %v3161_v48  ;;  %v3162_v53 = vmax.f32 %v4573_v49, 0.0 }
 0x17a   : > { %3484 = vst.msk [vmem:[%s5347_s20 + $0x18] sm:$0xf] %vm3477_vm1, %v4076_v50  ;;  %v4077_v54 = vpack.c.bf16 %v3164_v51, %v3164_v51  ;;  %v4368_v55 = vpop.f32.mrb[8].mxu1 }
 0x17b   : > { %3482 = vst.msk [vmem:[%s5347_s20 + $0x10] sm:$0xf] %vm3477_vm1, %v4074_v52  ;;  %v4075_v56 = vpack.c.bf16 %v3162_v53, %v3162_v53  ;;  %v4512_v57 = vpop.f32.mrb[8].mxu0  ;;  %v1524_v58 = vpop.f32.mrb[9].mxu1 }
 0x17c   : > { %3485 = vst.msk [vmem:[%s5347_s20 + $0x1c] sm:$0xf] %vm3477_vm1, %v4077_v54  ;;  %v4574_v59 = vadd.f32 %v4512_v57, %v4368_v55  ;;  %v2870_v60 = vpop.f32.mrb[9].mxu0  ;;  %v4369_v61 = vpop.f32.mrb[10].mxu1 }
 0x17d   : > { %3483 = vst.msk [vmem:[%s5347_s20 + $0x14] sm:$0xf] %vm3477_vm1, %v4075_v56  ;;  %v4575_v62 = vadd.f32 %v2870_v60, %v1524_v58  ;;  %v4513_v63 = vpop.f32.mrb[10].mxu0  ;;  %v1527_v0 = vpop.f32.mrb[11].mxu1 }
 0x17e   : > { %v3167_v1 = vmax.f32 %v4574_v59, 0.0  ;;  %v4576_v2 = vadd.f32 %v4513_v63, %v4369_v61  ;;  %v2873_v3 = vpop.f32.mrb[11].mxu0 }
 0x17f   : > { %v3165_v4 = vmax.f32 %v4575_v62, 0.0  ;;  %v4577_v5 = vadd.f32 %v2873_v3, %v1527_v0 }
 0x180   : > { %v4080_v6 = vpack.c.bf16 %v3167_v1, %v3167_v1  ;;  %v3168_v7 = vmax.f32 %v4576_v2, 0.0 }
 0x181   : > { %v4078_v8 = vpack.c.bf16 %v3165_v4, %v3165_v4  ;;  %v3166_v9 = vmax.f32 %v4577_v5, 0.0 }
 0x182   : > { %3488 = vst.msk [vmem:[%s5347_s20 + $0x28] sm:$0xf] %vm3477_vm1, %v4080_v6  ;;  %v4081_v10 = vpack.c.bf16 %v3168_v7, %v3168_v7  ;;  %v4372_v11 = vpop.f32.mrb[12].mxu1 }
 0x183   : > { %3486 = vst.msk [vmem:[%s5347_s20 + $0x20] sm:$0xf] %vm3477_vm1, %v4078_v8  ;;  %v4079_v12 = vpack.c.bf16 %v3166_v9, %v3166_v9  ;;  %v4516_v13 = vpop.f32.mrb[12].mxu0  ;;  %v1540_v14 = vpop.f32.mrb[13].mxu1 }
 0x184   : > { %3489 = vst.msk [vmem:[%s5347_s20 + $0x2c] sm:$0xf] %vm3477_vm1, %v4081_v10  ;;  %v4578_v15 = vadd.f32 %v4516_v13, %v4372_v11  ;;  %v2886_v16 = vpop.f32.mrb[13].mxu0  ;;  %v4373_v17 = vpop.f32.mrb[14].mxu1 }
 0x185   : > { %3487 = vst.msk [vmem:[%s5347_s20 + $0x24] sm:$0xf] %vm3477_vm1, %v4079_v12  ;;  %v4579_v18 = vadd.f32 %v2886_v16, %v1540_v14  ;;  %v4517_v19 = vpop.f32.mrb[14].mxu0  ;;  %v1543_v20 = vpop.f32.mrb[15].mxu1 }
 0x186   : > { %v3171_v21 = vmax.f32 %v4578_v15, 0.0  ;;  %v4580_v22 = vadd.f32 %v4517_v19, %v4373_v17  ;;  %v2889_v23 = vpop.f32.mrb[15].mxu0 }
 0x187   : > { %v3169_v24 = vmax.f32 %v4579_v18, 0.0  ;;  %v4581_v25 = vadd.f32 %v2889_v23, %v1543_v20 }
 0x188   : > { %v4084_v26 = vpack.c.bf16 %v3171_v21, %v3171_v21  ;;  %v3172_v27 = vmax.f32 %v4580_v22, 0.0 }
 0x189   : > { %v4082_v28 = vpack.c.bf16 %v3169_v24, %v3169_v24  ;;  %v3170_v29 = vmax.f32 %v4581_v25, 0.0 }
 0x18a   : > { %3492 = vst.msk [vmem:[%s5347_s20 + $0x38] sm:$0xf] %vm3477_vm1, %v4084_v26  ;;  %v4085_v30 = vpack.c.bf16 %v3172_v27, %v3172_v27  ;;  %v4376_v31 = vpop.f32.mrb[16].mxu1 }
 0x18b   : > { %3490 = vst.msk [vmem:[%s5347_s20 + $0x30] sm:$0xf] %vm3477_vm1, %v4082_v28  ;;  %v4083_v32 = vpack.c.bf16 %v3170_v29, %v3170_v29  ;;  %v4520_v33 = vpop.f32.mrb[16].mxu0  ;;  %v1556_v34 = vpop.f32.mrb[17].mxu1 }
 0x18c   : > { %3493 = vst.msk [vmem:[%s5347_s20 + $0x3c] sm:$0xf] %vm3477_vm1, %v4085_v30  ;;  %v4582_v35 = vadd.f32 %v4520_v33, %v4376_v31  ;;  %v2902_v36 = vpop.f32.mrb[17].mxu0  ;;  %v4377_v37 = vpop.f32.mrb[18].mxu1 }
 0x18d   : > { %3491 = vst.msk [vmem:[%s5347_s20 + $0x34] sm:$0xf] %vm3477_vm1, %v4083_v32  ;;  %v4583_v38 = vadd.f32 %v2902_v36, %v1556_v34  ;;  %v4521_v39 = vpop.f32.mrb[18].mxu0  ;;  %v1559_v40 = vpop.f32.mrb[19].mxu1 }
 0x18e   : > { %v3175_v41 = vmax.f32 %v4582_v35, 0.0  ;;  %v4584_v42 = vadd.f32 %v4521_v39, %v4377_v37  ;;  %v2905_v43 = vpop.f32.mrb[19].mxu0 }
 0x18f   : > { %v3173_v44 = vmax.f32 %v4583_v38, 0.0  ;;  %v4585_v45 = vadd.f32 %v2905_v43, %v1559_v40 }
 0x190   : > { %v4088_v46 = vpack.c.bf16 %v3175_v41, %v3175_v41  ;;  %v3176_v47 = vmax.f32 %v4584_v42, 0.0 }
 0x191   : > { %v4086_v48 = vpack.c.bf16 %v3173_v44, %v3173_v44  ;;  %v3174_v49 = vmax.f32 %v4585_v45, 0.0 }
 0x192   : > { %3496 = vst.msk [vmem:[%s5347_s20 + $0x48] sm:$0xf] %vm3477_vm1, %v4088_v46  ;;  %v4089_v50 = vpack.c.bf16 %v3176_v47, %v3176_v47  ;;  %v4380_v51 = vpop.f32.mrb[20].mxu1 }
 0x193   : > { %3494 = vst.msk [vmem:[%s5347_s20 + $0x40] sm:$0xf] %vm3477_vm1, %v4086_v48  ;;  %v4087_v52 = vpack.c.bf16 %v3174_v49, %v3174_v49  ;;  %v4524_v53 = vpop.f32.mrb[20].mxu0  ;;  %v1572_v54 = vpop.f32.mrb[21].mxu1 }
 0x194   : > { %3497 = vst.msk [vmem:[%s5347_s20 + $0x4c] sm:$0xf] %vm3477_vm1, %v4089_v50  ;;  %v4586_v55 = vadd.f32 %v4524_v53, %v4380_v51  ;;  %v2918_v56 = vpop.f32.mrb[21].mxu0  ;;  %v4381_v57 = vpop.f32.mrb[22].mxu1 }
 0x195   : > { %3495 = vst.msk [vmem:[%s5347_s20 + $0x44] sm:$0xf] %vm3477_vm1, %v4087_v52  ;;  %v4587_v58 = vadd.f32 %v2918_v56, %v1572_v54  ;;  %v4525_v59 = vpop.f32.mrb[22].mxu0  ;;  %v1575_v60 = vpop.f32.mrb[23].mxu1 }
 0x196   : > { %v3179_v61 = vmax.f32 %v4586_v55, 0.0  ;;  %v4588_v62 = vadd.f32 %v4525_v59, %v4381_v57  ;;  %v2921_v63 = vpop.f32.mrb[23].mxu0 }
 0x197   : > { %v3177_v0 = vmax.f32 %v4587_v58, 0.0  ;;  %v4589_v1 = vadd.f32 %v2921_v63, %v1575_v60 }
 0x198   : > { %v4092_v2 = vpack.c.bf16 %v3179_v61, %v3179_v61  ;;  %v3180_v3 = vmax.f32 %v4588_v62, 0.0 }
 0x199   : > { %v4090_v4 = vpack.c.bf16 %v3177_v0, %v3177_v0  ;;  %v3178_v5 = vmax.f32 %v4589_v1, 0.0 }
 0x19a   : > { %3500 = vst.msk [vmem:[%s5347_s20 + $0x58] sm:$0xf] %vm3477_vm1, %v4092_v2  ;;  %v4093_v6 = vpack.c.bf16 %v3180_v3, %v3180_v3  ;;  %v4384_v7 = vpop.f32.mrb[24].mxu1 }
 0x19b   : > { %3498 = vst.msk [vmem:[%s5347_s20 + $0x50] sm:$0xf] %vm3477_vm1, %v4090_v4  ;;  %v4091_v8 = vpack.c.bf16 %v3178_v5, %v3178_v5  ;;  %v4528_v9 = vpop.f32.mrb[24].mxu0  ;;  %v1588_v10 = vpop.f32.mrb[25].mxu1 }
 0x19c   : > { %3501 = vst.msk [vmem:[%s5347_s20 + $0x5c] sm:$0xf] %vm3477_vm1, %v4093_v6  ;;  %v4590_v11 = vadd.f32 %v4528_v9, %v4384_v7  ;;  %v2934_v12 = vpop.f32.mrb[25].mxu0  ;;  %v4385_v13 = vpop.f32.mrb[26].mxu1 }
 0x19d   : > { %3499 = vst.msk [vmem:[%s5347_s20 + $0x54] sm:$0xf] %vm3477_vm1, %v4091_v8  ;;  %v4591_v14 = vadd.f32 %v2934_v12, %v1588_v10  ;;  %v4529_v15 = vpop.f32.mrb[26].mxu0  ;;  %v1591_v16 = vpop.f32.mrb[27].mxu1 }
 0x19e   : > { %v3183_v17 = vmax.f32 %v4590_v11, 0.0  ;;  %v4592_v18 = vadd.f32 %v4529_v15, %v4385_v13  ;;  %v2937_v19 = vpop.f32.mrb[27].mxu0 }
 0x19f   : > { %v3181_v20 = vmax.f32 %v4591_v14, 0.0  ;;  %v4593_v21 = vadd.f32 %v2937_v19, %v1591_v16 }
 0x1a0   : > { %v4096_v22 = vpack.c.bf16 %v3183_v17, %v3183_v17  ;;  %v3184_v23 = vmax.f32 %v4592_v18, 0.0 }
 0x1a1   : > { %v4094_v24 = vpack.c.bf16 %v3181_v20, %v3181_v20  ;;  %v3182_v25 = vmax.f32 %v4593_v21, 0.0 }
 0x1a2   : > { %3504 = vst.msk [vmem:[%s5347_s20 + $0x68] sm:$0xf] %vm3477_vm1, %v4096_v22  ;;  %v4097_v26 = vpack.c.bf16 %v3184_v23, %v3184_v23  ;;  %v4388_v27 = vpop.f32.mrb[28].mxu1 }
 0x1a3   : > { %3502 = vst.msk [vmem:[%s5347_s20 + $0x60] sm:$0xf] %vm3477_vm1, %v4094_v24  ;;  %v4095_v28 = vpack.c.bf16 %v3182_v25, %v3182_v25  ;;  %v4532_v29 = vpop.f32.mrb[28].mxu0  ;;  %v1604_v30 = vpop.f32.mrb[29].mxu1 }
 0x1a4   : > { %3505 = vst.msk [vmem:[%s5347_s20 + $0x6c] sm:$0xf] %vm3477_vm1, %v4097_v26  ;;  %v4594_v31 = vadd.f32 %v4532_v29, %v4388_v27  ;;  %v2950_v32 = vpop.f32.mrb[29].mxu0  ;;  %v4389_v33 = vpop.f32.mrb[30].mxu1 }
 0x1a5   : > { %3503 = vst.msk [vmem:[%s5347_s20 + $0x64] sm:$0xf] %vm3477_vm1, %v4095_v28  ;;  %v4595_v34 = vadd.f32 %v2950_v32, %v1604_v30  ;;  %v4533_v35 = vpop.f32.mrb[30].mxu0  ;;  %v1607_v36 = vpop.f32.mrb[31].mxu1 }
 0x1a6   : > { %v3187_v37 = vmax.f32 %v4594_v31, 0.0  ;;  %v4596_v38 = vadd.f32 %v4533_v35, %v4389_v33  ;;  %v2953_v39 = vpop.f32.mrb[31].mxu0 }
 0x1a7   : > { %v3185_v40 = vmax.f32 %v4595_v34, 0.0  ;;  %v4597_v41 = vadd.f32 %v2953_v39, %v1607_v36 }
 0x1a8   : > { %v4100_v42 = vpack.c.bf16 %v3187_v37, %v3187_v37  ;;  %v3188_v43 = vmax.f32 %v4596_v38, 0.0 }
 0x1a9   : > { %v4098_v44 = vpack.c.bf16 %v3185_v40, %v3185_v40  ;;  %v3186_v45 = vmax.f32 %v4597_v41, 0.0 }
 0x1aa   : > { %3508 = vst.msk [vmem:[%s5347_s20 + $0x78] sm:$0xf] %vm3477_vm1, %v4100_v42  ;;  %v4101_v46 = vpack.c.bf16 %v3188_v43, %v3188_v43  ;;  %v4392_v47 = vpop.f32.mrb[32].mxu1 }
 0x1ab   : > { %3506 = vst.msk [vmem:[%s5347_s20 + $0x70] sm:$0xf] %vm3477_vm1, %v4098_v44  ;;  %v4099_v48 = vpack.c.bf16 %v3186_v45, %v3186_v45  ;;  %v4536_v49 = vpop.f32.mrb[32].mxu0  ;;  %v1620_v50 = vpop.f32.mrb[33].mxu1 }
 0x1ac   : > { %3509 = vst.msk [vmem:[%s5347_s20 + $0x7c] sm:$0xf] %vm3477_vm1, %v4101_v46  ;;  %v4598_v51 = vadd.f32 %v4536_v49, %v4392_v47  ;;  %v2966_v52 = vpop.f32.mrb[33].mxu0  ;;  %v4393_v53 = vpop.f32.mrb[34].mxu1 }
 0x1ad   : > { %3507 = vst.msk [vmem:[%s5347_s20 + $0x74] sm:$0xf] %vm3477_vm1, %v4099_v48  ;;  %v4599_v54 = vadd.f32 %v2966_v52, %v1620_v50  ;;  %v4537_v55 = vpop.f32.mrb[34].mxu0  ;;  %v1623_v56 = vpop.f32.mrb[35].mxu1 }
 0x1ae   : > { %v3191_v57 = vmax.f32 %v4598_v51, 0.0  ;;  %v4600_v58 = vadd.f32 %v4537_v55, %v4393_v53  ;;  %v2969_v59 = vpop.f32.mrb[35].mxu0 }
 0x1af   : > { %v3189_v60 = vmax.f32 %v4599_v54, 0.0  ;;  %v4601_v61 = vadd.f32 %v2969_v59, %v1623_v56 }
 0x1b0   : > { %v4104_v62 = vpack.c.bf16 %v3191_v57, %v3191_v57  ;;  %v3192_v63 = vmax.f32 %v4600_v58, 0.0 }
 0x1b1   : > { %v4102_v0 = vpack.c.bf16 %v3189_v60, %v3189_v60  ;;  %v3190_v1 = vmax.f32 %v4601_v61, 0.0 }
 0x1b2   : > { %3512 = vst.msk [vmem:[%s5347_s20 + $0x88] sm:$0xf] %vm3477_vm1, %v4104_v62  ;;  %v4105_v2 = vpack.c.bf16 %v3192_v63, %v3192_v63  ;;  %v4396_v3 = vpop.f32.mrb[36].mxu1 }
 0x1b3   : > { %3510 = vst.msk [vmem:[%s5347_s20 + $0x80] sm:$0xf] %vm3477_vm1, %v4102_v0  ;;  %v4103_v4 = vpack.c.bf16 %v3190_v1, %v3190_v1  ;;  %v4540_v5 = vpop.f32.mrb[36].mxu0  ;;  %v1636_v6 = vpop.f32.mrb[37].mxu1 }
 0x1b4   : > { %3513 = vst.msk [vmem:[%s5347_s20 + $0x8c] sm:$0xf] %vm3477_vm1, %v4105_v2  ;;  %v4602_v7 = vadd.f32 %v4540_v5, %v4396_v3  ;;  %v2982_v8 = vpop.f32.mrb[37].mxu0  ;;  %v4397_v9 = vpop.f32.mrb[38].mxu1 }
 0x1b5   : > { %3511 = vst.msk [vmem:[%s5347_s20 + $0x84] sm:$0xf] %vm3477_vm1, %v4103_v4  ;;  %v4603_v10 = vadd.f32 %v2982_v8, %v1636_v6  ;;  %v4541_v11 = vpop.f32.mrb[38].mxu0  ;;  %v1639_v12 = vpop.f32.mrb[39].mxu1 }
 0x1b6   : > { %v3195_v13 = vmax.f32 %v4602_v7, 0.0  ;;  %v4604_v14 = vadd.f32 %v4541_v11, %v4397_v9  ;;  %v2985_v15 = vpop.f32.mrb[39].mxu0 }
 0x1b7   : > { %v3193_v16 = vmax.f32 %v4603_v10, 0.0  ;;  %v4605_v17 = vadd.f32 %v2985_v15, %v1639_v12 }
 0x1b8   : > { %v4108_v18 = vpack.c.bf16 %v3195_v13, %v3195_v13  ;;  %v3196_v19 = vmax.f32 %v4604_v14, 0.0 }
 0x1b9   : > { %v4106_v20 = vpack.c.bf16 %v3193_v16, %v3193_v16  ;;  %v3194_v21 = vmax.f32 %v4605_v17, 0.0 }
 0x1ba   : > { %3516 = vst.msk [vmem:[%s5347_s20 + $0x98] sm:$0xf] %vm3477_vm1, %v4108_v18  ;;  %v4109_v22 = vpack.c.bf16 %v3196_v19, %v3196_v19  ;;  %v4400_v23 = vpop.f32.mrb[40].mxu1 }
 0x1bb   : > { %3514 = vst.msk [vmem:[%s5347_s20 + $0x90] sm:$0xf] %vm3477_vm1, %v4106_v20  ;;  %v4107_v24 = vpack.c.bf16 %v3194_v21, %v3194_v21  ;;  %v4544_v25 = vpop.f32.mrb[40].mxu0  ;;  %v1652_v26 = vpop.f32.mrb[41].mxu1 }
 0x1bc   : > { %3517 = vst.msk [vmem:[%s5347_s20 + $0x9c] sm:$0xf] %vm3477_vm1, %v4109_v22  ;;  %v4606_v27 = vadd.f32 %v4544_v25, %v4400_v23  ;;  %v2998_v28 = vpop.f32.mrb[41].mxu0  ;;  %v4401_v29 = vpop.f32.mrb[42].mxu1 }
 0x1bd   : > { %3515 = vst.msk [vmem:[%s5347_s20 + $0x94] sm:$0xf] %vm3477_vm1, %v4107_v24  ;;  %v4607_v30 = vadd.f32 %v2998_v28, %v1652_v26  ;;  %v4545_v31 = vpop.f32.mrb[42].mxu0  ;;  %v1655_v32 = vpop.f32.mrb[43].mxu1 }
 0x1be   : > { %v3199_v33 = vmax.f32 %v4606_v27, 0.0  ;;  %v4608_v34 = vadd.f32 %v4545_v31, %v4401_v29  ;;  %v3001_v35 = vpop.f32.mrb[43].mxu0 }
 0x1bf   : > { %v3197_v36 = vmax.f32 %v4607_v30, 0.0  ;;  %v4609_v37 = vadd.f32 %v3001_v35, %v1655_v32 }
 0x1c0   : > { %v4112_v38 = vpack.c.bf16 %v3199_v33, %v3199_v33  ;;  %v3200_v39 = vmax.f32 %v4608_v34, 0.0 }
 0x1c1   : > { %v4110_v40 = vpack.c.bf16 %v3197_v36, %v3197_v36  ;;  %v3198_v41 = vmax.f32 %v4609_v37, 0.0 }
 0x1c2   : > { %3520 = vst.msk [vmem:[%s5347_s20 + $0xa8] sm:$0xf] %vm3477_vm1, %v4112_v38  ;;  %v4113_v42 = vpack.c.bf16 %v3200_v39, %v3200_v39  ;;  %v4404_v43 = vpop.f32.mrb[44].mxu1 }
 0x1c3   : > { %3518 = vst.msk [vmem:[%s5347_s20 + $0xa0] sm:$0xf] %vm3477_vm1, %v4110_v40  ;;  %v4111_v44 = vpack.c.bf16 %v3198_v41, %v3198_v41  ;;  %v4548_v45 = vpop.f32.mrb[44].mxu0  ;;  %v1668_v46 = vpop.f32.mrb[45].mxu1 }
 0x1c4   : > { %3521 = vst.msk [vmem:[%s5347_s20 + $0xac] sm:$0xf] %vm3477_vm1, %v4113_v42  ;;  %v4610_v47 = vadd.f32 %v4548_v45, %v4404_v43  ;;  %v3014_v48 = vpop.f32.mrb[45].mxu0  ;;  %v4405_v49 = vpop.f32.mrb[46].mxu1 }
 0x1c5   : > { %3519 = vst.msk [vmem:[%s5347_s20 + $0xa4] sm:$0xf] %vm3477_vm1, %v4111_v44  ;;  %v4611_v50 = vadd.f32 %v3014_v48, %v1668_v46  ;;  %v4549_v51 = vpop.f32.mrb[46].mxu0  ;;  %v1671_v52 = vpop.f32.mrb[47].mxu1 }
 0x1c6   : > { %v3203_v53 = vmax.f32 %v4610_v47, 0.0  ;;  %v4612_v54 = vadd.f32 %v4549_v51, %v4405_v49  ;;  %v3017_v55 = vpop.f32.mrb[47].mxu0 }
 0x1c7   : > { %v3201_v56 = vmax.f32 %v4611_v50, 0.0  ;;  %v4613_v57 = vadd.f32 %v3017_v55, %v1671_v52 }
 0x1c8   : > { %v4116_v58 = vpack.c.bf16 %v3203_v53, %v3203_v53  ;;  %v3204_v59 = vmax.f32 %v4612_v54, 0.0 }
 0x1c9   : > { %v4114_v60 = vpack.c.bf16 %v3201_v56, %v3201_v56  ;;  %v3202_v61 = vmax.f32 %v4613_v57, 0.0 }
 0x1ca   : > { %3524 = vst.msk [vmem:[%s5347_s20 + $0xb8] sm:$0xf] %vm3477_vm1, %v4116_v58  ;;  %v4117_v62 = vpack.c.bf16 %v3204_v59, %v3204_v59  ;;  %v4408_v63 = vpop.f32.mrb[48].mxu1 }
 0x1cb   : > { %3522 = vst.msk [vmem:[%s5347_s20 + $0xb0] sm:$0xf] %vm3477_vm1, %v4114_v60  ;;  %v4115_v0 = vpack.c.bf16 %v3202_v61, %v3202_v61  ;;  %v4552_v1 = vpop.f32.mrb[48].mxu0  ;;  %v1684_v2 = vpop.f32.mrb[49].mxu1 }
 0x1cc   : > { %3525 = vst.msk [vmem:[%s5347_s20 + $0xbc] sm:$0xf] %vm3477_vm1, %v4117_v62  ;;  %v4614_v3 = vadd.f32 %v4552_v1, %v4408_v63  ;;  %v3030_v4 = vpop.f32.mrb[49].mxu0  ;;  %v4409_v5 = vpop.f32.mrb[50].mxu1 }
 0x1cd   : > { %3523 = vst.msk [vmem:[%s5347_s20 + $0xb4] sm:$0xf] %vm3477_vm1, %v4115_v0  ;;  %v4615_v6 = vadd.f32 %v3030_v4, %v1684_v2  ;;  %v4553_v7 = vpop.f32.mrb[50].mxu0  ;;  %v1687_v8 = vpop.f32.mrb[51].mxu1 }
 0x1ce   : > { %v3207_v9 = vmax.f32 %v4614_v3, 0.0  ;;  %v4616_v10 = vadd.f32 %v4553_v7, %v4409_v5  ;;  %v3033_v11 = vpop.f32.mrb[51].mxu0 }
 0x1cf   : > { %v3205_v12 = vmax.f32 %v4615_v6, 0.0  ;;  %v4617_v13 = vadd.f32 %v3033_v11, %v1687_v8 }
 0x1d0   : > { %v4120_v14 = vpack.c.bf16 %v3207_v9, %v3207_v9  ;;  %v3208_v15 = vmax.f32 %v4616_v10, 0.0 }
 0x1d1   : > { %v4118_v16 = vpack.c.bf16 %v3205_v12, %v3205_v12  ;;  %v3206_v17 = vmax.f32 %v4617_v13, 0.0 }
 0x1d2   : > { %3528 = vst.msk [vmem:[%s5347_s20 + $0xc8] sm:$0xf] %vm3477_vm1, %v4120_v14  ;;  %v4121_v18 = vpack.c.bf16 %v3208_v15, %v3208_v15  ;;  %v4412_v19 = vpop.f32.mrb[52].mxu1 }
 0x1d3   : > { %3526 = vst.msk [vmem:[%s5347_s20 + $0xc0] sm:$0xf] %vm3477_vm1, %v4118_v16  ;;  %v4119_v20 = vpack.c.bf16 %v3206_v17, %v3206_v17  ;;  %v4556_v21 = vpop.f32.mrb[52].mxu0  ;;  %v1700_v22 = vpop.f32.mrb[53].mxu1 }
 0x1d4   : > { %3529 = vst.msk [vmem:[%s5347_s20 + $0xcc] sm:$0xf] %vm3477_vm1, %v4121_v18  ;;  %v4618_v23 = vadd.f32 %v4556_v21, %v4412_v19  ;;  %v3046_v24 = vpop.f32.mrb[53].mxu0  ;;  %v4413_v25 = vpop.f32.mrb[54].mxu1 }
 0x1d5   : > { %3527 = vst.msk [vmem:[%s5347_s20 + $0xc4] sm:$0xf] %vm3477_vm1, %v4119_v20  ;;  %v4619_v26 = vadd.f32 %v3046_v24, %v1700_v22  ;;  %v4557_v27 = vpop.f32.mrb[54].mxu0  ;;  %v1703_v28 = vpop.f32.mrb[55].mxu1 }
 0x1d6   : > { %v3211_v29 = vmax.f32 %v4618_v23, 0.0  ;;  %v4620_v30 = vadd.f32 %v4557_v27, %v4413_v25  ;;  %v3049_v31 = vpop.f32.mrb[55].mxu0 }
 0x1d7   : > { %v3209_v32 = vmax.f32 %v4619_v26, 0.0  ;;  %v4621_v33 = vadd.f32 %v3049_v31, %v1703_v28 }
 0x1d8   : > { %v4124_v34 = vpack.c.bf16 %v3211_v29, %v3211_v29  ;;  %v3212_v35 = vmax.f32 %v4620_v30, 0.0 }
 0x1d9   : > { %v4122_v36 = vpack.c.bf16 %v3209_v32, %v3209_v32  ;;  %v3210_v37 = vmax.f32 %v4621_v33, 0.0 }
 0x1da   : > { %3532 = vst.msk [vmem:[%s5347_s20 + $0xd8] sm:$0xf] %vm3477_vm1, %v4124_v34  ;;  %v4125_v38 = vpack.c.bf16 %v3212_v35, %v3212_v35  ;;  %v4416_v39 = vpop.f32.mrb[56].mxu1 }
 0x1db   : > { %3530 = vst.msk [vmem:[%s5347_s20 + $0xd0] sm:$0xf] %vm3477_vm1, %v4122_v36  ;;  %v4123_v40 = vpack.c.bf16 %v3210_v37, %v3210_v37  ;;  %v4560_v41 = vpop.f32.mrb[56].mxu0  ;;  %v1716_v42 = vpop.f32.mrb[57].mxu1 }
 0x1dc   : > { %3533 = vst.msk [vmem:[%s5347_s20 + $0xdc] sm:$0xf] %vm3477_vm1, %v4125_v38  ;;  %v4622_v43 = vadd.f32 %v4560_v41, %v4416_v39  ;;  %v3062_v44 = vpop.f32.mrb[57].mxu0  ;;  %v4417_v45 = vpop.f32.mrb[58].mxu1 }
 0x1dd   : > { %3531 = vst.msk [vmem:[%s5347_s20 + $0xd4] sm:$0xf] %vm3477_vm1, %v4123_v40  ;;  %v4623_v46 = vadd.f32 %v3062_v44, %v1716_v42  ;;  %v4561_v47 = vpop.f32.mrb[58].mxu0  ;;  %v1719_v48 = vpop.f32.mrb[59].mxu1 }
 0x1de   : > { %v3215_v49 = vmax.f32 %v4622_v43, 0.0  ;;  %v4624_v50 = vadd.f32 %v4561_v47, %v4417_v45  ;;  %v3065_v51 = vpop.f32.mrb[59].mxu0 }
 0x1df   : > { %v3213_v52 = vmax.f32 %v4623_v46, 0.0  ;;  %v4625_v53 = vadd.f32 %v3065_v51, %v1719_v48 }
 0x1e0   : > { %v4128_v54 = vpack.c.bf16 %v3215_v49, %v3215_v49  ;;  %v3216_v55 = vmax.f32 %v4624_v50, 0.0 }
 0x1e1   : > { %v4126_v56 = vpack.c.bf16 %v3213_v52, %v3213_v52  ;;  %v3214_v57 = vmax.f32 %v4625_v53, 0.0 }
 0x1e2   : > { %3536 = vst.msk [vmem:[%s5347_s20 + $0xe8] sm:$0xf] %vm3477_vm1, %v4128_v54  ;;  %v4129_v58 = vpack.c.bf16 %v3216_v55, %v3216_v55  ;;  %v4420_v59 = vpop.f32.mrb[60].mxu1 }
 0x1e3   : > { %3534 = vst.msk [vmem:[%s5347_s20 + $0xe0] sm:$0xf] %vm3477_vm1, %v4126_v56  ;;  %v4127_v60 = vpack.c.bf16 %v3214_v57, %v3214_v57  ;;  %v4564_v61 = vpop.f32.mrb[60].mxu0  ;;  %v1732_v62 = vpop.f32.mrb[61].mxu1 }
 0x1e4   : > { %3537 = vst.msk [vmem:[%s5347_s20 + $0xec] sm:$0xf] %vm3477_vm1, %v4129_v58  ;;  %v4626_v63 = vadd.f32 %v4564_v61, %v4420_v59  ;;  %v3078_v0 = vpop.f32.mrb[61].mxu0  ;;  %v4421_v1 = vpop.f32.mrb[62].mxu1 }
 0x1e5   : > { %3535 = vst.msk [vmem:[%s5347_s20 + $0xe4] sm:$0xf] %vm3477_vm1, %v4127_v60  ;;  %v4627_v2 = vadd.f32 %v3078_v0, %v1732_v62  ;;  %v4565_v3 = vpop.f32.mrb[62].mxu0  ;;  %v1735_v4 = vpop.f32.mrb[63].mxu1 }
 0x1e6   : > { %v3219_v5 = vmax.f32 %v4626_v63, 0.0  ;;  %v4628_v6 = vadd.f32 %v4565_v3, %v4421_v1  ;;  %v3081_v7 = vpop.f32.mrb[63].mxu0 }
 0x1e7   : > { %v3217_v8 = vmax.f32 %v4627_v2, 0.0  ;;  %v4629_v9 = vadd.f32 %v3081_v7, %v1735_v4 }
 0x1e8   : > { %v4132_v10 = vpack.c.bf16 %v3219_v5, %v3219_v5  ;;  %v3220_v11 = vmax.f32 %v4628_v6, 0.0 }
 0x1e9   : > { %v4130_v12 = vpack.c.bf16 %v3217_v8, %v3217_v8  ;;  %v3218_v13 = vmax.f32 %v4629_v9, 0.0 }
 0x1ea   : > { %3540 = vst.msk [vmem:[%s5347_s20 + $0xf8] sm:$0xf] %vm3477_vm1, %v4132_v10  ;;  %v4133_v14 = vpack.c.bf16 %v3220_v11, %v3220_v11 }
 0x1eb   : > { %3538 = vst.msk [vmem:[%s5347_s20 + $0xf0] sm:$0xf] %vm3477_vm1, %v4130_v12  ;;  %v4131_v15 = vpack.c.bf16 %v3218_v13, %v3218_v13 }
 0x1ec   : > { %3541 = vst.msk [vmem:[%s5347_s20 + $0xfc] sm:$0xf] %vm3477_vm1, %v4133_v14 }
 0x1ed   : > { %3539 = vst.msk [vmem:[%s5347_s20 + $0xf4] sm:$0xf] %vm3477_vm1, %v4131_v15 }
 0x1ee PF: > { %s18_s29 = sadd.s32 1, %s4948_s29   ;;  %s5495_s27 = smov %s4944_s28 }
 0x1ef   : > { %p15_p5 = scmp.ge.s32.totalorder %s18_s29, 6   ;;  %s5496_s28 = smov %s5498_s30 }
 0x1f1   :  { %17 = sbr.rel (!%p15_p5) target bundleno = 2 (0x2), region = 103 }

// kernel: _lambda_.13
= control target key start
LH: loop header
LB: loop body
LE: loop exit
PB: predicated region body
PF: predicated region fallthrough
CT: control target
= control target key end

     0   :  { %s6118_s13 = smov 0   ;;  %s6120_s14 = smov 0   ;;  %s6789_s0 = inlined_call_operand.vmem [shape: bf16[2048,64], index: 0, kind: input, shape index: {}]   ;;  %s6790_s1 = inlined_call_operand.vmem [shape: bf16[2048,64], index: 1, kind: input, shape index: {}]   ;;  %s6791_s2 = inlined_call_operand.vmem [shape: bf16[2048,64], index: 2, kind: input, shape index: {}]   ;;  %s6792_s3 = inlined_call_operand.vmem [shape: bf16[2048,64], index: 3, kind: input, shape index: {}]   ;;  %s6793_s4 = inlined_call_operand.vmem [shape: bf16[2048,64], index: 4, kind: input, shape index: {}]   ;;  %s6794_s5 = inlined_call_operand.vmem [shape: bf16[64,64], index: 5, kind: input, shape index: {}, may-alias: {5,6,7}]   ;;  %s6795_s6 = inlined_call_operand.vmem [shape: bf16[64,64], index: 6, kind: input, shape index: {}, may-alias: {5,6,7}]   ;;  %s6796_s7 = inlined_call_operand.vmem [shape: bf16[64,64], index: 7, kind: input, shape index: {}, may-alias: {5,6,7}]   ;;  %s6797_s8 = inlined_call_operand.vmem [shape: bf16[64,64], index: 8, kind: input, shape index: {}, may-alias: {8,9}]   ;;  %s6798_s9 = inlined_call_operand.vmem [shape: bf16[64,64], index: 9, kind: input, shape index: {}, may-alias: {8,9}]   ;;  %s6799_s10 = inlined_call_operand.vmem [shape: bf16[2048,64], index: 10, kind: output, shape index: {}]  }
   0x1   :  { %s6122_s15 = smov 0  }
   0x2 LB: > { %s32_s16 = sadd.s32 1, %s6057_s14  ;;  %p4547_p0 = scmp.ge.s32.totalorder %s6061_s15, 1  ;;  %s6061_s15 = sphi %s6122_s15, %s20_s15   ;;  %s6057_s14 = sphi %s6120_s14, %s6801_s14   ;;  %s6053_s13 = sphi %s6118_s13, %s6800_s13  }
   0x3   : > { %p34_p1 = scmp.ge.s32.totalorder %s32_s16, 4  ;;  %p416_p2 = scmp.lt.s32.totalorder %s6061_s15, 5 }
   0x5   : > { %s6803_s16 = smov (%p34_p1, %s32_s16), 0  ;;  %p417_p3 = pnand %p4547_p0, %p416_p2 }
   0x6   : > { %v5858_v0 = vld [vmem:[%s6795_s6] sm:$0xff] (!%p417_p3)   ;;  %s4548_s19 = sshll.u32 (!%p417_p3), %s6053_s13, 6  ;;  %v5860_v2 = vld [vmem:[%s6795_s6 + $0x8] sm:$0xff] (!%p417_p3)   ;;  %v5862_v4 = vld [vmem:[%s6795_s6 + $0x10] sm:$0xff] (!%p417_p3)   ;;  %vm885_vm0 = vcmask (!%p417_p3), 523264   ;;  %vm4275_vm1 = vcmask (!%p417_p3), 519168  }
   0x7   : > { %420 = sbr.rel (%p417_p3) target bundleno = 558 (0x22e), region = 60  ;;  %v6142_v1 = vld [vmem:[%s6796_s7] sm:$0xff] (!%p417_p3)   ;;  %p498_p4 = scmp.lt.s32.totalorder (!%p417_p3), %s4548_s19, 255  ;;  %5210 = vmatprep.subr.bf16.mxu1 (!%p417_p3), %v5858_v0  ;;  %v6151_v3 = vld [vmem:[%s6796_s7 + $0x8] sm:$0xff] (!%p417_p3)   ;;  %v6161_v5 = vld [vmem:[%s6796_s7 + $0x10] sm:$0xff] (!%p417_p3)  }
   0x8   : > { %5354 = vmatprep.subr.bf16.mxu0 (!%p417_p3), %v6142_v1  ;;  %5211 = vmatpush3.bf16.msra.mxu1 (!%p417_p3), %v5858_v0  ;;  %v5864_v6 = vld [vmem:[%s6795_s6 + $0x18] sm:$0xff] (!%p417_p3)   ;;  %v5869_v10 = vld [vmem:[%s6794_s5] sm:$0xff] (!%p417_p3)   ;;  %v5880_v18 = vld [vmem:[%s6797_s8 + $0x8] sm:$0xff] (!%p417_p3)  }
   0x9   : > { %5355 = vmatpush3.bf16.msra.mxu0 (!%p417_p3), %v6142_v1  ;;  %5212 = vmatprep.subr.bf16.mxu1 (!%p417_p3), %v5860_v2  ;;  %v6183_v7 = vld [vmem:[%s6796_s7 + $0x18] sm:$0xff] (!%p417_p3)   ;;  %v5871_v11 = vld [vmem:[%s6797_s8] sm:$0xff] (!%p417_p3)   ;;  %v5888_v24 = vld [vmem:[%s6794_s5 + $0x8] sm:$0xff] (!%p417_p3)  }
   0xa   : > { %5356 = vmatprep.subr.bf16.mxu0 (!%p417_p3), %v6151_v3  ;;  %v5890_v26 = vld [vmem:[%s6797_s8 + $0x10] sm:$0xff] (!%p417_p3)   ;;  %v5899_v31 = vld [vmem:[%s6797_s8 + $0x18] sm:$0xff] (!%p417_p3)   ;;  %v5909_v37 = vld [vmem:[%s6798_s9] sm:$0xff] (!%p417_p3)  }
   0xb   : > { %v5907_v36 = vld [vmem:[%s6794_s5 + $0x10] sm:$0xff] (!%p417_p3)   ;;  %v5925_v46 = vld [vmem:[%s6794_s5 + $0x18] sm:$0xff] (!%p417_p3)   ;;  %v5927_v55 = vld [vmem:[%s6798_s9 + $0x8] sm:$0xff] (!%p417_p3)  }
   0xc   : > { %5213 = vmatpush3.bf16.msra.mxu1 (!%p417_p3), %v5860_v2  ;;  %v5944_v58 = vld [vmem:[%s6798_s9 + $0x10] sm:$0xff] (!%p417_p3)  }
   0xd   : > { %5357 = vmatpush3.bf16.msra.mxu0 (!%p417_p3), %v6151_v3  ;;  %5214 = vmatprep.subr.bf16.mxu1 (!%p417_p3), %v5862_v4 }
   0xe   : > { %s6805_s19 = smov (!%p498_p4, %s4548_s19), 255  ;;  %5358 = vmatprep.subr.bf16.mxu0 %v6161_v5 }
   0xf   : > { %s6163_s30 = sshll.u32 %s6805_s19, 2 }
  0x10   : > { %s6172_s18 = scalar_lea.vmem %s6790_s1, %s6163_s30  ;;  %s6178_s22 = scalar_lea.vmem %s6791_s2, %s6163_s30  ;;  %5215 = vmatpush3.bf16.msra.mxu1 %v5862_v4 }
  0x11   : > { %v5866_v8 = vld [vmem:[%s6172_s18] sm:$0xff]   ;;  %5359 = vmatpush3.bf16.msra.mxu0 %v6161_v5  ;;  %5216 = vmatprep.subr.bf16.mxu1 %v5864_v6  ;;  %v5868_v12 = vld [vmem:[%s6172_s18 + $0x8] sm:$0xff]   ;;  %v5872_v14 = vld [vmem:[%s6172_s18 + $0x10] sm:$0xff]   ;;  %s6250_s24 = scalar_lea.vmem %s6792_s3, %s6163_s30  ;;  %s6303_s21 = scalar_lea.vmem %s6789_s0, %s6163_s30 }
  0x12   : > { %v5867_v9 = vld [vmem:[%s6178_s22] sm:$0xff]   ;;  %5218 = vmatprep.mubr.msk.bf16.mxu1 %vm885_vm0, %v5866_v8  ;;  %5360 = vmatprep.subr.bf16.mxu0 %v6183_v7  ;;  %v5870_v13 = vld [vmem:[%s6178_s22 + $0x8] sm:$0xff]   ;;  %v5873_v15 = vld [vmem:[%s6178_s22 + $0x10] sm:$0xff]   ;;  %s6351_s29 = scalar_lea.vmem %s6793_s4, %s6163_s30  ;;  %s6626_s12 = scalar_lea.vmem %s6799_s10, %s6163_s30 }
  0x13   : > { %5362 = vmatprep.mubr.msk.bf16.mxu0 %vm885_vm0, %v5867_v9  ;;  %v5874_v16 = vld [vmem:[%s6172_s18 + $0x18] sm:$0xff]   ;;  %v5876_v19 = vld [vmem:[%s6172_s18 + $0x20] sm:$0xff]   ;;  %v5878_v21 = vld [vmem:[%s6172_s18 + $0x28] sm:$0xff]  }
  0x14   : > { %5217 = vmatpush3.bf16.msra.mxu1 %v5864_v6  ;;  %v5875_v17 = vld [vmem:[%s6178_s22 + $0x18] sm:$0xff]   ;;  %v5877_v20 = vld [vmem:[%s6178_s22 + $0x20] sm:$0xff]   ;;  %v5879_v22 = vld [vmem:[%s6178_s22 + $0x28] sm:$0xff]  }
  0x15   : > { %5361 = vmatpush3.bf16.msra.mxu0 %v6183_v7  ;;  %5282 = vmatprep.subr.bf16.mxu1 %v5869_v10  ;;  %v5881_v23 = vld [vmem:[%s6172_s18 + $0x30] sm:$0xff]   ;;  %v5883_v27 = vld [vmem:[%s6172_s18 + $0x38] sm:$0xff]   ;;  %v5885_v29 = vld [vmem:[%s6172_s18 + $0x40] sm:$0xff]  }
  0x16   : > { %5426 = vmatprep.subr.bf16.mxu0 %v5871_v11  ;;  %v5882_v25 = vld [vmem:[%s6178_s22 + $0x30] sm:$0xff]   ;;  %v5884_v28 = vld [vmem:[%s6178_s22 + $0x38] sm:$0xff]   ;;  %v5886_v30 = vld [vmem:[%s6178_s22 + $0x40] sm:$0xff]  }
  0x17   : > { %5219 = vmatmul.mubr.msk.bf16.vlgmr.msra.gmra.mrb[0].mxu1 %vm885_vm0, %v5868_v12  ;;  %v5887_v32 = vld [vmem:[%s6172_s18 + $0x48] sm:$0xff]   ;;  %v5891_v34 = vld [vmem:[%s6172_s18 + $0x50] sm:$0xff]   ;;  %v5893_v38 = vld [vmem:[%s6172_s18 + $0x58] sm:$0xff]  }
  0x18   : > { %5363 = vmatmul.mubr.msk.bf16.vlgmr.msra.gmra.mrb[0].mxu0 %vm885_vm0, %v5870_v13  ;;  %5283 = vmatpush3.bf16.msra.mxu1 %v5869_v10  ;;  %v5889_v33 = vld [vmem:[%s6178_s22 + $0x48] sm:$0xff]   ;;  %v5892_v35 = vld [vmem:[%s6178_s22 + $0x50] sm:$0xff]   ;;  %v5894_v39 = vld [vmem:[%s6178_s22 + $0x58] sm:$0xff]  }
  0x19   : > { %5427 = vmatpush3.bf16.msra.mxu0 %v5871_v11  ;;  %5222 = vmatprep.mubr.msk.bf16.mxu1 %vm885_vm0, %v5872_v14  ;;  %v5895_v40 = vld [vmem:[%s6172_s18 + $0x60] sm:$0xff]   ;;  %v5897_v42 = vld [vmem:[%s6172_s18 + $0x68] sm:$0xff]   ;;  %v5900_v44 = vld [vmem:[%s6172_s18 + $0x70] sm:$0xff]  }
  0x1a   : > { %5366 = vmatprep.mubr.msk.bf16.mxu0 %vm885_vm0, %v5873_v15  ;;  %5428 = vmatprep.subr.bf16.mxu0 %v5880_v18  ;;  %v5896_v41 = vld [vmem:[%s6178_s22 + $0x60] sm:$0xff]   ;;  %v5898_v43 = vld [vmem:[%s6178_s22 + $0x68] sm:$0xff]   ;;  %v5901_v45 = vld [vmem:[%s6178_s22 + $0x70] sm:$0xff]  }
  0x1b   : > { %5284 = vmatprep.subr.bf16.mxu1 %v5888_v24  ;;  %v5902_v47 = vld [vmem:[%s6172_s18 + $0x78] sm:$0xff]   ;;  %v5904_v49 = vld [vmem:[%s6172_s18 + $0x80] sm:$0xff]   ;;  %v5906_v51 = vld [vmem:[%s6172_s18 + $0x88] sm:$0xff]  }
  0x1c   : > { %5285 = vmatpush3.bf16.msra.mxu1 %v5888_v24  ;;  %v5903_v48 = vld [vmem:[%s6178_s22 + $0x78] sm:$0xff]   ;;  %v5905_v50 = vld [vmem:[%s6250_s24] sm:$0xff]   ;;  %v5908_v52 = vld [vmem:[%s6250_s24 + $0x8] sm:$0xff]  }
  0x1d   : > { %5429 = vmatpush3.bf16.msra.mxu0 %v5880_v18  ;;  %5286 = vmatprep.subr.bf16.mxu1 %v5907_v36  ;;  %v5910_v53 = vld [vmem:[%s6172_s18 + $0x90] sm:$0xff]   ;;  %v5912_v56 = vld [vmem:[%s6172_s18 + $0x98] sm:$0xff]   ;;  %v5914_v59 = vld [vmem:[%s6172_s18 + $0xa0] sm:$0xff]  }
  0x1e   : > { %5430 = vmatprep.subr.bf16.mxu0 %v5890_v26  ;;  %v5911_v54 = vld [vmem:[%s6250_s24 + $0x10] sm:$0xff]   ;;  %v5913_v57 = vld [vmem:[%s6250_s24 + $0x18] sm:$0xff]   ;;  %v5915_v60 = vld [vmem:[%s6250_s24 + $0x20] sm:$0xff]  }
  0x1f   : > { %5223 = vmatmul.mubr.msk.bf16.gmra.mrb[4].mxu1 %vm885_vm0, %v5874_v16  ;;  %v5916_v61 = vld [vmem:[%s6172_s18 + $0xa8] sm:$0xff]   ;;  %v5918_v63 = vld [vmem:[%s6172_s18 + $0xb0] sm:$0xff]   ;;  %v5920_v2 = vld [vmem:[%s6172_s18 + $0xb8] sm:$0xff]  }
  0x20   : > { %5367 = vmatmul.mubr.msk.bf16.gmra.mrb[4].mxu0 %vm885_vm0, %v5875_v17  ;;  %5226 = vmatprep.mubr.msk.bf16.mxu1 %vm885_vm0, %v5876_v19  ;;  %v5917_v62 = vld [vmem:[%s6250_s24 + $0x28] sm:$0xff]   ;;  %v5919_v0 = vld [vmem:[%s6250_s24 + $0x30] sm:$0xff]   ;;  %v5921_v4 = vld [vmem:[%s6250_s24 + $0x38] sm:$0xff]  }
  0x21   : > { %5370 = vmatprep.mubr.msk.bf16.mxu0 %vm885_vm0, %v5877_v20  ;;  %5431 = vmatpush3.bf16.msra.mxu0 %v5890_v26  ;;  %v5922_v6 = vld [vmem:[%s6172_s18 + $0xc0] sm:$0xff]   ;;  %v5961_v8 = vld [vmem:[%s6798_s9 + $0x18] sm:$0xff]   ;;  %v5924_v10 = vld [vmem:[%s6172_s18 + $0xc8] sm:$0xff]  }
  0x22   : > { %5432 = vmatprep.subr.bf16.mxu0 %v5899_v31  ;;  %5287 = vmatpush3.bf16.msra.mxu1 %v5907_v36  ;;  %v5923_v9 = vld [vmem:[%s6250_s24 + $0x40] sm:$0xff]   ;;  %v5926_v11 = vld [vmem:[%s6250_s24 + $0x48] sm:$0xff]   ;;  %v5928_v12 = vld [vmem:[%s6172_s18 + $0xd0] sm:$0xff]  }
  0x23   : > { %5288 = vmatprep.subr.bf16.mxu1 %v5925_v46  ;;  %v5929_v13 = vld [vmem:[%s6250_s24 + $0x50] sm:$0xff]   ;;  %v5930_v14 = vld [vmem:[%s6172_s18 + $0xd8] sm:$0xff]   ;;  %v5932_v16 = vld [vmem:[%s6172_s18 + $0xe0] sm:$0xff]  }
  0x24   : > { %v5931_v15 = vld [vmem:[%s6250_s24 + $0x58] sm:$0xff]   ;;  %v5933_v17 = vld [vmem:[%s6250_s24 + $0x60] sm:$0xff]   ;;  %v5934_v18 = vld [vmem:[%s6172_s18 + $0xe8] sm:$0xff]  }
  0x25   : > { %5433 = vmatpush3.bf16.msra.mxu0 %v5899_v31  ;;  %v5935_v19 = vld [vmem:[%s6250_s24 + $0x68] sm:$0xff]   ;;  %v5936_v20 = vld [vmem:[%s6172_s18 + $0xf0] sm:$0xff]   ;;  %v5940_v24 = vld [vmem:[%s6303_s21] sm:$0xff]  }
  0x26   : > { %5498 = vmatprep.subr.bf16.mxu0 %v5909_v37  ;;  %5289 = vmatpush3.bf16.msra.mxu1 %v5925_v46  ;;  %v5942_v26 = vld [vmem:[%s6303_s21 + $0x8] sm:$0xff]   ;;  %v5948_v31 = vld [vmem:[%s6250_s24 + $0x98] sm:$0xff]   ;;  %v5967_v46 = vld [vmem:[%s6250_s24 + $0xe0] sm:$0xff]  }
  0x27   : > { %5227 = vmatmul.mubr.msk.bf16.gmra.mrb[8].mxu1 %vm885_vm0, %v5878_v21  ;;  %5570 = vmatprep.subr.bf16.mxu1 %v6142_v1  ;;  %v5937_v21 = vld [vmem:[%s6250_s24 + $0x70] sm:$0xff]   ;;  %v6038_v36 = vld [vmem:[%s6796_s7 + $0x18] sm:$0xff]  }
  0x28   : > { %5371 = vmatmul.mubr.msk.bf16.gmra.mrb[8].mxu0 %vm885_vm0, %v5879_v22  ;;  %5230 = vmatprep.mubr.msk.bf16.mxu1 %vm885_vm0, %v5881_v23  ;;  %v5938_v22 = vld [vmem:[%s6172_s18 + $0xf8] sm:$0xff]  }
  0x29   : > { %5374 = vmatprep.mubr.msk.bf16.mxu0 %vm885_vm0, %v5882_v25  ;;  %v5939_v23 = vld [vmem:[%s6250_s24 + $0x78] sm:$0xff]   ;;  %v5941_v25 = vld [vmem:[%s6250_s24 + $0x80] sm:$0xff]  }
  0x2f   : > { %5231 = vmatmul.mubr.msk.bf16.gmra.mrb[12].mxu1 %vm885_vm0, %v5883_v27  ;;  %v5943_v27 = vld [vmem:[%s6250_s24 + $0x88] sm:$0xff]  }
  0x30   : > { %5375 = vmatmul.mubr.msk.bf16.gmra.mrb[12].mxu0 %vm885_vm0, %v5884_v28  ;;  %5234 = vmatprep.mubr.msk.bf16.mxu1 %vm885_vm0, %v5885_v29  ;;  %v5945_v28 = vld [vmem:[%s6303_s21 + $0x10] sm:$0xff]  }
  0x31   : > { %5378 = vmatprep.mubr.msk.bf16.mxu0 %vm885_vm0, %v5886_v30  ;;  %v5946_v29 = vld [vmem:[%s6250_s24 + $0x90] sm:$0xff]   ;;  %v5947_v30 = vld [vmem:[%s6303_s21 + $0x18] sm:$0xff]  }
  0x37   : > { %5235 = vmatmul.mubr.msk.bf16.gmra.mrb[16].mxu1 %vm885_vm0, %v5887_v32  ;;  %v5949_v32 = vld [vmem:[%s6303_s21 + $0x20] sm:$0xff]  }
  0x38   : > { %5379 = vmatmul.mubr.msk.bf16.gmra.mrb[16].mxu0 %vm885_vm0, %v5889_v33  ;;  %5238 = vmatprep.mubr.msk.bf16.mxu1 %vm885_vm0, %v5891_v34  ;;  %v5950_v33 = vld [vmem:[%s6250_s24 + $0xa0] sm:$0xff]   ;;  %v5952_v34 = vld [vmem:[%s6250_s24 + $0xa8] sm:$0xff]  }
  0x39   : > { %5382 = vmatprep.mubr.msk.bf16.mxu0 %vm885_vm0, %v5892_v35  ;;  %v5954_v35 = vld [vmem:[%s6250_s24 + $0xb0] sm:$0xff]  }
  0x3f   : > { %5239 = vmatmul.mubr.msk.bf16.gmra.mrb[20].mxu1 %vm885_vm0, %v5893_v38  ;;  %v5958_v38 = vld [vmem:[%s6250_s24 + $0xc0] sm:$0xff]  }
  0x40   : > { %5383 = vmatmul.mubr.msk.bf16.gmra.mrb[20].mxu0 %vm885_vm0, %v5894_v39  ;;  %5242 = vmatprep.mubr.msk.bf16.mxu1 %vm885_vm0, %v5895_v40  ;;  %v5959_v39 = vld [vmem:[%s6303_s21 + $0x48] sm:$0xff]  }
  0x41   : > { %5386 = vmatprep.mubr.msk.bf16.mxu0 %vm885_vm0, %v5896_v41  ;;  %v5960_v40 = vld [vmem:[%s6250_s24 + $0xc8] sm:$0xff]   ;;  %v5962_v41 = vld [vmem:[%s6303_s21 + $0x50] sm:$0xff]  }
  0x47   : > { %5243 = vmatmul.mubr.msk.bf16.gmra.mrb[24].mxu1 %vm885_vm0, %v5897_v42  ;;  %v5963_v42 = vld [vmem:[%s6250_s24 + $0xd0] sm:$0xff]  }
  0x48   : > { %5387 = vmatmul.mubr.msk.bf16.gmra.mrb[24].mxu0 %vm885_vm0, %v5898_v43  ;;  %5246 = vmatprep.mubr.msk.bf16.mxu1 %vm885_vm0, %v5900_v44  ;;  %v5964_v43 = vld [vmem:[%s6303_s21 + $0x58] sm:$0xff]  }
  0x49   : > { %5390 = vmatprep.mubr.msk.bf16.mxu0 %vm885_vm0, %v5901_v45  ;;  %v5965_v44 = vld [vmem:[%s6250_s24 + $0xd8] sm:$0xff]   ;;  %v5966_v45 = vld [vmem:[%s6303_s21 + $0x60] sm:$0xff]  }
  0x4f   : > { %5247 = vmatmul.mubr.msk.bf16.gmra.mrb[28].mxu1 %vm885_vm0, %v5902_v47  ;;  %v5968_v47 = vld [vmem:[%s6303_s21 + $0x68] sm:$0xff]  }
  0x50   : > { %5391 = vmatmul.mubr.msk.bf16.gmra.mrb[28].mxu0 %vm885_vm0, %v5903_v48  ;;  %5250 = vmatprep.mubr.msk.bf16.mxu1 %vm885_vm0, %v5904_v49  ;;  %v5969_v48 = vld [vmem:[%s6250_s24 + $0xe8] sm:$0xff]   ;;  %v5970_v49 = vld [vmem:[%s6303_s21 + $0x70] sm:$0xff]  }
  0x51   : > { %5434 = vmatprep.mubr.msk.bf16.mxu0 %vm885_vm0, %v5905_v50  ;;  %v5971_v50 = vld [vmem:[%s6250_s24 + $0xf0] sm:$0xff]  }
  0x57   : > { %5251 = vmatmul.mubr.msk.bf16.gmra.mrb[32].mxu1 %vm885_vm0, %v5906_v51  ;;  %v5972_v51 = vld [vmem:[%s6303_s21 + $0x78] sm:$0xff]  }
  0x58   : > { %5435 = vmatmul.mubr.msk.bf16.vlgmr.msra.gmra.mrb[0].mxu0 %vm885_vm0, %v5908_v52  ;;  %5254 = vmatprep.mubr.msk.bf16.mxu1 %vm885_vm0, %v5910_v53  ;;  %v5973_v52 = vld [vmem:[%s6250_s24 + $0xf8] sm:$0xff]   ;;  %v5974_v53 = vld [vmem:[%s6303_s21 + $0x80] sm:$0xff]  }
  0x59   : > { %5499 = vmatpush3.bf16.msra.mxu0 %v5909_v37  ;;  %5438 = vmatprep.mubr.msk.bf16.mxu0 %vm885_vm0, %v5911_v54  ;;  %v5957_v37 = vld [vmem:[%s6303_s21 + $0x40] sm:$0xff]  }
  0x5a   : > { %5500 = vmatprep.subr.bf16.mxu0 %v5927_v55  ;;  %v5975_v54 = vld [vmem:[%s6351_s29] sm:$0xff]  }
  0x5d   : > { %5501 = vmatpush3.bf16.msra.mxu0 %v5927_v55  ;;  %v5976_v55 = vld [vmem:[%s6303_s21 + $0x88] sm:$0xff]  }
  0x5e   : > { %5502 = vmatprep.subr.bf16.mxu0 %v5944_v58 }
  0x5f   : > { %5255 = vmatmul.mubr.msk.bf16.gmra.mrb[36].mxu1 %vm885_vm0, %v5912_v56  ;;  %v5977_v56 = vld [vmem:[%s6351_s29 + $0x8] sm:$0xff]  }
  0x60   : > { %5439 = vmatmul.mubr.msk.bf16.gmra.mrb[4].mxu0 %vm885_vm0, %v5913_v57  ;;  %5258 = vmatprep.mubr.msk.bf16.mxu1 %vm885_vm0, %v5914_v59  ;;  %v5978_v57 = vld [vmem:[%s6303_s21 + $0x90] sm:$0xff]   ;;  %v5980_v59 = vld [vmem:[%s6303_s21 + $0x98] sm:$0xff]  }
  0x61   : > { %5442 = vmatprep.mubr.msk.bf16.mxu0 %vm885_vm0, %v5915_v60  ;;  %5503 = vmatpush3.bf16.msra.mxu0 %v5944_v58  ;;  %v5979_v58 = vld [vmem:[%s6351_s29 + $0x10] sm:$0xff]   ;;  %v5981_v60 = vld [vmem:[%s6351_s29 + $0x18] sm:$0xff]  }
  0x62   : > { %5504 = vmatprep.subr.bf16.mxu0 %v5961_v8 }
  0x65   : > { %5505 = vmatpush3.bf16.msra.mxu0 %v5961_v8  ;;  %v5989_v8 = vld [vmem:[%s6351_s29 + $0x38] sm:$0xff]  }
  0x67   : > { %5259 = vmatmul.mubr.msk.bf16.gmra.mrb[40].mxu1 %vm885_vm0, %v5916_v61  ;;  %v5982_v61 = vld [vmem:[%s6303_s21 + $0xa0] sm:$0xff]  }
  0x68   : > { %5443 = vmatmul.mubr.msk.bf16.gmra.mrb[8].mxu0 %vm885_vm0, %v5917_v62  ;;  %5262 = vmatprep.mubr.msk.bf16.mxu1 %vm885_vm0, %v5918_v63  ;;  %v5983_v62 = vld [vmem:[%s6351_s29 + $0x20] sm:$0xff]   ;;  %v5984_v63 = vld [vmem:[%s6303_s21 + $0xa8] sm:$0xff]  }
  0x69   : > { %5446 = vmatprep.mubr.msk.bf16.mxu0 %vm885_vm0, %v5919_v0  ;;  %v5985_v0 = vld [vmem:[%s6351_s29 + $0x28] sm:$0xff]  }
  0x6f   : > { %5263 = vmatmul.mubr.msk.bf16.gmra.mrb[44].mxu1 %vm885_vm0, %v5920_v2  ;;  %v5986_v2 = vld [vmem:[%s6303_s21 + $0xb0] sm:$0xff]  }
  0x70   : > { %5447 = vmatmul.mubr.msk.bf16.gmra.mrb[12].mxu0 %vm885_vm0, %v5921_v4  ;;  %5266 = vmatprep.mubr.msk.bf16.mxu1 %vm885_vm0, %v5922_v6  ;;  %v5987_v4 = vld [vmem:[%s6351_s29 + $0x30] sm:$0xff]   ;;  %v5988_v6 = vld [vmem:[%s6303_s21 + $0xb8] sm:$0xff]  }
  0x71   : > { %5450 = vmatprep.mubr.msk.bf16.mxu0 %vm885_vm0, %v5923_v9  ;;  %v5990_v9 = vld [vmem:[%s6303_s21 + $0xc0] sm:$0xff]  }
  0x77   : > { %5267 = vmatmul.mubr.msk.bf16.gmra.mrb[48].mxu1 %vm885_vm0, %v5924_v10  ;;  %v5991_v10 = vld [vmem:[%s6351_s29 + $0x40] sm:$0xff]  }
  0x78   : > { %5451 = vmatmul.mubr.msk.bf16.gmra.mrb[16].mxu0 %vm885_vm0, %v5926_v11  ;;  %5270 = vmatprep.mubr.msk.bf16.mxu1 %vm885_vm0, %v5928_v12  ;;  %v5992_v11 = vld [vmem:[%s6303_s21 + $0xc8] sm:$0xff]  }
  0x79   : > { %5454 = vmatprep.mubr.msk.bf16.mxu0 %vm885_vm0, %v5929_v13  ;;  %v5993_v12 = vld [vmem:[%s6351_s29 + $0x48] sm:$0xff]   ;;  %v5994_v13 = vld [vmem:[%s6303_s21 + $0xd0] sm:$0xff]  }
  0x7f   : > { %5271 = vmatmul.mubr.msk.bf16.gmra.mrb[52].mxu1 %vm885_vm0, %v5930_v14  ;;  %v5995_v14 = vld [vmem:[%s6351_s29 + $0x50] sm:$0xff]  }
  0x80   : > { %5455 = vmatmul.mubr.msk.bf16.gmra.mrb[20].mxu0 %vm885_vm0, %v5931_v15  ;;  %5274 = vmatprep.mubr.msk.bf16.mxu1 %vm885_vm0, %v5932_v16  ;;  %v5996_v15 = vld [vmem:[%s6303_s21 + $0xd8] sm:$0xff]  }
  0x81   : > { %5458 = vmatprep.mubr.msk.bf16.mxu0 %vm885_vm0, %v5933_v17  ;;  %v5997_v16 = vld [vmem:[%s6351_s29 + $0x58] sm:$0xff]   ;;  %v5998_v17 = vld [vmem:[%s6303_s21 + $0xe0] sm:$0xff]  }
  0x87   : > { %5275 = vmatmul.mubr.msk.bf16.gmra.mrb[56].mxu1 %vm885_vm0, %v5934_v18  ;;  %v5999_v18 = vld [vmem:[%s6351_s29 + $0x60] sm:$0xff]  }
  0x88   : > { %5459 = vmatmul.mubr.msk.bf16.gmra.mrb[24].mxu0 %vm885_vm0, %v5935_v19  ;;  %5278 = vmatprep.mubr.msk.bf16.mxu1 %vm885_vm0, %v5936_v20  ;;  %v6000_v19 = vld [vmem:[%s6303_s21 + $0xe8] sm:$0xff]  }
  0x89   : > { %5462 = vmatprep.mubr.msk.bf16.mxu0 %vm885_vm0, %v5937_v21  ;;  %v6001_v20 = vld [vmem:[%s6351_s29 + $0x68] sm:$0xff]   ;;  %v6002_v21 = vld [vmem:[%s6303_s21 + $0xf0] sm:$0xff]  }
  0x8f   : > { %5279 = vmatmul.mubr.msk.bf16.gmra.mrb[60].mxu1 %vm885_vm0, %v5938_v22  ;;  %v6003_v22 = vld [vmem:[%s6351_s29 + $0x70] sm:$0xff]  }
  0x90   : > { %5463 = vmatmul.mubr.msk.bf16.gmra.mrb[28].mxu0 %vm885_vm0, %v5939_v23  ;;  %5290 = vmatprep.mubr.msk.bf16.mxu1 %vm885_vm0, %v5940_v24  ;;  %v6004_v23 = vld [vmem:[%s6303_s21 + $0xf8] sm:$0xff]  }
  0x91   : > { %5466 = vmatprep.mubr.msk.bf16.mxu0 %vm885_vm0, %v5941_v25  ;;  %v6005_v24 = vld [vmem:[%s6351_s29 + $0x78] sm:$0xff]   ;;  %v6006_v25 = vld [vmem:[%s6178_s22 + $0x80] sm:$0xff]  }
  0x97   : > { %5291 = vmatmul.mubr.msk.bf16.vlgmr.msra.gmra.mrb[0].mxu1 %vm885_vm0, %v5942_v26  ;;  %v6007_v26 = vld [vmem:[%s6351_s29 + $0x80] sm:$0xff]  }
  0x98   : > { %5467 = vmatmul.mubr.msk.bf16.gmra.mrb[32].mxu0 %vm885_vm0, %v5943_v27  ;;  %5574 = vmatpush3.bf16.msra.mxu1 %v6142_v1  ;;  %v5951_v1 = vld [vmem:[%s6303_s21 + $0x28] sm:$0xff]  }
  0x99   : > { %5294 = vmatprep.mubr.msk.bf16.mxu1 %vm885_vm0, %v5945_v28  ;;  %5470 = vmatprep.mubr.msk.bf16.mxu0 %vm885_vm0, %v5946_v29  ;;  %v6008_v27 = vld [vmem:[%s6178_s22 + $0x88] sm:$0xff]   ;;  %v6010_v29 = vld [vmem:[%s6178_s22 + $0x90] sm:$0xff]  }
  0x9a   : > { %5571 = vmatprep.subr.bf16.mxu1 %v6151_v3  ;;  %v6009_v28 = vld [vmem:[%s6351_s29 + $0x88] sm:$0xff]  }
  0x9c   : > { %5575 = vmatpush3.bf16.msra.mxu1 %v6151_v3  ;;  %v5953_v3 = vld [vmem:[%s6303_s21 + $0x30] sm:$0xff]  }
  0x9d   : > { %5572 = vmatprep.subr.bf16.mxu1 %v6161_v5 }
  0x9f   : > { %5295 = vmatmul.mubr.msk.bf16.gmra.mrb[4].mxu1 %vm885_vm0, %v5947_v30  ;;  %v6011_v30 = vld [vmem:[%s6351_s29 + $0x90] sm:$0xff]  }
  0xa0   : > { %5471 = vmatmul.mubr.msk.bf16.gmra.mrb[36].mxu0 %vm885_vm0, %v5948_v31  ;;  %5298 = vmatprep.mubr.msk.bf16.mxu1 %vm885_vm0, %v5949_v32  ;;  %v6012_v31 = vld [vmem:[%s6178_s22 + $0x98] sm:$0xff]  }
  0xa1   : > { %5474 = vmatprep.mubr.msk.bf16.mxu0 %vm885_vm0, %v5950_v33  ;;  %5576 = vmatpush3.bf16.msra.mxu1 %v6161_v5  ;;  %v5955_v5 = vld [vmem:[%s6303_s21 + $0x38] sm:$0xff]   ;;  %v6014_v33 = vld [vmem:[%s6178_s22 + $0xa0] sm:$0xff]  }
  0xa2   : > { %5573 = vmatprep.subr.bf16.mxu1 %v6183_v7  ;;  %v5956_v7 = vld [vmem:[%s6250_s24 + $0xb8] sm:$0xff]  }
  0xa3   : > { %v6013_v32 = vld [vmem:[%s6351_s29 + $0x98] sm:$0xff]  }
  0xa5   : > { %5577 = vmatpush3.bf16.msra.mxu1 %v6038_v36  ;;  %v6019_v36 = vld [vmem:[%s6351_s29 + $0xb0] sm:$0xff]  }
  0xa7   : > { %5299 = vmatmul.mubr.msk.bf16.gmra.mrb[8].mxu1 %vm885_vm0, %v5951_v1  ;;  %v6015_v1 = vld [vmem:[%s6351_s29 + $0xa0] sm:$0xff]  }
  0xa8   : > { %5475 = vmatmul.mubr.msk.bf16.gmra.mrb[40].mxu0 %vm885_vm0, %v5952_v34  ;;  %5302 = vmatprep.mubr.msk.bf16.mxu1 %vm885_vm0, %v5953_v3  ;;  %v6016_v34 = vld [vmem:[%s6178_s22 + $0xa8] sm:$0xff]  }
  0xa9   : > { %5478 = vmatprep.mubr.msk.bf16.mxu0 %vm885_vm0, %v5954_v35  ;;  %v6017_v3 = vld [vmem:[%s6351_s29 + $0xa8] sm:$0xff]   ;;  %v6018_v35 = vld [vmem:[%s6178_s22 + $0xb0] sm:$0xff]  }
  0xaf   : > { %5303 = vmatmul.mubr.msk.bf16.gmra.mrb[12].mxu1 %vm885_vm0, %v5955_v5  ;;  %v6020_v5 = vld [vmem:[%s6178_s22 + $0xb8] sm:$0xff]  }
  0xb0   : > { %5479 = vmatmul.mubr.msk.bf16.gmra.mrb[44].mxu0 %vm885_vm0, %v5956_v7  ;;  %5306 = vmatprep.mubr.msk.bf16.mxu1 %vm885_vm0, %v5957_v37  ;;  %v6021_v7 = vld [vmem:[%s6351_s29 + $0xb8] sm:$0xff]   ;;  %v6022_v37 = vld [vmem:[%s6178_s22 + $0xc0] sm:$0xff]  }
  0xb1   : > { %5482 = vmatprep.mubr.msk.bf16.mxu0 %vm885_vm0, %v5958_v38  ;;  %v6023_v38 = vld [vmem:[%s6351_s29 + $0xc0] sm:$0xff]  }
  0xb7   : > { %5307 = vmatmul.mubr.msk.bf16.gmra.mrb[16].mxu1 %vm885_vm0, %v5959_v39  ;;  %v6024_v39 = vld [vmem:[%s6178_s22 + $0xc8] sm:$0xff]  }
  0xb8   : > { %5483 = vmatmul.mubr.msk.bf16.gmra.mrb[48].mxu0 %vm885_vm0, %v5960_v40  ;;  %5310 = vmatprep.mubr.msk.bf16.mxu1 %vm885_vm0, %v5962_v41  ;;  %v6025_v40 = vld [vmem:[%s6351_s29 + $0xc8] sm:$0xff]   ;;  %v6026_v41 = vld [vmem:[%s6178_s22 + $0xd0] sm:$0xff]  }
  0xb9   : > { %5486 = vmatprep.mubr.msk.bf16.mxu0 %vm885_vm0, %v5963_v42  ;;  %v6027_v42 = vld [vmem:[%s6351_s29 + $0xd0] sm:$0xff]  }
  0xbf   : > { %5311 = vmatmul.mubr.msk.bf16.gmra.mrb[20].mxu1 %vm885_vm0, %v5964_v43  ;;  %v6028_v43 = vld [vmem:[%s6178_s22 + $0xd8] sm:$0xff]  }
  0xc0   : > { %5487 = vmatmul.mubr.msk.bf16.gmra.mrb[52].mxu0 %vm885_vm0, %v5965_v44  ;;  %5314 = vmatprep.mubr.msk.bf16.mxu1 %vm885_vm0, %v5966_v45  ;;  %v6029_v44 = vld [vmem:[%s6351_s29 + $0xd8] sm:$0xff]   ;;  %v6030_v45 = vld [vmem:[%s6178_s22 + $0xe0] sm:$0xff]  }
  0xc1   : > { %5490 = vmatprep.mubr.msk.bf16.mxu0 %vm885_vm0, %v5967_v46  ;;  %v6031_v46 = vld [vmem:[%s6351_s29 + $0xe0] sm:$0xff]  }
  0xc7   : > { %5315 = vmatmul.mubr.msk.bf16.gmra.mrb[24].mxu1 %vm885_vm0, %v5968_v47  ;;  %v6032_v47 = vld [vmem:[%s6178_s22 + $0xe8] sm:$0xff]  }
  0xc8   : > { %5491 = vmatmul.mubr.msk.bf16.gmra.mrb[56].mxu0 %vm885_vm0, %v5969_v48  ;;  %5318 = vmatprep.mubr.msk.bf16.mxu1 %vm885_vm0, %v5970_v49  ;;  %v6033_v48 = vld [vmem:[%s6351_s29 + $0xe8] sm:$0xff]   ;;  %v6034_v49 = vld [vmem:[%s6178_s22 + $0xf0] sm:$0xff]  }
  0xc9   : > { %5494 = vmatprep.mubr.msk.bf16.mxu0 %vm885_vm0, %v5971_v50  ;;  %v6035_v50 = vld [vmem:[%s6351_s29 + $0xf0] sm:$0xff]  }
  0xcf   : > { %5319 = vmatmul.mubr.msk.bf16.gmra.mrb[28].mxu1 %vm885_vm0, %v5972_v51  ;;  %v6036_v51 = vld [vmem:[%s6178_s22 + $0xf8] sm:$0xff]  }
  0xd0   : > { %5495 = vmatmul.mubr.msk.bf16.gmra.mrb[60].mxu0 %vm885_vm0, %v5973_v52  ;;  %5322 = vmatprep.mubr.msk.bf16.mxu1 %vm885_vm0, %v5974_v53  ;;  %v6037_v52 = vld [vmem:[%s6351_s29 + $0xf8] sm:$0xff]  }
  0xd1   : > { %5506 = vmatprep.mubr.msk.bf16.mxu0 %vm885_vm0, %v5975_v54 }
  0xd7   : > { %5323 = vmatmul.mubr.msk.bf16.gmra.mrb[32].mxu1 %vm885_vm0, %v5976_v55 }
  0xd8   : > { %5507 = vmatmul.mubr.msk.bf16.vlgmr.msra.gmra.mrb[0].mxu0 %vm885_vm0, %v5977_v56  ;;  %5326 = vmatprep.mubr.msk.bf16.mxu1 %vm885_vm0, %v5978_v57 }
  0xd9   : > { %5510 = vmatprep.mubr.msk.bf16.mxu0 %vm885_vm0, %v5979_v58 }
  0xdf   : > { %5327 = vmatmul.mubr.msk.bf16.gmra.mrb[36].mxu1 %vm885_vm0, %v5980_v59 }
  0xe0   : > { %5511 = vmatmul.mubr.msk.bf16.gmra.mrb[4].mxu0 %vm885_vm0, %v5981_v60  ;;  %5330 = vmatprep.mubr.msk.bf16.mxu1 %vm885_vm0, %v5982_v61 }
  0xe1   : > { %5514 = vmatprep.mubr.msk.bf16.mxu0 %vm885_vm0, %v5983_v62 }
  0xe7   : > { %5331 = vmatmul.mubr.msk.bf16.gmra.mrb[40].mxu1 %vm885_vm0, %v5984_v63 }
  0xe8   : > { %5515 = vmatmul.mubr.msk.bf16.gmra.mrb[8].mxu0 %vm885_vm0, %v5985_v0  ;;  %5334 = vmatprep.mubr.msk.bf16.mxu1 %vm885_vm0, %v5986_v2 }
  0xe9   : > { %5518 = vmatprep.mubr.msk.bf16.mxu0 %vm885_vm0, %v5987_v4 }
  0xef   : > { %5335 = vmatmul.mubr.msk.bf16.gmra.mrb[44].mxu1 %vm885_vm0, %v5988_v6 }
  0xf0   : > { %5519 = vmatmul.mubr.msk.bf16.gmra.mrb[12].mxu0 %vm885_vm0, %v5989_v8  ;;  %5338 = vmatprep.mubr.msk.bf16.mxu1 %vm885_vm0, %v5990_v9 }
  0xf1   : > { %5522 = vmatprep.mubr.msk.bf16.mxu0 %vm885_vm0, %v5991_v10 }
  0xf7   : > { %5339 = vmatmul.mubr.msk.bf16.gmra.mrb[48].mxu1 %vm885_vm0, %v5992_v11 }
  0xf8   : > { %5523 = vmatmul.mubr.msk.bf16.gmra.mrb[16].mxu0 %vm885_vm0, %v5993_v12  ;;  %5342 = vmatprep.mubr.msk.bf16.mxu1 %vm885_vm0, %v5994_v13 }
  0xf9   : > { %5526 = vmatprep.mubr.msk.bf16.mxu0 %vm885_vm0, %v5995_v14 }
  0xff   : > { %5343 = vmatmul.mubr.msk.bf16.gmra.mrb[52].mxu1 %vm885_vm0, %v5996_v15 }
 0x100   : > { %5527 = vmatmul.mubr.msk.bf16.gmra.mrb[20].mxu0 %vm885_vm0, %v5997_v16  ;;  %5346 = vmatprep.mubr.msk.bf16.mxu1 %vm885_vm0, %v5998_v17 }
 0x101   : > { %5530 = vmatprep.mubr.msk.bf16.mxu0 %vm885_vm0, %v5999_v18 }
 0x107   : > { %5347 = vmatmul.mubr.msk.bf16.gmra.mrb[56].mxu1 %vm885_vm0, %v6000_v19 }
 0x108   : > { %5531 = vmatmul.mubr.msk.bf16.gmra.mrb[24].mxu0 %vm885_vm0, %v6001_v20  ;;  %5350 = vmatprep.mubr.msk.bf16.mxu1 %vm885_vm0, %v6002_v21 }
 0x109   : > { %5534 = vmatprep.mubr.msk.bf16.mxu0 %vm885_vm0, %v6003_v22 }
 0x10f   : > { %5351 = vmatmul.mubr.msk.bf16.gmra.mrb[60].mxu1 %vm885_vm0, %v6004_v23 }
 0x110   : > { %5535 = vmatmul.mubr.msk.bf16.gmra.mrb[28].mxu0 %vm885_vm0, %v6005_v24  ;;  %5394 = vmatprep.mubr.msk.bf16.mxu1 %vm885_vm0, %v6006_v25 }
 0x111   : > { %5538 = vmatprep.mubr.msk.bf16.mxu0 %vm885_vm0, %v6007_v26 }
 0x117   : > { %5395 = vmatmul.mubr.msk.bf16.vlgmr.msra.gmra.mrb[32].mxu1 %vm885_vm0, %v6008_v27 }
 0x118   : > { %5539 = vmatmul.mubr.msk.bf16.gmra.mrb[32].mxu0 %vm885_vm0, %v6009_v28  ;;  %5398 = vmatprep.mubr.msk.bf16.mxu1 %vm885_vm0, %v6010_v29 }
 0x119   : > { %5542 = vmatprep.mubr.msk.bf16.mxu0 %vm885_vm0, %v6011_v30 }
 0x11f   : > { %5399 = vmatmul.mubr.msk.bf16.gmra.mrb[36].mxu1 %vm885_vm0, %v6012_v31 }
 0x120   : > { %5543 = vmatmul.mubr.msk.bf16.gmra.mrb[36].mxu0 %vm885_vm0, %v6013_v32  ;;  %5402 = vmatprep.mubr.msk.bf16.mxu1 %vm885_vm0, %v6014_v33 }
 0x121   : > { %5546 = vmatprep.mubr.msk.bf16.mxu0 %vm885_vm0, %v6015_v1 }
 0x127   : > { %5403 = vmatmul.mubr.msk.bf16.gmra.mrb[40].mxu1 %vm885_vm0, %v6016_v34 }
 0x128   : > { %5547 = vmatmul.mubr.msk.bf16.gmra.mrb[40].mxu0 %vm885_vm0, %v6017_v3  ;;  %5406 = vmatprep.mubr.msk.bf16.mxu1 %vm885_vm0, %v6018_v35 }
 0x129   : > { %5550 = vmatprep.mubr.msk.bf16.mxu0 %vm885_vm0, %v6019_v36 }
 0x12f   : > { %5407 = vmatmul.mubr.msk.bf16.gmra.mrb[44].mxu1 %vm885_vm0, %v6020_v5 }
 0x130   : > { %5551 = vmatmul.mubr.msk.bf16.gmra.mrb[44].mxu0 %vm885_vm0, %v6021_v7  ;;  %5410 = vmatprep.mubr.msk.bf16.mxu1 %vm885_vm0, %v6022_v37 }
 0x131   : > { %5554 = vmatprep.mubr.msk.bf16.mxu0 %vm885_vm0, %v6023_v38 }
 0x137   : > { %5411 = vmatmul.mubr.msk.bf16.gmra.mrb[48].mxu1 %vm885_vm0, %v6024_v39 }
 0x138   : > { %5555 = vmatmul.mubr.msk.bf16.gmra.mrb[48].mxu0 %vm885_vm0, %v6025_v40  ;;  %5414 = vmatprep.mubr.msk.bf16.mxu1 %vm885_vm0, %v6026_v41 }
 0x139   : > { %5558 = vmatprep.mubr.msk.bf16.mxu0 %vm885_vm0, %v6027_v42 }
 0x13f   : > { %5415 = vmatmul.mubr.msk.bf16.gmra.mrb[52].mxu1 %vm885_vm0, %v6028_v43 }
 0x140   : > { %5559 = vmatmul.mubr.msk.bf16.gmra.mrb[52].mxu0 %vm885_vm0, %v6029_v44  ;;  %5418 = vmatprep.mubr.msk.bf16.mxu1 %vm885_vm0, %v6030_v45 }
 0x141   : > { %5562 = vmatprep.mubr.msk.bf16.mxu0 %vm885_vm0, %v6031_v46 }
 0x147   : > { %5419 = vmatmul.mubr.msk.bf16.gmra.mrb[56].mxu1 %vm885_vm0, %v6032_v47 }
 0x148   : > { %5563 = vmatmul.mubr.msk.bf16.gmra.mrb[56].mxu0 %vm885_vm0, %v6033_v48  ;;  %5422 = vmatprep.mubr.msk.bf16.mxu1 %vm885_vm0, %v6034_v49 }
 0x149   : > { %5566 = vmatprep.mubr.msk.bf16.mxu0 %vm885_vm0, %v6035_v50 }
 0x14f   : > { %5423 = vmatmul.mubr.msk.bf16.gmra.mrb[60].mxu1 %vm885_vm0, %v6036_v51 }
 0x150   : > { %5567 = vmatmul.mubr.msk.bf16.gmra.mrb[60].mxu0 %vm885_vm0, %v6037_v52 }
 0x16a   : > { %v5292_v53 = vpop.f32.mrb[0].mxu1 }
 0x16b   : > { %v1585_v54 = vpop.f32.mrb[1].mxu1 }
 0x16c   : > { %v5293_v55 = vpop.f32.mrb[2].mxu1 }
 0x16d   : > { %v1588_v56 = vpop.f32.mrb[3].mxu1 }
 0x172   : > { %v5296_v57 = vpop.f32.mrb[4].mxu1 }
 0x173   : > { %v1601_v58 = vpop.f32.mrb[5].mxu1 }
 0x174   : > { %v5297_v59 = vpop.f32.mrb[6].mxu1 }
 0x175   : > { %v1604_v60 = vpop.f32.mrb[7].mxu1 }
 0x17a   : > { %v6574_v61 = vpop.f32.mrb[8].mxu1 }
 0x17b   : > { %v6576_v62 = vpop.f32.mrb[9].mxu1 }
 0x17c   : > { %v6578_v63 = vpop.f32.mrb[10].mxu1 }
 0x17d   : > { %v6580_v0 = vpop.f32.mrb[11].mxu1 }
 0x182   : > { %v6582_v2 = vpop.f32.mrb[12].mxu1 }
 0x183   : > { %v6584_v4 = vpop.f32.mrb[13].mxu1 }
 0x184   : > { %v6586_v6 = vpop.f32.mrb[14].mxu1 }
 0x185   : > { %v6588_v8 = vpop.f32.mrb[15].mxu1 }
 0x18a   : > { %v6590_v9 = vpop.f32.mrb[16].mxu1 }
 0x18b   : > { %v6592_v10 = vpop.f32.mrb[17].mxu1 }
 0x18c   : > { %v6594_v11 = vpop.f32.mrb[18].mxu1 }
 0x18d   : > { %v6596_v12 = vpop.f32.mrb[19].mxu1 }
 0x192   : > { %v6598_v13 = vpop.f32.mrb[20].mxu1 }
 0x193   : > { %v6600_v14 = vpop.f32.mrb[21].mxu1 }
 0x194   : > { %v6602_v15 = vpop.f32.mrb[22].mxu1 }
 0x195   : > { %v6604_v16 = vpop.f32.mrb[23].mxu1 }
 0x19a   : > { %v6606_v17 = vpop.f32.mrb[24].mxu1 }
 0x19b   : > { %v6608_v18 = vpop.f32.mrb[25].mxu1 }
 0x19c   : > { %v6610_v19 = vpop.f32.mrb[26].mxu1 }
 0x19d   : > { %v6612_v20 = vpop.f32.mrb[27].mxu1 }
 0x1a2   : > { %v6614_v21 = vpop.f32.mrb[28].mxu1 }
 0x1a3   : > { %v6616_v22 = vpop.f32.mrb[29].mxu1 }
 0x1a4   : > { %v6618_v23 = vpop.f32.mrb[30].mxu1 }
 0x1a5   : > { %v6620_v24 = vpop.f32.mrb[31].mxu1 }
 0x1ab   : > { %v5508_v25 = vpop.f32.mrb[0].mxu0 }
 0x1ac   : > { %v5578_v26 = vadd.f32 %v5508_v25, %v5292_v53  ;;  %v3636_v27 = vpop.f32.mrb[1].mxu0 }
 0x1ad   : > { %v5579_v28 = vadd.f32 %v3636_v27, %v1585_v54  ;;  %v5509_v29 = vpop.f32.mrb[2].mxu0 }
 0x1ae   : > { %v3957_v30 = vmax.f32 %v5578_v26, 0.0  ;;  %v5580_v31 = vadd.f32 %v5509_v29, %v5293_v55  ;;  %v3639_v32 = vpop.f32.mrb[3].mxu0 }
 0x1af   : > { %v3955_v33 = vmax.f32 %v5579_v28, 0.0  ;;  %v5581_v1 = vadd.f32 %v3639_v32, %v1588_v56 }
 0x1b0   : > { %v4968_v34 = vpack.c.bf16 %v3957_v30, %v3957_v30  ;;  %v3958_v3 = vmax.f32 %v5580_v31, 0.0 }
 0x1b1   : > { %v4966_v35 = vpack.c.bf16 %v3955_v33, %v3955_v33  ;;  %v3956_v36 = vmax.f32 %v5581_v1, 0.0 }
 0x1b2   : > { %4278 = vst.msk [vmem:[%s6626_s12 + $0x8] sm:$0xf] %vm4275_vm1, %v4968_v34  ;;  %v4969_v5 = vpack.c.bf16 %v3958_v3, %v3958_v3 }
 0x1b3   : > { %4276 = vst.msk [vmem:[%s6626_s12] sm:$0xf] %vm4275_vm1, %v4966_v35  ;;  %v4967_v7 = vpack.c.bf16 %v3956_v36, %v3956_v36  ;;  %v5512_v37 = vpop.f32.mrb[4].mxu0 }
 0x1b4   : > { %4279 = vst.msk [vmem:[%s6626_s12 + $0xc] sm:$0xf] %vm4275_vm1, %v4969_v5  ;;  %v5582_v38 = vadd.f32 %v5512_v37, %v5296_v57  ;;  %v3652_v39 = vpop.f32.mrb[5].mxu0 }
 0x1b5   : > { %4277 = vst.msk [vmem:[%s6626_s12 + $0x4] sm:$0xf] %vm4275_vm1, %v4967_v7  ;;  %v5583_v40 = vadd.f32 %v3652_v39, %v1601_v58  ;;  %v5513_v41 = vpop.f32.mrb[6].mxu0 }
 0x1b6   : > { %v3961_v42 = vmax.f32 %v5582_v38, 0.0  ;;  %v5584_v43 = vadd.f32 %v5513_v41, %v5297_v59  ;;  %v3655_v44 = vpop.f32.mrb[7].mxu0 }
 0x1b7   : > { %v3959_v45 = vmax.f32 %v5583_v40, 0.0  ;;  %v5585_v46 = vadd.f32 %v3655_v44, %v1604_v60 }
 0x1b8   : > { %v4972_v47 = vpack.c.bf16 %v3961_v42, %v3961_v42  ;;  %v3962_v48 = vmax.f32 %v5584_v43, 0.0 }
 0x1b9   : > { %v4970_v49 = vpack.c.bf16 %v3959_v45, %v3959_v45  ;;  %v3960_v50 = vmax.f32 %v5585_v46, 0.0 }
 0x1ba   : > { %4282 = vst.msk [vmem:[%s6626_s12 + $0x18] sm:$0xf] %vm4275_vm1, %v4972_v47  ;;  %v4973_v51 = vpack.c.bf16 %v3962_v48, %v3962_v48 }
 0x1bb   : > { %4280 = vst.msk [vmem:[%s6626_s12 + $0x10] sm:$0xf] %vm4275_vm1, %v4970_v49  ;;  %v4971_v52 = vpack.c.bf16 %v3960_v50, %v3960_v50  ;;  %v5516_v53 = vpop.f32.mrb[8].mxu0 }
 0x1bc   : > { %4283 = vst.msk [vmem:[%s6626_s12 + $0x1c] sm:$0xf] %vm4275_vm1, %v4973_v51  ;;  %v5586_v54 = vadd.f32 %v5516_v53, %v6574_v61  ;;  %v3668_v55 = vpop.f32.mrb[9].mxu0 }
 0x1bd   : > { %4281 = vst.msk [vmem:[%s6626_s12 + $0x14] sm:$0xf] %vm4275_vm1, %v4971_v52  ;;  %v5587_v56 = vadd.f32 %v3668_v55, %v6576_v62  ;;  %v5517_v57 = vpop.f32.mrb[10].mxu0 }
 0x1be   : > { %v3965_v58 = vmax.f32 %v5586_v54, 0.0  ;;  %v5588_v59 = vadd.f32 %v5517_v57, %v6578_v63  ;;  %v3671_v60 = vpop.f32.mrb[11].mxu0 }
 0x1bf   : > { %v3963_v25 = vmax.f32 %v5587_v56, 0.0  ;;  %v5589_v26 = vadd.f32 %v3671_v60, %v6580_v0 }
 0x1c0   : > { %v4976_v27 = vpack.c.bf16 %v3965_v58, %v3965_v58  ;;  %v3966_v28 = vmax.f32 %v5588_v59, 0.0 }
 0x1c1   : > { %v4974_v29 = vpack.c.bf16 %v3963_v25, %v3963_v25  ;;  %v3964_v61 = vmax.f32 %v5589_v26, 0.0 }
 0x1c2   : > { %4286 = vst.msk [vmem:[%s6626_s12 + $0x28] sm:$0xf] %vm4275_vm1, %v4976_v27  ;;  %v4977_v30 = vpack.c.bf16 %v3966_v28, %v3966_v28 }
 0x1c3   : > { %4284 = vst.msk [vmem:[%s6626_s12 + $0x20] sm:$0xf] %vm4275_vm1, %v4974_v29  ;;  %v4975_v62 = vpack.c.bf16 %v3964_v61, %v3964_v61  ;;  %v5520_v31 = vpop.f32.mrb[12].mxu0 }
 0x1c4   : > { %4287 = vst.msk [vmem:[%s6626_s12 + $0x2c] sm:$0xf] %vm4275_vm1, %v4977_v30  ;;  %v5590_v63 = vadd.f32 %v5520_v31, %v6582_v2  ;;  %v3684_v32 = vpop.f32.mrb[13].mxu0 }
 0x1c5   : > { %4285 = vst.msk [vmem:[%s6626_s12 + $0x24] sm:$0xf] %vm4275_vm1, %v4975_v62  ;;  %v5591_v0 = vadd.f32 %v3684_v32, %v6584_v4  ;;  %v5521_v33 = vpop.f32.mrb[14].mxu0 }
 0x1c6   : > { %v3969_v1 = vmax.f32 %v5590_v63, 0.0  ;;  %v5592_v34 = vadd.f32 %v5521_v33, %v6586_v6  ;;  %v3687_v3 = vpop.f32.mrb[15].mxu0 }
 0x1c7   : > { %v3967_v35 = vmax.f32 %v5591_v0, 0.0  ;;  %v5593_v36 = vadd.f32 %v3687_v3, %v6588_v8 }
 0x1c8   : > { %v4980_v5 = vpack.c.bf16 %v3969_v1, %v3969_v1  ;;  %v3970_v7 = vmax.f32 %v5592_v34, 0.0 }
 0x1c9   : > { %v4978_v37 = vpack.c.bf16 %v3967_v35, %v3967_v35  ;;  %v3968_v2 = vmax.f32 %v5593_v36, 0.0 }
 0x1ca   : > { %4290 = vst.msk [vmem:[%s6626_s12 + $0x38] sm:$0xf] %vm4275_vm1, %v4980_v5  ;;  %v4981_v38 = vpack.c.bf16 %v3970_v7, %v3970_v7 }
 0x1cb   : > { %4288 = vst.msk [vmem:[%s6626_s12 + $0x30] sm:$0xf] %vm4275_vm1, %v4978_v37  ;;  %v4979_v4 = vpack.c.bf16 %v3968_v2, %v3968_v2  ;;  %v5524_v39 = vpop.f32.mrb[16].mxu0 }
 0x1cc   : > { %4291 = vst.msk [vmem:[%s6626_s12 + $0x3c] sm:$0xf] %vm4275_vm1, %v4981_v38  ;;  %v5594_v6 = vadd.f32 %v5524_v39, %v6590_v9  ;;  %v3700_v40 = vpop.f32.mrb[17].mxu0 }
 0x1cd   : > { %4289 = vst.msk [vmem:[%s6626_s12 + $0x34] sm:$0xf] %vm4275_vm1, %v4979_v4  ;;  %v5595_v8 = vadd.f32 %v3700_v40, %v6592_v10  ;;  %v5525_v41 = vpop.f32.mrb[18].mxu0 }
 0x1ce   : > { %v3973_v42 = vmax.f32 %v5594_v6, 0.0  ;;  %v5596_v43 = vadd.f32 %v5525_v41, %v6594_v11  ;;  %v3703_v44 = vpop.f32.mrb[19].mxu0 }
 0x1cf   : > { %v3971_v45 = vmax.f32 %v5595_v8, 0.0  ;;  %v5597_v46 = vadd.f32 %v3703_v44, %v6596_v12 }
 0x1d0   : > { %v4984_v47 = vpack.c.bf16 %v3973_v42, %v3973_v42  ;;  %v3974_v48 = vmax.f32 %v5596_v43, 0.0 }
 0x1d1   : > { %v4982_v49 = vpack.c.bf16 %v3971_v45, %v3971_v45  ;;  %v3972_v9 = vmax.f32 %v5597_v46, 0.0 }
 0x1d2   : > { %4294 = vst.msk [vmem:[%s6626_s12 + $0x48] sm:$0xf] %vm4275_vm1, %v4984_v47  ;;  %v4985_v50 = vpack.c.bf16 %v3974_v48, %v3974_v48 }
 0x1d3   : > { %4292 = vst.msk [vmem:[%s6626_s12 + $0x40] sm:$0xf] %vm4275_vm1, %v4982_v49  ;;  %v4983_v10 = vpack.c.bf16 %v3972_v9, %v3972_v9  ;;  %v5528_v51 = vpop.f32.mrb[20].mxu0 }
 0x1d4   : > { %4295 = vst.msk [vmem:[%s6626_s12 + $0x4c] sm:$0xf] %vm4275_vm1, %v4985_v50  ;;  %v5598_v11 = vadd.f32 %v5528_v51, %v6598_v13  ;;  %v3716_v52 = vpop.f32.mrb[21].mxu0 }
 0x1d5   : > { %4293 = vst.msk [vmem:[%s6626_s12 + $0x44] sm:$0xf] %vm4275_vm1, %v4983_v10  ;;  %v5599_v12 = vadd.f32 %v3716_v52, %v6600_v14  ;;  %v5529_v53 = vpop.f32.mrb[22].mxu0 }
 0x1d6   : > { %v3977_v54 = vmax.f32 %v5598_v11, 0.0  ;;  %v5600_v55 = vadd.f32 %v5529_v53, %v6602_v15  ;;  %v3719_v56 = vpop.f32.mrb[23].mxu0 }
 0x1d7   : > { %v3975_v57 = vmax.f32 %v5599_v12, 0.0  ;;  %v5601_v58 = vadd.f32 %v3719_v56, %v6604_v16 }
 0x1d8   : > { %v4988_v59 = vpack.c.bf16 %v3977_v54, %v3977_v54  ;;  %v3978_v60 = vmax.f32 %v5600_v55, 0.0 }
 0x1d9   : > { %v4986_v25 = vpack.c.bf16 %v3975_v57, %v3975_v57  ;;  %v3976_v13 = vmax.f32 %v5601_v58, 0.0 }
 0x1da   : > { %4298 = vst.msk [vmem:[%s6626_s12 + $0x58] sm:$0xf] %vm4275_vm1, %v4988_v59  ;;  %v4989_v26 = vpack.c.bf16 %v3978_v60, %v3978_v60 }
 0x1db   : > { %4296 = vst.msk [vmem:[%s6626_s12 + $0x50] sm:$0xf] %vm4275_vm1, %v4986_v25  ;;  %v4987_v14 = vpack.c.bf16 %v3976_v13, %v3976_v13  ;;  %v5532_v27 = vpop.f32.mrb[24].mxu0 }
 0x1dc   : > { %4299 = vst.msk [vmem:[%s6626_s12 + $0x5c] sm:$0xf] %vm4275_vm1, %v4989_v26  ;;  %v5602_v15 = vadd.f32 %v5532_v27, %v6606_v17  ;;  %v3732_v28 = vpop.f32.mrb[25].mxu0 }
 0x1dd   : > { %4297 = vst.msk [vmem:[%s6626_s12 + $0x54] sm:$0xf] %vm4275_vm1, %v4987_v14  ;;  %v5603_v16 = vadd.f32 %v3732_v28, %v6608_v18  ;;  %v5533_v29 = vpop.f32.mrb[26].mxu0 }
 0x1de   : > { %v3981_v61 = vmax.f32 %v5602_v15, 0.0  ;;  %v5604_v30 = vadd.f32 %v5533_v29, %v6610_v19  ;;  %v3735_v62 = vpop.f32.mrb[27].mxu0 }
 0x1df   : > { %v3979_v31 = vmax.f32 %v5603_v16, 0.0  ;;  %v5605_v63 = vadd.f32 %v3735_v62, %v6612_v20 }
 0x1e0   : > { %v4992_v32 = vpack.c.bf16 %v3981_v61, %v3981_v61  ;;  %v3982_v0 = vmax.f32 %v5604_v30, 0.0 }
 0x1e1   : > { %v4990_v33 = vpack.c.bf16 %v3979_v31, %v3979_v31  ;;  %v3980_v17 = vmax.f32 %v5605_v63, 0.0 }
 0x1e2   : > { %4302 = vst.msk [vmem:[%s6626_s12 + $0x68] sm:$0xf] %vm4275_vm1, %v4992_v32  ;;  %v4993_v1 = vpack.c.bf16 %v3982_v0, %v3982_v0 }
 0x1e3   : > { %4300 = vst.msk [vmem:[%s6626_s12 + $0x60] sm:$0xf] %vm4275_vm1, %v4990_v33  ;;  %v4991_v18 = vpack.c.bf16 %v3980_v17, %v3980_v17  ;;  %v5536_v34 = vpop.f32.mrb[28].mxu0 }
 0x1e4   : > { %4303 = vst.msk [vmem:[%s6626_s12 + $0x6c] sm:$0xf] %vm4275_vm1, %v4993_v1  ;;  %v5606_v19 = vadd.f32 %v5536_v34, %v6614_v21  ;;  %v3748_v3 = vpop.f32.mrb[29].mxu0 }
 0x1e5   : > { %4301 = vst.msk [vmem:[%s6626_s12 + $0x64] sm:$0xf] %vm4275_vm1, %v4991_v18  ;;  %v5607_v20 = vadd.f32 %v3748_v3, %v6616_v22  ;;  %v5537_v35 = vpop.f32.mrb[30].mxu0 }
 0x1e6   : > { %v3985_v36 = vmax.f32 %v5606_v19, 0.0  ;;  %v5608_v5 = vadd.f32 %v5537_v35, %v6618_v23  ;;  %v3751_v7 = vpop.f32.mrb[31].mxu0 }
 0x1e7   : > { %v3983_v37 = vmax.f32 %v5607_v20, 0.0  ;;  %v5609_v2 = vadd.f32 %v3751_v7, %v6620_v24 }
 0x1e8   : > { %v4996_v38 = vpack.c.bf16 %v3985_v36, %v3985_v36  ;;  %v3986_v4 = vmax.f32 %v5608_v5, 0.0 }
 0x1e9   : > { %v4994_v39 = vpack.c.bf16 %v3983_v37, %v3983_v37  ;;  %v3984_v21 = vmax.f32 %v5609_v2, 0.0 }
 0x1ea   : > { %4306 = vst.msk [vmem:[%s6626_s12 + $0x78] sm:$0xf] %vm4275_vm1, %v4996_v38  ;;  %v4997_v6 = vpack.c.bf16 %v3986_v4, %v3986_v4  ;;  %v5396_v40 = vpop.f32.mrb[32].mxu1 }
 0x1eb   : > { %4304 = vst.msk [vmem:[%s6626_s12 + $0x70] sm:$0xf] %vm4275_vm1, %v4994_v39  ;;  %v4995_v22 = vpack.c.bf16 %v3984_v21, %v3984_v21  ;;  %v5540_v8 = vpop.f32.mrb[32].mxu0  ;;  %v2354_v41 = vpop.f32.mrb[33].mxu1 }
 0x1ec   : > { %4307 = vst.msk [vmem:[%s6626_s12 + $0x7c] sm:$0xf] %vm4275_vm1, %v4997_v6  ;;  %v5610_v23 = vadd.f32 %v5540_v8, %v5396_v40  ;;  %v3764_v42 = vpop.f32.mrb[33].mxu0  ;;  %v5397_v24 = vpop.f32.mrb[34].mxu1 }
 0x1ed   : > { %4305 = vst.msk [vmem:[%s6626_s12 + $0x74] sm:$0xf] %vm4275_vm1, %v4995_v22  ;;  %v5611_v43 = vadd.f32 %v3764_v42, %v2354_v41  ;;  %v5541_v44 = vpop.f32.mrb[34].mxu0  ;;  %v2357_v45 = vpop.f32.mrb[35].mxu1 }
 0x1ee   : > { %v3989_v46 = vmax.f32 %v5610_v23, 0.0  ;;  %v5612_v47 = vadd.f32 %v5541_v44, %v5397_v24  ;;  %v3767_v48 = vpop.f32.mrb[35].mxu0 }
 0x1ef   : > { %v3987_v49 = vmax.f32 %v5611_v43, 0.0  ;;  %v5613_v9 = vadd.f32 %v3767_v48, %v2357_v45 }
 0x1f0   : > { %v5000_v50 = vpack.c.bf16 %v3989_v46, %v3989_v46  ;;  %v3990_v10 = vmax.f32 %v5612_v47, 0.0 }
 0x1f1   : > { %v4998_v51 = vpack.c.bf16 %v3987_v49, %v3987_v49  ;;  %v3988_v11 = vmax.f32 %v5613_v9, 0.0 }
 0x1f2   : > { %4310 = vst.msk [vmem:[%s6626_s12 + $0x88] sm:$0xf] %vm4275_vm1, %v5000_v50  ;;  %v5001_v52 = vpack.c.bf16 %v3990_v10, %v3990_v10  ;;  %v5400_v12 = vpop.f32.mrb[36].mxu1 }
 0x1f3   : > { %4308 = vst.msk [vmem:[%s6626_s12 + $0x80] sm:$0xf] %vm4275_vm1, %v4998_v51  ;;  %v4999_v53 = vpack.c.bf16 %v3988_v11, %v3988_v11  ;;  %v5544_v54 = vpop.f32.mrb[36].mxu0  ;;  %v2370_v55 = vpop.f32.mrb[37].mxu1 }
 0x1f4   : > { %4311 = vst.msk [vmem:[%s6626_s12 + $0x8c] sm:$0xf] %vm4275_vm1, %v5001_v52  ;;  %v5614_v56 = vadd.f32 %v5544_v54, %v5400_v12  ;;  %v3780_v57 = vpop.f32.mrb[37].mxu0  ;;  %v5401_v58 = vpop.f32.mrb[38].mxu1 }
 0x1f5   : > { %4309 = vst.msk [vmem:[%s6626_s12 + $0x84] sm:$0xf] %vm4275_vm1, %v4999_v53  ;;  %v5615_v59 = vadd.f32 %v3780_v57, %v2370_v55  ;;  %v5545_v60 = vpop.f32.mrb[38].mxu0  ;;  %v2373_v25 = vpop.f32.mrb[39].mxu1 }
 0x1f6   : > { %v3993_v13 = vmax.f32 %v5614_v56, 0.0  ;;  %v5616_v26 = vadd.f32 %v5545_v60, %v5401_v58  ;;  %v3783_v14 = vpop.f32.mrb[39].mxu0 }
 0x1f7   : > { %v3991_v27 = vmax.f32 %v5615_v59, 0.0  ;;  %v5617_v15 = vadd.f32 %v3783_v14, %v2373_v25 }
 0x1f8   : > { %v5004_v28 = vpack.c.bf16 %v3993_v13, %v3993_v13  ;;  %v3994_v16 = vmax.f32 %v5616_v26, 0.0 }
 0x1f9   : > { %v5002_v29 = vpack.c.bf16 %v3991_v27, %v3991_v27  ;;  %v3992_v61 = vmax.f32 %v5617_v15, 0.0 }
 0x1fa   : > { %4314 = vst.msk [vmem:[%s6626_s12 + $0x98] sm:$0xf] %vm4275_vm1, %v5004_v28  ;;  %v5005_v30 = vpack.c.bf16 %v3994_v16, %v3994_v16  ;;  %v5404_v62 = vpop.f32.mrb[40].mxu1 }
 0x1fb   : > { %4312 = vst.msk [vmem:[%s6626_s12 + $0x90] sm:$0xf] %vm4275_vm1, %v5002_v29  ;;  %v5003_v31 = vpack.c.bf16 %v3992_v61, %v3992_v61  ;;  %v5548_v63 = vpop.f32.mrb[40].mxu0  ;;  %v2386_v32 = vpop.f32.mrb[41].mxu1 }
 0x1fc   : > { %4315 = vst.msk [vmem:[%s6626_s12 + $0x9c] sm:$0xf] %vm4275_vm1, %v5005_v30  ;;  %v5618_v0 = vadd.f32 %v5548_v63, %v5404_v62  ;;  %v3796_v33 = vpop.f32.mrb[41].mxu0  ;;  %v5405_v17 = vpop.f32.mrb[42].mxu1 }
 0x1fd   : > { %4313 = vst.msk [vmem:[%s6626_s12 + $0x94] sm:$0xf] %vm4275_vm1, %v5003_v31  ;;  %v5619_v1 = vadd.f32 %v3796_v33, %v2386_v32  ;;  %v5549_v18 = vpop.f32.mrb[42].mxu0  ;;  %v2389_v34 = vpop.f32.mrb[43].mxu1 }
 0x1fe   : > { %v3997_v19 = vmax.f32 %v5618_v0, 0.0  ;;  %v5620_v3 = vadd.f32 %v5549_v18, %v5405_v17  ;;  %v3799_v20 = vpop.f32.mrb[43].mxu0 }
 0x1ff   : > { %v3995_v35 = vmax.f32 %v5619_v1, 0.0  ;;  %v5621_v36 = vadd.f32 %v3799_v20, %v2389_v34 }
 0x200   : > { %v5008_v5 = vpack.c.bf16 %v3997_v19, %v3997_v19  ;;  %v3998_v7 = vmax.f32 %v5620_v3, 0.0 }
 0x201   : > { %v5006_v37 = vpack.c.bf16 %v3995_v35, %v3995_v35  ;;  %v3996_v2 = vmax.f32 %v5621_v36, 0.0 }
 0x202   : > { %4318 = vst.msk [vmem:[%s6626_s12 + $0xa8] sm:$0xf] %vm4275_vm1, %v5008_v5  ;;  %v5009_v38 = vpack.c.bf16 %v3998_v7, %v3998_v7  ;;  %v5408_v4 = vpop.f32.mrb[44].mxu1 }
 0x203   : > { %4316 = vst.msk [vmem:[%s6626_s12 + $0xa0] sm:$0xf] %vm4275_vm1, %v5006_v37  ;;  %v5007_v39 = vpack.c.bf16 %v3996_v2, %v3996_v2  ;;  %v5552_v21 = vpop.f32.mrb[44].mxu0  ;;  %v2402_v6 = vpop.f32.mrb[45].mxu1 }
 0x204   : > { %4319 = vst.msk [vmem:[%s6626_s12 + $0xac] sm:$0xf] %vm4275_vm1, %v5009_v38  ;;  %v5622_v40 = vadd.f32 %v5552_v21, %v5408_v4  ;;  %v3812_v22 = vpop.f32.mrb[45].mxu0  ;;  %v5409_v8 = vpop.f32.mrb[46].mxu1 }
 0x205   : > { %4317 = vst.msk [vmem:[%s6626_s12 + $0xa4] sm:$0xf] %vm4275_vm1, %v5007_v39  ;;  %v5623_v41 = vadd.f32 %v3812_v22, %v2402_v6  ;;  %v5553_v23 = vpop.f32.mrb[46].mxu0  ;;  %v2405_v42 = vpop.f32.mrb[47].mxu1 }
 0x206   : > { %v4001_v24 = vmax.f32 %v5622_v40, 0.0  ;;  %v5624_v43 = vadd.f32 %v5553_v23, %v5409_v8  ;;  %v3815_v44 = vpop.f32.mrb[47].mxu0 }
 0x207   : > { %v3999_v45 = vmax.f32 %v5623_v41, 0.0  ;;  %v5625_v46 = vadd.f32 %v3815_v44, %v2405_v42 }
 0x208   : > { %v5012_v47 = vpack.c.bf16 %v4001_v24, %v4001_v24  ;;  %v4002_v48 = vmax.f32 %v5624_v43, 0.0 }
 0x209   : > { %v5010_v49 = vpack.c.bf16 %v3999_v45, %v3999_v45  ;;  %v4000_v9 = vmax.f32 %v5625_v46, 0.0 }
 0x20a   : > { %4322 = vst.msk [vmem:[%s6626_s12 + $0xb8] sm:$0xf] %vm4275_vm1, %v5012_v47  ;;  %v5013_v50 = vpack.c.bf16 %v4002_v48, %v4002_v48  ;;  %v5412_v10 = vpop.f32.mrb[48].mxu1 }
 0x20b   : > { %4320 = vst.msk [vmem:[%s6626_s12 + $0xb0] sm:$0xf] %vm4275_vm1, %v5010_v49  ;;  %v5011_v51 = vpack.c.bf16 %v4000_v9, %v4000_v9  ;;  %v5556_v11 = vpop.f32.mrb[48].mxu0  ;;  %v2418_v52 = vpop.f32.mrb[49].mxu1 }
 0x20c   : > { %4323 = vst.msk [vmem:[%s6626_s12 + $0xbc] sm:$0xf] %vm4275_vm1, %v5013_v50  ;;  %v5626_v12 = vadd.f32 %v5556_v11, %v5412_v10  ;;  %v3828_v53 = vpop.f32.mrb[49].mxu0  ;;  %v5413_v54 = vpop.f32.mrb[50].mxu1 }
 0x20d   : > { %4321 = vst.msk [vmem:[%s6626_s12 + $0xb4] sm:$0xf] %vm4275_vm1, %v5011_v51  ;;  %v5627_v55 = vadd.f32 %v3828_v53, %v2418_v52  ;;  %v5557_v56 = vpop.f32.mrb[50].mxu0  ;;  %v2421_v57 = vpop.f32.mrb[51].mxu1 }
 0x20e   : > { %v4005_v58 = vmax.f32 %v5626_v12, 0.0  ;;  %v5628_v59 = vadd.f32 %v5557_v56, %v5413_v54  ;;  %v3831_v60 = vpop.f32.mrb[51].mxu0 }
 0x20f   : > { %v4003_v25 = vmax.f32 %v5627_v55, 0.0  ;;  %v5629_v13 = vadd.f32 %v3831_v60, %v2421_v57 }
 0x210   : > { %v5016_v26 = vpack.c.bf16 %v4005_v58, %v4005_v58  ;;  %v4006_v14 = vmax.f32 %v5628_v59, 0.0 }
 0x211   : > { %v5014_v27 = vpack.c.bf16 %v4003_v25, %v4003_v25  ;;  %v4004_v15 = vmax.f32 %v5629_v13, 0.0 }
 0x212   : > { %4326 = vst.msk [vmem:[%s6626_s12 + $0xc8] sm:$0xf] %vm4275_vm1, %v5016_v26  ;;  %v5017_v28 = vpack.c.bf16 %v4006_v14, %v4006_v14  ;;  %v5416_v16 = vpop.f32.mrb[52].mxu1 }
 0x213   : > { %4324 = vst.msk [vmem:[%s6626_s12 + $0xc0] sm:$0xf] %vm4275_vm1, %v5014_v27  ;;  %v5015_v29 = vpack.c.bf16 %v4004_v15, %v4004_v15  ;;  %v5560_v61 = vpop.f32.mrb[52].mxu0  ;;  %v2434_v30 = vpop.f32.mrb[53].mxu1 }
 0x214   : > { %4327 = vst.msk [vmem:[%s6626_s12 + $0xcc] sm:$0xf] %vm4275_vm1, %v5017_v28  ;;  %v5630_v62 = vadd.f32 %v5560_v61, %v5416_v16  ;;  %v3844_v31 = vpop.f32.mrb[53].mxu0  ;;  %v5417_v63 = vpop.f32.mrb[54].mxu1 }
 0x215   : > { %4325 = vst.msk [vmem:[%s6626_s12 + $0xc4] sm:$0xf] %vm4275_vm1, %v5015_v29  ;;  %v5631_v32 = vadd.f32 %v3844_v31, %v2434_v30  ;;  %v5561_v0 = vpop.f32.mrb[54].mxu0  ;;  %v2437_v33 = vpop.f32.mrb[55].mxu1 }
 0x216   : > { %v4009_v17 = vmax.f32 %v5630_v62, 0.0  ;;  %v5632_v1 = vadd.f32 %v5561_v0, %v5417_v63  ;;  %v3847_v18 = vpop.f32.mrb[55].mxu0 }
 0x217   : > { %v4007_v34 = vmax.f32 %v5631_v32, 0.0  ;;  %v5633_v19 = vadd.f32 %v3847_v18, %v2437_v33 }
 0x218   : > { %v5020_v3 = vpack.c.bf16 %v4009_v17, %v4009_v17  ;;  %v4010_v20 = vmax.f32 %v5632_v1, 0.0 }
 0x219   : > { %v5018_v35 = vpack.c.bf16 %v4007_v34, %v4007_v34  ;;  %v4008_v36 = vmax.f32 %v5633_v19, 0.0 }
 0x21a   : > { %4330 = vst.msk [vmem:[%s6626_s12 + $0xd8] sm:$0xf] %vm4275_vm1, %v5020_v3  ;;  %v5021_v5 = vpack.c.bf16 %v4010_v20, %v4010_v20  ;;  %v5420_v7 = vpop.f32.mrb[56].mxu1 }
 0x21b   : > { %4328 = vst.msk [vmem:[%s6626_s12 + $0xd0] sm:$0xf] %vm4275_vm1, %v5018_v35  ;;  %v5019_v37 = vpack.c.bf16 %v4008_v36, %v4008_v36  ;;  %v5564_v2 = vpop.f32.mrb[56].mxu0  ;;  %v2450_v38 = vpop.f32.mrb[57].mxu1 }
 0x21c   : > { %4331 = vst.msk [vmem:[%s6626_s12 + $0xdc] sm:$0xf] %vm4275_vm1, %v5021_v5  ;;  %v5634_v4 = vadd.f32 %v5564_v2, %v5420_v7  ;;  %v3860_v39 = vpop.f32.mrb[57].mxu0  ;;  %v5421_v21 = vpop.f32.mrb[58].mxu1 }
 0x21d   : > { %4329 = vst.msk [vmem:[%s6626_s12 + $0xd4] sm:$0xf] %vm4275_vm1, %v5019_v37  ;;  %v5635_v6 = vadd.f32 %v3860_v39, %v2450_v38  ;;  %v5565_v40 = vpop.f32.mrb[58].mxu0  ;;  %v2453_v22 = vpop.f32.mrb[59].mxu1 }
 0x21e   : > { %v4013_v8 = vmax.f32 %v5634_v4, 0.0  ;;  %v5636_v41 = vadd.f32 %v5565_v40, %v5421_v21  ;;  %v3863_v23 = vpop.f32.mrb[59].mxu0 }
 0x21f   : > { %v4011_v42 = vmax.f32 %v5635_v6, 0.0  ;;  %v5637_v24 = vadd.f32 %v3863_v23, %v2453_v22 }
 0x220   : > { %v5024_v43 = vpack.c.bf16 %v4013_v8, %v4013_v8  ;;  %v4014_v44 = vmax.f32 %v5636_v41, 0.0 }
 0x221   : > { %v5022_v45 = vpack.c.bf16 %v4011_v42, %v4011_v42  ;;  %v4012_v46 = vmax.f32 %v5637_v24, 0.0 }
 0x222   : > { %4334 = vst.msk [vmem:[%s6626_s12 + $0xe8] sm:$0xf] %vm4275_vm1, %v5024_v43  ;;  %v5025_v47 = vpack.c.bf16 %v4014_v44, %v4014_v44  ;;  %v5424_v48 = vpop.f32.mrb[60].mxu1 }
 0x223   : > { %4332 = vst.msk [vmem:[%s6626_s12 + $0xe0] sm:$0xf] %vm4275_vm1, %v5022_v45  ;;  %v5023_v49 = vpack.c.bf16 %v4012_v46, %v4012_v46  ;;  %v5568_v9 = vpop.f32.mrb[60].mxu0  ;;  %v2466_v50 = vpop.f32.mrb[61].mxu1 }
 0x224   : > { %4335 = vst.msk [vmem:[%s6626_s12 + $0xec] sm:$0xf] %vm4275_vm1, %v5025_v47  ;;  %v5638_v10 = vadd.f32 %v5568_v9, %v5424_v48  ;;  %v3876_v51 = vpop.f32.mrb[61].mxu0  ;;  %v5425_v11 = vpop.f32.mrb[62].mxu1 }
 0x225   : > { %4333 = vst.msk [vmem:[%s6626_s12 + $0xe4] sm:$0xf] %vm4275_vm1, %v5023_v49  ;;  %v5639_v52 = vadd.f32 %v3876_v51, %v2466_v50  ;;  %v5569_v12 = vpop.f32.mrb[62].mxu0  ;;  %v2469_v53 = vpop.f32.mrb[63].mxu1 }
 0x226   : > { %v4017_v54 = vmax.f32 %v5638_v10, 0.0  ;;  %v5640_v55 = vadd.f32 %v5569_v12, %v5425_v11  ;;  %v3879_v56 = vpop.f32.mrb[63].mxu0 }
 0x227   : > { %v4015_v57 = vmax.f32 %v5639_v52, 0.0  ;;  %v5641_v58 = vadd.f32 %v3879_v56, %v2469_v53 }
 0x228   : > { %v5028_v59 = vpack.c.bf16 %v4017_v54, %v4017_v54  ;;  %v4018_v60 = vmax.f32 %v5640_v55, 0.0 }
 0x229   : > { %v5026_v25 = vpack.c.bf16 %v4015_v57, %v4015_v57  ;;  %v4016_v13 = vmax.f32 %v5641_v58, 0.0 }
 0x22a   : > { %4338 = vst.msk [vmem:[%s6626_s12 + $0xf8] sm:$0xf] %vm4275_vm1, %v5028_v59  ;;  %v5029_v26 = vpack.c.bf16 %v4018_v60, %v4018_v60 }
 0x22b   : > { %4336 = vst.msk [vmem:[%s6626_s12 + $0xf0] sm:$0xf] %vm4275_vm1, %v5026_v25  ;;  %v5027_v14 = vpack.c.bf16 %v4016_v13, %v4016_v13 }
 0x22c   : > { %4339 = vst.msk [vmem:[%s6626_s12 + $0xfc] sm:$0xf] %vm4275_vm1, %v5029_v26 }
 0x22d   : > { %4337 = vst.msk [vmem:[%s6626_s12 + $0xf4] sm:$0xf] %vm4275_vm1, %v5027_v14 }
 0x22e PF: > { %s20_s15 = sadd.s32 1, %s6061_s15   ;;  %s6800_s13 = smov %s6057_s14 }
 0x22f   : > { %p17_p5 = scmp.ge.s32.totalorder %s20_s15, 6   ;;  %s6801_s14 = smov %s6803_s16 }
 0x231   :  { %19 = sbr.rel (!%p17_p5) target bundleno = 2 (0x2), region = 117 }

</bundles_post_ra>
